<compile_context>
chip_gen: v6e
topology: v6e:2x2x1
jax: 0.10.0
libtpu: 0.0.40
codegen_flags: <defaults>
</compile_context>

<pallas_src>
import functools

import jax
import jax.numpy as jnp
from jax import lax
from jax.experimental import pallas as pl
from jax.experimental.pallas import tpu as pltpu


# ---------------------------------------------------------------------------
# in-kernel helper: build the (2C, 2C) per-channel whiten+gamma matrix and the
# mean-folded (1, 2C) bias from raw sums.  Everything here is (1, C)-sized.
# ---------------------------------------------------------------------------
def _ln_affine_matrix(s1, s2, sc, g, b, inv_S, C, eps):
    mu = s1 * inv_S                                   # (1, 2C) [mu_r | mu_i]
    var = s2 * inv_S - mu * mu                        # (1, 2C) [vrr | vii]
    mur, mui = mu[:, :C], mu[:, C:]
    vrr = var[:, :C] + eps
    vii = var[:, C:] + eps
    vri = sc * inv_S - mur * mui                      # (1, C)

    tau = vrr + vii
    delta = jnp.maximum(vrr * vii - vri * vri, 1e-12)
    s = jnp.sqrt(delta)
    t = jnp.sqrt(tau + 2.0 * s)
    inv_st = pl.reciprocal(s * t, approx=True)        # EUP slot, ~free
    wrr = (vii + s) * inv_st
    wii = (vrr + s) * inv_st
    wri = -vri * inv_st

    grr, gri, gii = g[0:1, :], g[1:2, :], g[2:3, :]   # (1, C) each
    br, bi = b[0:1, :], b[1:2, :]
    # fold gamma into the whitening 2x2 (per channel)
    arr = grr * wrr + gri * wri
    ari = grr * wri + gri * wii
    air = gri * wrr + gii * wri
    aii = gri * wri + gii * wii
    # fold the mean subtraction into the bias
    b_r = br - (arr * mur + ari * mui)
    b_i = bi - (air * mur + aii * mui)

    Av = jnp.concatenate([arr, aii], axis=-1)         # diag values, indexed by column
    Bv = jnp.concatenate([ari, air], axis=-1)         # cross values, indexed by column
    beta = jnp.concatenate([b_r, b_i], axis=-1)       # (1, 2C)

    kk = lax.broadcasted_iota(jnp.int32, (2 * C, 2 * C), 0)
    jj = lax.broadcasted_iota(jnp.int32, (2 * C, 2 * C), 1)
    M = (jnp.where(kk == jj, Av, 0.0)
         + jnp.where(jnp.abs(kk - jj) == C, Bv, 0.0))  # (2C, 2C)
    return M, beta


# ---------------------------------------------------------------------------
# Fully fused kernel: LN1 + ReLU + 3x3 complex conv + LN2 + ReLU + stride-2 1x1
# complex conv, one sample per grid step.  Nothing intermediate touches HBM.
# ---------------------------------------------------------------------------
def _down_fused_kernel(x_ref, g1_ref, b1_ref, w1_ref, g2_ref, b2_ref, w2_ref,
                       o_ref, a_scr, y1_scr, *,
                       Cin, C1, C2, H, W, Wpad, shift, eps):
    P = (H + 3) * Wpad
    Hw = H * Wpad
    Hs, Ws = H // 2, W // 2
    inv_S = 1.0 / (H * W)

    # ---------------- LN1 statistics (pads are exact zeros -> plain sums) ----------------
    x = x_ref[...]                                    # (P, 2*Cin) f32
    s1 = jnp.sum(x, axis=0, keepdims=True)            # (1, 2Cin)
    s2 = jnp.sum(x * x, axis=0, keepdims=True)        # (1, 2Cin)
    sc = jnp.sum(x[:, :Cin] * x[:, Cin:], axis=0, keepdims=True)   # (1, Cin)
    M1, beta1 = _ln_affine_matrix(s1, s2, sc, g1_ref[...], b1_ref[...], inv_S, Cin, eps)

    # ------------- LN1 whiten+affine as ONE small matmul (MXU) + ReLU + pad re-zero -------------
    y_pre = jnp.dot(x, M1, preferred_element_type=jnp.float32) + beta1     # (P, 2Cin)
    pos = lax.broadcasted_iota(jnp.int32, (P, 1), 0)
    rr = pos >> shift                                  # Wpad is a power of two
    cc = pos & (Wpad - 1)
    valid = (rr >= 1) & (rr <= H) & (cc >= 1) & (cc <= W)                   # (P, 1) bool
    a_scr[...] = jnp.where(valid, jnp.maximum(y_pre, 0.0),
                           0.0).astype(jnp.bfloat16)   # single bf16 cast, staged in VMEM

    # ---------------- 3x3 complex conv: 9 shifted stacked matmuls (f32 accumulate) ----------------
    acc = jnp.zeros((Hw, 2 * C1), jnp.float32)
    for t in range(9):
        ky, kx = divmod(t, 3)
        off = ky * Wpad + kx                           # ky*Wpad is tile-aligned
        a_t = a_scr[pl.ds(off, Hw), :]                 # (Hw, 2Cin) bf16 read from scratch
        acc = acc + jnp.dot(a_t, w1_ref[t], preferred_element_type=jnp.float32)
    y1_scr[...] = acc                                  # stage wide conv1 output in VMEM

    # ---------------- LN2 statistics over the H*W valid wide outputs ----------------
    # Wide columns >= W are junk; with zero-padded inputs only columns {W, Wpad-1}
    # can be nonzero, so subtract just those from the plain sums.
    t1 = jnp.sum(acc, axis=0, keepdims=True)
    t2 = jnp.sum(acc * acc, axis=0, keepdims=True)
    tc = jnp.sum(acc[:, :C1] * acc[:, C1:], axis=0, keepdims=True)
    for col in (W, Wpad - 1):
        g = y1_scr[pl.ds(col, H, Wpad), :]             # (H, 2C1) strided read of one column
        t1 = t1 - jnp.sum(g, axis=0, keepdims=True)
        t2 = t2 - jnp.sum(g * g, axis=0, keepdims=True)
        tc = tc - jnp.sum(g[:, :C1] * g[:, C1:], axis=0, keepdims=True)
    M2, beta2 = _ln_affine_matrix(t1, t2, tc, g2_ref[...], b2_ref[...], inv_S, C1, eps)

    # -------- stride-(2,2) subsample straight out of VMEM, LN2 affine + ReLU + 1x1 conv --------
    sub = jnp.concatenate(
        [y1_scr[pl.ds(2 * r * Wpad, Ws, 2), :] for r in range(Hs)], axis=0)  # (Ms, 2C1)
    z = jnp.dot(sub, M2, preferred_element_type=jnp.float32) + beta2
    z = jnp.maximum(z, 0.0).astype(jnp.bfloat16)
    o_ref[...] = jnp.dot(z, w2_ref[...], preferred_element_type=jnp.float32)  # (Ms, 2C2)


# ---------------------------------------------------------------------------
# wrapper
# ---------------------------------------------------------------------------
def _stack_complex_weight(wr, wi):
    """(Cout, Cin) real/imag kernels -> (2*Cin, 2*Cout) = [[Wr^T, Wi^T], [-Wi^T, Wr^T]]."""
    wrt = wr.astype(jnp.float32).T
    wit = wi.astype(jnp.float32).T
    top = jnp.concatenate([wrt, wit], axis=1)
    bot = jnp.concatenate([-wit, wrt], axis=1)
    return jnp.concatenate([top, bot], axis=0)


def down_forward(params, x, *, eps=1e-4):
    """x: (N, 2*Cin, H, W) NCHW float32 -> (N, 2*C2, H//2, W//2)."""
    N, C2in, H, W = x.shape
    Cin = C2in // 2
    wr1, wi1 = params["conv1_wr"], params["conv1_wi"]
    wr2, wi2 = params["conv2_wr"], params["conv2_wi"]
    C1 = wr1.shape[0]
    C2 = wr2.shape[0]
    assert H % 2 == 0 and W % 2 == 0, "down halves the spatial dims"

    # power-of-two padded row width: tap offsets ky*Wpad are tile-aligned and the
    # in-kernel pad-mask decode is shift/and.
    Wpad = max(16, pl.next_power_of_2(W + 2))
    shift = Wpad.bit_length() - 1
    P = (H + 3) * Wpad                 # top pad 1, data H, bottom pad >=2 (keeps taps in-bounds)
    Hw = H * Wpad
    Hs, Ws = H // 2, W // 2
    Ms = Hs * Ws

    # single NCHW -> channels-last relayout + zero pad; flatten padded spatial onto sublanes
    xcl = jnp.transpose(x, (0, 2, 3, 1)).astype(jnp.float32)              # (N, H, W, 2Cin)
    xp = jnp.pad(xcl, ((0, 0), (1, 2), (1, Wpad - W - 1), (0, 0)))        # (N, H+3, Wpad, 2Cin)
    xp = xp.reshape(N, P, 2 * Cin)

    ln1, ln2 = params["ln1"], params["ln2"]
    g1 = jnp.stack([ln1["grr"], ln1["gri"], ln1["gii"]], 0).astype(jnp.float32)   # (3, Cin)
    b1 = jnp.stack([ln1["beta"][:Cin], ln1["beta"][Cin:]], 0).astype(jnp.float32)  # (2, Cin)
    g2 = jnp.stack([ln2["grr"], ln2["gri"], ln2["gii"]], 0).astype(jnp.float32)   # (3, C1)
    b2 = jnp.stack([ln2["beta"][:C1], ln2["beta"][C1:]], 0).astype(jnp.float32)    # (2, C1)

    # stacked complex weights (bf16 MXU operands)
    w1s = jnp.stack(
        [_stack_complex_weight(wr1[:, :, t // 3, t % 3], wi1[:, :, t // 3, t % 3])
         for t in range(9)], axis=0).astype(jnp.bfloat16)                 # (9, 2Cin, 2C1)
    w2s = _stack_complex_weight(wr2[:, :, 0, 0], wi2[:, :, 0, 0]).astype(jnp.bfloat16)

    # derive the VMEM limit from the actual block + scratch sizes (don't hard-code 32MiB)
    blk_bytes = (P * 2 * Cin * 4 + Ms * 2 * C2 * 4)
    scr_bytes = P * 2 * Cin * 2 + Hw * 2 * C1 * 4
    wgt_bytes = (9 * 2 * Cin * 2 * C1 + 2 * C1 * 2 * C2) * 2 + (5 * Cin + 5 * C1) * 4
    est = 2 * blk_bytes + scr_bytes + wgt_bytes + (1 << 20)
    vmem_limit = int(min(100 * 2**20, max(32 * 2**20, 4 * est)))

    kernel = functools.partial(
        _down_fused_kernel, Cin=Cin, C1=C1, C2=C2, H=H, W=W, Wpad=Wpad,
        shift=shift, eps=eps)

    y2 = pl.pallas_call(
        kernel,
        out_shape=jax.ShapeDtypeStruct((N, Ms, 2 * C2), jnp.float32),
        grid=(N,),
        in_specs=[
            pl.BlockSpec((None, P, 2 * Cin), lambda n: (n, 0, 0)),
            pl.BlockSpec((3, Cin), lambda n: (0, 0)),
            pl.BlockSpec((2, Cin), lambda n: (0, 0)),
            pl.BlockSpec((9, 2 * Cin, 2 * C1), lambda n: (0, 0, 0)),
            pl.BlockSpec((3, C1), lambda n: (0, 0)),
            pl.BlockSpec((2, C1), lambda n: (0, 0)),
            pl.BlockSpec((2 * C1, 2 * C2), lambda n: (0, 0)),
        ],
        out_specs=pl.BlockSpec((None, Ms, 2 * C2), lambda n: (n, 0, 0)),
        scratch_shapes=[
            pltpu.VMEM((P, 2 * Cin), jnp.bfloat16),    # LN1+ReLU activation (tap source)
            pltpu.VMEM((Hw, 2 * C1), jnp.float32),     # wide conv1 output (never hits HBM)
        ],
        compiler_params=pltpu.CompilerParams(
            dimension_semantics=("parallel",),
            vmem_limit_bytes=vmem_limit),
    )(xp, g1, b1, w1s, g2, b2, w2s)

    # back to the external NCHW interface
    return y2.reshape(N, Hs, Ws, 2 * C2).transpose(0, 3, 1, 2)


# ---------------------------------------------------------------------------
# parameters
# ---------------------------------------------------------------------------
def init_down_params(key, cin, c1, c2):
    ks = jax.random.split(key, 4)

    def winit(k, shape, fan_in):
        return jax.random.normal(k, shape, jnp.float32) * jnp.sqrt(1.0 / fan_in)

    def ln_params(c):
        return {
            "grr": jnp.full((c,), 1.0 / jnp.sqrt(2.0), jnp.float32),
            "gri": jnp.zeros((c,), jnp.float32),
            "gii": jnp.full((c,), 1.0 / jnp.sqrt(2.0), jnp.float32),
            "beta": jnp.zeros((2 * c,), jnp.float32),
        }

    return {
        "ln1": ln_params(cin),
        "conv1_wr": winit(ks[0], (c1, cin, 3, 3), cin * 9),
        "conv1_wi": winit(ks[1], (c1, cin, 3, 3), cin * 9),
        "ln2": ln_params(c1),
        "conv2_wr": winit(ks[2], (c2, c1, 1, 1), c1),
        "conv2_wi": winit(ks[3], (c2, c1, 1, 1), c1),
    }


# ---------------------------------------------------------------------------
# pure-JAX reference (matmul operands cast to bf16 to mirror the kernel)
# ---------------------------------------------------------------------------
def _reference_down(params, x, *, eps=1e-4):
    Cin = x.shape[1] // 2

    def ln_relu(z, ln, C):
        zr, zi = z[:, :C], z[:, C:]
        mu_r = jnp.mean(zr, axis=(2, 3), keepdims=True)
        mu_i = jnp.mean(zi, axis=(2, 3), keepdims=True)
        cr, ci = zr - mu_r, zi - mu_i
        vrr = jnp.mean(cr * cr, axis=(2, 3), keepdims=True) + eps
        vii = jnp.mean(ci * ci, axis=(2, 3), keepdims=True) + eps
        vri = jnp.mean(cr * ci, axis=(2, 3), keepdims=True)
        s = jnp.sqrt(jnp.maximum(vrr * vii - vri * vri, 1e-12))
        t = jnp.sqrt(vrr + vii + 2.0 * s)
        inv_st = 1.0 / (s * t)
        wrr, wii, wri = (vii + s) * inv_st, (vrr + s) * inv_st, -vri * inv_st
        xr = wrr * cr + wri * ci
        xi = wri * cr + wii * ci
        rs = lambda v: v.reshape(1, C, 1, 1)
        yr = rs(ln["grr"]) * xr + rs(ln["gri"]) * xi + rs(ln["beta"][:C])
        yi = rs(ln["gri"]) * xr + rs(ln["gii"]) * xi + rs(ln["beta"][C:])
        return jnp.concatenate([jnp.maximum(yr, 0.0), jnp.maximum(yi, 0.0)], axis=1)

    def cconv(z, wr, wi, stride, pad, C):
        conv = lambda a, w: lax.conv_general_dilated(
            a.astype(jnp.bfloat16), w.astype(jnp.bfloat16),
            window_strides=stride, padding=[(pad, pad), (pad, pad)],
            dimension_numbers=("NCHW", "OIHW", "NCHW"),
            preferred_element_type=jnp.float32)
        zr, zi = z[:, :C], z[:, C:]
        return jnp.concatenate([conv(zr, wr) - conv(zi, wi),
                                conv(zr, wi) + conv(zi, wr)], axis=1)

    C1 = params["conv1_wr"].shape[0]
    z = ln_relu(x.astype(jnp.float32), params["ln1"], Cin)
    z = cconv(z, params["conv1_wr"], params["conv1_wi"], (1, 1), 1, Cin)
    z = ln_relu(z, params["ln2"], C1)
    z = cconv(z, params["conv2_wr"], params["conv2_wi"], (2, 2), 0, C1)
    return z


if __name__ == "__main__":
    key = jax.random.PRNGKey(0)
    k_x, k_p = jax.random.split(key)

    # in_channels = 2 complex feature maps -> NCHW input (2, 4, 16, 16)
    N, CIN, C1, C2, H, W = 2, 2, 4, 4, 16, 16
    x = jax.random.normal(k_x, (N, 2 * CIN, H, W), jnp.float32)
    params = init_down_params(k_p, CIN, C1, C2)

    out = jax.jit(down_forward)(params, x)
    out = jax.block_until_ready(out)

    expected_shape = (N, 2 * C2, H // 2, W // 2)
    assert out.shape == expected_shape, (out.shape, expected_shape)
    assert bool(jnp.all(jnp.isfinite(out)))

    # loose tolerance: bf16 MXU conv operands + approx reciprocal + single-pass LN stats
    ref = _reference_down(params, x)
    max_err = float(jnp.max(jnp.abs(out - ref)))
    assert max_err < 0.2, max_err

    print("KERNEL_OK")
</pallas_src>

<mosaic_0001>
module attributes {stable_mosaic.version = 11 : i64} {
  func.func @_down_fused_kernel(%arg0: i32, %arg1: memref<1x608x4xf32, #tpu.memory_space<vmem>>, %arg2: memref<3x2xf32, #tpu.memory_space<vmem>>, %arg3: memref<2x2xf32, #tpu.memory_space<vmem>>, %arg4: memref<9x4x8xbf16, #tpu.memory_space<vmem>>, %arg5: memref<3x4xf32, #tpu.memory_space<vmem>>, %arg6: memref<2x4xf32, #tpu.memory_space<vmem>>, %arg7: memref<8x8xbf16, #tpu.memory_space<vmem>>, %arg8: memref<1x64x8xf32, #tpu.memory_space<vmem>>, %arg9: memref<608x4xbf16, #tpu.memory_space<vmem>>, %arg10: memref<512x8xf32, #tpu.memory_space<vmem>>) attributes {dimension_semantics = [#tpu.dimension_semantics<parallel>], iteration_bounds = array<i64: 2>, scalar_prefetch = 0 : i64, scratch_operands = 2 : i64, tpu.core_type = #tpu.core_type<tc>, window_params = [{transform_indices = @transform_0, window_bounds = array<i64: 1, 608, 4>}, {pipeline_mode = #tpu.pipeline_mode<synchronous>, transform_indices = @transform_1, window_bounds = array<i64: 3, 2>}, {pipeline_mode = #tpu.pipeline_mode<synchronous>, transform_indices = @transform_2, window_bounds = array<i64: 2, 2>}, {pipeline_mode = #tpu.pipeline_mode<synchronous>, transform_indices = @transform_3, window_bounds = array<i64: 9, 4, 8>}, {pipeline_mode = #tpu.pipeline_mode<synchronous>, transform_indices = @transform_4, window_bounds = array<i64: 3, 4>}, {pipeline_mode = #tpu.pipeline_mode<synchronous>, transform_indices = @transform_5, window_bounds = array<i64: 2, 4>}, {pipeline_mode = #tpu.pipeline_mode<synchronous>, transform_indices = @transform_6, window_bounds = array<i64: 8, 8>}, {transform_indices = @transform_7, window_bounds = array<i64: 1, 64, 8>}]} {
    %c0 = arith.constant 0 : index
    %c0_0 = arith.constant 0 : index
    %c0_1 = arith.constant 0 : index
    %0 = vector.load %arg1[%c0, %c0_0, %c0_1] : memref<1x608x4xf32, #tpu.memory_space<vmem>>, vector<1x608x4xf32>
    %1 = vector.shape_cast %0 : vector<1x608x4xf32> to vector<608x4xf32>
    %cst = arith.constant dense<0.000000e+00> : vector<4xf32>
    %2 = vector.multi_reduction <add>, %1, %cst [0] : vector<608x4xf32> to vector<4xf32>
    %3 = vector.shape_cast %2 : vector<4xf32> to vector<1x4xf32>
    %4 = arith.mulf %1, %1 : vector<608x4xf32>
    %cst_2 = arith.constant dense<0.000000e+00> : vector<4xf32>
    %5 = vector.multi_reduction <add>, %4, %cst_2 [0] : vector<608x4xf32> to vector<4xf32>
    %6 = vector.shape_cast %5 : vector<4xf32> to vector<1x4xf32>
    %7 = vector.extract_strided_slice %1 {offsets = [0, 0], sizes = [608, 2], strides = [1, 1]} : vector<608x4xf32> to vector<608x2xf32>
    %8 = vector.extract_strided_slice %1 {offsets = [0, 2], sizes = [608, 2], strides = [1, 1]} : vector<608x4xf32> to vector<608x2xf32>
    %9 = arith.mulf %7, %8 : vector<608x2xf32>
    %cst_3 = arith.constant dense<0.000000e+00> : vector<2xf32>
    %10 = vector.multi_reduction <add>, %9, %cst_3 [0] : vector<608x2xf32> to vector<2xf32>
    %11 = vector.shape_cast %10 : vector<2xf32> to vector<1x2xf32>
    %c0_4 = arith.constant 0 : index
    %c0_5 = arith.constant 0 : index
    %12 = vector.load %arg2[%c0_4, %c0_5] : memref<3x2xf32, #tpu.memory_space<vmem>>, vector<3x2xf32>
    %c0_6 = arith.constant 0 : index
    %c0_7 = arith.constant 0 : index
    %13 = vector.load %arg3[%c0_6, %c0_7] : memref<2x2xf32, #tpu.memory_space<vmem>>, vector<2x2xf32>
    %cst_8 = arith.constant 3.906250e-03 : f32
    %14 = vector.broadcast %cst_8 : f32 to vector<1x4xf32>
    %15 = arith.mulf %3, %14 : vector<1x4xf32>
    %cst_9 = arith.constant 3.906250e-03 : f32
    %16 = vector.broadcast %cst_9 : f32 to vector<1x4xf32>
    %17 = arith.mulf %6, %16 : vector<1x4xf32>
    %18 = arith.mulf %15, %15 : vector<1x4xf32>
    %19 = arith.subf %17, %18 : vector<1x4xf32>
    %20 = vector.extract_strided_slice %15 {offsets = [0, 0], sizes = [1, 2], strides = [1, 1]} : vector<1x4xf32> to vector<1x2xf32>
    %21 = vector.extract_strided_slice %15 {offsets = [0, 2], sizes = [1, 2], strides = [1, 1]} : vector<1x4xf32> to vector<1x2xf32>
    %22 = vector.extract_strided_slice %19 {offsets = [0, 0], sizes = [1, 2], strides = [1, 1]} : vector<1x4xf32> to vector<1x2xf32>
    %cst_10 = arith.constant 9.99999974E-5 : f32
    %23 = vector.broadcast %cst_10 : f32 to vector<1x2xf32>
    %24 = arith.addf %22, %23 : vector<1x2xf32>
    %25 = vector.extract_strided_slice %19 {offsets = [0, 2], sizes = [1, 2], strides = [1, 1]} : vector<1x4xf32> to vector<1x2xf32>
    %cst_11 = arith.constant 9.99999974E-5 : f32
    %26 = vector.broadcast %cst_11 : f32 to vector<1x2xf32>
    %27 = arith.addf %25, %26 : vector<1x2xf32>
    %cst_12 = arith.constant 3.906250e-03 : f32
    %28 = vector.broadcast %cst_12 : f32 to vector<1x2xf32>
    %29 = arith.mulf %11, %28 : vector<1x2xf32>
    %30 = arith.mulf %20, %21 : vector<1x2xf32>
    %31 = arith.subf %29, %30 : vector<1x2xf32>
    %32 = arith.addf %24, %27 : vector<1x2xf32>
    %33 = arith.mulf %24, %27 : vector<1x2xf32>
    %34 = arith.mulf %31, %31 : vector<1x2xf32>
    %35 = arith.subf %33, %34 : vector<1x2xf32>
    %cst_13 = arith.constant 9.99999996E-13 : f32
    %36 = vector.broadcast %cst_13 : f32 to vector<1x2xf32>
    %37 = arith.maximumf %35, %36 : vector<1x2xf32>
    %38 = math.sqrt %37 : vector<1x2xf32>
    %cst_14 = arith.constant 2.000000e+00 : f32
    %39 = vector.broadcast %cst_14 : f32 to vector<1x2xf32>
    %40 = arith.mulf %39, %38 : vector<1x2xf32>
    %41 = arith.addf %32, %40 : vector<1x2xf32>
    %42 = math.sqrt %41 : vector<1x2xf32>
    %43 = arith.mulf %38, %42 : vector<1x2xf32>
    %44 = tpu.reciprocal %43 {approx = true} : vector<1x2xf32> -> vector<1x2xf32>
    %45 = arith.addf %27, %38 : vector<1x2xf32>
    %46 = arith.mulf %45, %44 : vector<1x2xf32>
    %47 = arith.addf %24, %38 : vector<1x2xf32>
    %48 = arith.mulf %47, %44 : vector<1x2xf32>
    %cst_15 = arith.constant 0.000000e+00 : f32
    %49 = vector.broadcast %cst_15 : f32 to vector<1x2xf32>
    %50 = arith.subf %49, %31 : vector<1x2xf32>
    %51 = arith.mulf %50, %44 : vector<1x2xf32>
    %52 = vector.extract_strided_slice %12 {offsets = [0, 0], sizes = [1, 2], strides = [1, 1]} : vector<3x2xf32> to vector<1x2xf32>
    %53 = vector.extract_strided_slice %12 {offsets = [1, 0], sizes = [1, 2], strides = [1, 1]} : vector<3x2xf32> to vector<1x2xf32>
    %54 = vector.extract_strided_slice %12 {offsets = [2, 0], sizes = [1, 2], strides = [1, 1]} : vector<3x2xf32> to vector<1x2xf32>
    %55 = vector.extract_strided_slice %13 {offsets = [0, 0], sizes = [1, 2], strides = [1, 1]} : vector<2x2xf32> to vector<1x2xf32>
    %56 = vector.extract_strided_slice %13 {offsets = [1, 0], sizes = [1, 2], strides = [1, 1]} : vector<2x2xf32> to vector<1x2xf32>
    %57 = arith.mulf %52, %46 : vector<1x2xf32>
    %58 = arith.mulf %53, %51 : vector<1x2xf32>
    %59 = arith.addf %57, %58 : vector<1x2xf32>
    %60 = arith.mulf %52, %51 : vector<1x2xf32>
    %61 = arith.mulf %53, %48 : vector<1x2xf32>
    %62 = arith.addf %60, %61 : vector<1x2xf32>
    %63 = arith.mulf %53, %46 : vector<1x2xf32>
    %64 = arith.mulf %54, %51 : vector<1x2xf32>
    %65 = arith.addf %63, %64 : vector<1x2xf32>
    %66 = arith.mulf %53, %51 : vector<1x2xf32>
    %67 = arith.mulf %54, %48 : vector<1x2xf32>
    %68 = arith.addf %66, %67 : vector<1x2xf32>
    %69 = arith.mulf %59, %20 : vector<1x2xf32>
    %70 = arith.mulf %62, %21 : vector<1x2xf32>
    %71 = arith.addf %69, %70 : vector<1x2xf32>
    %72 = arith.subf %55, %71 : vector<1x2xf32>
    %73 = arith.mulf %65, %20 : vector<1x2xf32>
    %74 = arith.mulf %68, %21 : vector<1x2xf32>
    %75 = arith.addf %73, %74 : vector<1x2xf32>
    %76 = arith.subf %56, %75 : vector<1x2xf32>
    %77 = tpu.concatenate %59, %68 in 1 : vector<1x2xf32>, vector<1x2xf32> -> vector<1x4xf32>
    %78 = tpu.concatenate %62, %65 in 1 : vector<1x2xf32>, vector<1x2xf32> -> vector<1x4xf32>
    %79 = tpu.concatenate %72, %76 in 1 : vector<1x2xf32>, vector<1x2xf32> -> vector<1x4xf32>
    %80 = tpu.iota {dimensions = array<i32: 0>} : vector<4x4xi32>
    %81 = tpu.iota {dimensions = array<i32: 1>} : vector<4x4xi32>
    %82 = arith.cmpi eq, %80, %81 : vector<4x4xi32>
    %cst_16 = arith.constant 0.000000e+00 : f32
    %83 = vector.shape_cast %77 : vector<1x4xf32> to vector<1x4xf32>
    %84 = vector.broadcast %83 : vector<1x4xf32> to vector<4x4xf32>
    %85 = vector.broadcast %cst_16 : f32 to vector<4x4xf32>
    %86 = arith.select %82, %84, %85 : vector<4x4xi1>, vector<4x4xf32>
    %87 = arith.subi %80, %81 : vector<4x4xi32>
    %88 = math.absi %87 : vector<4x4xi32>
    %c2_i32 = arith.constant 2 : i32
    %89 = vector.broadcast %c2_i32 : i32 to vector<4x4xi32>
    %90 = arith.cmpi eq, %88, %89 : vector<4x4xi32>
    %cst_17 = arith.constant 0.000000e+00 : f32
    %91 = vector.shape_cast %78 : vector<1x4xf32> to vector<1x4xf32>
    %92 = vector.broadcast %91 : vector<1x4xf32> to vector<4x4xf32>
    %93 = vector.broadcast %cst_17 : f32 to vector<4x4xf32>
    %94 = arith.select %90, %92, %93 : vector<4x4xi1>, vector<4x4xf32>
    %95 = arith.addf %86, %94 : vector<4x4xf32>
    %cst_18 = arith.constant dense<0.000000e+00> : vector<608x4xf32>
    %96 = tpu.matmul %1, %95, %cst_18 {dimension_numbers = #tpu.dot_dimension_numbers<[1], [0], [0], [1], [0, 0, 1, 1], [], []>} : vector<608x4xf32>, vector<4x4xf32>, vector<608x4xf32> -> vector<608x4xf32>
    %97 = vector.broadcast %79 : vector<1x4xf32> to vector<608x4xf32>
    %98 = arith.addf %96, %97 : vector<608x4xf32>
    %99 = tpu.iota {dimensions = array<i32: 0>} : vector<608x1xi32>
    %c5_i32 = arith.constant 5 : i32
    %100 = vector.broadcast %c5_i32 : i32 to vector<608x1xi32>
    %101 = arith.shrsi %99, %100 : vector<608x1xi32>
    %c31_i32 = arith.constant 31 : i32
    %102 = vector.broadcast %c31_i32 : i32 to vector<608x1xi32>
    %103 = arith.andi %99, %102 : vector<608x1xi32>
    %c1_i32 = arith.constant 1 : i32
    %104 = vector.broadcast %c1_i32 : i32 to vector<608x1xi32>
    %105 = arith.cmpi sge, %101, %104 : vector<608x1xi32>
    %c16_i32 = arith.constant 16 : i32
    %106 = vector.broadcast %c16_i32 : i32 to vector<608x1xi32>
    %107 = arith.cmpi sle, %101, %106 : vector<608x1xi32>
    %108 = arith.andi %105, %107 : vector<608x1xi1>
    %c1_i32_19 = arith.constant 1 : i32
    %109 = vector.broadcast %c1_i32_19 : i32 to vector<608x1xi32>
    %110 = arith.cmpi sge, %103, %109 : vector<608x1xi32>
    %111 = arith.andi %108, %110 : vector<608x1xi1>
    %c16_i32_20 = arith.constant 16 : i32
    %112 = vector.broadcast %c16_i32_20 : i32 to vector<608x1xi32>
    %113 = arith.cmpi sle, %103, %112 : vector<608x1xi32>
    %114 = arith.andi %111, %113 : vector<608x1xi1>
    %cst_21 = arith.constant 0.000000e+00 : f32
    %115 = vector.broadcast %cst_21 : f32 to vector<608x4xf32>
    %116 = arith.maximumf %98, %115 : vector<608x4xf32>
    %cst_22 = arith.constant 0.000000e+00 : f32
    %117 = vector.shape_cast %114 : vector<608x1xi1> to vector<608x1xi1>
    %118 = vector.broadcast %117 : vector<608x1xi1> to vector<608x4xi1>
    %119 = vector.broadcast %cst_22 : f32 to vector<608x4xf32>
    %120 = arith.select %118, %116, %119 : vector<608x4xi1>, vector<608x4xf32>
    %121 = arith.truncf %120 : vector<608x4xf32> to vector<608x4xbf16>
    %c0_23 = arith.constant 0 : index
    %c0_24 = arith.constant 0 : index
    %122 = vector.load %arg9[%c0_23, %c0_24] : memref<608x4xbf16, #tpu.memory_space<vmem>>, vector<608x4xbf16>
    tpu.vector_store %arg9[%c0_23, %c0_24], %121 {strides = array<i32>} : memref<608x4xbf16, #tpu.memory_space<vmem>>, vector<608x4xbf16>,
    %cst_25 = arith.constant 0.000000e+00 : f32
    %123 = vector.broadcast %cst_25 : f32 to vector<512x8xf32>
    %c0_26 = arith.constant 0 : index
    %c0_27 = arith.constant 0 : index
    %124 = vector.load %arg9[%c0_26, %c0_27] : memref<608x4xbf16, #tpu.memory_space<vmem>>, vector<512x4xbf16>
    %c0_28 = arith.constant 0 : index
    %c0_29 = arith.constant 0 : index
    %c0_30 = arith.constant 0 : index
    %125 = vector.load %arg4[%c0_28, %c0_29, %c0_30] : memref<9x4x8xbf16, #tpu.memory_space<vmem>>, vector<1x4x8xbf16>
    %126 = vector.shape_cast %125 : vector<1x4x8xbf16> to vector<4x8xbf16>
    %cst_31 = arith.constant dense<0.000000e+00> : vector<512x8xf32>
    %127 = tpu.matmul %124, %126, %cst_31 {dimension_numbers = #tpu.dot_dimension_numbers<[1], [0], [0], [1], [0, 0, 1, 1], [], []>} : vector<512x4xbf16>, vector<4x8xbf16>, vector<512x8xf32> -> vector<512x8xf32>
    %128 = arith.addf %123, %127 : vector<512x8xf32>
    %c1 = arith.constant 1 : index
    %c0_32 = arith.constant 0 : index
    %129 = vector.load %arg9[%c1, %c0_32] : memref<608x4xbf16, #tpu.memory_space<vmem>>, vector<512x4xbf16>
    %c1_33 = arith.constant 1 : index
    %c0_34 = arith.constant 0 : index
    %c0_35 = arith.constant 0 : index
    %130 = vector.load %arg4[%c1_33, %c0_34, %c0_35] : memref<9x4x8xbf16, #tpu.memory_space<vmem>>, vector<1x4x8xbf16>
    %131 = vector.shape_cast %130 : vector<1x4x8xbf16> to vector<4x8xbf16>
    %cst_36 = arith.constant dense<0.000000e+00> : vector<512x8xf32>
    %132 = tpu.matmul %129, %131, %cst_36 {dimension_numbers = #tpu.dot_dimension_numbers<[1], [0], [0], [1], [0, 0, 1, 1], [], []>} : vector<512x4xbf16>, vector<4x8xbf16>, vector<512x8xf32> -> vector<512x8xf32>
    %133 = arith.addf %128, %132 : vector<512x8xf32>
    %c2 = arith.constant 2 : index
    %c0_37 = arith.constant 0 : index
    %134 = vector.load %arg9[%c2, %c0_37] : memref<608x4xbf16, #tpu.memory_space<vmem>>, vector<512x4xbf16>
    %c2_38 = arith.constant 2 : index
    %c0_39 = arith.constant 0 : index
    %c0_40 = arith.constant 0 : index
    %135 = vector.load %arg4[%c2_38, %c0_39, %c0_40] : memref<9x4x8xbf16, #tpu.memory_space<vmem>>, vector<1x4x8xbf16>
    %136 = vector.shape_cast %135 : vector<1x4x8xbf16> to vector<4x8xbf16>
    %cst_41 = arith.constant dense<0.000000e+00> : vector<512x8xf32>
    %137 = tpu.matmul %134, %136, %cst_41 {dimension_numbers = #tpu.dot_dimension_numbers<[1], [0], [0], [1], [0, 0, 1, 1], [], []>} : vector<512x4xbf16>, vector<4x8xbf16>, vector<512x8xf32> -> vector<512x8xf32>
    %138 = arith.addf %133, %137 : vector<512x8xf32>
    %c32 = arith.constant 32 : index
    %c0_42 = arith.constant 0 : index
    %139 = vector.load %arg9[%c32, %c0_42] : memref<608x4xbf16, #tpu.memory_space<vmem>>, vector<512x4xbf16>
    %c3 = arith.constant 3 : index
    %c0_43 = arith.constant 0 : index
    %c0_44 = arith.constant 0 : index
    %140 = vector.load %arg4[%c3, %c0_43, %c0_44] : memref<9x4x8xbf16, #tpu.memory_space<vmem>>, vector<1x4x8xbf16>
    %141 = vector.shape_cast %140 : vector<1x4x8xbf16> to vector<4x8xbf16>
    %cst_45 = arith.constant dense<0.000000e+00> : vector<512x8xf32>
    %142 = tpu.matmul %139, %141, %cst_45 {dimension_numbers = #tpu.dot_dimension_numbers<[1], [0], [0], [1], [0, 0, 1, 1], [], []>} : vector<512x4xbf16>, vector<4x8xbf16>, vector<512x8xf32> -> vector<512x8xf32>
    %143 = arith.addf %138, %142 : vector<512x8xf32>
    %c33 = arith.constant 33 : index
    %c0_46 = arith.constant 0 : index
    %144 = vector.load %arg9[%c33, %c0_46] : memref<608x4xbf16, #tpu.memory_space<vmem>>, vector<512x4xbf16>
    %c4 = arith.constant 4 : index
    %c0_47 = arith.constant 0 : index
    %c0_48 = arith.constant 0 : index
    %145 = vector.load %arg4[%c4, %c0_47, %c0_48] : memref<9x4x8xbf16, #tpu.memory_space<vmem>>, vector<1x4x8xbf16>
    %146 = vector.shape_cast %145 : vector<1x4x8xbf16> to vector<4x8xbf16>
    %cst_49 = arith.constant dense<0.000000e+00> : vector<512x8xf32>
    %147 = tpu.matmul %144, %146, %cst_49 {dimension_numbers = #tpu.dot_dimension_numbers<[1], [0], [0], [1], [0, 0, 1, 1], [], []>} : vector<512x4xbf16>, vector<4x8xbf16>, vector<512x8xf32> -> vector<512x8xf32>
    %148 = arith.addf %143, %147 : vector<512x8xf32>
    %c34 = arith.constant 34 : index
    %c0_50 = arith.constant 0 : index
    %149 = vector.load %arg9[%c34, %c0_50] : memref<608x4xbf16, #tpu.memory_space<vmem>>, vector<512x4xbf16>
    %c5 = arith.constant 5 : index
    %c0_51 = arith.constant 0 : index
    %c0_52 = arith.constant 0 : index
    %150 = vector.load %arg4[%c5, %c0_51, %c0_52] : memref<9x4x8xbf16, #tpu.memory_space<vmem>>, vector<1x4x8xbf16>
    %151 = vector.shape_cast %150 : vector<1x4x8xbf16> to vector<4x8xbf16>
    %cst_53 = arith.constant dense<0.000000e+00> : vector<512x8xf32>
    %152 = tpu.matmul %149, %151, %cst_53 {dimension_numbers = #tpu.dot_dimension_numbers<[1], [0], [0], [1], [0, 0, 1, 1], [], []>} : vector<512x4xbf16>, vector<4x8xbf16>, vector<512x8xf32> -> vector<512x8xf32>
    %153 = arith.addf %148, %152 : vector<512x8xf32>
    %c64 = arith.constant 64 : index
    %c0_54 = arith.constant 0 : index
    %154 = vector.load %arg9[%c64, %c0_54] : memref<608x4xbf16, #tpu.memory_space<vmem>>, vector<512x4xbf16>
    %c6 = arith.constant 6 : index
    %c0_55 = arith.constant 0 : index
    %c0_56 = arith.constant 0 : index
    %155 = vector.load %arg4[%c6, %c0_55, %c0_56] : memref<9x4x8xbf16, #tpu.memory_space<vmem>>, vector<1x4x8xbf16>
    %156 = vector.shape_cast %155 : vector<1x4x8xbf16> to vector<4x8xbf16>
    %cst_57 = arith.constant dense<0.000000e+00> : vector<512x8xf32>
    %157 = tpu.matmul %154, %156, %cst_57 {dimension_numbers = #tpu.dot_dimension_numbers<[1], [0], [0], [1], [0, 0, 1, 1], [], []>} : vector<512x4xbf16>, vector<4x8xbf16>, vector<512x8xf32> -> vector<512x8xf32>
    %158 = arith.addf %153, %157 : vector<512x8xf32>
    %c65 = arith.constant 65 : index
    %c0_58 = arith.constant 0 : index
    %159 = vector.load %arg9[%c65, %c0_58] : memref<608x4xbf16, #tpu.memory_space<vmem>>, vector<512x4xbf16>
    %c7 = arith.constant 7 : index
    %c0_59 = arith.constant 0 : index
    %c0_60 = arith.constant 0 : index
    %160 = vector.load %arg4[%c7, %c0_59, %c0_60] : memref<9x4x8xbf16, #tpu.memory_space<vmem>>, vector<1x4x8xbf16>
    %161 = vector.shape_cast %160 : vector<1x4x8xbf16> to vector<4x8xbf16>
    %cst_61 = arith.constant dense<0.000000e+00> : vector<512x8xf32>
    %162 = tpu.matmul %159, %161, %cst_61 {dimension_numbers = #tpu.dot_dimension_numbers<[1], [0], [0], [1], [0, 0, 1, 1], [], []>} : vector<512x4xbf16>, vector<4x8xbf16>, vector<512x8xf32> -> vector<512x8xf32>
    %163 = arith.addf %158, %162 : vector<512x8xf32>
    %c66 = arith.constant 66 : index
    %c0_62 = arith.constant 0 : index
    %164 = vector.load %arg9[%c66, %c0_62] : memref<608x4xbf16, #tpu.memory_space<vmem>>, vector<512x4xbf16>
    %c8 = arith.constant 8 : index
    %c0_63 = arith.constant 0 : index
    %c0_64 = arith.constant 0 : index
    %165 = vector.load %arg4[%c8, %c0_63, %c0_64] : memref<9x4x8xbf16, #tpu.memory_space<vmem>>, vector<1x4x8xbf16>
    %166 = vector.shape_cast %165 : vector<1x4x8xbf16> to vector<4x8xbf16>
    %cst_65 = arith.constant dense<0.000000e+00> : vector<512x8xf32>
    %167 = tpu.matmul %164, %166, %cst_65 {dimension_numbers = #tpu.dot_dimension_numbers<[1], [0], [0], [1], [0, 0, 1, 1], [], []>} : vector<512x4xbf16>, vector<4x8xbf16>, vector<512x8xf32> -> vector<512x8xf32>
    %168 = arith.addf %163, %167 : vector<512x8xf32>
    %c0_66 = arith.constant 0 : index
    %c0_67 = arith.constant 0 : index
    %169 = vector.load %arg10[%c0_66, %c0_67] : memref<512x8xf32, #tpu.memory_space<vmem>>, vector<512x8xf32>
    tpu.vector_store %arg10[%c0_66, %c0_67], %168 {strides = array<i32>} : memref<512x8xf32, #tpu.memory_space<vmem>>, vector<512x8xf32>,
    %cst_68 = arith.constant dense<0.000000e+00> : vector<8xf32>
    %170 = vector.multi_reduction <add>, %168, %cst_68 [0] : vector<512x8xf32> to vector<8xf32>
    %171 = vector.shape_cast %170 : vector<8xf32> to vector<1x8xf32>
    %172 = arith.mulf %168, %168 : vector<512x8xf32>
    %cst_69 = arith.constant dense<0.000000e+00> : vector<8xf32>
    %173 = vector.multi_reduction <add>, %172, %cst_69 [0] : vector<512x8xf32> to vector<8xf32>
    %174 = vector.shape_cast %173 : vector<8xf32> to vector<1x8xf32>
    %175 = vector.extract_strided_slice %168 {offsets = [0, 0], sizes = [512, 4], strides = [1, 1]} : vector<512x8xf32> to vector<512x4xf32>
    %176 = vector.extract_strided_slice %168 {offsets = [0, 4], sizes = [512, 4], strides = [1, 1]} : vector<512x8xf32> to vector<512x4xf32>
    %177 = arith.mulf %175, %176 : vector<512x4xf32>
    %cst_70 = arith.constant dense<0.000000e+00> : vector<4xf32>
    %178 = vector.multi_reduction <add>, %177, %cst_70 [0] : vector<512x4xf32> to vector<4xf32>
    %179 = vector.shape_cast %178 : vector<4xf32> to vector<1x4xf32>
    %c16 = arith.constant 16 : index
    %c0_71 = arith.constant 0 : index
    %180 = tpu.strided_load %arg10[%c16, %c0_71] {strides = array<i32: 32, 1>} : memref<512x8xf32, #tpu.memory_space<vmem>>, vector<16x8xf32>
    %cst_72 = arith.constant dense<0.000000e+00> : vector<8xf32>
    %181 = vector.multi_reduction <add>, %180, %cst_72 [0] : vector<16x8xf32> to vector<8xf32>
    %182 = vector.shape_cast %181 : vector<8xf32> to vector<1x8xf32>
    %183 = arith.subf %171, %182 : vector<1x8xf32>
    %184 = arith.mulf %180, %180 : vector<16x8xf32>
    %cst_73 = arith.constant dense<0.000000e+00> : vector<8xf32>
    %185 = vector.multi_reduction <add>, %184, %cst_73 [0] : vector<16x8xf32> to vector<8xf32>
    %186 = vector.shape_cast %185 : vector<8xf32> to vector<1x8xf32>
    %187 = arith.subf %174, %186 : vector<1x8xf32>
    %188 = vector.extract_strided_slice %180 {offsets = [0, 0], sizes = [16, 4], strides = [1, 1]} : vector<16x8xf32> to vector<16x4xf32>
    %189 = vector.extract_strided_slice %180 {offsets = [0, 4], sizes = [16, 4], strides = [1, 1]} : vector<16x8xf32> to vector<16x4xf32>
    %190 = arith.mulf %188, %189 : vector<16x4xf32>
    %cst_74 = arith.constant dense<0.000000e+00> : vector<4xf32>
    %191 = vector.multi_reduction <add>, %190, %cst_74 [0] : vector<16x4xf32> to vector<4xf32>
    %192 = vector.shape_cast %191 : vector<4xf32> to vector<1x4xf32>
    %193 = arith.subf %179, %192 : vector<1x4xf32>
    %c31 = arith.constant 31 : index
    %c0_75 = arith.constant 0 : index
    %194 = tpu.strided_load %arg10[%c31, %c0_75] {strides = array<i32: 32, 1>} : memref<512x8xf32, #tpu.memory_space<vmem>>, vector<16x8xf32>
    %cst_76 = arith.constant dense<0.000000e+00> : vector<8xf32>
    %195 = vector.multi_reduction <add>, %194, %cst_76 [0] : vector<16x8xf32> to vector<8xf32>
    %196 = vector.shape_cast %195 : vector<8xf32> to vector<1x8xf32>
    %197 = arith.subf %183, %196 : vector<1x8xf32>
    %198 = arith.mulf %194, %194 : vector<16x8xf32>
    %cst_77 = arith.constant dense<0.000000e+00> : vector<8xf32>
    %199 = vector.multi_reduction <add>, %198, %cst_77 [0] : vector<16x8xf32> to vector<8xf32>
    %200 = vector.shape_cast %199 : vector<8xf32> to vector<1x8xf32>
    %201 = arith.subf %187, %200 : vector<1x8xf32>
    %202 = vector.extract_strided_slice %194 {offsets = [0, 0], sizes = [16, 4], strides = [1, 1]} : vector<16x8xf32> to vector<16x4xf32>
    %203 = vector.extract_strided_slice %194 {offsets = [0, 4], sizes = [16, 4], strides = [1, 1]} : vector<16x8xf32> to vector<16x4xf32>
    %204 = arith.mulf %202, %203 : vector<16x4xf32>
    %cst_78 = arith.constant dense<0.000000e+00> : vector<4xf32>
    %205 = vector.multi_reduction <add>, %204, %cst_78 [0] : vector<16x4xf32> to vector<4xf32>
    %206 = vector.shape_cast %205 : vector<4xf32> to vector<1x4xf32>
    %207 = arith.subf %193, %206 : vector<1x4xf32>
    %c0_79 = arith.constant 0 : index
    %c0_80 = arith.constant 0 : index
    %208 = vector.load %arg5[%c0_79, %c0_80] : memref<3x4xf32, #tpu.memory_space<vmem>>, vector<3x4xf32>
    %c0_81 = arith.constant 0 : index
    %c0_82 = arith.constant 0 : index
    %209 = vector.load %arg6[%c0_81, %c0_82] : memref<2x4xf32, #tpu.memory_space<vmem>>, vector<2x4xf32>
    %cst_83 = arith.constant 3.906250e-03 : f32
    %210 = vector.broadcast %cst_83 : f32 to vector<1x8xf32>
    %211 = arith.mulf %197, %210 : vector<1x8xf32>
    %cst_84 = arith.constant 3.906250e-03 : f32
    %212 = vector.broadcast %cst_84 : f32 to vector<1x8xf32>
    %213 = arith.mulf %201, %212 : vector<1x8xf32>
    %214 = arith.mulf %211, %211 : vector<1x8xf32>
    %215 = arith.subf %213, %214 : vector<1x8xf32>
    %216 = vector.extract_strided_slice %211 {offsets = [0, 0], sizes = [1, 4], strides = [1, 1]} : vector<1x8xf32> to vector<1x4xf32>
    %217 = vector.extract_strided_slice %211 {offsets = [0, 4], sizes = [1, 4], strides = [1, 1]} : vector<1x8xf32> to vector<1x4xf32>
    %218 = vector.extract_strided_slice %215 {offsets = [0, 0], sizes = [1, 4], strides = [1, 1]} : vector<1x8xf32> to vector<1x4xf32>
    %cst_85 = arith.constant 9.99999974E-5 : f32
    %219 = vector.broadcast %cst_85 : f32 to vector<1x4xf32>
    %220 = arith.addf %218, %219 : vector<1x4xf32>
    %221 = vector.extract_strided_slice %215 {offsets = [0, 4], sizes = [1, 4], strides = [1, 1]} : vector<1x8xf32> to vector<1x4xf32>
    %cst_86 = arith.constant 9.99999974E-5 : f32
    %222 = vector.broadcast %cst_86 : f32 to vector<1x4xf32>
    %223 = arith.addf %221, %222 : vector<1x4xf32>
    %cst_87 = arith.constant 3.906250e-03 : f32
    %224 = vector.broadcast %cst_87 : f32 to vector<1x4xf32>
    %225 = arith.mulf %207, %224 : vector<1x4xf32>
    %226 = arith.mulf %216, %217 : vector<1x4xf32>
    %227 = arith.subf %225, %226 : vector<1x4xf32>
    %228 = arith.addf %220, %223 : vector<1x4xf32>
    %229 = arith.mulf %220, %223 : vector<1x4xf32>
    %230 = arith.mulf %227, %227 : vector<1x4xf32>
    %231 = arith.subf %229, %230 : vector<1x4xf32>
    %cst_88 = arith.constant 9.99999996E-13 : f32
    %232 = vector.broadcast %cst_88 : f32 to vector<1x4xf32>
    %233 = arith.maximumf %231, %232 : vector<1x4xf32>
    %234 = math.sqrt %233 : vector<1x4xf32>
    %cst_89 = arith.constant 2.000000e+00 : f32
    %235 = vector.broadcast %cst_89 : f32 to vector<1x4xf32>
    %236 = arith.mulf %235, %234 : vector<1x4xf32>
    %237 = arith.addf %228, %236 : vector<1x4xf32>
    %238 = math.sqrt %237 : vector<1x4xf32>
    %239 = arith.mulf %234, %238 : vector<1x4xf32>
    %240 = tpu.reciprocal %239 {approx = true} : vector<1x4xf32> -> vector<1x4xf32>
    %241 = arith.addf %223, %234 : vector<1x4xf32>
    %242 = arith.mulf %241, %240 : vector<1x4xf32>
    %243 = arith.addf %220, %234 : vector<1x4xf32>
    %244 = arith.mulf %243, %240 : vector<1x4xf32>
    %cst_90 = arith.constant 0.000000e+00 : f32
    %245 = vector.broadcast %cst_90 : f32 to vector<1x4xf32>
    %246 = arith.subf %245, %227 : vector<1x4xf32>
    %247 = arith.mulf %246, %240 : vector<1x4xf32>
    %248 = vector.extract_strided_slice %208 {offsets = [0, 0], sizes = [1, 4], strides = [1, 1]} : vector<3x4xf32> to vector<1x4xf32>
    %249 = vector.extract_strided_slice %208 {offsets = [1, 0], sizes = [1, 4], strides = [1, 1]} : vector<3x4xf32> to vector<1x4xf32>
    %250 = vector.extract_strided_slice %208 {offsets = [2, 0], sizes = [1, 4], strides = [1, 1]} : vector<3x4xf32> to vector<1x4xf32>
    %251 = vector.extract_strided_slice %209 {offsets = [0, 0], sizes = [1, 4], strides = [1, 1]} : vector<2x4xf32> to vector<1x4xf32>
    %252 = vector.extract_strided_slice %209 {offsets = [1, 0], sizes = [1, 4], strides = [1, 1]} : vector<2x4xf32> to vector<1x4xf32>
    %253 = arith.mulf %248, %242 : vector<1x4xf32>
    %254 = arith.mulf %249, %247 : vector<1x4xf32>
    %255 = arith.addf %253, %254 : vector<1x4xf32>
    %256 = arith.mulf %248, %247 : vector<1x4xf32>
    %257 = arith.mulf %249, %244 : vector<1x4xf32>
    %258 = arith.addf %256, %257 : vector<1x4xf32>
    %259 = arith.mulf %249, %242 : vector<1x4xf32>
    %260 = arith.mulf %250, %247 : vector<1x4xf32>
    %261 = arith.addf %259, %260 : vector<1x4xf32>
    %262 = arith.mulf %249, %247 : vector<1x4xf32>
    %263 = arith.mulf %250, %244 : vector<1x4xf32>
    %264 = arith.addf %262, %263 : vector<1x4xf32>
    %265 = arith.mulf %255, %216 : vector<1x4xf32>
    %266 = arith.mulf %258, %217 : vector<1x4xf32>
    %267 = arith.addf %265, %266 : vector<1x4xf32>
    %268 = arith.subf %251, %267 : vector<1x4xf32>
    %269 = arith.mulf %261, %216 : vector<1x4xf32>
    %270 = arith.mulf %264, %217 : vector<1x4xf32>
    %271 = arith.addf %269, %270 : vector<1x4xf32>
    %272 = arith.subf %252, %271 : vector<1x4xf32>
    %273 = tpu.concatenate %255, %264 in 1 : vector<1x4xf32>, vector<1x4xf32> -> vector<1x8xf32>
    %274 = tpu.concatenate %258, %261 in 1 : vector<1x4xf32>, vector<1x4xf32> -> vector<1x8xf32>
    %275 = tpu.concatenate %268, %272 in 1 : vector<1x4xf32>, vector<1x4xf32> -> vector<1x8xf32>
    %276 = tpu.iota {dimensions = array<i32: 0>} : vector<8x8xi32>
    %277 = tpu.iota {dimensions = array<i32: 1>} : vector<8x8xi32>
    %278 = arith.cmpi eq, %276, %277 : vector<8x8xi32>
    %cst_91 = arith.constant 0.000000e+00 : f32
    %279 = vector.shape_cast %273 : vector<1x8xf32> to vector<1x8xf32>
    %280 = vector.broadcast %279 : vector<1x8xf32> to vector<8x8xf32>
    %281 = vector.broadcast %cst_91 : f32 to vector<8x8xf32>
    %282 = arith.select %278, %280, %281 : vector<8x8xi1>, vector<8x8xf32>
    %283 = arith.subi %276, %277 : vector<8x8xi32>
    %284 = math.absi %283 : vector<8x8xi32>
    %c4_i32 = arith.constant 4 : i32
    %285 = vector.broadcast %c4_i32 : i32 to vector<8x8xi32>
    %286 = arith.cmpi eq, %284, %285 : vector<8x8xi32>
    %cst_92 = arith.constant 0.000000e+00 : f32
    %287 = vector.shape_cast %274 : vector<1x8xf32> to vector<1x8xf32>
    %288 = vector.broadcast %287 : vector<1x8xf32> to vector<8x8xf32>
    %289 = vector.broadcast %cst_92 : f32 to vector<8x8xf32>
    %290 = arith.select %286, %288, %289 : vector<8x8xi1>, vector<8x8xf32>
    %291 = arith.addf %282, %290 : vector<8x8xf32>
    %c0_93 = arith.constant 0 : index
    %c0_94 = arith.constant 0 : index
    %292 = tpu.strided_load %arg10[%c0_93, %c0_94] {strides = array<i32: 2, 1>} : memref<512x8xf32, #tpu.memory_space<vmem>>, vector<8x8xf32>
    %c64_95 = arith.constant 64 : index
    %c0_96 = arith.constant 0 : index
    %293 = tpu.strided_load %arg10[%c64_95, %c0_96] {strides = array<i32: 2, 1>} : memref<512x8xf32, #tpu.memory_space<vmem>>, vector<8x8xf32>
    %c128 = arith.constant 128 : index
    %c0_97 = arith.constant 0 : index
    %294 = tpu.strided_load %arg10[%c128, %c0_97] {strides = array<i32: 2, 1>} : memref<512x8xf32, #tpu.memory_space<vmem>>, vector<8x8xf32>
    %c192 = arith.constant 192 : index
    %c0_98 = arith.constant 0 : index
    %295 = tpu.strided_load %arg10[%c192, %c0_98] {strides = array<i32: 2, 1>} : memref<512x8xf32, #tpu.memory_space<vmem>>, vector<8x8xf32>
    %c256 = arith.constant 256 : index
    %c0_99 = arith.constant 0 : index
    %296 = tpu.strided_load %arg10[%c256, %c0_99] {strides = array<i32: 2, 1>} : memref<512x8xf32, #tpu.memory_space<vmem>>, vector<8x8xf32>
    %c320 = arith.constant 320 : index
    %c0_100 = arith.constant 0 : index
    %297 = tpu.strided_load %arg10[%c320, %c0_100] {strides = array<i32: 2, 1>} : memref<512x8xf32, #tpu.memory_space<vmem>>, vector<8x8xf32>
    %c384 = arith.constant 384 : index
    %c0_101 = arith.constant 0 : index
    %298 = tpu.strided_load %arg10[%c384, %c0_101] {strides = array<i32: 2, 1>} : memref<512x8xf32, #tpu.memory_space<vmem>>, vector<8x8xf32>
    %c448 = arith.constant 448 : index
    %c0_102 = arith.constant 0 : index
    %299 = tpu.strided_load %arg10[%c448, %c0_102] {strides = array<i32: 2, 1>} : memref<512x8xf32, #tpu.memory_space<vmem>>, vector<8x8xf32>
    %300 = tpu.concatenate %292, %293, %294, %295, %296, %297, %298, %299 in 0 : vector<8x8xf32>, vector<8x8xf32>, vector<8x8xf32>, vector<8x8xf32>, vector<8x8xf32>, vector<8x8xf32>, vector<8x8xf32>, vector<8x8xf32> -> vector<64x8xf32>
    %cst_103 = arith.constant dense<0.000000e+00> : vector<64x8xf32>
    %301 = tpu.matmul %300, %291, %cst_103 {dimension_numbers = #tpu.dot_dimension_numbers<[1], [0], [0], [1], [0, 0, 1, 1], [], []>} : vector<64x8xf32>, vector<8x8xf32>, vector<64x8xf32> -> vector<64x8xf32>
    %302 = vector.broadcast %275 : vector<1x8xf32> to vector<64x8xf32>
    %303 = arith.addf %301, %302 : vector<64x8xf32>
    %cst_104 = arith.constant 0.000000e+00 : f32
    %304 = vector.broadcast %cst_104 : f32 to vector<64x8xf32>
    %305 = arith.maximumf %303, %304 : vector<64x8xf32>
    %306 = arith.truncf %305 : vector<64x8xf32> to vector<64x8xbf16>
    %c0_105 = arith.constant 0 : index
    %c0_106 = arith.constant 0 : index
    %307 = vector.load %arg7[%c0_105, %c0_106] : memref<8x8xbf16, #tpu.memory_space<vmem>>, vector<8x8xbf16>
    %cst_107 = arith.constant dense<0.000000e+00> : vector<64x8xf32>
    %308 = tpu.matmul %306, %307, %cst_107 {dimension_numbers = #tpu.dot_dimension_numbers<[1], [0], [0], [1], [0, 0, 1, 1], [], []>} : vector<64x8xbf16>, vector<8x8xbf16>, vector<64x8xf32> -> vector<64x8xf32>
    %c0_108 = arith.constant 0 : index
    %c0_109 = arith.constant 0 : index
    %c0_110 = arith.constant 0 : index
    %309 = vector.load %arg8[%c0_108, %c0_109, %c0_110] : memref<1x64x8xf32, #tpu.memory_space<vmem>>, vector<1x64x8xf32>
    %310 = vector.shape_cast %309 : vector<1x64x8xf32> to vector<64x8xf32>
    %311 = vector.shape_cast %308 : vector<64x8xf32> to vector<1x64x8xf32>
    tpu.vector_store %arg8[%c0_108, %c0_109, %c0_110], %311 {strides = array<i32>} : memref<1x64x8xf32, #tpu.memory_space<vmem>>, vector<1x64x8xf32>,
    return
  }
  func.func @transform_0(%arg0: i32) -> (i32, i32, i32) {
    %c0_i32 = arith.constant 0 : i32
    %c0_i32_0 = arith.constant 0 : i32
    %c0_i32_1 = arith.constant 0 : i32
    return %arg0, %c0_i32, %c0_i32_0 : i32, i32, i32
  }
  func.func @transform_1(%arg0: i32) -> (i32, i32) {
    %c0_i32 = arith.constant 0 : i32
    %c0_i32_0 = arith.constant 0 : i32
    %c0_i32_1 = arith.constant 0 : i32
    return %c0_i32, %c0_i32_0 : i32, i32
  }
  func.func @transform_2(%arg0: i32) -> (i32, i32) {
    %c0_i32 = arith.constant 0 : i32
    %c0_i32_0 = arith.constant 0 : i32
    %c0_i32_1 = arith.constant 0 : i32
    return %c0_i32, %c0_i32_0 : i32, i32
  }
  func.func @transform_3(%arg0: i32) -> (i32, i32, i32) {
    %c0_i32 = arith.constant 0 : i32
    %c0_i32_0 = arith.constant 0 : i32
    %c0_i32_1 = arith.constant 0 : i32
    %c0_i32_2 = arith.constant 0 : i32
    return %c0_i32, %c0_i32_0, %c0_i32_1 : i32, i32, i32
  }
  func.func @transform_4(%arg0: i32) -> (i32, i32) {
    %c0_i32 = arith.constant 0 : i32
    %c0_i32_0 = arith.constant 0 : i32
    %c0_i32_1 = arith.constant 0 : i32
    return %c0_i32, %c0_i32_0 : i32, i32
  }
  func.func @transform_5(%arg0: i32) -> (i32, i32) {
    %c0_i32 = arith.constant 0 : i32
    %c0_i32_0 = arith.constant 0 : i32
    %c0_i32_1 = arith.constant 0 : i32
    return %c0_i32, %c0_i32_0 : i32, i32
  }
  func.func @transform_6(%arg0: i32) -> (i32, i32) {
    %c0_i32 = arith.constant 0 : i32
    %c0_i32_0 = arith.constant 0 : i32
    %c0_i32_1 = arith.constant 0 : i32
    return %c0_i32, %c0_i32_0 : i32, i32
  }
  func.func @transform_7(%arg0: i32) -> (i32, i32, i32) {
    %c0_i32 = arith.constant 0 : i32
    %c0_i32_0 = arith.constant 0 : i32
    %c0_i32_1 = arith.constant 0 : i32
    return %arg0, %c0_i32, %c0_i32_0 : i32, i32, i32
  }
}

</mosaic_0001>

<bundles_post_ra>
// kernel: down_forward.1
= control target key start
LH: loop header
LB: loop body
LE: loop exit
PB: predicated region body
PF: predicated region fallthrough
CT: control target
= control target key end

     0   :  { %s13201_s24 = smov 0   ;;  %s19935_s0 = inlined_call_operand.vmem [shape: f32[2,608,4], index: 0, kind: input, shape index: {}]   ;;  %s19936_s1 = inlined_call_operand.vmem [shape: f32[3,2], index: 1, kind: input, shape index: {}]   ;;  %s19937_s2 = inlined_call_operand.vmem [shape: f32[2,2], index: 2, kind: input, shape index: {}]   ;;  %s19938_s3 = inlined_call_operand.vmem [shape: bf16[9,4,8], index: 3, kind: input, shape index: {}]   ;;  %s19939_s4 = inlined_call_operand.vmem [shape: f32[3,4], index: 4, kind: input, shape index: {}]   ;;  %s19940_s5 = inlined_call_operand.vmem [shape: f32[2,4], index: 5, kind: input, shape index: {}]   ;;  %s19941_s6 = inlined_call_operand.vmem [shape: bf16[8,8], index: 6, kind: input, shape index: {}]   ;;  %s19942_s7 = inlined_call_operand.vmem [shape: f32[2,64,8], index: 7, kind: output, shape index: {}]  }
   0x1 LB: > { %s10958_s25 = sadd.s32 4294967295, %s13154_s24   ;;  %p10962_p0 = scmp.ge.s32.totalorder %s13154_s24, 1  ;;  %s13154_s24 = sphi %s13201_s24, %s17_s24  }
   0x2   : > { %p237_p1 = scmp.lt.s32.totalorder %s13154_s24, 3 }
   0x4   : > { %p238_p2 = pnand %p10962_p0, %p237_p1 }
   0x6   : > { %241 = sbr.rel (%p238_p2) target bundleno = 2926 (0xb6e), region = 48 }
   0xb   : > { %p269_p3 = scmp.lt.s32.totalorder %s10958_s25, 1  ;;  %vm19969_vm0 = vcmask 31744   ;;  %s13156_s30 = smov 126   ;;  %vm1127_vm1 = vcmask 15360   ;;  %vm19966_vm8 = vcmask 1043456   ;;  %vm19970_vm9 = vcmask 27648  }
   0xc   : > { %s13157_s8 = smov 2   ;;  %vm19968_vm10 = vcmask 1041408   ;;  %s13159_s10 = smov 124  }
   0xd   : > { %s22112_s25 = smov (!%p269_p3, %s10958_s25), 1  ;;  %s13160_s11 = smov 4  }
   0xe   : > { %s12807_s26 = smul.u32 608, %s22112_s25  ;;  %s11596_s18 = sshll.u32 %s22112_s25, 6 }
   0xf   : > { %s278_s21 = scalar_lea.vmem %s19942_s7, %s11596_s18 }
  0x10   : > { %s13215_s29 = scalar_lea.vmem %s19935_s0, %s12807_s26 }
  0x11   : > { %v13218_v0 = vld [vmem:[%s13215_s29] sm:$0xff]  ;;  %v13221_v1 = vld [vmem:[%s13215_s29 + $0x10] sm:$0xff]  ;;  %v13224_v2 = vld [vmem:[%s13215_s29 + $0x8] sm:$0xff] }
  0x12   : > { %823 = vrot.lane.b32.xlu0 %v13218_v0, %s13156_s30  ;;  %v357_v3 = vsel %vm19969_vm0, %v13218_v0, 0.0  ;;  %v514_v4 = vmul.f32 %v13218_v0, %v13218_v0  ;;  %827 = vrot.lane.b32.xlu1 %v13221_v1, %s13156_s30  ;;  %v516_v5 = vmul.f32 %v13221_v1, %v13221_v1  ;;  %v13237_v6 = vld [vmem:[%s13215_s29 + $0x18] sm:$0xff]  ;;  %v13240_v7 = vld [vmem:[%s13215_s29 + $0x20] sm:$0xff]  ;;  %v360_v8 = vsel %vm19969_vm0, %v13221_v1, 0.0 }
  0x13   : > { %v358_v9 = vsel %vm19969_vm0, %v13224_v2, 0.0  ;;  %v515_v10 = vmul.f32 %v13224_v2, %v13224_v2  ;;  %v517_v11 = vmul.f32 %v13237_v6, %v13237_v6  ;;  %12063 = vmatprep.mubr.msk.f32.mxu0 %vm19969_vm0, %v13218_v0  ;;  %v13254_v14 = vld [vmem:[%s13215_s29 + $0x28] sm:$0xff]  ;;  %v362_v17 = vsel %vm19969_vm0, %v13237_v6, 0.0  ;;  %v13267_v21 = vld [vmem:[%s13215_s29 + $0x30] sm:$0xff]  ;;  %v13275_v27 = vld [vmem:[%s13215_s29 + $0x38] sm:$0xff] }
  0x14   : > { %v590_v12 = vsel %vm19969_vm0, %v514_v4, 0.0  ;;  %v359_v13 = vadd.f32 %v358_v9, %v357_v3  ;;  %v593_v15 = vsel %vm19969_vm0, %v516_v5, 0.0  ;;  %v518_v18 = vmul.f32 %v13240_v7, %v13240_v7  ;;  %v13287_v33 = vld [vmem:[%s13215_s29 + $0x40] sm:$0xff]  ;;  %v13295_v39 = vld [vmem:[%s13215_s29 + $0x48] sm:$0xff]  ;;  %v13307_v45 = vld [vmem:[%s13215_s29 + $0x50] sm:$0xff] }
  0x15   : > { %v591_v16 = vsel %vm19969_vm0, %v515_v10, 0.0  ;;  %v595_v22 = vsel %vm19969_vm0, %v517_v11, 0.0  ;;  %v364_v23 = vsel %vm19969_vm0, %v13240_v7, 0.0  ;;  %v519_v24 = vmul.f32 %v13254_v14, %v13254_v14  ;;  %v13315_v51 = vld [vmem:[%s13215_s29 + $0x58] sm:$0xff]  ;;  %v13327_v57 = vld [vmem:[%s13215_s29 + $0x60] sm:$0xff]  ;;  %v13335_v63 = vld [vmem:[%s13215_s29 + $0x68] sm:$0xff] }
  0x16   : > { %825 = vrot.lane.b32.xlu0 %v13224_v2, %s13156_s30  ;;  %v361_v19 = vadd.f32 %v360_v8, %v359_v13  ;;  %v592_v20 = vadd.f32 %v591_v16, %v590_v12  ;;  %829 = vrot.lane.b32.xlu1 %v13237_v6, %s13156_s30  ;;  %v597_v28 = vsel %vm19969_vm0, %v518_v18, 0.0  ;;  %v366_v29 = vsel %vm19969_vm0, %v13254_v14, 0.0  ;;  %v13347_v10 = vld [vmem:[%s13215_s29 + $0x70] sm:$0xff] }
  0x17   : > { %v520_v30 = vmul.f32 %v13267_v21, %v13267_v21  ;;  %v599_v34 = vsel %vm19969_vm0, %v519_v24, 0.0  ;;  %v368_v35 = vsel %vm19969_vm0, %v13267_v21, 0.0  ;;  %v521_v36 = vmul.f32 %v13275_v27, %v13275_v27  ;;  %v13367_v24 = vld [vmem:[%s13215_s29 + $0x80] sm:$0xff] }
  0x18   : > { %v594_v25 = vadd.f32 %v593_v15, %v592_v20  ;;  %v363_v26 = vadd.f32 %v362_v17, %v361_v19  ;;  %v370_v41 = vsel %vm19969_vm0, %v13275_v27, 0.0  ;;  %v522_v42 = vmul.f32 %v13287_v33, %v13287_v33  ;;  %v13355_v17 = vld [vmem:[%s13215_s29 + $0x78] sm:$0xff] }
  0x19   : > { %v601_v40 = vsel %vm19969_vm0, %v520_v30, 0.0  ;;  %v603_v46 = vsel %vm19969_vm0, %v521_v36, 0.0  ;;  %v372_v47 = vsel %vm19969_vm0, %v13287_v33, 0.0  ;;  %v523_v48 = vmul.f32 %v13295_v39, %v13295_v39 }
  0x1a   : > { %v596_v31 = vadd.f32 %v595_v22, %v594_v25  ;;  %831 = vrot.lane.b32.xlu0 %v13240_v7, %s13156_s30  ;;  %v365_v32 = vadd.f32 %v364_v23, %v363_v26  ;;  %833 = vrot.lane.b32.xlu1 %v13254_v14, %s13156_s30  ;;  %v605_v52 = vsel %vm19969_vm0, %v522_v42, 0.0  ;;  %v374_v53 = vsel %vm19969_vm0, %v13295_v39, 0.0 }
  0x1b   : > { %v524_v54 = vmul.f32 %v13307_v45, %v13307_v45  ;;  %v607_v58 = vsel %vm19969_vm0, %v523_v48, 0.0  ;;  %v376_v59 = vsel %vm19969_vm0, %v13307_v45, 0.0  ;;  %v525_v60 = vmul.f32 %v13315_v51, %v13315_v51 }
  0x1c   : > { %v598_v37 = vadd.f32 %v597_v28, %v596_v31  ;;  %v367_v38 = vadd.f32 %v366_v29, %v365_v32  ;;  %v378_v4 = vsel %vm19969_vm0, %v13315_v51, 0.0  ;;  %v526_v5 = vmul.f32 %v13327_v57, %v13327_v57  ;;  %v13375_v31 = vld [vmem:[%s13215_s29 + $0x88] sm:$0xff] }
  0x1d   : > { %v609_v3 = vsel %vm19969_vm0, %v524_v54, 0.0  ;;  %v611_v11 = vsel %vm19969_vm0, %v525_v60, 0.0  ;;  %v380_v12 = vsel %vm19969_vm0, %v13327_v57, 0.0  ;;  %v527_v13 = vmul.f32 %v13335_v63, %v13335_v63  ;;  %v13415_v60 = vld [vmem:[%s13215_s29 + $0xa8] sm:$0xff] }
  0x1e   : > { %v600_v43 = vadd.f32 %v599_v34, %v598_v37  ;;  %835 = vrot.lane.b32.xlu0 %v13267_v21, %s13156_s30  ;;  %v369_v44 = vadd.f32 %v368_v35, %v367_v38  ;;  %837 = vrot.lane.b32.xlu1 %v13275_v27, %s13156_s30  ;;  %v613_v18 = vsel %vm19969_vm0, %v526_v5, 0.0  ;;  %v382_v19 = vsel %vm19969_vm0, %v13335_v63, 0.0  ;;  %v13387_v38 = vld [vmem:[%s13215_s29 + $0x90] sm:$0xff] }
  0x1f   : > { %v528_v20 = vmul.f32 %v13347_v10, %v13347_v10  ;;  %v615_v25 = vsel %vm19969_vm0, %v527_v13, 0.0  ;;  %v384_v26 = vsel %vm19969_vm0, %v13347_v10, 0.0  ;;  %v529_v28 = vmul.f32 %v13355_v17, %v13355_v17 }
  0x20   : > { %v602_v49 = vadd.f32 %v601_v40, %v600_v43  ;;  %v371_v50 = vadd.f32 %v370_v41, %v369_v44  ;;  %v386_v34 = vsel %vm19969_vm0, %v13355_v17, 0.0  ;;  %v530_v35 = vmul.f32 %v13367_v24, %v13367_v24 }
  0x21   : > { %v617_v32 = vsel %vm19969_vm0, %v528_v20, 0.0  ;;  %v619_v40 = vsel %vm19969_vm0, %v529_v28, 0.0  ;;  %v388_v41 = vsel %vm19969_vm0, %v13367_v24, 0.0  ;;  %v531_v42 = vmul.f32 %v13375_v31, %v13375_v31 }
  0x22   : > { %v604_v55 = vadd.f32 %v603_v46, %v602_v49  ;;  %839 = vrot.lane.b32.xlu0 %v13287_v33, %s13156_s30  ;;  %v373_v56 = vadd.f32 %v372_v47, %v371_v50  ;;  %841 = vrot.lane.b32.xlu1 %v13295_v39, %s13156_s30  ;;  %v13395_v46 = vld [vmem:[%s13215_s29 + $0x98] sm:$0xff]  ;;  %v621_v47 = vsel %vm19969_vm0, %v530_v35, 0.0  ;;  %v390_v48 = vsel %vm19969_vm0, %v13375_v31, 0.0 }
  0x23   : > { %v532_v49 = vmul.f32 %v13387_v38, %v13387_v38  ;;  %v623_v54 = vsel %vm19969_vm0, %v531_v42, 0.0  ;;  %v13467_v42 = vld [vmem:[%s13215_s29 + $0xd0] sm:$0xff] }
  0x24   : > { %v606_v61 = vadd.f32 %v605_v52, %v604_v55  ;;  %v375_v62 = vadd.f32 %v374_v53, %v373_v56  ;;  %v13407_v53 = vld [vmem:[%s13215_s29 + $0xa0] sm:$0xff]  ;;  %v392_v55 = vsel %vm19969_vm0, %v13387_v38, 0.0  ;;  %v533_v56 = vmul.f32 %v13395_v46, %v13395_v46 }
  0x26   : > { %v608_v8 = vadd.f32 %v607_v58, %v606_v61  ;;  %843 = vrot.lane.b32.xlu0 %v13307_v45, %s13156_s30  ;;  %v377_v9 = vadd.f32 %v376_v59, %v375_v62  ;;  %845 = vrot.lane.b32.xlu1 %v13315_v51, %s13156_s30  ;;  %v625_v61 = vsel %vm19969_vm0, %v532_v49, 0.0  ;;  %v394_v62 = vsel %vm19969_vm0, %v13395_v46, 0.0 }
  0x28   : > { %v610_v15 = vadd.f32 %v609_v3, %v608_v8  ;;  %v379_v16 = vadd.f32 %v378_v4, %v377_v9  ;;  %v534_v3 = vmul.f32 %v13407_v53, %v13407_v53  ;;  %v13427_v8 = vld [vmem:[%s13215_s29 + $0xb0] sm:$0xff]  ;;  %v627_v9 = vsel %vm19969_vm0, %v533_v56, 0.0 }
  0x29   : > { %v536_v20 = vmul.f32 %v13427_v8, %v13427_v8  ;;  %v400_v28 = vsel %vm19969_vm0, %v13427_v8, 0.0 }
  0x2a   : > { %v612_v22 = vadd.f32 %v611_v11, %v610_v15  ;;  %847 = vrot.lane.b32.xlu0 %v13327_v57, %s13156_s30  ;;  %v381_v23 = vadd.f32 %v380_v12, %v379_v16  ;;  %849 = vrot.lane.b32.xlu1 %v13335_v63, %s13156_s30  ;;  %v396_v11 = vsel %vm19969_vm0, %v13407_v53, 0.0  ;;  %v535_v12 = vmul.f32 %v13415_v60, %v13415_v60  ;;  %v13435_v16 = vld [vmem:[%s13215_s29 + $0xb8] sm:$0xff] }
  0x2b   : > { %v633_v35 = vsel %vm19969_vm0, %v536_v20, 0.0 }
  0x2c   : > { %v614_v29 = vadd.f32 %v613_v18, %v612_v22  ;;  %v383_v30 = vadd.f32 %v382_v19, %v381_v23  ;;  %v629_v18 = vsel %vm19969_vm0, %v534_v3, 0.0  ;;  %v398_v19 = vsel %vm19969_vm0, %v13415_v60, 0.0 }
  0x2e   : > { %v616_v36 = vadd.f32 %v615_v25, %v614_v29  ;;  %851 = vrot.lane.b32.xlu0 %v13347_v10, %s13156_s30  ;;  %v385_v37 = vadd.f32 %v384_v26, %v383_v30  ;;  %853 = vrot.lane.b32.xlu1 %v13355_v17, %s13156_s30  ;;  %v13447_v25 = vld [vmem:[%s13215_s29 + $0xc0] sm:$0xff]  ;;  %v631_v26 = vsel %vm19969_vm0, %v535_v12, 0.0  ;;  %v537_v29 = vmul.f32 %v13435_v16, %v13435_v16 }
  0x30   : > { %v618_v43 = vadd.f32 %v617_v32, %v616_v36  ;;  %v387_v44 = vadd.f32 %v386_v34, %v385_v37  ;;  %v13455_v34 = vld [vmem:[%s13215_s29 + $0xc8] sm:$0xff]  ;;  %v402_v36 = vsel %vm19969_vm0, %v13435_v16, 0.0  ;;  %v538_v37 = vmul.f32 %v13447_v25, %v13447_v25 }
  0x32   : > { %v620_v50 = vadd.f32 %v619_v40, %v618_v43  ;;  %855 = vrot.lane.b32.xlu0 %v13367_v24, %s13156_s30  ;;  %v389_v52 = vadd.f32 %v388_v41, %v387_v44  ;;  %857 = vrot.lane.b32.xlu1 %v13375_v31, %s13156_s30  ;;  %v635_v43 = vsel %vm19969_vm0, %v537_v29, 0.0  ;;  %v404_v44 = vsel %vm19969_vm0, %v13447_v25, 0.0  ;;  %v13515_v29 = vld [vmem:[%s13215_s29 + $0xf8] sm:$0xff] }
  0x34   : > { %v622_v58 = vadd.f32 %v621_v47, %v620_v50  ;;  %v391_v59 = vadd.f32 %v390_v48, %v389_v52  ;;  %v539_v47 = vmul.f32 %v13455_v34, %v13455_v34  ;;  %v13475_v50 = vld [vmem:[%s13215_s29 + $0xd8] sm:$0xff]  ;;  %v637_v52 = vsel %vm19969_vm0, %v538_v37, 0.0 }
  0x35   : > { %v541_v3 = vmul.f32 %v13475_v50, %v13475_v50  ;;  %v410_v12 = vsel %vm19969_vm0, %v13475_v50, 0.0 }
  0x36   : > { %v624_v4 = vadd.f32 %v623_v54, %v622_v58  ;;  %859 = vrot.lane.b32.xlu0 %v13387_v38, %s13156_s30  ;;  %v393_v5 = vadd.f32 %v392_v55, %v391_v59  ;;  %861 = vrot.lane.b32.xlu1 %v13395_v46, %s13156_s30  ;;  %v406_v54 = vsel %vm19969_vm0, %v13455_v34, 0.0  ;;  %v540_v55 = vmul.f32 %v13467_v42, %v13467_v42  ;;  %v13487_v59 = vld [vmem:[%s13215_s29 + $0xe0] sm:$0xff] }
  0x37   : > { %v643_v20 = vsel %vm19969_vm0, %v541_v3, 0.0 }
  0x38   : > { %v626_v13 = vadd.f32 %v625_v61, %v624_v4  ;;  %v395_v15 = vadd.f32 %v394_v62, %v393_v5  ;;  %v639_v61 = vsel %vm19969_vm0, %v539_v47, 0.0  ;;  %v408_v62 = vsel %vm19969_vm0, %v13467_v42, 0.0 }
  0x3a   : > { %v628_v22 = vadd.f32 %v627_v9, %v626_v13  ;;  %863 = vrot.lane.b32.xlu0 %v13407_v53, %s13156_s30  ;;  %v397_v23 = vadd.f32 %v396_v11, %v395_v15  ;;  %865 = vrot.lane.b32.xlu1 %v13415_v60, %s13156_s30  ;;  %v13495_v9 = vld [vmem:[%s13215_s29 + $0xe8] sm:$0xff]  ;;  %v641_v11 = vsel %vm19969_vm0, %v540_v55, 0.0  ;;  %v542_v13 = vmul.f32 %v13487_v59, %v13487_v59 }
  0x3c   : > { %v630_v30 = vadd.f32 %v629_v18, %v628_v22  ;;  %v399_v32 = vadd.f32 %v398_v19, %v397_v23  ;;  %v13507_v19 = vld [vmem:[%s13215_s29 + $0xf0] sm:$0xff]  ;;  %v412_v22 = vsel %vm19969_vm0, %v13487_v59, 0.0  ;;  %v543_v23 = vmul.f32 %v13495_v9, %v13495_v9 }
  0x3e   : > { %v632_v40 = vadd.f32 %v631_v26, %v630_v30  ;;  %867 = vrot.lane.b32.xlu0 %v13427_v8, %s13156_s30  ;;  %v401_v41 = vadd.f32 %v400_v28, %v399_v32  ;;  %869 = vrot.lane.b32.xlu1 %v13435_v16, %s13156_s30  ;;  %v645_v30 = vsel %vm19969_vm0, %v542_v13, 0.0  ;;  %v414_v32 = vsel %vm19969_vm0, %v13495_v9, 0.0 }
  0x40   : > { %v634_v48 = vadd.f32 %v633_v35, %v632_v40  ;;  %v403_v49 = vadd.f32 %v402_v36, %v401_v41  ;;  %v544_v35 = vmul.f32 %v13507_v19, %v13507_v19  ;;  %v13527_v40 = vld [vmem:[%s13215_s29 + $0x100] sm:$0xff]  ;;  %v647_v41 = vsel %vm19969_vm0, %v543_v23, 0.0 }
  0x41   : > { %v546_v55 = vmul.f32 %v13527_v40, %v13527_v40  ;;  %v420_v3 = vsel %vm19969_vm0, %v13527_v40, 0.0  ;;  %v13567_v23 = vld [vmem:[%s13215_s29 + $0x120] sm:$0xff] }
  0x42   : > { %v636_v56 = vadd.f32 %v635_v43, %v634_v48  ;;  %871 = vrot.lane.b32.xlu0 %v13447_v25, %s13156_s30  ;;  %v405_v58 = vadd.f32 %v404_v44, %v403_v49  ;;  %873 = vrot.lane.b32.xlu1 %v13455_v34, %s13156_s30  ;;  %v416_v43 = vsel %vm19969_vm0, %v13507_v19, 0.0  ;;  %v545_v44 = vmul.f32 %v13515_v29, %v13515_v29  ;;  %v13535_v49 = vld [vmem:[%s13215_s29 + $0x108] sm:$0xff] }
  0x43   : > { %v653_v13 = vsel %vm19969_vm0, %v546_v55, 0.0 }
  0x44   : > { %v638_v4 = vadd.f32 %v637_v52, %v636_v56  ;;  %v407_v5 = vadd.f32 %v406_v54, %v405_v58  ;;  %v649_v52 = vsel %vm19969_vm0, %v544_v35, 0.0  ;;  %v418_v54 = vsel %vm19969_vm0, %v13515_v29, 0.0 }
  0x46   : > { %v640_v15 = vadd.f32 %v639_v61, %v638_v4  ;;  %875 = vrot.lane.b32.xlu0 %v13467_v42, %s13156_s30  ;;  %v409_v18 = vadd.f32 %v408_v62, %v407_v5  ;;  %877 = vrot.lane.b32.xlu1 %v13475_v50, %s13156_s30  ;;  %v13547_v61 = vld [vmem:[%s13215_s29 + $0x110] sm:$0xff]  ;;  %v651_v62 = vsel %vm19969_vm0, %v545_v44, 0.0  ;;  %v547_v4 = vmul.f32 %v13535_v49, %v13535_v49 }
  0x48   : > { %v642_v26 = vadd.f32 %v641_v11, %v640_v15  ;;  %v411_v28 = vadd.f32 %v410_v12, %v409_v18  ;;  %v13555_v12 = vld [vmem:[%s13215_s29 + $0x118] sm:$0xff]  ;;  %v422_v15 = vsel %vm19969_vm0, %v13535_v49, 0.0  ;;  %v548_v18 = vmul.f32 %v13547_v61, %v13547_v61 }
  0x4a   : > { %v644_v36 = vadd.f32 %v643_v20, %v642_v26  ;;  %879 = vrot.lane.b32.xlu0 %v13487_v59, %s13156_s30  ;;  %v413_v37 = vadd.f32 %v412_v22, %v411_v28  ;;  %881 = vrot.lane.b32.xlu1 %v13495_v9, %s13156_s30  ;;  %v655_v26 = vsel %vm19969_vm0, %v547_v4, 0.0  ;;  %v424_v28 = vsel %vm19969_vm0, %v13547_v61, 0.0 }
  0x4c   : > { %v646_v47 = vadd.f32 %v645_v30, %v644_v36  ;;  %v415_v48 = vadd.f32 %v414_v32, %v413_v37  ;;  %v549_v30 = vmul.f32 %v13555_v12, %v13555_v12  ;;  %v13575_v36 = vld [vmem:[%s13215_s29 + $0x128] sm:$0xff]  ;;  %v657_v37 = vsel %vm19969_vm0, %v548_v18, 0.0 }
  0x4d   : > { %v551_v55 = vmul.f32 %v13575_v36, %v13575_v36  ;;  %v430_v4 = vsel %vm19969_vm0, %v13575_v36, 0.0 }
  0x4e   : > { %v648_v56 = vadd.f32 %v647_v41, %v646_v47  ;;  %883 = vrot.lane.b32.xlu0 %v13507_v19, %s13156_s30  ;;  %v417_v58 = vadd.f32 %v416_v43, %v415_v48  ;;  %885 = vrot.lane.b32.xlu1 %v13515_v29, %s13156_s30  ;;  %v426_v41 = vsel %vm19969_vm0, %v13555_v12, 0.0  ;;  %v550_v43 = vmul.f32 %v13567_v23, %v13567_v23  ;;  %v13587_v48 = vld [vmem:[%s13215_s29 + $0x130] sm:$0xff] }
  0x4f   : > { %v663_v18 = vsel %vm19969_vm0, %v551_v55, 0.0 }
  0x50   : > { %v650_v5 = vadd.f32 %v649_v52, %v648_v56  ;;  %v419_v11 = vadd.f32 %v418_v54, %v417_v58  ;;  %v659_v52 = vsel %vm19969_vm0, %v549_v30, 0.0  ;;  %v428_v54 = vsel %vm19969_vm0, %v13567_v23, 0.0  ;;  %v13615_v30 = vld [vmem:[%s13215_s29 + $0x148] sm:$0xff] }
  0x51   : > { %20067 = vst [vmem:[#allocation6_spill] sm:$0xff] %v13615_v30 }
  0x52   : > { %v652_v20 = vadd.f32 %v651_v62, %v650_v5  ;;  %887 = vrot.lane.b32.xlu0 %v13527_v40, %s13156_s30  ;;  %v421_v22 = vadd.f32 %v420_v3, %v419_v11  ;;  %889 = vrot.lane.b32.xlu1 %v13535_v49, %s13156_s30  ;;  %v13595_v62 = vld [vmem:[%s13215_s29 + $0x138] sm:$0xff]  ;;  %v661_v3 = vsel %vm19969_vm0, %v550_v43, 0.0  ;;  %v552_v5 = vmul.f32 %v13587_v48, %v13587_v48 }
  0x53   : > { %20065 = vst [vmem:[#allocation4_spill] sm:$0xff] %v13595_v62 }
  0x54   : > { %v654_v32 = vadd.f32 %v653_v13, %v652_v20  ;;  %v423_v35 = vadd.f32 %v422_v15, %v421_v22  ;;  %v13607_v15 = vld [vmem:[%s13215_s29 + $0x140] sm:$0xff]  ;;  %v432_v20 = vsel %vm19969_vm0, %v13587_v48, 0.0  ;;  %v553_v22 = vmul.f32 %v13595_v62, %v13595_v62 }
  0x55   : > { %20066 = vst [vmem:[#allocation5_spill] sm:$0xff] %v13607_v15 }
  0x56   : > { %v656_v44 = vadd.f32 %v655_v26, %v654_v32  ;;  %891 = vrot.lane.b32.xlu0 %v13547_v61, %s13156_s30  ;;  %v425_v47 = vadd.f32 %v424_v28, %v423_v35  ;;  %893 = vrot.lane.b32.xlu1 %v13555_v12, %s13156_s30  ;;  %v665_v32 = vsel %vm19969_vm0, %v552_v5, 0.0  ;;  %v434_v35 = vsel %vm19969_vm0, %v13595_v62, 0.0 }
  0x58   : > { %v658_v56 = vadd.f32 %v657_v37, %v656_v44  ;;  %v427_v58 = vadd.f32 %v426_v41, %v425_v47  ;;  %v554_v37 = vmul.f32 %v13607_v15, %v13607_v15  ;;  %v13627_v44 = vld [vmem:[%s13215_s29 + $0x150] sm:$0xff]  ;;  %v667_v47 = vsel %vm19969_vm0, %v553_v22, 0.0 }
  0x59   : > { %20068 = vst [vmem:[#allocation7_spill] sm:$0xff] %v13627_v44  ;;  %v556_v5 = vmul.f32 %v13627_v44, %v13627_v44  ;;  %v440_v22 = vsel %vm19969_vm0, %v13627_v44, 0.0 }
  0x5a   : > { %v660_v11 = vadd.f32 %v659_v52, %v658_v56  ;;  %895 = vrot.lane.b32.xlu0 %v13567_v23, %s13156_s30  ;;  %v429_v13 = vadd.f32 %v428_v54, %v427_v58  ;;  %897 = vrot.lane.b32.xlu1 %v13575_v36, %s13156_s30  ;;  %v436_v52 = vsel %vm19969_vm0, %v13607_v15, 0.0  ;;  %v555_v54 = vmul.f32 %v13615_v30, %v13615_v30  ;;  %v13635_v58 = vld [vmem:[%s13215_s29 + $0x158] sm:$0xff] }
  0x5b   : > { %20069 = vst [vmem:[#allocation8_spill] sm:$0xff] %v13635_v58 }
  0x5c   : > { %v662_v26 = vadd.f32 %v661_v3, %v660_v11  ;;  %v431_v28 = vadd.f32 %v430_v4, %v429_v13  ;;  %v669_v3 = vsel %vm19969_vm0, %v554_v37, 0.0  ;;  %v438_v4 = vsel %vm19969_vm0, %v13615_v30, 0.0 }
  0x5d   : > { %v673_v37 = vsel %vm19969_vm0, %v556_v5, 0.0 }
  0x5e   : > { %v664_v41 = vadd.f32 %v663_v18, %v662_v26  ;;  %899 = vrot.lane.b32.xlu0 %v13587_v48, %s13156_s30  ;;  %v433_v43 = vadd.f32 %v432_v20, %v431_v28  ;;  %901 = vrot.lane.b32.xlu1 %v13595_v62, %s13156_s30  ;;  %v13647_v18 = vld [vmem:[%s13215_s29 + $0x160] sm:$0xff]  ;;  %v671_v20 = vsel %vm19969_vm0, %v555_v54, 0.0  ;;  %v557_v26 = vmul.f32 %v13635_v58, %v13635_v58  ;;  %v13667_v54 = vld [vmem:[%s13215_s29 + $0x170] sm:$0xff] }
  0x5f   : > { %20070 = vst [vmem:[#allocation9_spill] sm:$0xff] %v13647_v18  ;;  %20072 = vst [vmem:[#allocation11_spill] sm:$0xff] %v13667_v54  ;;  %v13849_v62 = vld [vmem:[%s13215_s29 + $0x200] sm:$0xff] }
  0x60   : > { %v666_v55 = vadd.f32 %v665_v32, %v664_v41  ;;  %v435_v56 = vadd.f32 %v434_v35, %v433_v43  ;;  %v13655_v35 = vld [vmem:[%s13215_s29 + $0x168] sm:$0xff]  ;;  %v442_v41 = vsel %vm19969_vm0, %v13635_v58, 0.0  ;;  %v558_v43 = vmul.f32 %v13647_v18, %v13647_v18 }
  0x61   : > { %20071 = vst [vmem:[#allocation10_spill] sm:$0xff] %v13655_v35 }
  0x62   : > { %v668_v11 = vadd.f32 %v667_v47, %v666_v55  ;;  %903 = vrot.lane.b32.xlu0 %v13607_v15, %s13156_s30  ;;  %v437_v13 = vadd.f32 %v436_v52, %v435_v56  ;;  %905 = vrot.lane.b32.xlu1 %v13615_v30, %s13156_s30  ;;  %v675_v55 = vsel %vm19969_vm0, %v557_v26, 0.0  ;;  %v444_v56 = vsel %vm19969_vm0, %v13647_v18, 0.0 }
  0x64   : > { %v670_v28 = vadd.f32 %v669_v3, %v668_v11  ;;  %v439_v32 = vadd.f32 %v438_v4, %v437_v13  ;;  %v559_v3 = vmul.f32 %v13655_v35, %v13655_v35  ;;  %v13675_v11 = vld [vmem:[%s13215_s29 + $0x178] sm:$0xff]  ;;  %v677_v13 = vsel %vm19969_vm0, %v558_v43, 0.0 }
  0x65   : > { %20073 = vst [vmem:[#allocation12_spill] sm:$0xff] %v13675_v11  ;;  %v561_v43 = vmul.f32 %v13675_v11, %v13675_v11 }
  0x66   : > { %v672_v47 = vadd.f32 %v671_v20, %v670_v28  ;;  %907 = vrot.lane.b32.xlu0 %v13627_v44, %s13156_s30  ;;  %v441_v52 = vadd.f32 %v440_v22, %v439_v32  ;;  %909 = vrot.lane.b32.xlu1 %v13635_v58, %s13156_s30  ;;  %v446_v20 = vsel %vm19969_vm0, %v13655_v35, 0.0  ;;  %v560_v22 = vmul.f32 %v13667_v54, %v13667_v54  ;;  %v13687_v32 = vld [vmem:[%s13215_s29 + $0x180] sm:$0xff] }
  0x67   : > { %20074 = vst [vmem:[#allocation13_spill] sm:$0xff] %v13687_v32 }
  0x68   : > { %v674_v4 = vadd.f32 %v673_v37, %v672_v47  ;;  %v443_v5 = vadd.f32 %v442_v41, %v441_v52  ;;  %v679_v37 = vsel %vm19969_vm0, %v559_v3, 0.0  ;;  %v448_v41 = vsel %vm19969_vm0, %v13667_v54, 0.0 }
  0x6a   : > { %v676_v26 = vadd.f32 %v675_v55, %v674_v4  ;;  %911 = vrot.lane.b32.xlu0 %v13647_v18, %s13156_s30  ;;  %v445_v28 = vadd.f32 %v444_v56, %v443_v5  ;;  %913 = vrot.lane.b32.xlu1 %v13655_v35, %s13156_s30  ;;  %v13695_v55 = vld [vmem:[%s13215_s29 + $0x188] sm:$0xff]  ;;  %v681_v56 = vsel %vm19969_vm0, %v560_v22, 0.0  ;;  %v450_v4 = vsel %vm19969_vm0, %v13675_v11, 0.0 }
  0x6b   : > { %20075 = vst [vmem:[#allocation14_spill] sm:$0xff] %v13695_v55  ;;  %v562_v5 = vmul.f32 %v13687_v32, %v13687_v32  ;;  %v452_v22 = vsel %vm19969_vm0, %v13687_v32, 0.0 }
  0x6c   : > { %v678_v47 = vadd.f32 %v677_v13, %v676_v26  ;;  %v447_v52 = vadd.f32 %v446_v20, %v445_v28  ;;  %v13707_v13 = vld [vmem:[%s13215_s29 + $0x190] sm:$0xff]  ;;  %v683_v20 = vsel %vm19969_vm0, %v561_v43, 0.0  ;;  %v563_v26 = vmul.f32 %v13695_v55, %v13695_v55 }
  0x6d   : > { %20076 = vst [vmem:[#allocation15_spill] sm:$0xff] %v13707_v13 }
  0x6e   : > { %v680_v3 = vadd.f32 %v679_v37, %v678_v47  ;;  %915 = vrot.lane.b32.xlu0 %v13667_v54, %s13156_s30  ;;  %v449_v35 = vadd.f32 %v448_v41, %v447_v52  ;;  %917 = vrot.lane.b32.xlu1 %v13675_v11, %s13156_s30  ;;  %v13715_v47 = vld [vmem:[%s13215_s29 + $0x198] sm:$0xff]  ;;  %v685_v41 = vsel %vm19969_vm0, %v562_v5, 0.0  ;;  %v454_v52 = vsel %vm19969_vm0, %v13695_v55, 0.0 }
  0x6f   : > { %20077 = vst [vmem:[#allocation16_spill] sm:$0xff] %v13715_v47  ;;  %v564_v11 = vmul.f32 %v13707_v13, %v13707_v13  ;;  %v565_v5 = vmul.f32 %v13715_v47, %v13715_v47 }
  0x70   : > { %v682_v28 = vadd.f32 %v681_v56, %v680_v3  ;;  %v451_v37 = vadd.f32 %v450_v4, %v449_v35  ;;  %v13727_v35 = vld [vmem:[%s13215_s29 + $0x1a0] sm:$0xff]  ;;  %v687_v56 = vsel %vm19969_vm0, %v563_v26, 0.0  ;;  %v456_v4 = vsel %vm19969_vm0, %v13707_v13, 0.0 }
  0x71   : > { %20078 = vst [vmem:[#allocation17_spill] sm:$0xff] %v13727_v35 }
  0x72   : > { %v684_v43 = vadd.f32 %v683_v20, %v682_v28  ;;  %919 = vrot.lane.b32.xlu0 %v13687_v32, %s13156_s30  ;;  %v453_v54 = vadd.f32 %v452_v22, %v451_v37  ;;  %921 = vrot.lane.b32.xlu1 %v13695_v55, %s13156_s30  ;;  %v13735_v28 = vld [vmem:[%s13215_s29 + $0x1a8] sm:$0xff]  ;;  %v689_v22 = vsel %vm19969_vm0, %v564_v11, 0.0  ;;  %v458_v37 = vsel %vm19969_vm0, %v13715_v47, 0.0 }
  0x73   : > { %20079 = vst [vmem:[#allocation18_spill] sm:$0xff] %v13735_v28  ;;  %v566_v55 = vmul.f32 %v13727_v35, %v13727_v35  ;;  %v460_v11 = vsel %vm19969_vm0, %v13727_v35, 0.0 }
  0x74   : > { %v686_v3 = vadd.f32 %v685_v41, %v684_v43  ;;  %v455_v20 = vadd.f32 %v454_v52, %v453_v54  ;;  %v13747_v54 = vld [vmem:[%s13215_s29 + $0x1b0] sm:$0xff]  ;;  %v691_v41 = vsel %vm19969_vm0, %v565_v5, 0.0  ;;  %v567_v52 = vmul.f32 %v13735_v28, %v13735_v28 }
  0x75   : > { %20080 = vst [vmem:[#allocation19_spill] sm:$0xff] %v13747_v54 }
  0x76   : > { %v688_v26 = vadd.f32 %v687_v56, %v686_v3  ;;  %923 = vrot.lane.b32.xlu0 %v13707_v13, %s13156_s30  ;;  %v457_v32 = vadd.f32 %v456_v4, %v455_v20  ;;  %925 = vrot.lane.b32.xlu1 %v13715_v47, %s13156_s30  ;;  %v13755_v3 = vld [vmem:[%s13215_s29 + $0x1b8] sm:$0xff]  ;;  %v693_v4 = vsel %vm19969_vm0, %v566_v55, 0.0  ;;  %v462_v20 = vsel %vm19969_vm0, %v13735_v28, 0.0 }
  0x77   : > { %20081 = vst [vmem:[#allocation20_spill] sm:$0xff] %v13755_v3  ;;  %v568_v47 = vmul.f32 %v13747_v54, %v13747_v54  ;;  %v464_v55 = vsel %vm19969_vm0, %v13747_v54, 0.0 }
  0x78   : > { %v690_v43 = vadd.f32 %v689_v22, %v688_v26  ;;  %v459_v56 = vadd.f32 %v458_v37, %v457_v32  ;;  %v13767_v32 = vld [vmem:[%s13215_s29 + $0x1c0] sm:$0xff]  ;;  %v695_v22 = vsel %vm19969_vm0, %v567_v52, 0.0  ;;  %v569_v37 = vmul.f32 %v13755_v3, %v13755_v3 }
  0x79   : > { %20082 = vst [vmem:[#allocation21_spill] sm:$0xff] %v13767_v32 }
  0x7a   : > { %v692_v5 = vadd.f32 %v691_v41, %v690_v43  ;;  %927 = vrot.lane.b32.xlu0 %v13727_v35, %s13156_s30  ;;  %v461_v13 = vadd.f32 %v460_v11, %v459_v56  ;;  %929 = vrot.lane.b32.xlu1 %v13735_v28, %s13156_s30  ;;  %v13775_v43 = vld [vmem:[%s13215_s29 + $0x1c8] sm:$0xff]  ;;  %v697_v11 = vsel %vm19969_vm0, %v568_v47, 0.0  ;;  %v466_v56 = vsel %vm19969_vm0, %v13755_v3, 0.0 }
  0x7b   : > { %20083 = vst [vmem:[#allocation22_spill] sm:$0xff] %v13775_v43  ;;  %v570_v28 = vmul.f32 %v13767_v32, %v13767_v32  ;;  %v468_v47 = vsel %vm19969_vm0, %v13767_v32, 0.0 }
  0x7c   : > { %v694_v26 = vadd.f32 %v693_v4, %v692_v5  ;;  %v463_v41 = vadd.f32 %v462_v20, %v461_v13  ;;  %v13787_v13 = vld [vmem:[%s13215_s29 + $0x1d0] sm:$0xff]  ;;  %v699_v4 = vsel %vm19969_vm0, %v569_v37, 0.0  ;;  %v571_v20 = vmul.f32 %v13775_v43, %v13775_v43 }
  0x7d   : > { %20084 = vst [vmem:[#allocation23_spill] sm:$0xff] %v13787_v13  ;;  %v572_v37 = vmul.f32 %v13787_v13, %v13787_v13 }
  0x7e   : > { %v696_v52 = vadd.f32 %v695_v22, %v694_v26  ;;  %931 = vrot.lane.b32.xlu0 %v13747_v54, %s13156_s30  ;;  %v465_v35 = vadd.f32 %v464_v55, %v463_v41  ;;  %933 = vrot.lane.b32.xlu1 %v13755_v3, %s13156_s30  ;;  %v13795_v26 = vld [vmem:[%s13215_s29 + $0x1d8] sm:$0xff]  ;;  %v701_v55 = vsel %vm19969_vm0, %v570_v28, 0.0  ;;  %v470_v41 = vsel %vm19969_vm0, %v13775_v43, 0.0 }
  0x7f   : > { %20085 = vst [vmem:[#allocation24_spill] sm:$0xff] %v13795_v26  ;;  %v472_v28 = vsel %vm19969_vm0, %v13787_v13, 0.0 }
  0x80   : > { %v698_v5 = vadd.f32 %v697_v11, %v696_v52  ;;  %v467_v22 = vadd.f32 %v466_v56, %v465_v35  ;;  %v13807_v35 = vld [vmem:[%s13215_s29 + $0x1e0] sm:$0xff]  ;;  %v703_v11 = vsel %vm19969_vm0, %v571_v20, 0.0  ;;  %v573_v56 = vmul.f32 %v13795_v26, %v13795_v26 }
  0x81   : > { %v474_v20 = vsel %vm19969_vm0, %v13795_v26, 0.0 }
  0x82   : > { %v700_v3 = vadd.f32 %v699_v4, %v698_v5  ;;  %935 = vrot.lane.b32.xlu0 %v13767_v32, %s13156_s30  ;;  %v469_v54 = vadd.f32 %v468_v47, %v467_v22  ;;  %937 = vrot.lane.b32.xlu1 %v13775_v43, %s13156_s30  ;;  %v13815_v32 = vld [vmem:[%s13215_s29 + $0x1e8] sm:$0xff]  ;;  %v13818_v47 = vld [vmem:[%s13215_s29 + $0x1f0] sm:$0xff]  ;;  %v705_v22 = vsel %vm19969_vm0, %v572_v37, 0.0  ;;  %v574_v43 = vmul.f32 %v13807_v35, %v13807_v35 }
  0x83   : > { %20086 = vst [vmem:[#allocation25_spill] sm:$0xff] %v13815_v32  ;;  %v575_v37 = vmul.f32 %v13815_v32, %v13815_v32  ;;  %v478_v44 = vsel %vm19969_vm0, %v13815_v32, 0.0 }
  0x84   : > { %v702_v52 = vadd.f32 %v701_v55, %v700_v3  ;;  %v824_v18 = vpop.permute.xlu0 %823  ;;  %v471_v4 = vadd.f32 %v470_v41, %v469_v54  ;;  %v828_v5 = vpop.permute.xlu1 %827  ;;  %v476_v3 = vsel %vm19969_vm0, %v13807_v35, 0.0  ;;  %v707_v41 = vsel %vm19969_vm0, %v573_v56, 0.0 }
  0x85   : > { %v1051_v55 = vmul.f32 %v824_v18, %v13218_v0  ;;  %v480_v0 = vsel %vm19969_vm0, %v13818_v47, 0.0  ;;  %v1053_v18 = vmul.f32 %v828_v5, %v13221_v1  ;;  %v709_v15 = vsel %vm19969_vm0, %v574_v43, 0.0 }
  0x86   : > { %v704_v58 = vadd.f32 %v703_v11, %v702_v52  ;;  %939 = vrot.lane.b32.xlu0 %v13787_v13, %s13156_s30  ;;  %v473_v54 = vadd.f32 %v472_v28, %v471_v4  ;;  %941 = vrot.lane.b32.xlu1 %v13795_v26, %s13156_s30  ;;  %v576_v11 = vmul.f32 %v13818_v47, %v13818_v47  ;;  %v13838_v52 = vld [vmem:[%s13215_s29 + $0x1f8] sm:$0xff] }
  0x87   : > { %v482_v1 = vsel %vm19969_vm0, %v13838_v52, 0.0 }
  0x88   : > { %v706_v28 = vadd.f32 %v705_v22, %v704_v58  ;;  %v826_v4 = vpop.permute.xlu0 %825  ;;  %v475_v13 = vadd.f32 %v474_v20, %v473_v54  ;;  %v830_v26 = vpop.permute.xlu1 %829  ;;  %v713_v5 = vsel %vm19969_vm0, %v576_v11, 0.0 }
  0x89   : > { %v1052_v56 = vmul.f32 %v826_v4, %v13224_v2  ;;  %v1054_v30 = vmul.f32 %v830_v26, %v13237_v6  ;;  %v577_v2 = vmul.f32 %v13838_v52, %v13838_v52  ;;  %v1128_v6 = vsel %vm1127_vm1, %v1051_v55, 0.0  ;;  %v13866_v4 = vld [vmem:[%s13215_s29 + $0x208] sm:$0xff] }
  0x8a   : > { %v708_v58 = vadd.f32 %v707_v41, %v706_v28  ;;  %943 = vrot.lane.b32.xlu0 %v13807_v35, %s13156_s30  ;;  %v477_v22 = vadd.f32 %v476_v3, %v475_v13  ;;  %945 = vrot.lane.b32.xlu1 %v13815_v32, %s13156_s30  ;;  %v711_v26 = vsel %vm19969_vm0, %v575_v37, 0.0  ;;  %v578_v28 = vmul.f32 %v13849_v62, %v13849_v62 }
  0x8b   : > { %v1129_v43 = vsel %vm1127_vm1, %v1052_v56, 0.0  ;;  %v1131_v32 = vsel %vm1127_vm1, %v1053_v18, 0.0  ;;  %v1133_v55 = vsel %vm1127_vm1, %v1054_v30, 0.0  ;;  %v13879_v18 = vld [vmem:[%s13215_s29 + $0x210] sm:$0xff]  ;;  %v486_v30 = vsel %vm19969_vm0, %v13866_v4, 0.0 }
  0x8c   : > { %v1130_v20 = vadd.f32 %v1129_v43, %v1128_v6  ;;  %v710_v54 = vadd.f32 %v709_v15, %v708_v58  ;;  %v479_v13 = vadd.f32 %v478_v44, %v477_v22  ;;  %v832_v3 = vpop.permute.xlu0 %831  ;;  %v834_v41 = vpop.permute.xlu1 %833  ;;  %v484_v44 = vsel %vm19969_vm0, %v13849_v62, 0.0 }
  0x8d   : > { %v1055_v56 = vmul.f32 %v832_v3, %v13240_v7  ;;  %v1056_v37 = vmul.f32 %v834_v41, %v13254_v14  ;;  %v715_v14 = vsel %vm19969_vm0, %v577_v2, 0.0  ;;  %v580_v41 = vmul.f32 %v13879_v18, %v13879_v18 }
  0x8e   : > { %v1132_v11 = vadd.f32 %v1131_v32, %v1130_v20  ;;  %v712_v6 = vadd.f32 %v711_v26, %v710_v54  ;;  %947 = vrot.lane.b32.xlu0 %v13818_v47, %s13156_s30  ;;  %v481_v15 = vadd.f32 %v480_v0, %v479_v13  ;;  %949 = vrot.lane.b32.xlu1 %v13838_v52, %s13156_s30  ;;  %v717_v20 = vsel %vm19969_vm0, %v578_v28, 0.0  ;;  %v13889_v54 = vld [vmem:[%s13215_s29 + $0x218] sm:$0xff] }
  0x8f   : > { %v1135_v7 = vsel %vm1127_vm1, %v1055_v56, 0.0  ;;  %v579_v32 = vmul.f32 %v13866_v4, %v13866_v4  ;;  %v1137_v13 = vsel %vm1127_vm1, %v1056_v37, 0.0  ;;  %v13897_v56 = vld [vmem:[%s13215_s29 + $0x220] sm:$0xff]  ;;  %v490_v37 = vsel %vm19969_vm0, %v13889_v54, 0.0 }
  0x90   : > { %v1134_v0 = vadd.f32 %v1133_v55, %v1132_v11  ;;  %v714_v58 = vadd.f32 %v713_v5, %v712_v6  ;;  %v483_v22 = vadd.f32 %v482_v1, %v481_v15  ;;  %v836_v43 = vpop.permute.xlu0 %835  ;;  %v838_v26 = vpop.permute.xlu1 %837  ;;  %v581_v11 = vmul.f32 %v13889_v54, %v13889_v54 }
  0x91   : > { %v1057_v3 = vmul.f32 %v836_v43, %v13267_v21  ;;  %v1058_v2 = vmul.f32 %v838_v26, %v13275_v27  ;;  %v488_v21 = vsel %vm19969_vm0, %v13879_v18, 0.0  ;;  %v719_v28 = vsel %vm19969_vm0, %v579_v32, 0.0 }
  0x92   : > { %v1136_v55 = vadd.f32 %v1135_v7, %v1134_v0  ;;  %v716_v1 = vadd.f32 %v715_v14, %v714_v58  ;;  %951 = vrot.lane.b32.xlu0 %v13849_v62, %s13156_s30  ;;  %v485_v5 = vadd.f32 %v484_v44, %v483_v22  ;;  %953 = vrot.lane.b32.xlu1 %v13866_v4, %s13156_s30  ;;  %v13914_v58 = vld [vmem:[%s13215_s29 + $0x228] sm:$0xff]  ;;  %v721_v26 = vsel %vm19969_vm0, %v580_v41, 0.0 }
  0x93   : > { %v1139_v27 = vsel %vm1127_vm1, %v1057_v3, 0.0  ;;  %v582_v0 = vmul.f32 %v13897_v56, %v13897_v56  ;;  %v1141_v22 = vsel %vm1127_vm1, %v1058_v2, 0.0  ;;  %v13927_v2 = vld [vmem:[%s13215_s29 + $0x230] sm:$0xff]  ;;  %v494_v41 = vsel %vm19969_vm0, %v13914_v58, 0.0 }
  0x94   : > { %v1138_v6 = vadd.f32 %v1137_v13, %v1136_v55  ;;  %v718_v15 = vadd.f32 %v717_v20, %v716_v1  ;;  %v487_v44 = vadd.f32 %v486_v30, %v485_v5  ;;  %v840_v7 = vpop.permute.xlu0 %839  ;;  %v842_v14 = vpop.permute.xlu1 %841  ;;  %v492_v20 = vsel %vm19969_vm0, %v13897_v56, 0.0 }
  0x95   : > { %v1059_v32 = vmul.f32 %v840_v7, %v13287_v33  ;;  %v1060_v43 = vmul.f32 %v842_v14, %v13295_v39  ;;  %v723_v39 = vsel %vm19969_vm0, %v581_v11, 0.0  ;;  %v583_v55 = vmul.f32 %v13914_v58, %v13914_v58 }
  0x96   : > { %v1140_v3 = vadd.f32 %v1139_v27, %v1138_v6  ;;  %v720_v13 = vadd.f32 %v719_v28, %v718_v15  ;;  %955 = vrot.lane.b32.xlu0 %v13879_v18, %s13156_s30  ;;  %v489_v30 = vadd.f32 %v488_v21, %v487_v44  ;;  %957 = vrot.lane.b32.xlu1 %v13889_v54, %s13156_s30  ;;  %v725_v6 = vsel %vm19969_vm0, %v582_v0, 0.0  ;;  %v13937_v15 = vld [vmem:[%s13215_s29 + $0x238] sm:$0xff] }
  0x97   : > { %v1143_v33 = vsel %vm1127_vm1, %v1059_v32, 0.0  ;;  %20087 = vst [vmem:[#allocation26_spill] sm:$0xff] %v13937_v15  ;;  %v1145_v44 = vsel %vm1127_vm1, %v1060_v43, 0.0  ;;  %v584_v14 = vmul.f32 %v13927_v2, %v13927_v2  ;;  %v13945_v32 = vld [vmem:[%s13215_s29 + $0x240] sm:$0xff]  ;;  %v727_v43 = vsel %vm19969_vm0, %v583_v55, 0.0 }
  0x98   : > { %v1142_v1 = vadd.f32 %v1141_v22, %v1140_v3  ;;  %v722_v5 = vadd.f32 %v721_v26, %v720_v13  ;;  %v491_v21 = vadd.f32 %v490_v37, %v489_v30  ;;  %v844_v27 = vpop.permute.xlu0 %843  ;;  %v846_v28 = vpop.permute.xlu1 %845  ;;  %v498_v26 = vsel %vm19969_vm0, %v13937_v15, 0.0 }
  0x99   : > { %v1061_v7 = vmul.f32 %v844_v27, %v13307_v45  ;;  %v1062_v11 = vmul.f32 %v846_v28, %v13315_v51  ;;  %v496_v45 = vsel %vm19969_vm0, %v13927_v2, 0.0  ;;  %v585_v3 = vmul.f32 %v13937_v15, %v13937_v15 }
  0x9a   : > { %v1144_v22 = vadd.f32 %v1143_v33, %v1142_v1  ;;  %v724_v37 = vadd.f32 %v723_v39, %v722_v5  ;;  %959 = vrot.lane.b32.xlu0 %v13897_v56, %s13156_s30  ;;  %v493_v0 = vadd.f32 %v492_v20, %v491_v21  ;;  %961 = vrot.lane.b32.xlu1 %v13914_v58, %s13156_s30  ;;  %v13962_v5 = vld [vmem:[%s13215_s29 + $0x248] sm:$0xff]  ;;  %v729_v28 = vsel %vm19969_vm0, %v584_v14, 0.0 }
  0x9b   : > { %v1147_v51 = vsel %vm1127_vm1, %v1061_v7, 0.0  ;;  %v586_v1 = vmul.f32 %v13945_v32, %v13945_v32  ;;  %v1149_v21 = vsel %vm1127_vm1, %v1062_v11, 0.0  ;;  %v13975_v11 = vld [vmem:[%s13215_s29 + $0x250] sm:$0xff]  ;;  %v502_v14 = vsel %vm19969_vm0, %v13962_v5, 0.0 }
  0x9c   : > { %v1146_v13 = vadd.f32 %v1145_v44, %v1144_v22  ;;  %v726_v30 = vadd.f32 %v725_v6, %v724_v37  ;;  %v495_v20 = vadd.f32 %v494_v41, %v493_v0  ;;  %v848_v33 = vpop.permute.xlu0 %847  ;;  %v850_v39 = vpop.permute.xlu1 %849  ;;  %v500_v6 = vsel %vm19969_vm0, %v13945_v32, 0.0 }
  0x9d   : > { %v1063_v55 = vmul.f32 %v848_v33, %v13327_v57  ;;  %v1064_v27 = vmul.f32 %v850_v39, %v13335_v63  ;;  %v731_v63 = vsel %vm19969_vm0, %v585_v3, 0.0  ;;  %v587_v22 = vmul.f32 %v13962_v5, %v13962_v5 }
  0x9e   : > { %v1148_v7 = vadd.f32 %v1147_v51, %v1146_v13  ;;  %v728_v44 = vadd.f32 %v727_v43, %v726_v30  ;;  %963 = vrot.lane.b32.xlu0 %v13927_v2, %s13156_s30  ;;  %v497_v41 = vadd.f32 %v496_v45, %v495_v20  ;;  %965 = vrot.lane.b32.xlu1 %v13937_v15, %s13156_s30  ;;  %v733_v13 = vsel %vm19969_vm0, %v586_v1, 0.0  ;;  %v13985_v30 = vld [vmem:[%s13215_s29 + $0x258] sm:$0xff] }
  0x9f   : > { %v1151_v57 = vsel %vm1127_vm1, %v1063_v55, 0.0  ;;  %v1153_v20 = vsel %vm1127_vm1, %v1064_v27, 0.0  ;;  %v588_v39 = vmul.f32 %v13975_v11, %v13975_v11 }
  0xa0   : > { %v1150_v37 = vadd.f32 %v1149_v21, %v1148_v7  ;;  %v730_v0 = vadd.f32 %v729_v28, %v728_v44  ;;  %v499_v45 = vadd.f32 %v498_v26, %v497_v41  ;;  %v852_v51 = vpop.permute.xlu0 %851  ;;  %v854_v43 = vpop.permute.xlu1 %853  ;;  %v735_v21 = vsel %vm19969_vm0, %v587_v22, 0.0 }
  0xa1   : > { %v1065_v33 = vmul.f32 %v852_v51, %v13347_v10  ;;  %v1066_v3 = vmul.f32 %v854_v43, %v13355_v17  ;;  %v504_v10 = vsel %vm19969_vm0, %v13975_v11, 0.0  ;;  %v589_v17 = vmul.f32 %v13985_v30, %v13985_v30 }
  0xa2   : > { %v1152_v55 = vadd.f32 %v1151_v57, %v1150_v37  ;;  %v732_v15 = vadd.f32 %v731_v63, %v730_v0  ;;  %967 = vrot.lane.b32.xlu0 %v13945_v32, %s13156_s30  ;;  %v501_v26 = vadd.f32 %v500_v6, %v499_v45  ;;  %969 = vrot.lane.b32.xlu1 %v13962_v5, %s13156_s30  ;;  %v506_v6 = vsel %vm19969_vm0, %v13985_v30, 0.0 }
  0xa3   : > { %v1155_v1 = vsel %vm1127_vm1, %v1065_v33, 0.0  ;;  %v1157_v57 = vsel %vm1127_vm1, %v1066_v3, 0.0  ;;  %v737_v37 = vsel %vm19969_vm0, %v588_v39, 0.0  ;;  %v739_v51 = vsel %vm19969_vm0, %v589_v17, 0.0 }
  0xa4   : > { %v1154_v27 = vadd.f32 %v1153_v20, %v1152_v55  ;;  %v734_v28 = vadd.f32 %v733_v13, %v732_v15  ;;  %v503_v7 = vadd.f32 %v502_v14, %v501_v26  ;;  %v856_v44 = vpop.permute.xlu0 %855  ;;  %v858_v41 = vpop.permute.xlu1 %857 }
  0xa5   : > { %v1067_v63 = vmul.f32 %v856_v44, %v13367_v24  ;;  %v1068_v22 = vmul.f32 %v858_v41, %v13375_v31 }
  0xa6   : > { %v1156_v0 = vadd.f32 %v1155_v1, %v1154_v27  ;;  %v736_v45 = vadd.f32 %v735_v21, %v734_v28  ;;  %971 = vrot.lane.b32.xlu0 %v13975_v11, %s13156_s30  ;;  %v505_v15 = vadd.f32 %v504_v10, %v503_v7  ;;  %973 = vrot.lane.b32.xlu1 %v13985_v30, %s13156_s30 }
  0xa7   : > { %v1159_v14 = vsel %vm1127_vm1, %v1067_v63, 0.0  ;;  %v1161_v33 = vsel %vm1127_vm1, %v1068_v22, 0.0 }
  0xa8   : > { %v1158_v43 = vadd.f32 %v1157_v57, %v1156_v0  ;;  %v738_v13 = vadd.f32 %v737_v37, %v736_v45  ;;  %v507_v24 = vadd.f32 %v506_v6, %v505_v15  ;;  %v860_v20 = vpop.permute.xlu0 %859  ;;  %v862_v31 = vpop.permute.xlu1 %861 }
  0xa9   : > { %v1069_v3 = vmul.f32 %v860_v20, %v13387_v38  ;;  %v1070_v39 = vmul.f32 %v862_v31, %v13395_v46 }
  0xaa   : > { %v1160_v55 = vadd.f32 %v1159_v14, %v1158_v43  ;;  %v508_v26 = vrot.slane %v507_v24, 4  ;;  %v740_v1 = vadd.f32 %v739_v51, %v738_v13 }
  0xab   : > { %v1163_v21 = vsel %vm1127_vm1, %v1069_v3, 0.0  ;;  %v1165_v44 = vsel %vm1127_vm1, %v1070_v39, 0.0 }
  0xac   : > { %v1162_v10 = vadd.f32 %v1161_v33, %v1160_v55  ;;  %v509_v27 = vadd.f32 %v508_v26, %v507_v24  ;;  %v741_v28 = vrot.slane %v740_v1, 4  ;;  %v864_v17 = vpop.permute.xlu0 %863  ;;  %v866_v7 = vpop.permute.xlu1 %865 }
  0xad   : > { %v1071_v41 = vmul.f32 %v864_v17, %v13407_v53  ;;  %v1072_v6 = vmul.f32 %v866_v7, %v13415_v60 }
  0xae   : > { %v742_v57 = vadd.f32 %v741_v28, %v740_v1  ;;  %v1164_v38 = vadd.f32 %v1163_v21, %v1162_v10  ;;  %v510_v63 = vrot.slane %v509_v27, 2 }
  0xaf   : > { %v1167_v46 = vsel %vm1127_vm1, %v1071_v41, 0.0  ;;  %v1169_v14 = vsel %vm1127_vm1, %v1072_v6, 0.0 }
  0xb0   : > { %v1166_v22 = vadd.f32 %v1165_v44, %v1164_v38  ;;  %v868_v37 = vpop.permute.xlu0 %867  ;;  %v870_v0 = vpop.permute.xlu1 %869  ;;  %v511_v45 = vadd.f32 %v510_v63, %v509_v27  ;;  %v743_v15 = vrot.slane %v742_v57, 2 }
  0xb1   : > { %v1073_v51 = vmul.f32 %v868_v37, %v13427_v8  ;;  %v1074_v43 = vmul.f32 %v870_v0, %v13435_v16 }
  0xb2   : > { %v1168_v13 = vadd.f32 %v1167_v46, %v1166_v22  ;;  %v512_v53 = vrot.slane %v511_v45, 1  ;;  %v744_v24 = vadd.f32 %v743_v15, %v742_v57 }
  0xb3   : > { %v1171_v60 = vsel %vm1127_vm1, %v1073_v51, 0.0  ;;  %v1173_v55 = vsel %vm1127_vm1, %v1074_v43, 0.0 }
  0xb4   : > { %v1170_v20 = vadd.f32 %v1169_v14, %v1168_v13  ;;  %v872_v31 = vpop.permute.xlu0 %871  ;;  %v874_v33 = vpop.permute.xlu1 %873  ;;  %v513_v3 = vadd.f32 %v512_v53, %v511_v45  ;;  %v745_v39 = vrot.slane %v744_v24, 1 }
  0xb5   : > { %v1075_v26 = vmul.f32 %v872_v31, %v13447_v25  ;;  %v1076_v1 = vmul.f32 %v874_v33, %v13455_v34 }
  0xb6   : > { %v1172_v21 = vadd.f32 %v1171_v60, %v1170_v20  ;;  %v14029_v8 = vmul.f32 0.00390625, %v513_v3  ;;  %v746_v16 = vadd.f32 %v745_v39, %v744_v24 }
  0xb7   : > { %v1175_v10 = vsel %vm1127_vm1, %v1075_v26, 0.0  ;;  %v1177_v25 = vsel %vm1127_vm1, %v1076_v1, 0.0 }
  0xb8   : > { %v1174_v27 = vadd.f32 %v1173_v55, %v1172_v21  ;;  %v876_v28 = vpop.permute.xlu0 %875  ;;  %1294 = vrot.lane.b32.xlu0 %v14029_v8, %s13156_s30  ;;  %v878_v17 = vpop.permute.xlu1 %877  ;;  %v1288_v7 = vmul.f32 0.00390625, %v746_v16  ;;  %v1289_v44 = vmul.f32 %v14029_v8, %v14029_v8 }
  0xb9   : > { %v1077_v34 = vmul.f32 %v876_v28, %v13467_v42  ;;  %v1078_v41 = vmul.f32 %v878_v17, %v13475_v50 }
  0xba   : > { %v1176_v6 = vadd.f32 %v1175_v10, %v1174_v27  ;;  %v1290_v57 = vsub.f32 %v1288_v7, %v1289_v44 }
  0xbb   : > { %v1179_v38 = vsel %vm1127_vm1, %v1077_v34, 0.0  ;;  %v1181_v0 = vsel %vm1127_vm1, %v1078_v41, 0.0 }
  0xbc   : > { %v1178_v63 = vadd.f32 %v1177_v25, %v1176_v6  ;;  %v880_v46 = vpop.permute.xlu0 %879  ;;  %v14040_v22 = vadd.f32 0.0001, %v1290_v57  ;;  %v882_v37 = vpop.permute.xlu1 %881 }
  0xbd   : > { %v1079_v45 = vmul.f32 %v880_v46, %v13487_v59  ;;  %v1080_v15 = vmul.f32 %v882_v37, %v13495_v9 }
  0xbe   : > { %v1180_v14 = vadd.f32 %v1179_v38, %v1178_v63  ;;  %1300 = vrot.lane.b32.xlu1 %v14040_v22, %s13156_s30  ;;  %v20088_v63 = vld [vmem:[#allocation4_spill] sm:$0xff] }
  0xbf   : > { %v1183_v42 = vsel %vm1127_vm1, %v1079_v45, 0.0  ;;  %v1185_v13 = vsel %vm1127_vm1, %v1080_v15, 0.0 }
  0xc0   : > { %v1182_v50 = vadd.f32 %v1181_v0, %v1180_v14  ;;  %v884_v51 = vpop.permute.xlu0 %883  ;;  %v886_v43 = vpop.permute.xlu1 %885  ;;  %v20089_v14 = vld [vmem:[#allocation5_spill] sm:$0xff] }
  0xc1   : > { %v1081_v53 = vmul.f32 %v884_v51, %v13507_v19  ;;  %v1082_v24 = vmul.f32 %v886_v43, %v13515_v29 }
  0xc2   : > { %v1184_v60 = vadd.f32 %v1183_v42, %v1182_v50  ;;  %v20090_v50 = vld [vmem:[#allocation6_spill] sm:$0xff] }
  0xc3   : > { %v1187_v59 = vsel %vm1127_vm1, %v1081_v53, 0.0  ;;  %v1189_v33 = vsel %vm1127_vm1, %v1082_v24, 0.0 }
  0xc4   : > { %v1186_v20 = vadd.f32 %v1185_v13, %v1184_v60  ;;  %v888_v9 = vpop.permute.xlu0 %887  ;;  %v890_v31 = vpop.permute.xlu1 %889 }
  0xc5   : > { %v1083_v3 = vmul.f32 %v888_v9, %v13527_v40  ;;  %v1084_v39 = vmul.f32 %v890_v31, %v13535_v49  ;;  %v20092_v9 = vld [vmem:[#allocation8_spill] sm:$0xff] }
  0xc6   : > { %v1188_v55 = vadd.f32 %v1187_v59, %v1186_v20  ;;  %v20091_v59 = vld [vmem:[#allocation7_spill] sm:$0xff] }
  0xc7   : > { %v1191_v26 = vsel %vm1127_vm1, %v1083_v3, 0.0  ;;  %v1193_v29 = vsel %vm1127_vm1, %v1084_v39, 0.0 }
  0xc8   : > { %v1190_v1 = vadd.f32 %v1189_v33, %v1188_v55  ;;  %v892_v21 = vpop.permute.xlu0 %891  ;;  %v894_v19 = vpop.permute.xlu1 %893 }
  0xc9   : > { %v1085_v16 = vmul.f32 %v892_v21, %v13547_v61  ;;  %v1086_v10 = vmul.f32 %v894_v19, %v13555_v12  ;;  %v20093_v21 = vld [vmem:[#allocation9_spill] sm:$0xff] }
  0xca   : > { %v1192_v27 = vadd.f32 %v1191_v26, %v1190_v1 }
  0xcb   : > { %v1195_v28 = vsel %vm1127_vm1, %v1085_v16, 0.0  ;;  %v1197_v49 = vsel %vm1127_vm1, %v1086_v10, 0.0 }
  0xcc   : > { %v1194_v17 = vadd.f32 %v1193_v29, %v1192_v27  ;;  %v896_v7 = vpop.permute.xlu0 %895  ;;  %v898_v40 = vpop.permute.xlu1 %897  ;;  %v20094_v29 = vld [vmem:[#allocation10_spill] sm:$0xff] }
  0xcd   : > { %v1087_v44 = vmul.f32 %v896_v7, %v13567_v23  ;;  %v1088_v25 = vmul.f32 %v898_v40, %v13575_v36 }
  0xce   : > { %v1196_v34 = vadd.f32 %v1195_v28, %v1194_v17 }
  0xcf   : > { %v1199_v41 = vsel %vm1127_vm1, %v1087_v44, 0.0  ;;  %v1201_v12 = vsel %vm1127_vm1, %v1088_v25, 0.0  ;;  %v20096_v25 = vld [vmem:[#allocation12_spill] sm:$0xff] }
  0xd0   : > { %v1198_v6 = vadd.f32 %v1197_v49, %v1196_v34  ;;  %v900_v57 = vpop.permute.xlu0 %899  ;;  %v902_v61 = vpop.permute.xlu1 %901  ;;  %v20095_v49 = vld [vmem:[#allocation11_spill] sm:$0xff] }
  0xd1   : > { %v1089_v38 = vmul.f32 %v900_v57, %v13587_v48  ;;  %v1090_v46 = vmul.f32 %v902_v61, %v20088_v63  ;;  %v20097_v63 = vld [vmem:[#allocation13_spill] sm:$0xff] }
  0xd2   : > { %v1200_v37 = vadd.f32 %v1199_v41, %v1198_v6 }
  0xd3   : > { %v1203_v0 = vsel %vm1127_vm1, %v1089_v38, 0.0  ;;  %v1205_v36 = vsel %vm1127_vm1, %v1090_v46, 0.0 }
  0xd4   : > { %v1202_v45 = vadd.f32 %v1201_v12, %v1200_v37  ;;  %v904_v15 = vpop.permute.xlu0 %903  ;;  %v906_v23 = vpop.permute.xlu1 %905  ;;  %v20098_v37 = vld [vmem:[#allocation14_spill] sm:$0xff] }
  0xd5   : > { %v1091_v42 = vmul.f32 %v904_v15, %v20089_v14  ;;  %v1092_v51 = vmul.f32 %v906_v23, %v20090_v50  ;;  %v20099_v50 = vld [vmem:[#allocation15_spill] sm:$0xff] }
  0xd6   : > { %v1204_v43 = vadd.f32 %v1203_v0, %v1202_v45 }
  0xd7   : > { %v1207_v13 = vsel %vm1127_vm1, %v1091_v42, 0.0  ;;  %v1209_v60 = vsel %vm1127_vm1, %v1092_v51, 0.0 }
  0xd8   : > { %v1206_v53 = vadd.f32 %v1205_v36, %v1204_v43  ;;  %v908_v24 = vpop.permute.xlu0 %907  ;;  %v910_v48 = vpop.permute.xlu1 %909  ;;  %v20100_v43 = vld [vmem:[#allocation16_spill] sm:$0xff] }
  0xd9   : > { %v1093_v20 = vmul.f32 %v908_v24, %v20091_v59  ;;  %v1094_v31 = vmul.f32 %v910_v48, %v20092_v9  ;;  %v20101_v9 = vld [vmem:[#allocation17_spill] sm:$0xff] }
  0xda   : > { %v1208_v33 = vadd.f32 %v1207_v13, %v1206_v53 }
  0xdb   : > { %v1211_v3 = vsel %vm1127_vm1, %v1093_v20, 0.0  ;;  %v1213_v1 = vsel %vm1127_vm1, %v1094_v31, 0.0 }
  0xdc   : > { %v1210_v39 = vadd.f32 %v1209_v60, %v1208_v33  ;;  %v912_v55 = vpop.permute.xlu0 %911  ;;  %v914_v26 = vpop.permute.xlu1 %913  ;;  %v20102_v33 = vld [vmem:[#allocation18_spill] sm:$0xff] }
  0xdd   : > { %v1095_v19 = vmul.f32 %v912_v55, %v20093_v21  ;;  %v1096_v16 = vmul.f32 %v914_v26, %v20094_v29  ;;  %v20103_v29 = vld [vmem:[#allocation19_spill] sm:$0xff] }
  0xde   : > { %v1212_v10 = vadd.f32 %v1211_v3, %v1210_v39 }
  0xdf   : > { %v1215_v27 = vsel %vm1127_vm1, %v1095_v19, 0.0  ;;  %v1217_v40 = vsel %vm1127_vm1, %v1096_v16, 0.0 }
  0xe0   : > { %v1214_v28 = vadd.f32 %v1213_v1, %v1212_v10  ;;  %v916_v17 = vpop.permute.xlu0 %915  ;;  %v918_v7 = vpop.permute.xlu1 %917  ;;  %v20104_v10 = vld [vmem:[#allocation20_spill] sm:$0xff] }
  0xe1   : > { %v1097_v44 = vmul.f32 %v916_v17, %v20095_v49  ;;  %v1098_v34 = vmul.f32 %v918_v7, %v20096_v25  ;;  %v20105_v25 = vld [vmem:[#allocation21_spill] sm:$0xff] }
  0xe2   : > { %v1216_v41 = vadd.f32 %v1215_v27, %v1214_v28 }
  0xe3   : > { %v1219_v6 = vsel %vm1127_vm1, %v1097_v44, 0.0  ;;  %v1221_v38 = vsel %vm1127_vm1, %v1098_v34, 0.0 }
  0xe4   : > { %v1218_v57 = vadd.f32 %v1217_v40, %v1216_v41  ;;  %v920_v61 = vpop.permute.xlu0 %919  ;;  %v922_v12 = vpop.permute.xlu1 %921  ;;  %v20106_v41 = vld [vmem:[#allocation22_spill] sm:$0xff] }
  0xe5   : > { %v1099_v46 = vmul.f32 %v920_v61, %v20097_v63  ;;  %v1100_v0 = vmul.f32 %v922_v12, %v20098_v37  ;;  %v20107_v37 = vld [vmem:[#allocation23_spill] sm:$0xff] }
  0xe6   : > { %v1220_v45 = vadd.f32 %v1219_v6, %v1218_v57 }
  0xe7   : > { %v1223_v15 = vsel %vm1127_vm1, %v1099_v46, 0.0  ;;  %v1225_v42 = vsel %vm1127_vm1, %v1100_v0, 0.0 }
  0xe8   : > { %v1222_v23 = vadd.f32 %v1221_v38, %v1220_v45  ;;  %v924_v36 = vpop.permute.xlu0 %923  ;;  %v926_v14 = vpop.permute.xlu1 %925  ;;  %v20108_v45 = vld [vmem:[#allocation24_spill] sm:$0xff] }
  0xe9   : > { %v1101_v51 = vmul.f32 %v924_v36, %v20099_v50  ;;  %v1102_v13 = vmul.f32 %v926_v14, %v20100_v43 }
  0xea   : > { %v1224_v53 = vadd.f32 %v1223_v15, %v1222_v23 }
  0xeb   : > { %v1227_v24 = vsel %vm1127_vm1, %v1101_v51, 0.0  ;;  %v1229_v20 = vsel %vm1127_vm1, %v1102_v13, 0.0  ;;  %v20109_v13 = vld [vmem:[#allocation25_spill] sm:$0xff] }
  0xec   : > { %v1226_v48 = vadd.f32 %v1225_v42, %v1224_v53  ;;  %v928_v60 = vpop.permute.xlu0 %927  ;;  %v930_v59 = vpop.permute.xlu1 %929 }
  0xed   : > { %v1103_v31 = vmul.f32 %v928_v60, %v20101_v9  ;;  %v1104_v3 = vmul.f32 %v930_v59, %v20102_v33 }
  0xee   : > { %v1228_v39 = vadd.f32 %v1227_v24, %v1226_v48 }
  0xef   : > { %v1231_v55 = vsel %vm1127_vm1, %v1103_v31, 0.0  ;;  %v1233_v19 = vsel %vm1127_vm1, %v1104_v3, 0.0 }
  0xf0   : > { %v1230_v26 = vadd.f32 %v1229_v20, %v1228_v39  ;;  %v932_v1 = vpop.permute.xlu0 %931  ;;  %v934_v21 = vpop.permute.xlu1 %933 }
  0xf1   : > { %v1105_v16 = vmul.f32 %v932_v1, %v20103_v29  ;;  %v1106_v27 = vmul.f32 %v934_v21, %v20104_v10 }
  0xf2   : > { %v1232_v28 = vadd.f32 %v1231_v55, %v1230_v26 }
  0xf3   : > { %v1235_v17 = vsel %vm1127_vm1, %v1105_v16, 0.0  ;;  %v1237_v44 = vsel %vm1127_vm1, %v1106_v27, 0.0 }
  0xf4   : > { %v1234_v7 = vadd.f32 %v1233_v19, %v1232_v28  ;;  %v936_v40 = vpop.permute.xlu0 %935  ;;  %v938_v49 = vpop.permute.xlu1 %937 }
  0xf5   : > { %v1107_v34 = vmul.f32 %v936_v40, %v20105_v25  ;;  %v1108_v6 = vmul.f32 %v938_v49, %v20106_v41 }
  0xf6   : > { %v1236_v57 = vadd.f32 %v1235_v17, %v1234_v7 }
  0xf7   : > { %v1239_v61 = vsel %vm1127_vm1, %v1107_v34, 0.0  ;;  %v1241_v46 = vsel %vm1127_vm1, %v1108_v6, 0.0 }
  0xf8   : > { %v1238_v12 = vadd.f32 %v1237_v44, %v1236_v57  ;;  %v940_v38 = vpop.permute.xlu0 %939  ;;  %v942_v63 = vpop.permute.xlu1 %941 }
  0xf9   : > { %v1109_v0 = vmul.f32 %v940_v38, %v20107_v37  ;;  %v1110_v15 = vmul.f32 %v942_v63, %v20108_v45  ;;  %v20110_v38 = vld [vmem:[#allocation26_spill] sm:$0xff] }
  0xfa   : > { %v1240_v23 = vadd.f32 %v1239_v61, %v1238_v12 }
  0xfb   : > { %v1243_v36 = vsel %vm1127_vm1, %v1109_v0, 0.0  ;;  %v1245_v51 = vsel %vm1127_vm1, %v1110_v15, 0.0 }
  0xfc   : > { %v1242_v14 = vadd.f32 %v1241_v46, %v1240_v23  ;;  %v944_v42 = vpop.permute.xlu0 %943  ;;  %v946_v50 = vpop.permute.xlu1 %945 }
  0xfd   : > { %v1111_v43 = vmul.f32 %v944_v42, %v13807_v35  ;;  %v1112_v53 = vmul.f32 %v946_v50, %v20109_v13 }
  0xfe   : > { %v1244_v24 = vadd.f32 %v1243_v36, %v1242_v14 }
  0xff   : > { %v1247_v48 = vsel %vm1127_vm1, %v1111_v43, 0.0  ;;  %v1249_v9 = vsel %vm1127_vm1, %v1112_v53, 0.0 }
 0x100   : > { %v1246_v60 = vadd.f32 %v1245_v51, %v1244_v24  ;;  %v948_v59 = vpop.permute.xlu0 %947  ;;  %v950_v20 = vpop.permute.xlu1 %949 }
 0x101   : > { %v1113_v31 = vmul.f32 %v948_v59, %v13818_v47  ;;  %v1114_v33 = vmul.f32 %v950_v20, %v13838_v52 }
 0x102   : > { %v1248_v3 = vadd.f32 %v1247_v48, %v1246_v60 }
 0x103   : > { %v1251_v39 = vsel %vm1127_vm1, %v1113_v31, 0.0  ;;  %v1253_v1 = vsel %vm1127_vm1, %v1114_v33, 0.0 }
 0x104   : > { %v1250_v55 = vadd.f32 %v1249_v9, %v1248_v3  ;;  %v952_v26 = vpop.permute.xlu0 %951  ;;  %v954_v35 = vpop.permute.xlu1 %953 }
 0x105   : > { %v1115_v21 = vmul.f32 %v952_v26, %v13849_v62  ;;  %v1116_v19 = vmul.f32 %v954_v35, %v13866_v4 }
 0x106   : > { %v1252_v29 = vadd.f32 %v1251_v39, %v1250_v55 }
 0x107   : > { %v1255_v16 = vsel %vm1127_vm1, %v1115_v21, 0.0  ;;  %v1257_v52 = vsel %vm1127_vm1, %v1116_v19, 0.0 }
 0x108   : > { %v1254_v10 = vadd.f32 %v1253_v1, %v1252_v29  ;;  %v956_v27 = vpop.permute.xlu0 %955  ;;  %v958_v47 = vpop.permute.xlu1 %957 }
 0x109   : > { %v1117_v28 = vmul.f32 %v956_v27, %v13879_v18  ;;  %v1118_v17 = vmul.f32 %v958_v47, %v13889_v54 }
 0x10a   : > { %v1256_v7 = vadd.f32 %v1255_v16, %v1254_v10 }
 0x10b   : > { %v1259_v40 = vsel %vm1127_vm1, %v1117_v28, 0.0  ;;  %v1261_v4 = vsel %vm1127_vm1, %v1118_v17, 0.0 }
 0x10c   : > { %v1258_v49 = vadd.f32 %v1257_v52, %v1256_v7  ;;  %v960_v44 = vpop.permute.xlu0 %959  ;;  %v962_v62 = vpop.permute.xlu1 %961 }
 0x10d   : > { %v1119_v25 = vmul.f32 %v960_v44, %v13897_v56  ;;  %v1120_v34 = vmul.f32 %v962_v62, %v13914_v58 }
 0x10e   : > { %v1260_v41 = vadd.f32 %v1259_v40, %v1258_v49 }
 0x10f   : > { %v1263_v6 = vsel %vm1127_vm1, %v1119_v25, 0.0  ;;  %v1265_v54 = vsel %vm1127_vm1, %v1120_v34, 0.0 }
 0x110   : > { %v1262_v57 = vadd.f32 %v1261_v4, %v1260_v41  ;;  %v964_v61 = vpop.permute.xlu0 %963  ;;  %v966_v18 = vpop.permute.xlu1 %965 }
 0x111   : > { %v1121_v12 = vmul.f32 %v964_v61, %v13927_v2  ;;  %v1122_v63 = vmul.f32 %v966_v18, %v20110_v38 }
 0x112   : > { %v1264_v46 = vadd.f32 %v1263_v6, %v1262_v57 }
 0x113   : > { %v1267_v37 = vsel %vm1127_vm1, %v1121_v12, 0.0  ;;  %v1269_v58 = vsel %vm1127_vm1, %v1122_v63, 0.0 }
 0x114   : > { %v1266_v0 = vadd.f32 %v1265_v54, %v1264_v46  ;;  %v968_v45 = vpop.permute.xlu0 %967  ;;  %v970_v56 = vpop.permute.xlu1 %969  ;;  %v1285_v54 = vld [vmem:[%s19936_s1] sm:$0x7] }
 0x115   : > { %v1123_v15 = vmul.f32 %v968_v45, %v13945_v32  ;;  %v1124_v23 = vmul.f32 %v970_v56, %v13962_v5 }
 0x116   : > { %v1268_v36 = vadd.f32 %v1267_v37, %v1266_v0 }
 0x117   : > { %v1271_v14 = vsel %vm1127_vm1, %v1123_v15, 0.0  ;;  %v1273_v51 = vsel %vm1127_vm1, %v1124_v23, 0.0 }
 0x118   : > { %v1270_v42 = vadd.f32 %v1269_v58, %v1268_v36  ;;  %v972_v50 = vpop.permute.xlu0 %971  ;;  %v974_v2 = vpop.permute.xlu1 %973 }
 0x119   : > { %v1125_v43 = vmul.f32 %v972_v50, %v13975_v11  ;;  %v1126_v13 = vmul.f32 %v974_v2, %v13985_v30 }
 0x11a   : > { %v1272_v53 = vadd.f32 %v1271_v14, %v1270_v42 }
 0x11b   : > { %v1275_v24 = vsel %vm1127_vm1, %v1125_v43, 0.0  ;;  %v1277_v32 = vsel %vm1127_vm1, %v1126_v13, 0.0 }
 0x11c   : > { %v1274_v48 = vadd.f32 %v1273_v51, %v1272_v53 }
 0x11e   : > { %v1276_v60 = vadd.f32 %v1275_v24, %v1274_v48 }
 0x120   : > { %v1278_v5 = vadd.f32 %v1277_v32, %v1276_v60 }
 0x122   : > { %v1279_v59 = vrot.slane %v1278_v5, 4 }
 0x124   : > { %v1280_v20 = vadd.f32 %v1279_v59, %v1278_v5 }
 0x126   : > { %v1281_v9 = vrot.slane %v1280_v20, 2 }
 0x128   : > { %v1282_v31 = vadd.f32 %v1281_v9, %v1280_v20  ;;  %v14162_v20 = vld [vmem:[%s19937_s2] sm:$0x3] }
 0x12a   : > { %v1283_v33 = vrot.slane %v1282_v31, 1  ;;  %v14141_v3 = vpop.permute.xlu0 %1294 }
 0x12b   : > { %v1297_v11 = vmul.f32 %v14141_v3, %v14029_v8 }
 0x12c   : > { %v1284_v39 = vadd.f32 %v1283_v33, %v1282_v31 }
 0x12e   : > { %v1292_v30 = vmul.f32 0.00390625, %v1284_v39 }
 0x130   : > { %v1298_v55 = vsub.f32 %v1292_v30, %v1297_v11  ;;  %v1301_v26 = vpop.permute.xlu1 %1300 }
 0x131   : > { %v1304_v35 = vmul.f32 %v1301_v26, %v14040_v22  ;;  %v1303_v52 = vadd.f32 %v1301_v26, %v14040_v22 }
 0x132   : > { %v1305_v1 = vmul.f32 %v1298_v55, %v1298_v55  ;;  %v1338_v25 = vsub.f32 0.0, %v1298_v55 }
 0x134   : > { %v1306_v21 = vsub.f32 %v1304_v35, %v1305_v1  ;;  %v1407_v35 = vlaneseq }
 0x136   : > { %v1307_v19 = vmax.f32 %v1306_v21, 1e-12  ;;  %v14173_v1 = vshrl.u32 %v1407_v35, 7 }
 0x138   : > { %12987 = vrsqrt.f32 %v1307_v19  ;;  %vm1310_vm2 = vcmp.eq.f32.partialorder %v1307_v19, inf  ;;  %v1313_v10 = vand.u32 2147483648, %v1307_v19  ;;  %vm1312_vm3 = vcmp.eq.f32.partialorder %v1307_v19, 0.0  ;;  %20111 = vst [vmem:[#allocation4_spill] sm:$0xff] %v14173_v1 }
 0x145   : > { %v12988_v29 = vpop.eup %12987 }
 0x146   : > { %v1309_v16 = vmul.f32 %v12988_v29, %v1307_v19  ;;  %v14180_v29 = vsub.s32 0, %v14173_v1 }
 0x148   : > { %v1311_v27 = vsel %vm1310_vm2, %v1307_v19, %v1309_v16  ;;  %20113 = vst [vmem:[#allocation6_spill] sm:$0xff] %v14180_v29 }
 0x149   : > { %v1314_v47 = vsel %vm1312_vm3, %v1313_v10, %v1311_v27 }
 0x14a   : > { %1327 = vrot.lane.b32.xlu0 %v1314_v47, %s13157_s8  ;;  %v1315_v28 = vmul.f32 2.0, %v1314_v47  ;;  %v1336_v34 = vadd.f32 %v1314_v47, %v14040_v22 }
 0x14c   : > { %v1316_v17 = vadd.f32 %v1315_v28, %v1303_v52 }
 0x14e   : > { %12989 = vrsqrt.f32 %v1316_v17  ;;  %vm1319_vm4 = vcmp.eq.f32.partialorder %v1316_v17, inf  ;;  %v1322_v49 = vand.u32 2147483648, %v1316_v17  ;;  %vm1321_vm5 = vcmp.eq.f32.partialorder %v1316_v17, 0.0 }
 0x15b   : > { %v12990_v7 = vpop.eup %12989 }
 0x15c   : > { %v1318_v40 = vmul.f32 %v12990_v7, %v1316_v17 }
 0x15e   : > { %v1320_v44 = vsel %vm1319_vm4, %v1316_v17, %v1318_v40 }
 0x15f   : > { %v1323_v62 = vsel %vm1321_vm5, %v1322_v49, %v1320_v44  ;;  %v12999_v49 = vld [vmem:[%s13215_s29 + $0x8] sm:$0xff]  ;;  %v13000_v44 = vld [vmem:[%s13215_s29 + $0x10] sm:$0xff] }
 0x160   : > { %v1324_v4 = vmul.f32 %v1323_v62, %v1314_v47  ;;  %v13001_v62 = vld [vmem:[%s13215_s29 + $0x18] sm:$0xff] }
 0x162   : > { %12991 = vrcp.f32 %v1324_v4  ;;  %v13002_v4 = vld [vmem:[%s13215_s29 + $0x20] sm:$0xff] }
 0x16f   : > { %v12992_v41 = vpop.eup %12991 }
 0x170   : > { %v1337_v6 = vmul.f32 %v12992_v41, %v1336_v34  ;;  %1332 = vrot.lane.b32.xlu1 %v12992_v41, %s13157_s8  ;;  %v1339_v57 = vmul.f32 %v12992_v41, %v1338_v25  ;;  %v13003_v25 = vld [vmem:[%s13215_s29 + $0x28] sm:$0xff]  ;;  %v13004_v34 = vld [vmem:[%s13215_s29 + $0x30] sm:$0xff]  ;;  %v13005_v41 = vld [vmem:[%s13215_s29 + $0x38] sm:$0xff] }
 0x172   : > { %v1346_v61 = vrot.slane %v1339_v57, 7  ;;  %v1374_v18 = vrot.slane %v1337_v6, 6  ;;  %v1355_v12 = vrot.slane %v1337_v6, 7  ;;  %v1353_v0 = vmul.f32 %v1339_v57, %v1285_v54  ;;  %v13006_v6 = vld [vmem:[%s13215_s29 + $0x40] sm:$0xff] }
 0x173   : > { %v1367_v2 = vrot.slane %v1339_v57, 6  ;;  %v13007_v57 = vld [vmem:[%s13215_s29 + $0x48] sm:$0xff] }
 0x174   : > { %v1376_v38 = vmul.f32 %v1374_v18, %v1285_v54  ;;  %v1357_v63 = vmul.f32 %v1355_v12, %v1285_v54  ;;  %v1348_v46 = vmul.f32 %v1346_v61, %v1285_v54  ;;  %v13008_v61 = vld [vmem:[%s13215_s29 + $0x50] sm:$0xff]  ;;  %v13009_v18 = vld [vmem:[%s13215_s29 + $0x58] sm:$0xff]  ;;  %v13011_v12 = vld [vmem:[%s13215_s29 + $0x68] sm:$0xff] }
 0x175   : > { %v1369_v51 = vmul.f32 %v1367_v2, %v1285_v54  ;;  %v13026_v2 = vld [vmem:[%s13215_s29 + $0xe0] sm:$0xff] }
 0x176   : > { %v1378_v37 = vrot.slane %v1376_v38, 1  ;;  %v1359_v45 = vrot.slane %v1357_v63, 1  ;;  %v1350_v53 = vrot.slane %v1348_v46, 1  ;;  %v13012_v38 = vld [vmem:[%s13215_s29 + $0x70] sm:$0xff]  ;;  %v13013_v63 = vld [vmem:[%s13215_s29 + $0x78] sm:$0xff] }
 0x177   : > { %v1371_v60 = vrot.slane %v1369_v51, 1  ;;  %v13027_v51 = vld [vmem:[%s13215_s29 + $0xe8] sm:$0xff] }
 0x178   : > { %v1380_v56 = vadd.f32 %v1378_v37, %v1348_v46  ;;  %v1361_v58 = vadd.f32 %v1359_v45, %v1353_v0  ;;  %v13014_v46 = vld [vmem:[%s13215_s29 + $0x80] sm:$0xff]  ;;  %v13015_v37 = vld [vmem:[%s13215_s29 + $0x88] sm:$0xff]  ;;  %v13016_v0 = vld [vmem:[%s13215_s29 + $0x90] sm:$0xff] }
 0x179   : > { %v13017_v45 = vld [vmem:[%s13215_s29 + $0x98] sm:$0xff] }
 0x17a   : > { %v1390_v50 = vrot.slane %v1380_v56, 1  ;;  %v1382_v59 = vmul.f32 %v1361_v58, %v14141_v3  ;;  %v1386_v9 = vmul.f32 %v1380_v56, %v14141_v3  ;;  %v14175_v3 = vand.u32 127, %v1407_v35  ;;  %v13018_v56 = vld [vmem:[%s13215_s29 + $0xa0] sm:$0xff]  ;;  %v13043_v35 = vld [vmem:[%s13215_s29 + $0x168] sm:$0xff] }
 0x17c   : > { %20112 = vst [vmem:[#allocation5_spill] sm:$0xff] %v14175_v3  ;;  %vm19967_vm6 = vcmp.eq.s32.totalorder %v14173_v1, %v14175_v3 }
 0x1bc   : > { %v1328_v15 = vpop.permute.xlu0 %1327 }
 0x1bd   : > { %v1330_v23 = vadd.f32 %v1328_v15, %v14040_v22  ;;  %v13020_v15 = vld [vmem:[%s13215_s29 + $0xb0] sm:$0xff] }
 0x1e2   : > { %v1333_v36 = vpop.permute.xlu1 %1332 }
 0x1e3   : > { %v1335_v14 = vmul.f32 %v1333_v36, %v1330_v23  ;;  %v13021_v23 = vld [vmem:[%s13215_s29 + $0xb8] sm:$0xff]  ;;  %v13022_v36 = vld [vmem:[%s13215_s29 + $0xc0] sm:$0xff] }
 0x1e5   : > { %v1362_v42 = vrot.slane %v1335_v14, 7  ;;  %1341 = vrot.lane.b32.xlu1 %v1335_v14, %s13156_s30  ;;  %v13023_v14 = vld [vmem:[%s13215_s29 + $0xc8] sm:$0xff] }
 0x1e7   : > { %1363 = vrot.lane.b32.xlu0 %v1362_v42, %s13156_s30  ;;  %v13024_v42 = vld [vmem:[%s13215_s29 + $0xd0] sm:$0xff] }
 0x1eb   : > { %1391 = vrot.lane.b32.xlu0 %v1390_v50, %s13157_s8  ;;  %v13025_v50 = vld [vmem:[%s13215_s29 + $0xd8] sm:$0xff] }
 0x257   : > { %v1342_v43 = vpop.permute.xlu1 %1341 }
 0x258   : > { %v1344_v13 = vmul.f32 %v1342_v43, %v1285_v54  ;;  %v13028_v43 = vld [vmem:[%s13215_s29 + $0xf0] sm:$0xff] }
 0x259   : > { %v1364_v24 = vpop.permute.xlu0 %1363 }
 0x25a   : > { %v1352_v48 = vadd.f32 %v1350_v53, %v1344_v13  ;;  %v1366_v32 = vmul.f32 %v1364_v24, %v1285_v54  ;;  %v13010_v54 = vld [vmem:[%s13215_s29 + $0x60] sm:$0xff]  ;;  %v13029_v13 = vld [vmem:[%s13215_s29 + $0xf8] sm:$0xff]  ;;  %v13031_v24 = vld [vmem:[%s13215_s29 + $0x108] sm:$0xff] }
 0x25b   : > { %v13030_v53 = vld [vmem:[%s13215_s29 + $0x100] sm:$0xff] }
 0x25c   : > { %v1381_v22 = vmul.f32 %v1352_v48, %v14029_v8  ;;  %v1373_v5 = vadd.f32 %v1371_v60, %v1366_v32  ;;  %v13033_v32 = vld [vmem:[%s13215_s29 + $0x118] sm:$0xff]  ;;  %v13034_v60 = vld [vmem:[%s13215_s29 + $0x120] sm:$0xff] }
 0x25d   : > { %v1392_v19 = vpop.permute.xlu0 %1391 }
 0x25e   : > { %v1385_v31 = vmul.f32 %v1373_v5, %v14029_v8  ;;  %v1396_v33 = vrot.slane %v1373_v5, 1  ;;  %v14166_v39 = vadd.f32 %v1382_v59, %v1381_v22  ;;  %v1417_v8 = vsub.s32 %v14173_v1, %v14175_v3  ;;  %v13035_v22 = vld [vmem:[%s13215_s29 + $0x128] sm:$0xff]  ;;  %v13036_v5 = vld [vmem:[%s13215_s29 + $0x130] sm:$0xff]  ;;  %v13037_v59 = vld [vmem:[%s13215_s29 + $0x138] sm:$0xff] }
 0x25f   : > { %v1394_v16 = vsel %vm1127_vm1, %v1352_v48, %v1392_v19  ;;  %v13032_v48 = vld [vmem:[%s13215_s29 + $0x110] sm:$0xff] }
 0x260   : > { %1397 = vrot.lane.b32.xlu1 %v1396_v33, %s13157_s8  ;;  %v1387_v11 = vadd.f32 %v1386_v9, %v1385_v31  ;;  %v1384_v30 = vsub.f32 %v14162_v20, %v14166_v39  ;;  %v1419_v21 = vsub.s32 0, %v1417_v8  ;;  %v1415_v27 = vrot.slane %v1394_v16, %v14180_v29  ;;  %v13038_v9 = vld [vmem:[%s13215_s29 + $0x140] sm:$0xff]  ;;  %v13039_v33 = vld [vmem:[%s13215_s29 + $0x148] sm:$0xff]  ;;  %v13045_v16 = vld [vmem:[%s13215_s29 + $0x178] sm:$0xff] }
 0x261   : > { %v13158_v31 = vmov 0.0|0.0   ;;  %v14394_v39 = vadd.s32 64, %v14173_v1 }
 0x262   : > { %v1388_v55 = vsub.f32 %v14162_v20, %v1387_v11  ;;  %v14183_v10 = vmin.u32 %v1419_v21, %v1417_v8  ;;  %v1416_v17 = vsel %vm19967_vm6, %v1415_v27, 0.0  ;;  %3404 = vst.msk [vmem:[#allocation2 + $0xc] sm:$0xf] %vm19970_vm9, %v13158_v31  ;;  %3408 = vst.msk [vmem:[#allocation2 + $0x1c] sm:$0xf] %vm19970_vm9, %v13158_v31  ;;  %v13040_v11 = vld [vmem:[%s13215_s29 + $0x150] sm:$0xff] }
 0x263   : > { %3412 = vst.msk [vmem:[#allocation2 + $0x2c] sm:$0xf] %vm19970_vm9, %v13158_v31  ;;  %3416 = vst.msk [vmem:[#allocation2 + $0x3c] sm:$0xf] %vm19970_vm9, %v13158_v31  ;;  %v13044_v8 = vld [vmem:[%s13215_s29 + $0x170] sm:$0xff]  ;;  %v14391_v20 = vadd.s32 72, %v14173_v1 }
 0x264   : > { %v1402_v26 = vrot.slane %v1388_v55, 1  ;;  %20114 = vst [vmem:[#allocation7_spill] sm:$0xff] %v14183_v10  ;;  %vm1421_vm7 = vcmp.eq.s32.totalorder %v14183_v10, 2  ;;  %3420 = vst.msk [vmem:[#allocation2 + $0x4c] sm:$0xf] %vm19970_vm9, %v13158_v31  ;;  %v13041_v55 = vld [vmem:[%s13215_s29 + $0x158] sm:$0xff] }
 0x265   : > { %3424 = vst.msk [vmem:[#allocation2 + $0x5c] sm:$0xf] %vm19970_vm9, %v13158_v31  ;;  %3428 = vst.msk [vmem:[#allocation2 + $0x6c] sm:$0xf] %vm19970_vm9, %v13158_v31  ;;  %v11218_v21 = vld [vmem:[%s19938_s3 + $0x4] sm:$0x3] }
 0x266   : > { %1403 = vrot.lane.b32.xlu0 %v1402_v26, %s13157_s8  ;;  %3432 = vst.msk [vmem:[#allocation2 + $0x7c] sm:$0xf] %vm19970_vm9, %v13158_v31  ;;  %3436 = vst.msk [vmem:[#allocation2 + $0x8c] sm:$0xf] %vm19970_vm9, %v13158_v31  ;;  %v13042_v26 = vld [vmem:[%s13215_s29 + $0x160] sm:$0xff]  ;;  %v4883_v19 = vsel %vm19968_vm10, %v11218_v21, 0 }
 0x267   : > { %3440 = vst.msk [vmem:[#allocation2 + $0x9c] sm:$0xf] %vm19970_vm9, %v13158_v31  ;;  %3444 = vst.msk [vmem:[#allocation2 + $0xac] sm:$0xf] %vm19970_vm9, %v13158_v31  ;;  %v11120_v27 = vld [vmem:[%s19938_s3 + $0x2] sm:$0x3] }
 0x268   : > { %3448 = vst.msk [vmem:[#allocation2 + $0xbc] sm:$0xf] %vm19970_vm9, %v13158_v31  ;;  %3452 = vst.msk [vmem:[#allocation2 + $0xcc] sm:$0xf] %vm19970_vm9, %v13158_v31  ;;  %12797 = vmatprep.subr.msk.bf16.mxu1 %vm19968_vm10, %v11120_v27 }
 0x269   : > { %3456 = vst.msk [vmem:[#allocation2 + $0xdc] sm:$0xf] %vm19970_vm9, %v13158_v31  ;;  %3460 = vst.msk [vmem:[#allocation2 + $0xec] sm:$0xf] %vm19970_vm9, %v13158_v31 }
 0x26a   : > { %3464 = vst.msk [vmem:[#allocation2 + $0xfc] sm:$0xf] %vm19970_vm9, %v13158_v31  ;;  %3468 = vst.msk [vmem:[#allocation2 + $0x10c] sm:$0xf] %vm19970_vm9, %v13158_v31 }
 0x26b   : > { %3472 = vst.msk [vmem:[#allocation2 + $0x11c] sm:$0xf] %vm19970_vm9, %v13158_v31 }
 0x2d2   : > { %v1398_v47 = vpop.permute.xlu1 %1397 }
 0x2d3   : > { %v1400_v52 = vsel %vm1127_vm1, %v1361_v58, %v1398_v47  ;;  %v13019_v58 = vld [vmem:[%s13215_s29 + $0xa8] sm:$0xff]  ;;  %v13046_v47 = vld [vmem:[%s13215_s29 + $0x180] sm:$0xff] }
 0x2d4   : > { %v1425_v28 = vrot.slane %v1400_v52, %v14180_v29  ;;  %v4067_v52 = vsel %vm19968_vm10, %v11120_v27, 0 }
 0x2d5   : > { %12178 = vmatpush3.bf16.msra.mxu1 %v4067_v52  ;;  %v2116_v52 = vshra.s32 %v14394_v39, 5 }
 0x2d6   : > { %v1426_v7 = vsel %vm1421_vm7, %v1425_v28, 0.0  ;;  %v13047_v28 = vld [vmem:[%s13215_s29 + $0x188] sm:$0xff] }
 0x2d7   : > { %v1427_v40 = vadd.f32 %v1426_v7, %v1416_v17  ;;  %v13048_v17 = vld [vmem:[%s13215_s29 + $0x190] sm:$0xff]  ;;  %v13049_v7 = vld [vmem:[%s13215_s29 + $0x198] sm:$0xff] }
 0x2d9   : > { %12061 = vmatprep.subr.msk.mxu0 %vm19966_vm8, %v1427_v40 }
 0x2da   : > { %12062 = vmatpush3.msk.msra.mxu0 %vm19966_vm8, %v1427_v40  ;;  %v13050_v40 = vld [vmem:[%s13215_s29 + $0x1a0] sm:$0xff] }
 0x2db   : > { %12064 = vmatmul.mubr.msk.f32.vlgmr.msra.gmra.mxu0 %vm19969_vm0, %v12999_v49  ;;  %12799 = vmatprep.subr.msk.bf16.mxu0 %vm19968_vm10, %v11218_v21  ;;  %v13051_v49 = vld [vmem:[%s13215_s29 + $0x1a8] sm:$0xff]  ;;  %v14431_v21 = vadd.s32 96, %v14173_v1 }
 0x2dc   : > { %12066 = vmatprep.mubr.msk.f32.mxu0 %vm19969_vm0, %v13000_v44  ;;  %12310 = vmatpush3.bf16.msra.mxu0 %v4883_v19  ;;  %v13052_v44 = vld [vmem:[%s13215_s29 + $0x1b0] sm:$0xff]  ;;  %v14434_v19 = vadd.s32 112, %v14173_v1 }
 0x2df   : > { %12067 = vmatmul.mubr.msk.f32.gmra.mxu0 %vm19969_vm0, %v13001_v62  ;;  %v13053_v62 = vld [vmem:[%s13215_s29 + $0x1b8] sm:$0xff] }
 0x2e0   : > { %12069 = vmatprep.mubr.msk.f32.mxu0 %vm19969_vm0, %v13002_v4  ;;  %v13054_v4 = vld [vmem:[%s13215_s29 + $0x1c0] sm:$0xff] }
 0x2e3   : > { %12070 = vmatmul.mubr.msk.f32.gmra.mxu0 %vm19969_vm0, %v13003_v25  ;;  %v13055_v25 = vld [vmem:[%s13215_s29 + $0x1c8] sm:$0xff] }
 0x2e4   : > { %12072 = vmatprep.mubr.msk.f32.mxu0 %vm19969_vm0, %v13004_v34  ;;  %v13056_v34 = vld [vmem:[%s13215_s29 + $0x1d0] sm:$0xff] }
 0x2e7   : > { %12073 = vmatmul.mubr.msk.f32.gmra.mxu0 %vm19969_vm0, %v13005_v41  ;;  %v13057_v41 = vld [vmem:[%s13215_s29 + $0x1d8] sm:$0xff] }
 0x2e8   : > { %12075 = vmatprep.mubr.msk.f32.mxu0 %vm19969_vm0, %v13006_v6  ;;  %v13058_v6 = vld [vmem:[%s13215_s29 + $0x1e0] sm:$0xff] }
 0x2eb   : > { %12076 = vmatmul.mubr.msk.f32.gmra.mxu0 %vm19969_vm0, %v13007_v57  ;;  %v13059_v57 = vld [vmem:[%s13215_s29 + $0x1e8] sm:$0xff] }
 0x2ec   : > { %12078 = vmatprep.mubr.msk.f32.mxu0 %vm19969_vm0, %v13008_v61  ;;  %v13060_v61 = vld [vmem:[%s13215_s29 + $0x1f0] sm:$0xff] }
 0x2ef   : > { %12079 = vmatmul.mubr.msk.f32.gmra.mxu0 %vm19969_vm0, %v13009_v18  ;;  %v13061_v18 = vld [vmem:[%s13215_s29 + $0x1f8] sm:$0xff] }
 0x2f0   : > { %12081 = vmatprep.mubr.msk.f32.mxu0 %vm19969_vm0, %v13010_v54  ;;  %v13062_v54 = vld [vmem:[%s13215_s29 + $0x200] sm:$0xff] }
 0x2f3   : > { %12082 = vmatmul.mubr.msk.f32.gmra.mxu0 %vm19969_vm0, %v13011_v12  ;;  %v13063_v12 = vld [vmem:[%s13215_s29 + $0x208] sm:$0xff] }
 0x2f4   : > { %12084 = vmatprep.mubr.msk.f32.mxu0 %vm19969_vm0, %v13012_v38  ;;  %v13064_v38 = vld [vmem:[%s13215_s29 + $0x210] sm:$0xff] }
 0x2f7   : > { %12085 = vmatmul.mubr.msk.f32.gmra.mxu0 %vm19969_vm0, %v13013_v63  ;;  %v13065_v63 = vld [vmem:[%s13215_s29 + $0x218] sm:$0xff] }
 0x2f8   : > { %12087 = vmatprep.mubr.msk.f32.mxu0 %vm19969_vm0, %v13014_v46  ;;  %v13066_v46 = vld [vmem:[%s13215_s29 + $0x220] sm:$0xff] }
 0x2fb   : > { %12088 = vmatmul.mubr.msk.f32.gmra.mxu0 %vm19969_vm0, %v13015_v37  ;;  %v13067_v37 = vld [vmem:[%s13215_s29 + $0x228] sm:$0xff] }
 0x2fc   : > { %12090 = vmatprep.mubr.msk.f32.mxu0 %vm19969_vm0, %v13016_v0  ;;  %v13068_v0 = vld [vmem:[%s13215_s29 + $0x230] sm:$0xff] }
 0x2ff   : > { %12091 = vmatmul.mubr.msk.f32.gmra.mxu0 %vm19969_vm0, %v13017_v45  ;;  %v13069_v45 = vld [vmem:[%s13215_s29 + $0x238] sm:$0xff] }
 0x300   : > { %12093 = vmatprep.mubr.msk.f32.mxu0 %vm19969_vm0, %v13018_v56  ;;  %v13070_v56 = vld [vmem:[%s13215_s29 + $0x240] sm:$0xff] }
 0x303   : > { %12094 = vmatmul.mubr.msk.f32.gmra.mxu0 %vm19969_vm0, %v13019_v58  ;;  %v13071_v58 = vld [vmem:[%s13215_s29 + $0x248] sm:$0xff] }
 0x304   : > { %12096 = vmatprep.mubr.msk.f32.mxu0 %vm19969_vm0, %v13020_v15  ;;  %v13072_v15 = vld [vmem:[%s13215_s29 + $0x250] sm:$0xff] }
 0x307   : > { %12097 = vmatmul.mubr.msk.f32.gmra.mxu0 %vm19969_vm0, %v13021_v23  ;;  %v13073_v23 = vld [vmem:[%s13215_s29 + $0x258] sm:$0xff] }
 0x308   : > { %12099 = vmatprep.mubr.msk.f32.mxu0 %vm19969_vm0, %v13022_v36  ;;  %v2033_v36 = vadd.s32 8, %v14173_v1 }
 0x30b   : > { %12100 = vmatmul.mubr.msk.f32.gmra.mxu0 %vm19969_vm0, %v13023_v14  ;;  %v1404_v14 = vpop.permute.xlu0 %1403 }
 0x30c   : > { %12102 = vmatprep.mubr.msk.f32.mxu0 %vm19969_vm0, %v13024_v42  ;;  %v2034_v42 = vadd.s32 16, %v14173_v1 }
 0x30f   : > { %12103 = vmatmul.mubr.msk.f32.gmra.mxu0 %vm19969_vm0, %v13025_v50  ;;  %v1406_v50 = vsel %vm1127_vm1, %v1384_v30, %v1404_v14  ;;  %v14838_v30 = vadd.s32 400, %v14173_v1 }
 0x310   : > { %12105 = vmatprep.mubr.msk.f32.mxu0 %vm19969_vm0, %v13026_v2  ;;  %v2109_v2 = vshra.s32 %v2033_v36, 5 }
 0x312   : > { %vm14396_vm11 = vcmp.ge.s32.totalorder %v2109_v2, 1  ;;  %vm14400_vm12 = vcmp.le.s32.totalorder %v2109_v2, 16 }
 0x313   : > { %12106 = vmatmul.mubr.msk.f32.gmra.mxu0 %vm19969_vm0, %v13027_v51  ;;  %v2108_v51 = vshra.s32 %v14173_v1, 5 }
 0x314   : > { %12108 = vmatprep.mubr.msk.f32.mxu0 %vm19969_vm0, %v13028_v43  ;;  %v2184_v43 = vand.u32 31, %v14173_v1 }
 0x315   : > { %vm14404_vm13 = vcmp.ge.s32.totalorder %v2108_v51, 1  ;;  %vm14408_vm14 = vcmp.le.s32.totalorder %v2108_v51, 16  ;;  %v20141_v51 = vmov 0 }
 0x316   : > { %vm14412_vm15 = vcmp.ge.s32.totalorder %v2184_v43, 1  ;;  %v20143_v43 = vmov 0 }
 0x317   : > { %12109 = vmatmul.mubr.msk.f32.gmra.mxu0 %vm19969_vm0, %v13029_v13  ;;  %v2037_v13 = vadd.s32 40, %v14173_v1 }
 0x318   : > { %12111 = vmatprep.mubr.msk.f32.mxu0 %vm19969_vm0, %v13030_v53  ;;  %v2036_v53 = vadd.s32 32, %v14173_v1 }
 0x319   : > { %v2113_v31 = vshra.s32 %v2037_v13, 5 }
 0x31b   : > { %12112 = vmatmul.mubr.msk.f32.gmra.mxu0 %vm19969_vm0, %v13031_v24  ;;  %v2110_v24 = vshra.s32 %v2034_v42, 5  ;;  %vm14484_vm7 = vcmp.ge.s32.totalorder %v2113_v31, 1  ;;  %vm14488_vm8 = vcmp.le.s32.totalorder %v2113_v31, 16 }
 0x31c   : > { %12114 = vmatprep.mubr.msk.f32.mxu0 %vm19969_vm0, %v13032_v48  ;;  %v14385_v48 = vrot.slane %v1406_v50, %v14180_v29  ;;  %v14508_v50 = vadd.s32 208, %v14173_v1 }
 0x31d   : > { %vm14419_vm1 = vcmp.ge.s32.totalorder %v2110_v24, 1  ;;  %vm14423_vm2 = vcmp.le.s32.totalorder %v2110_v24, 16  ;;  %v14524_v24 = vadd.s32 224, %v14173_v1 }
 0x31f   : > { %12115 = vmatmul.mubr.msk.f32.gmra.mxu0 %vm19969_vm0, %v13033_v32  ;;  %v14388_v32 = vadd.s32 48, %v14173_v1 }
 0x320   : > { %12117 = vmatprep.mubr.msk.f32.mxu0 %vm19969_vm0, %v13034_v60  ;;  %v14583_v60 = vadd.s32 272, %v14173_v1 }
 0x321   : > { %v2190_v27 = vand.u32 31, %v14388_v32 }
 0x323   : > { %12118 = vmatmul.mubr.msk.f32.gmra.mxu0 %vm19969_vm0, %v13035_v22 }
 0x324   : > { %12120 = vmatprep.mubr.msk.f32.mxu0 %vm19969_vm0, %v13036_v5  ;;  %v14813_v5 = vadd.s32 392, %v14173_v1 }
 0x327   : > { %12121 = vmatmul.mubr.msk.f32.gmra.mxu0 %vm19969_vm0, %v13037_v59  ;;  %v14658_v59 = vadd.s32 328, %v14173_v1 }
 0x328   : > { %12123 = vmatprep.mubr.msk.f32.mxu0 %vm19969_vm0, %v13038_v9  ;;  %v2186_v9 = vand.u32 31, %v2034_v42 }
 0x32a   : > { %vm14450_vm3 = vcmp.le.s32.totalorder %v2186_v9, 16 }
 0x32b   : > { %12124 = vmatmul.mubr.msk.f32.gmra.mxu0 %vm19969_vm0, %v13039_v33  ;;  %v2112_v33 = vshra.s32 %v2036_v53, 5 }
 0x32c   : > { %12126 = vmatprep.mubr.msk.f32.mxu0 %vm19969_vm0, %v13040_v11  ;;  %v14417_v11 = vadd.s32 80, %v14173_v1 }
 0x32d   : > { %vm14462_vm4 = vcmp.ge.s32.totalorder %v2112_v33, 1  ;;  %vm14466_vm5 = vcmp.le.s32.totalorder %v2112_v33, 16  ;;  %v14548_v33 = vadd.s32 240, %v14173_v1 }
 0x32f   : > { %12127 = vmatmul.mubr.msk.f32.gmra.mxu0 %vm19969_vm0, %v13041_v55  ;;  %v20164_v55 = vmov 0 }
 0x330   : > { %12129 = vmatprep.mubr.msk.f32.mxu0 %vm19969_vm0, %v13042_v26  ;;  %v14630_v26 = vadd.s32 288, %v14173_v1 }
 0x333   : > { %12130 = vmatmul.mubr.msk.f32.gmra.mxu0 %vm19969_vm0, %v13043_v35  ;;  %v2188_v35 = vand.u32 31, %v2036_v53  ;;  %v14521_v53 = vadd.s32 232, %v14173_v1 }
 0x334   : > { %12132 = vmatprep.mubr.msk.f32.mxu0 %vm19969_vm0, %v13044_v8  ;;  %v14428_v8 = vadd.s32 104, %v14173_v1 }
 0x335   : > { %vm14500_vm10 = vcmp.ge.s32.totalorder %v2188_v35, 1 }
 0x337   : > { %12133 = vmatmul.mubr.msk.f32.gmra.mxu0 %vm19969_vm0, %v13045_v16  ;;  %v2114_v16 = vshra.s32 %v14388_v32, 5 }
 0x338   : > { %12135 = vmatprep.mubr.msk.f32.mxu0 %vm19969_vm0, %v13046_v47  ;;  %v2117_v47 = vshra.s32 %v14391_v20, 5  ;;  %v20162_v20 = vmov 0 }
 0x339   : > { %vm14515_vm9 = vcmp.le.s32.totalorder %v2114_v16, 16 }
 0x33a   : > { %v20144_v43 = vsel %vm14515_vm9, 4294967295, %v20143_v43  ;;  %vm2414_vm9 = vmand %vm14419_vm1, %vm14423_vm2 }
 0x33b   : > { %12136 = vmatmul.mubr.msk.f32.gmra.mxu0 %vm19969_vm0, %v13047_v28  ;;  %v2192_v28 = vand.u32 31, %v14394_v39  ;;  %v20166_v39 = vmov 0 }
 0x33c   : > { %12138 = vmatprep.mubr.msk.f32.mxu0 %vm19969_vm0, %v13048_v17  ;;  %v14442_v17 = vadd.s32 136, %v14173_v1 }
 0x33d   : > { %vm14623_vm1 = vcmp.ge.s32.totalorder %v2192_v28, 1 }
 0x33e   : > { %v20163_v20 = vsel %vm14623_vm1, 4294967295, %v20162_v20 }
 0x33f   : > { %12139 = vmatmul.mubr.msk.f32.gmra.mxu0 %vm19969_vm0, %v13049_v7  ;;  %v14445_v7 = vadd.s32 128, %v14173_v1 }
 0x340   : > { %12141 = vmatprep.mubr.msk.f32.mxu0 %vm19969_vm0, %v13050_v40  ;;  %v14448_v40 = vadd.s32 144, %v14173_v1 }
 0x342   : > { %v20219_v3 = vshra.s32 %v14448_v40, 5 }
 0x343   : > { %12142 = vmatmul.mubr.msk.f32.gmra.mxu0 %vm19969_vm0, %v13051_v49 }
 0x344   : > { %12144 = vmatprep.mubr.msk.f32.mxu0 %vm19969_vm0, %v13052_v44  ;;  %v2118_v44 = vshra.s32 %v14417_v11, 5 }
 0x346   : > { %vm14635_vm2 = vcmp.ge.s32.totalorder %v2118_v44, 1 }
 0x347   : > { %12145 = vmatmul.mubr.msk.f32.gmra.mxu0 %vm19969_vm0, %v13053_v62  ;;  %v2194_v62 = vand.u32 31, %v14417_v11  ;;  %v20165_v55 = vsel %vm14635_vm2, 4294967295, %v20164_v55 }
 0x348   : > { %12147 = vmatprep.mubr.msk.f32.mxu0 %vm19969_vm0, %v13054_v4  ;;  %v14457_v4 = vadd.s32 168, %v14173_v1 }
 0x349   : > { %vm14683_vm1 = vcmp.le.s32.totalorder %v2194_v62, 16  ;;  %v20234_v62 = vand.u32 31, %v14448_v40 }
 0x34b   : > { %12148 = vmatmul.mubr.msk.f32.gmra.mxu0 %vm19969_vm0, %v13055_v25  ;;  %v14460_v25 = vadd.s32 160, %v14173_v1 }
 0x34c   : > { %12150 = vmatprep.mubr.msk.f32.mxu0 %vm19969_vm0, %v13056_v34 }
 0x34f   : > { %12151 = vmatmul.mubr.msk.f32.gmra.mxu0 %vm19969_vm0, %v13057_v41 }
 0x350   : > { %12153 = vmatprep.mubr.msk.f32.mxu0 %vm19969_vm0, %v13058_v6  ;;  %v2121_v6 = vshra.s32 %v14428_v8, 5  ;;  %v20189_v8 = vmov 0 }
 0x353   : > { %12154 = vmatmul.mubr.msk.f32.gmra.mxu0 %vm19969_vm0, %v13059_v57  ;;  %v2120_v57 = vshra.s32 %v14431_v21, 5 }
 0x354   : > { %12156 = vmatprep.mubr.msk.f32.mxu0 %vm19969_vm0, %v13060_v61  ;;  %v2196_v61 = vand.u32 31, %v14431_v21  ;;  %v20191_v21 = vmov 0 }
 0x357   : > { %12157 = vmatmul.mubr.msk.f32.gmra.mxu0 %vm19969_vm0, %v13061_v18  ;;  %v2122_v18 = vshra.s32 %v14434_v19, 5 }
 0x358   : > { %12159 = vmatprep.mubr.msk.f32.mxu0 %vm19969_vm0, %v13062_v54  ;;  %v2198_v54 = vand.u32 31, %v14434_v19 }
 0x35b   : > { %12160 = vmatmul.mubr.msk.f32.gmra.mxu0 %vm19969_vm0, %v13063_v12  ;;  %v14476_v12 = vadd.s32 176, %v14173_v1 }
 0x35c   : > { %12162 = vmatprep.mubr.msk.f32.mxu0 %vm19969_vm0, %v13064_v38  ;;  %v14479_v38 = vadd.s32 200, %v14173_v1 }
 0x35f   : > { %12163 = vmatmul.mubr.msk.f32.gmra.mxu0 %vm19969_vm0, %v13065_v63  ;;  %v14482_v63 = vadd.s32 192, %v14173_v1 }
 0x360   : > { %12165 = vmatprep.mubr.msk.f32.mxu0 %vm19969_vm0, %v13066_v46  ;;  %v14711_v46 = vadd.s32 360, %v14173_v1 }
 0x363   : > { %12166 = vmatmul.mubr.msk.f32.gmra.mxu0 %vm19969_vm0, %v13067_v37 }
 0x364   : > { %12168 = vmatprep.mubr.msk.f32.mxu0 %vm19969_vm0, %v13068_v0  ;;  %v2125_v0 = vshra.s32 %v14442_v17, 5 }
 0x367   : > { %12169 = vmatmul.mubr.msk.f32.gmra.mxu0 %vm19969_vm0, %v13069_v45  ;;  %v2124_v45 = vshra.s32 %v14445_v7, 5 }
 0x368   : > { %12171 = vmatprep.mubr.msk.f32.mxu0 %vm19969_vm0, %v13070_v56  ;;  %v2200_v56 = vand.u32 31, %v14445_v7  ;;  %v20222_v7 = vmov %v20219_v3 }
 0x36b   : > { %12172 = vmatmul.mubr.msk.f32.gmra.mxu0 %vm19969_vm0, %v13071_v58 }
 0x36c   : > { %12174 = vmatprep.mubr.msk.f32.mxu0 %vm19969_vm0, %v13072_v15 }
 0x36f   : > { %12175 = vmatmul.mubr.msk.f32.gmra.mxu0 %vm19969_vm0, %v13073_v23  ;;  %v20139_v23 = vmov 0  ;;  %vm14511_vm0 = vcmp.ge.s32.totalorder %v2114_v16, 1 }
 0x370   : > { %v20140_v23 = vsel %vm14500_vm10, 4294967295, %v20139_v23  ;;  %v20142_v51 = vsel %vm14511_vm0, 4294967295, %v20141_v51  ;;  %vm20145_vm0 = vmand %vm14404_vm13, %vm14408_vm14  ;;  %vm14554_vm10 = vcmp.le.s32.totalorder %v2190_v27, 16  ;;  %vm14571_vm13 = vcmp.ge.s32.totalorder %v2116_v52, 1 }
 0x371   : > { %vm14542_vm6 = vmand %vm20145_vm0, %vm14412_vm15  ;;  %vm14575_vm14 = vcmp.le.s32.totalorder %v2116_v52, 16  ;;  %vm20173_vm2 = vnez %v20142_v51 }
 0x372   : > { %vm20150_vm0 = vmand %vm14396_vm11, %vm14400_vm12  ;;  %vm14604_vm12 = vcmp.ge.s32.totalorder %v2117_v47, 1 }
 0x373   : > { %vm14598_vm11 = vmand %vm2414_vm9, %vm14450_vm3  ;;  %vm20161_vm9 = vcmask 27648   ;;  %vm14641_vm3 = vcmp.le.s32.totalorder %v2118_v44, 16 }
 0x374   : > { %vm2416_vm15 = vmand %vm14462_vm4, %vm14466_vm5  ;;  %v20167_v39 = vsel %vm14641_vm3, 4294967295, %v20166_v39  ;;  %vm14699_vm5 = vcmp.ge.s32.totalorder %v2120_v57, 1 }
 0x375   : > { %vm20176_vm4 = vmand %vm14484_vm7, %vm14488_vm8  ;;  %vm20181_vm8 = vcmask 27648  }
 0x39b   : > { %v12065_v15 = vpop.f32.mrf.mxu0 }
 0x39c   : > { %v1660_v2 = vadd.f32 %v12065_v15, %v14385_v48 }
 0x39d   : > { %v1654_v32 = vpop.f32.mrf.mxu0 }
 0x39e   : > { %v2793_v16 = vmax.f32 %v1660_v2, 0.0  ;;  %v1655_v15 = vadd.f32 %v1654_v32, %v14385_v48  ;;  %v14561_v2 = vadd.s32 264, %v14173_v1  ;;  %v14564_v32 = vadd.s32 256, %v14173_v1 }
 0x39f   : > { %v12068_v35 = vpop.f32.mrf.mxu0 }
 0x3a0   : > { %v3021_v35 = vsel %vm20150_vm0, %v2793_v16, 0.0  ;;  %v2792_v27 = vmax.f32 %v1655_v15, 0.0  ;;  %v14586_v16 = vadd.s32 296, %v14173_v1  ;;  %vm20168_vm0 = vmmov %vm20161_vm9 }
 0x3a1   : > { %v11598_v14 = vpack.c.bf16 %v3021_v35, %v3021_v35  ;;  %v1664_v42 = vpop.f32.mrf.mxu0 }
 0x3a2   : > { %v3020_v52 = vsel %vm14542_vm6, %v2792_v27, 0.0  ;;  %v1665_v15 = vadd.f32 %v1664_v42, %v14385_v48  ;;  %vm14610_vm6 = vcmp.le.s32.totalorder %v2117_v47, 16  ;;  %v14647_v47 = vadd.s32 304, %v14173_v1 }
 0x3a3   : > { %3402 = vst.msk [vmem:[#allocation2 + $0x4] sm:$0xf] %vm20161_vm9, %v11598_v14  ;;  %v11597_v49 = vpack.c.bf16 %v3020_v52, %v3020_v52  ;;  %v12071_v13 = vpop.f32.mrf.mxu0  ;;  %v14675_v27 = vadd.s32 320, %v14173_v1 }
 0x3a4   : > { %v2794_v14 = vmax.f32 %v1665_v15, 0.0  ;;  %v1680_v52 = vadd.f32 %v12071_v13, %v14385_v48 }
 0x3a5   : > { %3401 = vst.msk [vmem:[#allocation2] sm:$0xf] %vm20168_vm0, %v11597_v49  ;;  %v1674_v15 = vpop.f32.mrf.mxu0  ;;  %vm20169_vm0 = vnez %v20140_v23  ;;  %v14717_v23 = vadd.s32 352, %v14173_v1 }
 0x3a6   : > { %v3022_v28 = vsel %vm14598_vm11, %v2794_v14, 0.0  ;;  %v2797_v9 = vmax.f32 %v1680_v52, 0.0  ;;  %v1675_v49 = vadd.f32 %v1674_v15, %v14385_v48  ;;  %vm14670_vm9 = vmand %vm2416_vm15, %vm20169_vm0  ;;  %vm20172_vm11 = vnez %v20144_v43 }
 0x3a7   : > { %v11599_v13 = vpack.c.bf16 %v3022_v28, %v3022_v28  ;;  %v12074_v35 = vpop.f32.mrf.mxu0  ;;  %vm2418_vm3 = vmand %vm20173_vm2, %vm20172_vm11  ;;  %v14690_v14 = vadd.s32 336, %v14173_v1  ;;  %vm14705_vm15 = vcmp.le.s32.totalorder %v2120_v57, 16  ;;  %v14747_v43 = vadd.s32 368, %v14173_v1 }
 0x3a8   : > { %v3025_v52 = vsel %vm20176_vm4, %v2797_v9, 0.0  ;;  %v2796_v28 = vmax.f32 %v1675_v49, 0.0  ;;  %vm14729_vm0 = vmand %vm2418_vm3, %vm14554_vm10  ;;  %vm14735_vm4 = vcmp.ge.s32.totalorder %v2121_v6, 1  ;;  %vm14756_vm3 = vcmp.ge.s32.totalorder %v2196_v61, 1 }
 0x3a9   : > { %3403 = vst.msk [vmem:[#allocation2 + $0x8] sm:$0xf] %vm20181_vm8, %v11599_v13  ;;  %v11602_v37 = vpack.c.bf16 %v3025_v52, %v3025_v52  ;;  %v1684_v9 = vpop.f32.mrf.mxu0  ;;  %vm20188_vm10 = vmmov %vm20181_vm8  ;;  %v20190_v8 = vsel %vm14756_vm3, 4294967295, %v20189_v8  ;;  %vm14766_vm8 = vcmp.ge.s32.totalorder %v2122_v18, 1  ;;  %v20193_v61 = vmov 0 }
 0x3aa   : > { %v3024_v57 = vsel %vm14670_vm9, %v2796_v28, 0.0  ;;  %v1685_v15 = vadd.f32 %v1684_v9, %v14385_v48  ;;  %vm14741_vm9 = vcmp.le.s32.totalorder %v2121_v6, 16  ;;  %vm2420_vm2 = vmand %vm14571_vm13, %vm14575_vm14  ;;  %v3478_v6 = vld [vmem:[#allocation2 + $0x4] sm:$0xf]  ;;  %v20192_v21 = vsel %vm14766_vm8, 4294967295, %v20191_v21 }
 0x3ab   : > { %3406 = vst.msk [vmem:[#allocation2 + $0x14] sm:$0xf] %vm20188_vm10, %v11602_v37  ;;  %v11601_v22 = vpack.c.bf16 %v3024_v57, %v3024_v57  ;;  %v12077_v28 = vpop.f32.mrf.mxu0  ;;  %vm14772_vm10 = vcmp.le.s32.totalorder %v2122_v18, 16  ;;  %vm20195_vm11 = vcmask 27648   ;;  %vm20200_vm8 = vnez %v20165_v55  ;;  %vm20203_vm13 = vmand %vm14604_vm12, %vm14610_vm6 }
 0x3ac   : > { %v2798_v57 = vmax.f32 %v1685_v15, 0.0  ;;  %v1700_v51 = vadd.f32 %v12077_v28, %v14385_v48  ;;  %v3477_v49 = vld [vmem:[#allocation2] sm:$0xf]  ;;  %v20194_v61 = vsel %vm14772_vm10, 4294967295, %v20193_v61  ;;  %vm14808_vm3 = vcmp.le.s32.totalorder %v2198_v54, 16 }
 0x3ad   : > { %v4714_v41 = vld [vmem:[#allocation2] sm:$0xe]  ;;  %3405 = vst.msk [vmem:[#allocation2 + $0x10] sm:$0xf] %vm20195_vm11, %v11601_v22  ;;  %v1694_v15 = vpop.f32.mrf.mxu0  ;;  %v14782_v28 = vcombine.low %v3477_v49, %v3478_v6  ;;  %vm20196_vm11 = vnez %v20163_v20  ;;  %v14816_v13 = vadd.s32 384, %v14173_v1  ;;  %vm14827_vm14 = vcmp.ge.s32.totalorder %v2124_v45, 1 }
 0x3ae   : > { %v11219_v37 = vcombine.low %v4714_v41, %v3478_v6  ;;  %v3026_v36 = vsel %vm14729_vm0, %v2798_v57, 0.0  ;;  %v2801_v58 = vmax.f32 %v1700_v51, 0.0  ;;  %v1695_v35 = vadd.f32 %v1694_v15, %v14385_v48  ;;  %vm14796_vm7 = vmand %vm2420_vm2, %vm20196_vm11 }
 0x3af   : > { %v11603_v22 = vpack.c.bf16 %v3026_v36, %v3026_v36  ;;  %v12080_v6 = vpop.f32.mrf.mxu0  ;;  %vm20199_vm0 = vnez %v20167_v39  ;;  %v3712_v20 = vshll.u32 %v14782_v28, 16  ;;  %vm14833_vm2 = vcmp.le.s32.totalorder %v2124_v45, 16 }
 0x3b0   : > { %vm2422_vm10 = vmand %vm20200_vm8, %vm20199_vm0  ;;  %v3029_v36 = vsel %vm20203_vm13, %v2801_v58, 0.0  ;;  %v2800_v51 = vmax.f32 %v1695_v35, 0.0  ;;  %v14823_v57 = vld [vmem:[#allocation2 + $0x8] sm:$0xff]   ;;  %vm20208_vm12 = vcmask 27648   ;;  %v4721_v35 = vrot.slane %v11219_v37, 1 }
 0x3b1   : > { %3407 = vst.msk [vmem:[#allocation2 + $0x18] sm:$0xf] %vm20208_vm12, %v11603_v22  ;;  %v11606_v58 = vpack.c.bf16 %v3029_v36, %v3029_v36  ;;  %v1704_v42 = vpop.f32.mrf.mxu0  ;;  %v3710_v15 = vshrl.u32 %v14782_v28, 16  ;;  %v3714_v6 = vrot.slane %v3712_v20, 1  ;;  %vm14852_vm6 = vmand %vm2422_vm10, %vm14683_vm1  ;;  %v4722_v37 = vrot.slane %v14823_v57, 1 }
 0x3b2   : > { %v3028_v41 = vsel %vm14796_vm7, %v2800_v51, 0.0  ;;  %v1705_v18 = vadd.f32 %v1704_v42, %v14385_v48  ;;  %v3717_v22 = vshll.u32 %v14823_v57, 16  ;;  %vm14860_vm7 = vcmp.ge.s32.totalorder %v2125_v0, 1  ;;  %vm20215_vm1 = vmmov %vm20208_vm12 }
 0x3b3   : > { %v20211_v49 = vmov 0  ;;  %vm14866_vm11 = vcmp.le.s32.totalorder %v2125_v0, 16  ;;  %3410 = vst.msk [vmem:[#allocation2 + $0x24] sm:$0xf] %vm20215_vm1, %v11606_v58  ;;  %v11605_v39 = vpack.c.bf16 %v3028_v41, %v3028_v41  ;;  %v12083_v34 = vpop.f32.mrf.mxu0  ;;  %v3715_v20 = vor.u32 %v3714_v6, %v3710_v15 }
 0x3b4   : > { %v20212_v49 = vsel %vm14860_vm7, 4294967295, %v20211_v49  ;;  %vm14877_vm10 = vcmp.ge.s32.totalorder %v2200_v56, 1  ;;  %v20216_v36 = vmov 0  ;;  %v2230_v17 = vand.u32 31, %v14747_v43  ;;  %v12824_v9 = vld [vmem:[#allocation2 + $0x10] sm:$0xff]  }
 0x3b5   : > { %v20217_v36 = vsel %vm14877_vm10, 4294967295, %v20216_v36  ;;  %v2802_v51 = vmax.f32 %v1705_v18, 0.0  ;;  %v1720_v41 = vadd.f32 %v12083_v34, %v14385_v48  ;;  %vm20218_vm0 = vcmask 1046528   ;;  %3409 = vst.msk [vmem:[#allocation2 + $0x20] sm:$0xf] %vm20215_vm1, %v11605_v39  ;;  %v1714_v18 = vpop.f32.mrf.mxu0 }
 0x3b6   : > { %v4723_v58 = vsel %vm20218_vm0, %v4721_v35, %v4722_v37  ;;  %v3719_v42 = vrot.slane %v3717_v22, 1  ;;  %vm14887_vm13 = vcmp.ge.s32.totalorder %v20219_v3, 1  ;;  %v20220_v15 = vmov 0 }
 0x3b7   : > { %v20221_v15 = vsel %vm14887_vm13, 4294967295, %v20220_v15  ;;  %vm14893_vm12 = vcmp.le.s32.totalorder %v20222_v7, 16  ;;  %v20223_v56 = vmov 0  ;;  %vm20225_vm8 = vcmask 31744   ;;  %v12086_v6 = vpop.f32.mrf.mxu0 }
 0x3b8   : > { %v20224_v56 = vsel %vm14893_vm12, 4294967295, %v20223_v56  ;;  %12311 = vmatprep.mubr.msk.bf16.mxu0 %vm20225_vm8, %v4723_v58  ;;  %v3721_v3 = vshrl.u32 %v14823_v57, 16  ;;  %v3030_v34 = vsel %vm14852_vm6, %v2802_v51, 0.0  ;;  %v2805_v39 = vmax.f32 %v1720_v41, 0.0  ;;  %vm20227_vm8 = vmand %vm14699_vm5, %vm14705_vm15  ;;  %v14941_v6 = vld [vmem:[#allocation2 + $0x18] sm:$0xff]  }
 0x3b9   : > { %v1715_v7 = vadd.f32 %v1714_v18, %v14385_v48  ;;  %vm20226_vm1 = vnez %v20190_v8  ;;  %vm20230_vm13 = vsmask.f32 7424  ;;  %v11607_v22 = vpack.c.bf16 %v3030_v34, %v3030_v34  ;;  %vm20237_vm15 = vmand %vm14735_vm4, %vm14741_vm9 }
 0x3ba   : > { %vm14917_vm0 = vmand %vm20227_vm8, %vm20226_vm1  ;;  %v3720_v58 = vsel %vm20230_vm13, %v3715_v20, %v3719_v42  ;;  %vm20231_vm12 = vcmask 31744   ;;  %vm20232_vm6 = vnez %v20194_v61  ;;  %vm20233_vm10 = vnez %v20192_v21 }
 0x3bb   : > { %12179 = vmatprep.mubr.msk.bf16.mxu1 %vm20231_vm12, %v3720_v58  ;;  %vm2426_vm7 = vmand %vm20233_vm10, %vm20232_vm6  ;;  %v4724_v8 = vrot.slane %v12824_v9, 1  ;;  %v3725_v11 = vshll.u32 %v12824_v9, 16  ;;  %vm14929_vm5 = vcmp.le.s32.totalorder %v20234_v62, 16  ;;  %v14934_v51 = vadd.s32 424, %v14173_v1 }
 0x3bc   : > { %v3033_v20 = vsel %vm20237_vm15, %v2805_v39, 0.0  ;;  %v2804_v41 = vmax.f32 %v1715_v7, 0.0  ;;  %v3723_v18 = vor.u32 %v3721_v3, %v3719_v42  ;;  %v20238_v34 = vshra.s32 %v14460_v25, 5  ;;  %v1724_v42 = vpop.f32.mrf.mxu0  ;;  %vm14970_vm1 = vmand %vm2426_vm7, %vm14808_vm3 }
 0x3bd   : > { %v14956_v52 = vadd.s32 416, %v14173_v1  ;;  %vm20244_vm4 = vcmask 27648   ;;  %v11610_v44 = vpack.c.bf16 %v3033_v20, %v3033_v20  ;;  %vm20245_vm9 = vcmask 1046528  }
 0x3be   : > { %vm14945_vm13 = vcmp.ge.s32.totalorder %v20238_v34, 1  ;;  %v20241_v58 = vmov %v20238_v34  ;;  %3411 = vst.msk [vmem:[#allocation2 + $0x28] sm:$0xf] %vm20244_vm4, %v11607_v22  ;;  %v4725_v3 = vsel %vm20245_vm9, %v4722_v37, %v4724_v8  ;;  %v3727_v39 = vrot.slane %v3725_v11, 1  ;;  %vm20255_vm3 = vmmov %vm20244_vm4  ;;  %v12089_v20 = vpop.f32.mrf.mxu0 }
 0x3bf   : > { %vm14951_vm12 = vcmp.le.s32.totalorder %v20241_v58, 16  ;;  %v3729_v7 = vshrl.u32 %v12824_v9, 16  ;;  %v3032_v34 = vsel %vm14917_vm0, %v2804_v41, 0.0  ;;  %v1725_v0 = vadd.f32 %v1724_v42, %v14385_v48  ;;  %3414 = vst.msk [vmem:[#allocation2 + $0x34] sm:$0xf] %vm20255_vm3, %v11610_v44 }
 0x3c0   : > { %vm20248_vm8 = vcmask 31744   ;;  %v4726_v9 = vrot.slane %v14941_v6, 1  ;;  %v3733_v37 = vshll.u32 %v14941_v6, 16  ;;  %v20249_v57 = vshra.s32 %v14457_v4, 5  ;;  %v15005_v44 = vld [vmem:[%s19938_s3 + $0x8] sm:$0x3] }
 0x3c1   : > { %12312 = vmatmul.mubr.msk.bf16.vlgmr.msra.gmra.mxu0 %vm20248_vm8, %v4725_v3  ;;  %v20250_v11 = vmov 0  ;;  %v11609_v31 = vpack.c.bf16 %v3032_v34, %v3032_v34  ;;  %vm20256_vm7 = vsmask.f32 7424  ;;  %v3731_v58 = vor.u32 %v3729_v7, %v3727_v39  ;;  %vm20260_vm4 = vmmov %vm20248_vm8 }
 0x3c2   : > { %vm14979_vm0 = vcmp.ge.s32.totalorder %v20249_v57, 1  ;;  %v20252_v21 = vmov %v20249_v57  ;;  %v3728_v41 = vsel %vm20256_vm7, %v3723_v18, %v3727_v39  ;;  %v20257_v42 = vand.u32 31, %v14460_v25  ;;  %v15010_v18 = vld [vmem:[%s19938_s3] sm:$0x3] }
 0x3c3   : > { %v20251_v11 = vsel %vm14979_vm0, 4294967295, %v20250_v11  ;;  %vm14985_vm15 = vcmp.le.s32.totalorder %v20252_v21, 16  ;;  %v20258_v4 = vmov 0  ;;  %v2806_v34 = vmax.f32 %v1725_v0, 0.0  ;;  %12180 = vmatmul.mubr.msk.bf16.vlgmr.msra.gmra.mxu1 %vm20260_vm4, %v3728_v41  ;;  %v12826_v57 = vld [vmem:[#allocation2 + $0x20] sm:$0xff]   ;;  %v1734_v0 = vpop.f32.mrf.mxu0 }
 0x3c4   : > { %vm14997_vm6 = vcmp.ge.s32.totalorder %v20257_v42, 1  ;;  %v1740_v39 = vadd.f32 %v12089_v20, %v14385_v48  ;;  %v4727_v25 = vsel %vm20245_vm9, %v4724_v8, %v4726_v9  ;;  %v3735_v7 = vrot.slane %v3733_v37, 1 }
 0x3c5   : > { %v20259_v4 = vsel %vm14997_vm6, 4294967295, %v20258_v4  ;;  %v20261_v21 = vshra.s32 %v14476_v12, 5  ;;  %v20262_v42 = vmov 0  ;;  %v20265_v35 = vmov 0  ;;  %v12092_v37 = vpop.f32.mrf.mxu0 }
 0x3c6   : > { %vm20267_vm7 = vcmask 1041408   ;;  %vm20268_vm4 = vcmask 27648   ;;  %vm20269_vm9 = vnez %v20212_v49  ;;  %vm20270_vm6 = vcmask 31744   ;;  %v15075_v37 = vld [vmem:[#allocation2 + $0x28] sm:$0xff]  }
 0x3c7   : > { %vm15017_vm8 = vcmp.ge.s32.totalorder %v20261_v21, 1  ;;  %v20264_v3 = vmov %v20261_v21  ;;  %12801 = vmatprep.subr.msk.bf16.mxu0 %vm20267_vm7, %v15005_v44  ;;  %3413 = vst.msk [vmem:[#allocation2 + $0x30] sm:$0xf] %vm20268_vm4, %v11609_v31  ;;  %12315 = vmatprep.mubr.msk.bf16.mxu0 %vm20270_vm6, %v4727_v25  ;;  %v3737_v8 = vshrl.u32 %v14941_v6, 16  ;;  %v3034_v31 = vsel %vm14970_vm1, %v2806_v34, 0.0  ;;  %vm20272_vm6 = vmand %vm14827_vm14, %vm14833_vm2 }
 0x3c8   : > { %v20263_v42 = vsel %vm15017_vm8, 4294967295, %v20262_v42  ;;  %vm15023_vm3 = vcmp.le.s32.totalorder %v20264_v3, 16  ;;  %12798 = vmatprep.subr.msk.bf16.mxu1 %vm20267_vm7, %v15010_v18  ;;  %v2809_v3 = vmax.f32 %v1740_v39, 0.0  ;;  %v1735_v21 = vadd.f32 %v1734_v0, %v14385_v48  ;;  %vm20282_vm2 = vmand %vm20269_vm9, %vm14866_vm11 }
 0x3c9   : > { %v20266_v35 = vsel %vm15023_vm3, 4294967295, %v20265_v35  ;;  %vm20271_vm4 = vnez %v20217_v36  ;;  %vm20275_vm8 = vsmask.f32 7424  ;;  %v11611_v41 = vpack.c.bf16 %v3034_v31, %v3034_v31 }
 0x3ca   : > { %vm15051_vm10 = vmand %vm20272_vm6, %vm20271_vm4  ;;  %v3736_v25 = vsel %vm20275_vm8, %v3731_v58, %v3735_v7  ;;  %vm20276_vm7 = vcmask 31744   ;;  %vm20277_vm1 = vnez %v20224_v56  ;;  %vm20278_vm3 = vnez %v20221_v15 }
 0x3cb   : > { %12183 = vmatprep.mubr.msk.bf16.mxu1 %vm20276_vm7, %v3736_v25  ;;  %vm2430_vm0 = vmand %vm20278_vm3, %vm20277_vm1  ;;  %v4728_v36 = vrot.slane %v12826_v57, 1  ;;  %v3741_v19 = vshll.u32 %v12826_v57, 16  ;;  %v20279_v54 = vand.u32 31, %v14476_v12  ;;  %v15068_v34 = vadd.s32 432, %v14173_v1 }
 0x3cc   : > { %v3037_v58 = vsel %vm20282_vm2, %v2809_v3, 0.0  ;;  %v2808_v39 = vmax.f32 %v1735_v21, 0.0  ;;  %v3739_v0 = vor.u32 %v3737_v8, %v3735_v7  ;;  %v20283_v31 = vshra.s32 %v14482_v63, 5  ;;  %v1744_v7 = vpop.f32.mrf.mxu0  ;;  %vm15104_vm6 = vmand %vm2430_vm0, %vm14929_vm5 }
 0x3cd   : > { %vm15063_vm14 = vcmp.le.s32.totalorder %v20279_v54, 16  ;;  %v15090_v49 = vadd.s32 456, %v14173_v1  ;;  %vm20289_vm11 = vcmask 27648   ;;  %v11614_v55 = vpack.c.bf16 %v3037_v58, %v3037_v58 }
 0x3ce   : > { %vm15079_vm8 = vcmp.ge.s32.totalorder %v20283_v31, 1  ;;  %v20286_v25 = vmov %v20283_v31  ;;  %3415 = vst.msk [vmem:[#allocation2 + $0x38] sm:$0xf] %vm20289_vm11, %v11611_v41  ;;  %vm20290_vm9 = vcmask 1046528   ;;  %v3743_v3 = vrot.slane %v3741_v19, 1  ;;  %vm20299_vm5 = vmmov %vm20289_vm11  ;;  %v12095_v58 = vpop.f32.mrf.mxu0 }
 0x3cf   : > { %vm15085_vm4 = vcmp.le.s32.totalorder %v20286_v25, 16  ;;  %v4729_v8 = vsel %vm20290_vm9, %v4726_v9, %v4728_v36  ;;  %v3745_v21 = vshrl.u32 %v12826_v57, 16  ;;  %v3036_v31 = vsel %vm15051_vm10, %v2808_v39, 0.0  ;;  %3418 = vst.msk [vmem:[#allocation2 + $0x44] sm:$0xf] %vm20299_vm5, %v11614_v55  ;;  %vm20304_vm11 = vmmov %vm20276_vm7 }
 0x3d0   : > { %v1745_v20 = vadd.f32 %v1744_v7, %v14385_v48  ;;  %12316 = vmatmul.mubr.msk.bf16.gmra.mxu0 %vm20276_vm7, %v4729_v8  ;;  %v4730_v9 = vrot.slane %v15075_v37, 1  ;;  %v3749_v57 = vshll.u32 %v15075_v37, 16  ;;  %v20293_v6 = vshra.s32 %v14479_v38, 5 }
 0x3d1   : > { %v20294_v19 = vmov 0  ;;  %v11613_v45 = vpack.c.bf16 %v3036_v31, %v3036_v31  ;;  %vm20300_vm0 = vsmask.f32 7424  ;;  %v3747_v25 = vor.u32 %v3745_v21, %v3743_v3 }
 0x3d2   : > { %vm15113_vm10 = vcmp.ge.s32.totalorder %v20293_v6, 1  ;;  %v20296_v15 = vmov %v20293_v6  ;;  %v3744_v39 = vsel %vm20300_vm0, %v3739_v0, %v3743_v3  ;;  %v20301_v7 = vand.u32 31, %v14482_v63 }
 0x3d3   : > { %v20295_v19 = vsel %vm15113_vm10, 4294967295, %v20294_v19  ;;  %vm15119_vm2 = vcmp.le.s32.totalorder %v20296_v15, 16  ;;  %v20302_v38 = vmov 0  ;;  %v15136_v8 = vadd.s32 448, %v14173_v1  ;;  %12184 = vmatmul.mubr.msk.bf16.gmra.mxu1 %vm20304_vm11, %v3744_v39  ;;  %v12828_v15 = vld [vmem:[#allocation2 + $0x30] sm:$0xff]  }
 0x3d4   : > { %vm15131_vm1 = vcmp.ge.s32.totalorder %v20301_v7, 1  ;;  %v2810_v55 = vmax.f32 %v1745_v20, 0.0  ;;  %v1760_v31 = vadd.f32 %v12095_v58, %v14385_v48  ;;  %v4731_v0 = vsel %vm20290_vm9, %v4728_v36, %v4730_v9  ;;  %v1754_v20 = vpop.f32.mrf.mxu0 }
 0x3d5   : > { %v20303_v38 = vsel %vm15131_vm1, 4294967295, %v20302_v38  ;;  %v3751_v6 = vrot.slane %v3749_v57, 1  ;;  %v20305_v3 = vshra.s32 %v14508_v50, 5  ;;  %v20306_v63 = vmov 0 }
 0x3d6   : > { %v20309_v7 = vmov 0  ;;  %vm20311_vm0 = vcmask 27648   ;;  %vm20312_vm11 = vnez %v20251_v11  ;;  %vm20313_vm3 = vcmask 31744   ;;  %v12098_v58 = vpop.f32.mrf.mxu0 }
 0x3d7   : > { %vm15143_vm7 = vcmp.ge.s32.totalorder %v20305_v3, 1  ;;  %v20308_v21 = vmov %v20305_v3  ;;  %3417 = vst.msk [vmem:[#allocation2 + $0x40] sm:$0xf] %vm20311_vm0, %v11613_v45  ;;  %12319 = vmatprep.mubr.msk.bf16.mxu0 %vm20313_vm3, %v4731_v0  ;;  %v3753_v36 = vshrl.u32 %v15075_v37, 16  ;;  %v3038_v3 = vsel %vm15104_vm6, %v2810_v55, 0.0  ;;  %vm20315_vm3 = vmand %vm14945_vm13, %vm14951_vm12  ;;  %v15195_v58 = vld [vmem:[#allocation2 + $0x38] sm:$0xff]  }
 0x3d8   : > { %v20307_v63 = vsel %vm15143_vm7, 4294967295, %v20306_v63  ;;  %vm15149_vm5 = vcmp.le.s32.totalorder %v20308_v21, 16  ;;  %v2813_v45 = vmax.f32 %v1760_v31, 0.0  ;;  %v1755_v21 = vadd.f32 %v1754_v20, %v14385_v48  ;;  %vm20325_vm12 = vmand %vm20312_vm11, %vm14985_vm15 }
 0x3d9   : > { %v20310_v7 = vsel %vm15149_vm5, 4294967295, %v20309_v7  ;;  %vm20314_vm0 = vnez %v20259_v4  ;;  %vm20318_vm7 = vsmask.f32 7424  ;;  %v11615_v39 = vpack.c.bf16 %v3038_v3, %v3038_v3 }
 0x3da   : > { %vm15173_vm9 = vmand %vm20315_vm3, %vm20314_vm0  ;;  %v3752_v0 = vsel %vm20318_vm7, %v3747_v25, %v3751_v6  ;;  %vm20319_vm5 = vcmask 31744   ;;  %vm20320_vm6 = vnez %v20266_v35  ;;  %vm20321_vm1 = vnez %v20263_v42 }
 0x3db   : > { %12187 = vmatprep.mubr.msk.bf16.mxu1 %vm20319_vm5, %v3752_v0  ;;  %vm2434_vm10 = vmand %vm20321_vm1, %vm20320_vm6  ;;  %v4732_v4 = vrot.slane %v12828_v15, 1  ;;  %v3757_v40 = vshll.u32 %v12828_v15, 16  ;;  %v20322_v62 = vand.u32 31, %v14508_v50  ;;  %v3041_v25 = vsel %vm20325_vm12, %v2813_v45, 0.0 }
 0x3dc   : > { %v2812_v31 = vmax.f32 %v1755_v21, 0.0  ;;  %v3755_v20 = vor.u32 %v3753_v36, %v3751_v6  ;;  %v20326_v3 = vshra.s32 %v14524_v24, 5  ;;  %v15210_v11 = vadd.s32 464, %v14173_v1  ;;  %v1764_v6 = vpop.f32.mrf.mxu0  ;;  %vm15224_vm0 = vmand %vm2434_vm10, %vm15063_vm14 }
 0x3dd   : > { %vm15185_vm13 = vcmp.le.s32.totalorder %v20322_v62, 16  ;;  %vm20332_vm15 = vcmask 27648   ;;  %v11618_v61 = vpack.c.bf16 %v3041_v25, %v3041_v25  ;;  %vm20333_vm11 = vcmask 1046528  }
 0x3de   : > { %vm15199_vm7 = vcmp.ge.s32.totalorder %v20326_v3, 1  ;;  %v20329_v0 = vmov %v20326_v3  ;;  %3419 = vst.msk [vmem:[#allocation2 + $0x48] sm:$0xf] %vm20332_vm15, %v11615_v39  ;;  %v4733_v36 = vsel %vm20333_vm11, %v4730_v9, %v4732_v4  ;;  %v3759_v45 = vrot.slane %v3757_v40, 1  ;;  %vm20343_vm14 = vmmov %vm20332_vm15  ;;  %v12101_v25 = vpop.f32.mrf.mxu0 }
 0x3df   : > { %vm15205_vm5 = vcmp.le.s32.totalorder %v20329_v0, 16  ;;  %v3761_v21 = vshrl.u32 %v12828_v15, 16  ;;  %v3040_v3 = vsel %vm15173_vm9, %v2812_v31, 0.0  ;;  %v1765_v55 = vadd.f32 %v1764_v6, %v14385_v48  ;;  %3422 = vst.msk [vmem:[#allocation2 + $0x54] sm:$0xf] %vm20343_vm14, %v11618_v61 }
 0x3e0   : > { %vm20336_vm3 = vcmask 31744   ;;  %v4734_v9 = vrot.slane %v15195_v58, 1  ;;  %v3765_v15 = vshll.u32 %v15195_v58, 16  ;;  %v20337_v37 = vshra.s32 %v14521_v53, 5 }
 0x3e1   : > { %12320 = vmatmul.mubr.msk.bf16.gmra.mxu0 %vm20336_vm3, %v4733_v36  ;;  %v20338_v40 = vmov 0  ;;  %v11617_v22 = vpack.c.bf16 %v3040_v3, %v3040_v3  ;;  %vm20344_vm10 = vsmask.f32 7424  ;;  %v3763_v0 = vor.u32 %v3761_v21, %v3759_v45  ;;  %vm20348_vm15 = vmmov %vm20336_vm3 }
 0x3e2   : > { %vm15233_vm9 = vcmp.ge.s32.totalorder %v20337_v37, 1  ;;  %v20340_v42 = vmov %v20337_v37  ;;  %v3760_v31 = vsel %vm20344_vm10, %v3755_v20, %v3759_v45  ;;  %v20345_v6 = vand.u32 31, %v14524_v24 }
 0x3e3   : > { %v20339_v40 = vsel %vm15233_vm9, 4294967295, %v20338_v40  ;;  %vm15239_vm12 = vcmp.le.s32.totalorder %v20340_v42, 16  ;;  %v20346_v53 = vmov 0  ;;  %v2240_v36 = vand.u32 31, %v15136_v8  ;;  %12188 = vmatmul.mubr.msk.bf16.gmra.mxu1 %vm20348_vm15, %v3760_v31  ;;  %v12830_v42 = vld [vmem:[#allocation2 + $0x40] sm:$0xff]  }
 0x3e4   : > { %vm15251_vm6 = vcmp.ge.s32.totalorder %v20345_v6, 1  ;;  %v2814_v37 = vmax.f32 %v1765_v55, 0.0  ;;  %v1780_v61 = vadd.f32 %v12101_v25, %v14385_v48  ;;  %v4735_v20 = vsel %vm20333_vm11, %v4732_v4, %v4734_v9  ;;  %v1774_v4 = vpop.f32.mrf.mxu0 }
 0x3e5   : > { %v20347_v53 = vsel %vm15251_vm6, 4294967295, %v20346_v53  ;;  %v3767_v3 = vrot.slane %v3765_v15, 1  ;;  %v20349_v57 = vshra.s32 %v14548_v33, 5  ;;  %v20350_v45 = vmov 0 }
 0x3e6   : > { %v20353_v21 = vmov 0  ;;  %vm20355_vm10 = vcmask 27648   ;;  %vm20356_vm15 = vnez %v20295_v19  ;;  %vm20357_vm1 = vcmask 31744   ;;  %v12104_v39 = vpop.f32.mrf.mxu0 }
 0x3e7   : > { %vm15261_vm3 = vcmp.ge.s32.totalorder %v20349_v57, 1  ;;  %v20352_v24 = vmov %v20349_v57  ;;  %3421 = vst.msk [vmem:[#allocation2 + $0x50] sm:$0xf] %vm20355_vm10, %v11617_v22  ;;  %12323 = vmatprep.mubr.msk.bf16.mxu0 %vm20357_vm1, %v4735_v20  ;;  %v3769_v57 = vshrl.u32 %v15195_v58, 16  ;;  %v2166_v55 = vshra.s32 %v15210_v11, 5  ;;  %vm20360_vm1 = vmand %vm15079_vm8, %vm15085_vm4 }
 0x3e8   : > { %v20351_v45 = vsel %vm15261_vm3, 4294967295, %v20350_v45  ;;  %vm15267_vm14 = vcmp.le.s32.totalorder %v20352_v24, 16  ;;  %v2242_v15 = vand.u32 31, %v15210_v11  ;;  %vm20358_vm3 = vcmask 1041408   ;;  %vm20370_vm4 = vmand %vm20356_vm15, %vm15119_vm2 }
 0x3e9   : > { %v20354_v21 = vsel %vm15267_vm14, 4294967295, %v20353_v21  ;;  %v6503_v25 = vsel %vm20358_vm3, %v15005_v44, 0  ;;  %v3042_v22 = vsel %vm15224_vm0, %v2814_v37, 0.0  ;;  %v2817_v31 = vmax.f32 %v1780_v61, 0.0 }
 0x3ea   : > { %v1775_v6 = vadd.f32 %v1774_v4, %v14385_v48  ;;  %vm20359_vm10 = vnez %v20303_v38  ;;  %vm20363_vm14 = vsmask.f32 7424  ;;  %12442 = vmatpush3.bf16.msra.mxu0 %v6503_v25  ;;  %v11619_v44 = vpack.c.bf16 %v3042_v22, %v3042_v22  ;;  %v15313_v4 = vld [vmem:[#allocation2 + $0x48] sm:$0xff]  }
 0x3eb   : > { %vm15292_vm11 = vmand %vm20360_vm1, %vm20359_vm10  ;;  %v3768_v20 = vsel %vm20363_vm14, %v3763_v0, %v3767_v3  ;;  %vm20364_vm0 = vcmask 31744   ;;  %vm20365_vm3 = vnez %v20310_v7  ;;  %vm20366_vm6 = vnez %v20307_v63 }
 0x3ec   : > { %12191 = vmatprep.mubr.msk.bf16.mxu1 %vm20364_vm0, %v3768_v20  ;;  %vm2438_vm9 = vmand %vm20366_vm6, %vm20365_vm3  ;;  %v4736_v12 = vrot.slane %v12830_v42, 1  ;;  %v3773_v38 = vshll.u32 %v12830_v42, 16  ;;  %v20367_v54 = vand.u32 31, %v14548_v33  ;;  %v3045_v0 = vsel %vm20370_vm4, %v2817_v31, 0.0 }
 0x3ed   : > { %v2816_v61 = vmax.f32 %v1775_v6, 0.0  ;;  %v3771_v24 = vor.u32 %v3769_v57, %v3767_v3  ;;  %v20371_v25 = vshra.s32 %v14564_v32, 5  ;;  %v15328_v19 = vadd.s32 488, %v14173_v1  ;;  %v1784_v3 = vpop.f32.mrf.mxu0  ;;  %vm15342_vm1 = vmand %vm2438_vm9, %vm15185_vm13 }
 0x3ee   : > { %vm15304_vm8 = vcmp.le.s32.totalorder %v20367_v54, 16  ;;  %vm20377_vm2 = vcmask 27648   ;;  %v11622_v56 = vpack.c.bf16 %v3045_v0, %v3045_v0  ;;  %vm20378_vm15 = vcmask 1046528  }
 0x3ef   : > { %vm15317_vm14 = vcmp.ge.s32.totalorder %v20371_v25, 1  ;;  %v20374_v33 = vmov %v20371_v25  ;;  %3423 = vst.msk [vmem:[#allocation2 + $0x58] sm:$0xf] %vm20377_vm2, %v11619_v44  ;;  %v4737_v57 = vsel %vm20378_vm15, %v4734_v9, %v4736_v12  ;;  %v3775_v31 = vrot.slane %v3773_v38, 1  ;;  %vm20387_vm13 = vmmov %vm20377_vm2  ;;  %v12107_v0 = vpop.f32.mrf.mxu0 }
 0x3f0   : > { %vm15323_vm10 = vcmp.le.s32.totalorder %v20374_v33, 16  ;;  %v3777_v6 = vshrl.u32 %v12830_v42, 16  ;;  %v3044_v39 = vsel %vm15292_vm11, %v2816_v61, 0.0  ;;  %v1785_v54 = vadd.f32 %v1784_v3, %v14385_v48  ;;  %12324 = vmatmul.mubr.msk.bf16.gmra.mxu0 %vm20364_vm0, %v4737_v57  ;;  %3426 = vst.msk [vmem:[#allocation2 + $0x64] sm:$0xf] %vm20387_vm13, %v11622_v56  ;;  %vm20392_vm2 = vmmov %vm20364_vm0 }
 0x3f1   : > { %v4738_v9 = vrot.slane %v15313_v4, 1  ;;  %v3781_v42 = vshll.u32 %v15313_v4, 16  ;;  %v20381_v58 = vshra.s32 %v14561_v2, 5  ;;  %v20382_v38 = vmov 0 }
 0x3f2   : > { %v11621_v41 = vpack.c.bf16 %v3044_v39, %v3044_v39  ;;  %vm20388_vm9 = vsmask.f32 7424  ;;  %v3779_v25 = vor.u32 %v3777_v6, %v3775_v31  ;;  %v20389_v33 = vand.u32 31, %v14564_v32 }
 0x3f3   : > { %vm15351_vm11 = vcmp.ge.s32.totalorder %v20381_v58, 1  ;;  %v20384_v63 = vmov %v20381_v58  ;;  %v3776_v61 = vsel %vm20388_vm9, %v3771_v24, %v3775_v31  ;;  %v20390_v2 = vmov 0  ;;  %v12832_v58 = vld [vmem:[#allocation2 + $0x50] sm:$0xff]  }
 0x3f4   : > { %v20383_v38 = vsel %vm15351_vm11, 4294967295, %v20382_v38  ;;  %vm15357_vm4 = vcmp.le.s32.totalorder %v20384_v63, 16  ;;  %vm15369_vm3 = vcmp.ge.s32.totalorder %v20389_v33, 1  ;;  %v15374_v3 = vadd.s32 480, %v14173_v1  ;;  %12192 = vmatmul.mubr.msk.bf16.gmra.mxu1 %vm20392_vm2, %v3776_v61 }
 0x3f5   : > { %v20391_v2 = vsel %vm15369_vm3, 4294967295, %v20390_v2  ;;  %v2818_v56 = vmax.f32 %v1785_v54, 0.0  ;;  %v1800_v57 = vadd.f32 %v12107_v0, %v14385_v48  ;;  %v4739_v24 = vsel %vm20378_vm15, %v4736_v12, %v4738_v9  ;;  %v1794_v12 = vpop.f32.mrf.mxu0  ;;  %vm20404_vm15 = vmand %vm15199_vm7, %vm15205_vm5 }
 0x3f6   : > { %v3783_v39 = vrot.slane %v3781_v42, 1  ;;  %v20393_v31 = vshra.s32 %v14583_v60, 5  ;;  %v20394_v32 = vmov 0  ;;  %v20397_v63 = vmov 0 }
 0x3f7   : > { %vm20399_vm9 = vcmask 27648   ;;  %vm20400_vm2 = vnez %v20339_v40  ;;  %vm20401_vm6 = vcmask 31744   ;;  %v3785_v54 = vshrl.u32 %v15313_v4, 16  ;;  %v12110_v44 = vpop.f32.mrf.mxu0 }
 0x3f8   : > { %vm15381_vm0 = vcmp.ge.s32.totalorder %v20393_v31, 1  ;;  %v20396_v6 = vmov %v20393_v31  ;;  %3425 = vst.msk [vmem:[#allocation2 + $0x60] sm:$0xf] %vm20399_vm9, %v11621_v41  ;;  %12327 = vmatprep.mubr.msk.bf16.mxu0 %vm20401_vm6, %v4739_v24  ;;  %v3046_v0 = vsel %vm15342_vm1, %v2818_v56, 0.0  ;;  %v2821_v61 = vmax.f32 %v1800_v57, 0.0  ;;  %vm20414_vm5 = vmand %vm20400_vm2, %vm15239_vm12  ;;  %v15431_v31 = vld [vmem:[#allocation2 + $0x58] sm:$0xff]  }
 0x3f9   : > { %v20395_v32 = vsel %vm15381_vm0, 4294967295, %v20394_v32  ;;  %vm15387_vm13 = vcmp.le.s32.totalorder %v20396_v6, 16  ;;  %vm20402_vm0 = vcmask 1041408   ;;  %v1795_v33 = vadd.f32 %v1794_v12, %v14385_v48 }
 0x3fa   : > { %v20398_v63 = vsel %vm15387_vm13, 4294967295, %v20397_v63  ;;  %v4423_v42 = vsel %vm20402_vm0, %v15010_v18, 0  ;;  %vm20403_vm9 = vnez %v20347_v53  ;;  %vm20407_vm6 = vsmask.f32 7424 }
 0x3fb   : > { %vm15410_vm13 = vmand %vm20404_vm15, %vm20403_vm9  ;;  %v3784_v4 = vsel %vm20407_vm6, %v3779_v25, %v3783_v39  ;;  %12244 = vmatpush3.bf16.msra.mxu1 %v4423_v42  ;;  %v11623_v18 = vpack.c.bf16 %v3046_v0, %v3046_v0  ;;  %vm20408_vm1 = vcmask 31744   ;;  %vm20409_vm0 = vnez %v20354_v21 }
 0x3fc   : > { %12195 = vmatprep.mubr.msk.bf16.mxu1 %vm20408_vm1, %v3784_v4  ;;  %vm20410_vm3 = vnez %v20351_v45  ;;  %v4740_v50 = vrot.slane %v12832_v58, 1  ;;  %v3789_v53 = vshll.u32 %v12832_v58, 16  ;;  %v20411_v62 = vand.u32 31, %v14583_v60 }
 0x3fd   : > { %vm2442_vm11 = vmand %vm20410_vm3, %vm20409_vm0  ;;  %v3049_v25 = vsel %vm20414_vm5, %v2821_v61, 0.0  ;;  %v2820_v57 = vmax.f32 %v1795_v33, 0.0  ;;  %v3787_v24 = vor.u32 %v3785_v54, %v3783_v39  ;;  %v20415_v6 = vshra.s32 %v14630_v26, 5  ;;  %v1804_v39 = vpop.f32.mrf.mxu0 }
 0x3fe   : > { %vm15422_vm7 = vcmp.le.s32.totalorder %v20411_v62, 16  ;;  %v15446_v40 = vadd.s32 496, %v14173_v1  ;;  %vm20421_vm12 = vcmask 27648   ;;  %v11626_v35 = vpack.c.bf16 %v3049_v25, %v3049_v25  ;;  %vm15460_vm6 = vmand %vm2442_vm11, %vm15304_vm8 }
 0x3ff   : > { %vm15435_vm15 = vcmp.ge.s32.totalorder %v20415_v6, 1  ;;  %v20418_v60 = vmov %v20415_v6  ;;  %3427 = vst.msk [vmem:[#allocation2 + $0x68] sm:$0xf] %vm20421_vm12, %v11623_v18  ;;  %vm20422_vm2 = vcmask 1046528   ;;  %v3791_v0 = vrot.slane %v3789_v53, 1  ;;  %vm20431_vm8 = vmmov %vm20421_vm12  ;;  %v12113_v53 = vpop.f32.mrf.mxu0 }
 0x400   : > { %vm15441_vm9 = vcmp.le.s32.totalorder %v20418_v60, 16  ;;  %v4741_v54 = vsel %vm20422_vm2, %v4738_v9, %v4740_v50  ;;  %v3793_v61 = vshrl.u32 %v12832_v58, 16  ;;  %v3048_v33 = vsel %vm15410_vm13, %v2820_v57, 0.0  ;;  %3430 = vst.msk [vmem:[#allocation2 + $0x74] sm:$0xf] %vm20431_vm8, %v11626_v35  ;;  %vm20436_vm12 = vmmov %vm20408_vm1 }
 0x401   : > { %v1805_v4 = vadd.f32 %v1804_v39, %v14385_v48  ;;  %12328 = vmatmul.mubr.msk.bf16.gmra.mxu0 %vm20408_vm1, %v4741_v54  ;;  %v4742_v9 = vrot.slane %v15431_v31, 1  ;;  %v3797_v58 = vshll.u32 %v15431_v31, 16  ;;  %v20425_v41 = vshra.s32 %v14586_v16, 5  ;;  %v12834_v54 = vld [vmem:[#allocation2 + $0x60] sm:$0xff]  }
 0x402   : > { %v20426_v44 = vmov 0  ;;  %v11625_v37 = vpack.c.bf16 %v3048_v33, %v3048_v33  ;;  %vm20432_vm11 = vsmask.f32 7424  ;;  %v3795_v25 = vor.u32 %v3793_v61, %v3791_v0 }
 0x403   : > { %vm15469_vm13 = vcmp.ge.s32.totalorder %v20425_v41, 1  ;;  %v20428_v45 = vmov %v20425_v41  ;;  %v3792_v62 = vsel %vm20432_vm11, %v3787_v24, %v3791_v0  ;;  %v20433_v57 = vand.u32 31, %v14630_v26 }
 0x404   : > { %v20427_v44 = vsel %vm15469_vm13, 4294967295, %v20426_v44  ;;  %vm15475_vm5 = vcmp.le.s32.totalorder %v20428_v45, 16  ;;  %v20434_v16 = vmov 0  ;;  %v2169_v6 = vshra.s32 %v15328_v19, 5  ;;  %12196 = vmatmul.mubr.msk.bf16.gmra.mxu1 %vm20436_vm12, %v3792_v62 }
 0x405   : > { %vm15487_vm0 = vcmp.ge.s32.totalorder %v20433_v57, 1  ;;  %v2822_v60 = vmax.f32 %v1805_v4, 0.0  ;;  %v1820_v35 = vadd.f32 %v12113_v53, %v14385_v48  ;;  %v4743_v24 = vsel %vm20422_vm2, %v4740_v50, %v4742_v9  ;;  %v1814_v50 = vpop.f32.mrf.mxu0 }
 0x406   : > { %v20435_v16 = vsel %vm15487_vm0, 4294967295, %v20434_v16  ;;  %v3799_v39 = vrot.slane %v3797_v58, 1  ;;  %v20437_v33 = vshra.s32 %v14647_v47, 5  ;;  %v20438_v0 = vmov 0 }
 0x407   : > { %v20441_v61 = vmov 0  ;;  %vm20443_vm11 = vcmask 27648   ;;  %vm20444_vm12 = vnez %v20383_v38  ;;  %vm20445_vm3 = vcmask 31744  }
 0x408   : > { %vm15497_vm1 = vcmp.ge.s32.totalorder %v20437_v33, 1  ;;  %v20440_v26 = vmov %v20437_v33  ;;  %3429 = vst.msk [vmem:[#allocation2 + $0x70] sm:$0xf] %vm20443_vm11, %v11625_v37  ;;  %12331 = vmatprep.mubr.msk.bf16.mxu0 %vm20445_vm3, %v4743_v24  ;;  %v3801_v4 = vshrl.u32 %v15431_v31, 16  ;;  %v2168_v58 = vshra.s32 %v15374_v3, 5  ;;  %vm20447_vm3 = vmand %vm15317_vm14, %vm15323_vm10  ;;  %v12116_v33 = vpop.f32.mrf.mxu0 }
 0x409   : > { %v20439_v0 = vsel %vm15497_vm1, 4294967295, %v20438_v0  ;;  %vm15503_vm8 = vcmp.le.s32.totalorder %v20440_v26, 16  ;;  %v2244_v41 = vand.u32 31, %v15374_v3  ;;  %v2170_v45 = vshra.s32 %v15446_v40, 5  ;;  %vm20457_vm10 = vmand %vm20444_vm12, %vm15357_vm4  ;;  %v15548_v26 = vld [vmem:[#allocation2 + $0x68] sm:$0xff]  }
 0x40a   : > { %v20442_v61 = vsel %vm15503_vm8, 4294967295, %v20441_v61  ;;  %v3050_v53 = vsel %vm15460_vm6, %v2822_v60, 0.0  ;;  %v2825_v37 = vmax.f32 %v1820_v35, 0.0  ;;  %v1815_v62 = vadd.f32 %v1814_v50, %v14385_v48 }
 0x40b   : > { %vm20446_vm11 = vnez %v20391_v2  ;;  %vm20450_vm1 = vsmask.f32 7424  ;;  %v11627_v24 = vpack.c.bf16 %v3050_v53, %v3050_v53  ;;  %vm20451_vm8 = vcmask 31744  }
 0x40c   : > { %vm15527_vm2 = vmand %vm20447_vm3, %vm20446_vm11  ;;  %v3800_v57 = vsel %vm20450_vm1, %v3795_v25, %v3799_v39  ;;  %vm20452_vm6 = vnez %v20398_v63  ;;  %vm20453_vm0 = vnez %v20395_v32  ;;  %v4744_v2 = vrot.slane %v12834_v54, 1 }
 0x40d   : > { %12199 = vmatprep.mubr.msk.bf16.mxu1 %vm20451_vm8, %v3800_v57  ;;  %vm2446_vm13 = vmand %vm20453_vm0, %vm20452_vm6  ;;  %v3805_v22 = vshll.u32 %v12834_v54, 16  ;;  %v20454_v20 = vand.u32 31, %v14647_v47  ;;  %v3053_v25 = vsel %vm20457_vm10, %v2825_v37, 0.0  ;;  %v2824_v60 = vmax.f32 %v1815_v62, 0.0 }
 0x40e   : > { %v3803_v35 = vor.u32 %v3801_v4, %v3799_v39  ;;  %v20458_v50 = vshra.s32 %v14675_v27, 5  ;;  %v2246_v38 = vand.u32 31, %v15446_v40  ;;  %vm20464_vm4 = vcmask 27648   ;;  %v1824_v39 = vpop.f32.mrf.mxu0  ;;  %vm15575_vm11 = vmand %vm2446_vm13, %vm15422_vm7 }
 0x40f   : > { %vm15539_vm14 = vcmp.le.s32.totalorder %v20454_v20, 16  ;;  %3431 = vst.msk [vmem:[#allocation2 + $0x78] sm:$0xf] %vm20464_vm4, %v11627_v24  ;;  %v11630_v7 = vpack.c.bf16 %v3053_v25, %v3053_v25  ;;  %vm20465_vm12 = vcmask 1046528   ;;  %v3807_v37 = vrot.slane %v3805_v22, 1  ;;  %vm20475_vm7 = vmmov %vm20464_vm4 }
 0x410   : > { %vm15552_vm1 = vcmp.ge.s32.totalorder %v20458_v50, 1  ;;  %v20461_v47 = vmov %v20458_v50  ;;  %v4745_v4 = vsel %vm20465_vm12, %v4742_v9, %v4744_v2  ;;  %v3809_v62 = vshrl.u32 %v12834_v54, 16  ;;  %v12119_v25 = vpop.f32.mrf.mxu0 }
 0x411   : > { %vm15558_vm8 = vcmp.le.s32.totalorder %v20461_v47, 16  ;;  %v3052_v33 = vsel %vm15527_vm2, %v2824_v60, 0.0  ;;  %v1825_v20 = vadd.f32 %v1824_v39, %v14385_v48  ;;  %vm20468_vm3 = vcmask 31744   ;;  %3434 = vst.msk [vmem:[#allocation2 + $0x84] sm:$0xf] %vm20475_vm7, %v11630_v7 }
 0x412   : > { %12332 = vmatmul.mubr.msk.bf16.gmra.mxu0 %vm20468_vm3, %v4745_v4  ;;  %v4746_v9 = vrot.slane %v15548_v26, 1  ;;  %v3813_v54 = vshll.u32 %v15548_v26, 16  ;;  %v20469_v31 = vshra.s32 %v14658_v59, 5  ;;  %v20470_v22 = vmov 0  ;;  %vm20480_vm4 = vmmov %vm20468_vm3 }
 0x413   : > { %v11629_v56 = vpack.c.bf16 %v3052_v33, %v3052_v33  ;;  %vm20476_vm13 = vsmask.f32 7424  ;;  %v3811_v50 = vor.u32 %v3809_v62, %v3807_v37  ;;  %v20477_v47 = vand.u32 31, %v14675_v27 }
 0x414   : > { %vm15584_vm2 = vcmp.ge.s32.totalorder %v20469_v31, 1  ;;  %v20472_v32 = vmov %v20469_v31  ;;  %v3808_v60 = vsel %vm20476_vm13, %v3803_v35, %v3807_v37  ;;  %v20478_v59 = vmov 0  ;;  %v12836_v31 = vld [vmem:[#allocation2 + $0x70] sm:$0xff]  }
 0x415   : > { %v20471_v22 = vsel %vm15584_vm2, 4294967295, %v20470_v22  ;;  %vm15590_vm10 = vcmp.le.s32.totalorder %v20472_v32, 16  ;;  %vm15602_vm6 = vcmp.ge.s32.totalorder %v20477_v47, 1  ;;  %v15607_v39 = vadd.s32 520, %v14173_v1  ;;  %12200 = vmatmul.mubr.msk.bf16.gmra.mxu1 %vm20480_vm4, %v3808_v60 }
 0x416   : > { %v20479_v59 = vsel %vm15602_vm6, 4294967295, %v20478_v59  ;;  %v2826_v7 = vmax.f32 %v1825_v20, 0.0  ;;  %v1840_v4 = vadd.f32 %v12119_v25, %v14385_v48  ;;  %v4747_v35 = vsel %vm20465_vm12, %v4744_v2, %v4746_v9  ;;  %v1834_v2 = vpop.f32.mrf.mxu0  ;;  %vm20491_vm12 = vmand %vm15435_vm15, %vm15441_vm9 }
 0x417   : > { %v3815_v33 = vrot.slane %v3813_v54, 1  ;;  %v20481_v37 = vshra.s32 %v14690_v14, 5  ;;  %v20482_v27 = vmov 0  ;;  %v20485_v32 = vmov 0 }
 0x418   : > { %vm20487_vm13 = vcmask 27648   ;;  %vm20488_vm4 = vnez %v20427_v44  ;;  %vm20489_vm0 = vcmask 31744   ;;  %v3817_v20 = vshrl.u32 %v15548_v26, 16 }
 0x419   : > { %vm15614_vm3 = vcmp.ge.s32.totalorder %v20481_v37, 1  ;;  %v20484_v62 = vmov %v20481_v37  ;;  %3433 = vst.msk [vmem:[#allocation2 + $0x80] sm:$0xf] %vm20487_vm13, %v11629_v56  ;;  %12335 = vmatprep.mubr.msk.bf16.mxu0 %vm20489_vm0, %v4747_v35  ;;  %v15632_v54 = vadd.s32 512, %v14173_v1  ;;  %v3054_v25 = vsel %vm15575_vm11, %v2826_v7, 0.0  ;;  %v12122_v37 = vpop.f32.mrf.mxu0  ;;  %vm20501_vm9 = vmand %vm20488_vm4, %vm15475_vm5 }
 0x41a   : > { %v20483_v27 = vsel %vm15614_vm3, 4294967295, %v20482_v27  ;;  %vm15620_vm7 = vcmp.le.s32.totalorder %v20484_v62, 16  ;;  %v2829_v60 = vmax.f32 %v1840_v4, 0.0  ;;  %v1835_v47 = vadd.f32 %v1834_v2, %v14385_v48  ;;  %v15665_v62 = vld [vmem:[#allocation2 + $0x78] sm:$0xff]  }
 0x41b   : > { %v20486_v32 = vsel %vm15620_vm7, 4294967295, %v20485_v32  ;;  %vm20490_vm13 = vnez %v20435_v16  ;;  %vm20494_vm0 = vsmask.f32 7424  ;;  %v11631_v35 = vpack.c.bf16 %v3054_v25, %v3054_v25 }
 0x41c   : > { %vm15644_vm3 = vmand %vm20491_vm12, %vm20490_vm13  ;;  %v3816_v26 = vsel %vm20494_vm0, %v3811_v50, %v3815_v33  ;;  %vm20495_vm7 = vcmask 31744   ;;  %vm20496_vm11 = vnez %v20442_v61  ;;  %vm20497_vm6 = vnez %v20439_v0 }
 0x41d   : > { %12203 = vmatprep.mubr.msk.bf16.mxu1 %vm20495_vm7, %v3816_v26  ;;  %vm2450_vm2 = vmand %vm20497_vm6, %vm20496_vm11  ;;  %v4748_v16 = vrot.slane %v12836_v31, 1  ;;  %v3821_v12 = vshll.u32 %v12836_v31, 16  ;;  %v20498_v42 = vand.u32 31, %v14690_v14  ;;  %v3057_v50 = vsel %vm20501_vm9, %v2829_v60, 0.0 }
 0x41e   : > { %v2828_v7 = vmax.f32 %v1835_v47, 0.0  ;;  %v3819_v4 = vor.u32 %v3817_v20, %v3815_v33  ;;  %v20502_v2 = vshra.s32 %v14717_v23, 5  ;;  %v2173_v44 = vshra.s32 %v15607_v39, 5  ;;  %v1844_v33 = vpop.f32.mrf.mxu0  ;;  %vm15692_vm13 = vmand %vm2450_vm2, %vm15539_vm14 }
 0x41f   : > { %vm15656_vm15 = vcmp.le.s32.totalorder %v20498_v42, 16  ;;  %vm20508_vm5 = vcmask 27648   ;;  %v11634_v21 = vpack.c.bf16 %v3057_v50, %v3057_v50  ;;  %vm20509_vm4 = vcmask 1046528  }
 0x420   : > { %vm15669_vm7 = vcmp.ge.s32.totalorder %v20502_v2, 1  ;;  %v20505_v14 = vmov %v20502_v2  ;;  %3435 = vst.msk [vmem:[#allocation2 + $0x88] sm:$0xf] %vm20508_vm5, %v11631_v35  ;;  %v4749_v20 = vsel %vm20509_vm4, %v4746_v9, %v4748_v16  ;;  %v3823_v60 = vrot.slane %v3821_v12, 1  ;;  %vm20519_vm14 = vmmov %vm20508_vm5  ;;  %v12125_v50 = vpop.f32.mrf.mxu0 }
 0x421   : > { %vm15675_vm12 = vcmp.le.s32.totalorder %v20505_v14, 16  ;;  %v3825_v47 = vshrl.u32 %v12836_v31, 16  ;;  %v3056_v37 = vsel %vm15644_vm3, %v2828_v7, 0.0  ;;  %v1845_v42 = vadd.f32 %v1844_v33, %v14385_v48  ;;  %3438 = vst.msk [vmem:[#allocation2 + $0x94] sm:$0xf] %vm20519_vm14, %v11634_v21 }
 0x422   : > { %vm20512_vm0 = vcmask 31744   ;;  %v4750_v9 = vrot.slane %v15665_v62, 1  ;;  %v3829_v31 = vshll.u32 %v15665_v62, 16  ;;  %v20513_v56 = vshra.s32 %v14711_v46, 5 }
 0x423   : > { %12336 = vmatmul.mubr.msk.bf16.gmra.mxu0 %vm20512_vm0, %v4749_v20  ;;  %v20514_v12 = vmov 0  ;;  %v11633_v18 = vpack.c.bf16 %v3056_v37, %v3056_v37  ;;  %vm20520_vm2 = vsmask.f32 7424  ;;  %v3827_v2 = vor.u32 %v3825_v47, %v3823_v60  ;;  %vm20524_vm5 = vmmov %vm20512_vm0 }
 0x424   : > { %vm15701_vm3 = vcmp.ge.s32.totalorder %v20513_v56, 1  ;;  %v20516_v0 = vmov %v20513_v56  ;;  %v3824_v7 = vsel %vm20520_vm2, %v3819_v4, %v3823_v60  ;;  %v20521_v14 = vand.u32 31, %v14717_v23  ;;  %v12838_v56 = vld [vmem:[#allocation2 + $0x80] sm:$0xff]  }
 0x425   : > { %v20515_v12 = vsel %vm15701_vm3, 4294967295, %v20514_v12  ;;  %vm15707_vm9 = vcmp.le.s32.totalorder %v20516_v0, 16  ;;  %v20522_v46 = vmov 0  ;;  %v2172_v33 = vshra.s32 %v15632_v54, 5  ;;  %12204 = vmatmul.mubr.msk.bf16.gmra.mxu1 %vm20524_vm5, %v3824_v7 }
 0x426   : > { %vm15719_vm11 = vcmp.ge.s32.totalorder %v20521_v14, 1  ;;  %v2830_v20 = vmax.f32 %v1845_v42, 0.0  ;;  %v1860_v21 = vadd.f32 %v12125_v50, %v14385_v48  ;;  %v4751_v4 = vsel %vm20509_vm4, %v4748_v16, %v4750_v9  ;;  %v1854_v16 = vpop.f32.mrf.mxu0  ;;  %vm20535_vm4 = vmand %vm15552_vm1, %vm15558_vm8 }
 0x427   : > { %v20523_v46 = vsel %vm15719_vm11, 4294967295, %v20522_v46  ;;  %v3831_v37 = vrot.slane %v3829_v31, 1  ;;  %v20525_v0 = vshra.s32 %v14747_v43, 5  ;;  %v20526_v60 = vmov 0 }
 0x428   : > { %v20529_v47 = vmov 0  ;;  %vm20531_vm2 = vcmask 27648   ;;  %vm20532_vm5 = vnez %v20471_v22  ;;  %vm20533_vm6 = vcmask 31744  }
 0x429   : > { %vm15729_vm0 = vcmp.ge.s32.totalorder %v20525_v0, 1  ;;  %v20528_v23 = vmov %v20525_v0  ;;  %3437 = vst.msk [vmem:[#allocation2 + $0x90] sm:$0xf] %vm20531_vm2, %v11633_v18  ;;  %12339 = vmatprep.mubr.msk.bf16.mxu0 %vm20533_vm6, %v4751_v4  ;;  %v3833_v42 = vshrl.u32 %v15665_v62, 16  ;;  %v15747_v31 = vadd.s32 528, %v14173_v1  ;;  %v12128_v0 = vpop.f32.mrf.mxu0  ;;  %vm20544_vm8 = vmand %vm20532_vm5, %vm15590_vm10 }
 0x42a   : > { %v20527_v60 = vsel %vm15729_vm0, 4294967295, %v20526_v60  ;;  %vm15735_vm14 = vcmp.le.s32.totalorder %v20528_v23, 16  ;;  %v3058_v50 = vsel %vm15692_vm13, %v2830_v20, 0.0  ;;  %v2833_v7 = vmax.f32 %v1860_v21, 0.0  ;;  %v15780_v21 = vld [vmem:[#allocation2 + $0x88] sm:$0xff]  }
 0x42b   : > { %v20530_v47 = vsel %vm15735_vm14, 4294967295, %v20529_v47  ;;  %v1855_v14 = vadd.f32 %v1854_v16, %v14385_v48  ;;  %vm20534_vm2 = vnez %v20479_v59  ;;  %vm20538_vm6 = vsmask.f32 7424 }
 0x42c   : > { %vm15759_vm0 = vmand %vm20535_vm4, %vm20534_vm2  ;;  %v3832_v62 = vsel %vm20538_vm6, %v3827_v2, %v3831_v37  ;;  %v11635_v4 = vpack.c.bf16 %v3058_v50, %v3058_v50  ;;  %vm20539_vm14 = vcmask 31744   ;;  %vm20540_vm13 = vnez %v20486_v32 }
 0x42d   : > { %12207 = vmatprep.mubr.msk.bf16.mxu1 %vm20539_vm14, %v3832_v62  ;;  %vm20541_vm11 = vnez %v20483_v27  ;;  %v4752_v59 = vrot.slane %v12838_v56, 1  ;;  %v3837_v53 = vshll.u32 %v12838_v56, 16  ;;  %vm15771_vm1 = vcmp.le.s32.totalorder %v2230_v17, 16 }
 0x42e   : > { %vm2454_vm3 = vmand %vm20541_vm11, %vm20540_vm13  ;;  %v3061_v35 = vsel %vm20544_vm8, %v2833_v7, 0.0  ;;  %v2832_v2 = vmax.f32 %v1855_v14, 0.0  ;;  %v3835_v20 = vor.u32 %v3833_v42, %v3831_v37  ;;  %v20545_v23 = vshra.s32 %v14816_v13, 5  ;;  %v1864_v37 = vpop.f32.mrf.mxu0 }
 0x42f   : > { %v2248_v22 = vand.u32 31, %v15632_v54  ;;  %vm20551_vm10 = vcmask 27648   ;;  %v11638_v63 = vpack.c.bf16 %v3061_v35, %v3061_v35  ;;  %vm20552_vm5 = vcmask 1046528   ;;  %vm15807_vm2 = vmand %vm2454_vm3, %vm15656_vm15 }
 0x430   : > { %vm15784_vm14 = vcmp.ge.s32.totalorder %v20545_v23, 1  ;;  %v20548_v43 = vmov %v20545_v23  ;;  %3439 = vst.msk [vmem:[#allocation2 + $0x98] sm:$0xf] %vm20551_vm10, %v11635_v4  ;;  %v4753_v42 = vsel %vm20552_vm5, %v4750_v9, %v4752_v59  ;;  %v3839_v50 = vrot.slane %v3837_v53, 1  ;;  %vm20562_vm15 = vmmov %vm20551_vm10  ;;  %v12131_v53 = vpop.f32.mrf.mxu0 }
 0x431   : > { %vm15790_vm4 = vcmp.le.s32.totalorder %v20548_v43, 16  ;;  %v3841_v7 = vshrl.u32 %v12838_v56, 16  ;;  %v3060_v14 = vsel %vm15759_vm0, %v2832_v2, 0.0  ;;  %v1865_v62 = vadd.f32 %v1864_v37, %v14385_v48  ;;  %3442 = vst.msk [vmem:[#allocation2 + $0xa4] sm:$0xf] %vm20562_vm15, %v11638_v63 }
 0x432   : > { %vm20555_vm6 = vcmask 31744   ;;  %v4754_v9 = vrot.slane %v15780_v21, 1  ;;  %v3845_v56 = vshll.u32 %v15780_v21, 16  ;;  %v20556_v18 = vshra.s32 %v14813_v5, 5 }
 0x433   : > { %12340 = vmatmul.mubr.msk.bf16.gmra.mxu0 %vm20555_vm6, %v4753_v42  ;;  %v20557_v0 = vmov 0  ;;  %v11637_v24 = vpack.c.bf16 %v3060_v14, %v3060_v14  ;;  %vm20563_vm3 = vsmask.f32 7424  ;;  %v3843_v2 = vor.u32 %v3841_v7, %v3839_v50  ;;  %vm20567_vm10 = vmmov %vm20555_vm6  ;;  %v12840_v14 = vld [vmem:[#allocation2 + $0x90] sm:$0xff]  }
 0x434   : > { %vm15816_vm0 = vcmp.ge.s32.totalorder %v20556_v18, 1  ;;  %v20559_v27 = vmov %v20556_v18  ;;  %v3840_v35 = vsel %vm20563_vm3, %v3835_v20, %v3839_v50  ;;  %v20564_v23 = vand.u32 31, %v14816_v13 }
 0x435   : > { %v20558_v0 = vsel %vm15816_vm0, 4294967295, %v20557_v0  ;;  %vm15822_vm8 = vcmp.le.s32.totalorder %v20559_v27, 16  ;;  %v20565_v5 = vmov 0  ;;  %v2174_v43 = vshra.s32 %v15747_v31, 5  ;;  %12208 = vmatmul.mubr.msk.bf16.gmra.mxu1 %vm20567_vm10, %v3840_v35 }
 0x436   : > { %vm15834_vm13 = vcmp.ge.s32.totalorder %v20564_v23, 1  ;;  %v2834_v37 = vmax.f32 %v1865_v62, 0.0  ;;  %v1880_v63 = vadd.f32 %v12131_v53, %v14385_v48  ;;  %v4755_v20 = vsel %vm20552_vm5, %v4752_v59, %v4754_v9  ;;  %v1874_v59 = vpop.f32.mrf.mxu0  ;;  %vm20578_vm5 = vmand %vm15669_vm7, %vm15675_vm12 }
 0x437   : > { %v20566_v5 = vsel %vm15834_vm13, 4294967295, %v20565_v5  ;;  %v3847_v42 = vrot.slane %v3845_v56, 1  ;;  %v20568_v18 = vshra.s32 %v14838_v30, 5  ;;  %v20569_v50 = vmov 0 }
 0x438   : > { %v20572_v7 = vmov 0  ;;  %vm20574_vm3 = vcmask 27648   ;;  %vm20575_vm10 = vnez %v20515_v12  ;;  %vm20576_vm11 = vcmask 31744  }
 0x439   : > { %vm15844_vm6 = vcmp.ge.s32.totalorder %v20568_v18, 1  ;;  %v20571_v13 = vmov %v20568_v18  ;;  %3441 = vst.msk [vmem:[#allocation2 + $0xa0] sm:$0xf] %vm20574_vm3, %v11637_v24  ;;  %12343 = vmatprep.mubr.msk.bf16.mxu0 %vm20576_vm11, %v4755_v20  ;;  %v3849_v62 = vshrl.u32 %v15780_v21, 16  ;;  %v2250_v56 = vand.u32 31, %v15747_v31  ;;  %v12134_v20 = vpop.f32.mrf.mxu0  ;;  %vm20588_vm12 = vmand %vm20575_vm10, %vm15707_vm9  ;;  %v15893_v18 = vld [vmem:[#allocation2 + $0x98] sm:$0xff]  }
 0x43a   : > { %v20570_v50 = vsel %vm15844_vm6, 4294967295, %v20569_v50  ;;  %vm15850_vm15 = vcmp.le.s32.totalorder %v20571_v13, 16  ;;  %v3062_v27 = vsel %vm15807_vm2, %v2834_v37, 0.0  ;;  %v2837_v53 = vmax.f32 %v1880_v63, 0.0 }
 0x43b   : > { %v20573_v7 = vsel %vm15850_vm15, 4294967295, %v20572_v7  ;;  %v1875_v35 = vadd.f32 %v1874_v59, %v14385_v48  ;;  %vm20577_vm3 = vnez %v20523_v46  ;;  %vm20581_vm11 = vsmask.f32 7424 }
 0x43c   : > { %vm15872_vm6 = vmand %vm20578_vm5, %vm20577_vm3  ;;  %v3848_v21 = vsel %vm20581_vm11, %v3843_v2, %v3847_v42  ;;  %v11639_v23 = vpack.c.bf16 %v3062_v27, %v3062_v27  ;;  %vm20582_vm15 = vcmask 31744   ;;  %vm20583_vm2 = vnez %v20530_v47 }
 0x43d   : > { %12211 = vmatprep.mubr.msk.bf16.mxu1 %vm20582_vm15, %v3848_v21  ;;  %vm20584_vm13 = vnez %v20527_v60  ;;  %v4756_v46 = vrot.slane %v12840_v14, 1  ;;  %v3853_v25 = vshll.u32 %v12840_v14, 16  ;;  %v20585_v26 = vand.u32 31, %v14838_v30 }
 0x43e   : > { %vm2458_vm0 = vmand %vm20584_vm13, %vm20583_vm2  ;;  %v3065_v2 = vsel %vm20588_vm12, %v2837_v53, 0.0  ;;  %v2836_v37 = vmax.f32 %v1875_v35, 0.0  ;;  %v3851_v63 = vor.u32 %v3849_v62, %v3847_v42  ;;  %v20589_v13 = vshra.s32 %v14956_v52, 5  ;;  %v1884_v42 = vpop.f32.mrf.mxu0 }
 0x43f   : > { %vm15884_vm7 = vcmp.le.s32.totalorder %v20585_v26, 16  ;;  %v15908_v12 = vadd.s32 552, %v14173_v1  ;;  %vm20595_vm9 = vcmask 27648   ;;  %v11642_v61 = vpack.c.bf16 %v3065_v2, %v3065_v2  ;;  %vm15922_vm3 = vmand %vm2458_vm0, %vm15771_vm1 }
 0x440   : > { %vm15897_vm15 = vcmp.ge.s32.totalorder %v20589_v13, 1  ;;  %v20592_v30 = vmov %v20589_v13  ;;  %3443 = vst.msk [vmem:[#allocation2 + $0xa8] sm:$0xf] %vm20595_vm9, %v11639_v23  ;;  %vm20596_vm10 = vcmask 1046528   ;;  %v3855_v53 = vrot.slane %v3853_v25, 1  ;;  %vm20606_vm1 = vmmov %vm20595_vm9  ;;  %v12137_v26 = vpop.f32.mrf.mxu0 }
 0x441   : > { %vm15903_vm5 = vcmp.le.s32.totalorder %v20592_v30, 16  ;;  %v4757_v62 = vsel %vm20596_vm10, %v4754_v9, %v4756_v46  ;;  %v3857_v35 = vshrl.u32 %v12840_v14, 16  ;;  %v3064_v21 = vsel %vm15872_vm6, %v2836_v37, 0.0  ;;  %3446 = vst.msk [vmem:[#allocation2 + $0xb4] sm:$0xf] %vm20606_vm1, %v11642_v61 }
 0x442   : > { %v1885_v20 = vadd.f32 %v1884_v42, %v14385_v48  ;;  %vm20599_vm11 = vcmask 31744   ;;  %v4758_v9 = vrot.slane %v15893_v18, 1  ;;  %v3861_v14 = vshll.u32 %v15893_v18, 16 }
 0x443   : > { %12344 = vmatmul.mubr.msk.bf16.gmra.mxu0 %vm20599_vm11, %v4757_v62  ;;  %v20600_v24 = vshra.s32 %v14934_v51, 5  ;;  %v20601_v25 = vmov 0  ;;  %v11641_v57 = vpack.c.bf16 %v3064_v21, %v3064_v21  ;;  %vm20607_vm0 = vsmask.f32 7424  ;;  %vm20611_vm9 = vmmov %vm20599_vm11  ;;  %v12842_v21 = vld [vmem:[#allocation2 + $0xa0] sm:$0xff]  }
 0x444   : > { %v3856_v2 = vsel %vm20607_vm0, %v3851_v63, %v3855_v53  ;;  %v3859_v37 = vor.u32 %v3857_v35, %v3855_v53  ;;  %v20608_v13 = vand.u32 31, %v14956_v52  ;;  %v20609_v51 = vmov 0 }
 0x445   : > { %vm15931_vm6 = vcmp.ge.s32.totalorder %v20600_v24, 1  ;;  %v20603_v60 = vmov %v20600_v24  ;;  %v15954_v30 = vadd.s32 544, %v14173_v1  ;;  %v2838_v61 = vmax.f32 %v1885_v20, 0.0  ;;  %12212 = vmatmul.mubr.msk.bf16.gmra.mxu1 %vm20611_vm9, %v3856_v2 }
 0x446   : > { %v20602_v25 = vsel %vm15931_vm6, 4294967295, %v20601_v25  ;;  %vm15937_vm12 = vcmp.le.s32.totalorder %v20603_v60, 16  ;;  %vm15949_vm2 = vcmp.ge.s32.totalorder %v20608_v13, 1  ;;  %v1900_v42 = vadd.f32 %v12137_v26, %v14385_v48 }
 0x447   : > { %v20610_v51 = vsel %vm15949_vm2, 4294967295, %v20609_v51  ;;  %v4759_v63 = vsel %vm20596_vm10, %v4756_v46, %v4758_v9  ;;  %v3863_v62 = vrot.slane %v3861_v14, 1  ;;  %v20612_v53 = vshra.s32 %v15068_v34, 5  ;;  %v1894_v46 = vpop.f32.mrf.mxu0  ;;  %vm20622_vm10 = vmand %vm15784_vm14, %vm15790_vm4 }
 0x448   : > { %v20613_v52 = vmov 0  ;;  %v20616_v24 = vmov 0  ;;  %vm20618_vm0 = vcmask 27648   ;;  %vm20619_vm9 = vnez %v20558_v0 }
 0x449   : > { %vm15961_vm11 = vcmp.ge.s32.totalorder %v20612_v53, 1  ;;  %v20615_v35 = vmov %v20612_v53  ;;  %3445 = vst.msk [vmem:[#allocation2 + $0xb0] sm:$0xf] %vm20618_vm0, %v11641_v57  ;;  %vm20620_vm13 = vcmask 31744   ;;  %v3865_v20 = vshrl.u32 %v15893_v18, 16  ;;  %vm20632_vm4 = vmand %vm20619_vm9, %vm15822_vm8 }
 0x44a   : > { %v20614_v52 = vsel %vm15961_vm11, 4294967295, %v20613_v52  ;;  %vm15967_vm1 = vcmp.le.s32.totalorder %v20615_v35, 16  ;;  %12347 = vmatprep.mubr.msk.bf16.mxu0 %vm20620_vm13, %v4759_v63  ;;  %v2177_v14 = vshra.s32 %v15908_v12, 5  ;;  %v3066_v60 = vsel %vm15922_vm3, %v2838_v61, 0.0  ;;  %v12140_v63 = vpop.f32.mrf.mxu0  ;;  %v16011_v35 = vld [vmem:[#allocation2 + $0xa8] sm:$0xff]  }
 0x44b   : > { %v20617_v24 = vsel %vm15967_vm1, 4294967295, %v20616_v24  ;;  %v2841_v26 = vmax.f32 %v1900_v42, 0.0  ;;  %v1895_v2 = vadd.f32 %v1894_v46, %v14385_v48  ;;  %vm20621_vm0 = vnez %v20566_v5 }
 0x44c   : > { %vm15989_vm11 = vmand %vm20622_vm10, %vm20621_vm0  ;;  %vm20625_vm13 = vsmask.f32 7424  ;;  %v11643_v13 = vpack.c.bf16 %v3066_v60, %v3066_v60  ;;  %vm20626_vm1 = vcmask 31744   ;;  %vm20627_vm3 = vnez %v20573_v7 }
 0x44d   : > { %v3864_v18 = vsel %vm20625_vm13, %v3859_v37, %v3863_v62  ;;  %vm20628_vm2 = vnez %v20570_v50  ;;  %v4760_v5 = vrot.slane %v12842_v21, 1  ;;  %v3869_v16 = vshll.u32 %v12842_v21, 16 }
 0x44e   : > { %12215 = vmatprep.mubr.msk.bf16.mxu1 %vm20626_vm1, %v3864_v18  ;;  %vm2462_vm6 = vmand %vm20628_vm2, %vm20627_vm3  ;;  %v20629_v17 = vand.u32 31, %v15068_v34  ;;  %v2176_v61 = vshra.s32 %v15954_v30, 5  ;;  %v3069_v37 = vsel %vm20632_vm4, %v2841_v26, 0.0  ;;  %v2840_v42 = vmax.f32 %v1895_v2, 0.0 }
 0x44f   : > { %v3867_v53 = vor.u32 %v3865_v20, %v3863_v62  ;;  %v20633_v46 = vshra.s32 %v15136_v8, 5  ;;  %v16026_v0 = vadd.s32 560, %v14173_v1  ;;  %vm20639_vm8 = vcmask 27648   ;;  %v1904_v62 = vpop.f32.mrf.mxu0  ;;  %vm16040_vm0 = vmand %vm2462_vm6, %vm15884_vm7 }
 0x450   : > { %vm16001_vm14 = vcmp.le.s32.totalorder %v20629_v17, 16  ;;  %3447 = vst.msk [vmem:[#allocation2 + $0xb8] sm:$0xf] %vm20639_vm8, %v11643_v13  ;;  %v11646_v32 = vpack.c.bf16 %v3069_v37, %v3069_v37  ;;  %vm20640_vm9 = vcmask 1046528   ;;  %v3871_v26 = vrot.slane %v3869_v16, 1  ;;  %vm20650_vm7 = vmmov %vm20639_vm8 }
 0x451   : > { %vm16015_vm1 = vcmp.ge.s32.totalorder %v20633_v46, 1  ;;  %v20636_v60 = vmov %v20633_v46  ;;  %v4761_v20 = vsel %vm20640_vm9, %v4758_v9, %v4760_v5  ;;  %v3873_v2 = vshrl.u32 %v12842_v21, 16  ;;  %v12143_v37 = vpop.f32.mrf.mxu0 }
 0x452   : > { %vm16021_vm10 = vcmp.le.s32.totalorder %v20636_v60, 16  ;;  %v3068_v63 = vsel %vm15989_vm11, %v2840_v42, 0.0  ;;  %v1905_v17 = vadd.f32 %v1904_v62, %v14385_v48  ;;  %vm20643_vm13 = vcmask 31744   ;;  %3450 = vst.msk [vmem:[#allocation2 + $0xc4] sm:$0xf] %vm20650_vm7, %v11646_v32 }
 0x453   : > { %12348 = vmatmul.mubr.msk.bf16.gmra.mxu0 %vm20643_vm13, %v4761_v20  ;;  %v4762_v9 = vrot.slane %v16011_v35, 1  ;;  %v3877_v21 = vshll.u32 %v16011_v35, 16  ;;  %v20644_v57 = vshra.s32 %v15090_v49, 5  ;;  %v20645_v16 = vmov 0  ;;  %vm20654_vm8 = vmmov %vm20643_vm13 }
 0x454   : > { %v11645_v4 = vpack.c.bf16 %v3068_v63, %v3068_v63  ;;  %vm20651_vm6 = vsmask.f32 7424  ;;  %v3875_v46 = vor.u32 %v3873_v2, %v3871_v26  ;;  %vm16067_vm3 = vcmp.ge.s32.totalorder %v2240_v36, 1  ;;  %v12844_v63 = vld [vmem:[#allocation2 + $0xb0] sm:$0xff]   ;;  %v1914_v36 = vpop.f32.mrf.mxu0 }
 0x455   : > { %vm16049_vm11 = vcmp.ge.s32.totalorder %v20644_v57, 1  ;;  %v20647_v50 = vmov %v20644_v57  ;;  %v3872_v42 = vsel %vm20651_vm6, %v3867_v53, %v3871_v26  ;;  %v20652_v49 = vmov 0 }
 0x456   : > { %v20646_v16 = vsel %vm16049_vm11, 4294967295, %v20645_v16  ;;  %vm16055_vm4 = vcmp.le.s32.totalorder %v20647_v50, 16  ;;  %v20653_v49 = vsel %vm16067_vm3, 4294967295, %v20652_v49  ;;  %v2252_v60 = vand.u32 31, %v15954_v30  ;;  %12216 = vmatmul.mubr.msk.bf16.gmra.mxu1 %vm20654_vm8, %v3872_v42 }
 0x457   : > { %v2842_v62 = vmax.f32 %v1905_v17, 0.0  ;;  %v1920_v32 = vadd.f32 %v12143_v37, %v14385_v48  ;;  %v4763_v53 = vsel %vm20640_vm9, %v4760_v5, %v4762_v9  ;;  %v3879_v20 = vrot.slane %v3877_v21, 1  ;;  %vm20663_vm9 = vmand %vm15897_vm15, %vm15903_vm5 }
 0x458   : > { %vm16077_vm13 = vcmp.ge.s32.totalorder %v2166_v55, 1  ;;  %v20655_v26 = vmov 0  ;;  %vm16083_vm7 = vcmp.le.s32.totalorder %v2166_v55, 16  ;;  %v20657_v8 = vmov 0 }
 0x459   : > { %v20656_v26 = vsel %vm16077_vm13, 4294967295, %v20655_v26  ;;  %v20658_v8 = vsel %vm16083_vm7, 4294967295, %v20657_v8  ;;  %vm20659_vm6 = vcmask 27648   ;;  %vm20660_vm8 = vnez %v20602_v25 }
 0x45a   : > { %3449 = vst.msk [vmem:[#allocation2 + $0xc0] sm:$0xf] %vm20659_vm6, %v11645_v4  ;;  %vm20661_vm2 = vcmask 31744   ;;  %v3881_v5 = vshrl.u32 %v16011_v35, 16  ;;  %v2178_v2 = vshra.s32 %v16026_v0, 5  ;;  %v3070_v55 = vsel %vm16040_vm0, %v2842_v62, 0.0  ;;  %v12146_v4 = vpop.f32.mrf.mxu0  ;;  %vm20672_vm5 = vmand %vm20660_vm8, %vm15937_vm12 }
 0x45b   : > { %12351 = vmatprep.mubr.msk.bf16.mxu0 %vm20661_vm2, %v4763_v53  ;;  %v2845_v17 = vmax.f32 %v1920_v32, 0.0  ;;  %v1915_v21 = vadd.f32 %v1914_v36, %v14385_v48  ;;  %vm20662_vm6 = vnez %v20610_v51  ;;  %vm20666_vm2 = vsmask.f32 7424 }
 0x45c   : > { %vm16105_vm13 = vmand %vm20663_vm9, %vm20662_vm6  ;;  %v3880_v35 = vsel %vm20666_vm2, %v3875_v46, %v3879_v20  ;;  %v11647_v50 = vpack.c.bf16 %v3070_v55, %v3070_v55  ;;  %vm20667_vm7 = vcmask 31744   ;;  %vm20668_vm0 = vnez %v20617_v24  ;;  %v12845_v46 = vld [vmem:[#allocation2 + $0xb8] sm:$0xff]   ;;  %v1924_v47 = vpop.f32.mrf.mxu0 }
 0x45d   : > { %12219 = vmatprep.mubr.msk.bf16.mxu1 %vm20667_vm7, %v3880_v35  ;;  %vm20669_vm3 = vnez %v20614_v52  ;;  %v4764_v51 = vrot.slane %v12844_v63, 1  ;;  %v3885_v59 = vshll.u32 %v12844_v63, 16  ;;  %vm16117_vm15 = vcmp.le.s32.totalorder %v2242_v15, 16 }
 0x45e   : > { %vm2466_vm11 = vmand %vm20669_vm3, %vm20668_vm0  ;;  %v3073_v13 = vsel %vm20672_vm5, %v2845_v17, 0.0  ;;  %v2844_v37 = vmax.f32 %v1915_v21, 0.0  ;;  %v3883_v42 = vor.u32 %v3881_v5, %v3879_v20  ;;  %vm16128_vm7 = vcmp.ge.s32.totalorder %v2168_v58, 1  ;;  %v12149_v23 = vpop.f32.mrf.mxu0 }
 0x45f   : > { %vm16134_vm9 = vcmp.le.s32.totalorder %v2168_v58, 16  ;;  %v2254_v15 = vand.u32 31, %v16026_v0  ;;  %vm20677_vm6 = vcmask 27648   ;;  %v11650_v25 = vpack.c.bf16 %v3073_v13, %v3073_v13  ;;  %vm16151_vm8 = vmand %vm2466_vm11, %vm16001_vm14 }
 0x460   : > { %3451 = vst.msk [vmem:[#allocation2 + $0xc8] sm:$0xf] %vm20677_vm6, %v11647_v50  ;;  %vm20678_vm12 = vcmask 1046528   ;;  %v3887_v53 = vrot.slane %v3885_v59, 1  ;;  %v3889_v20 = vshrl.u32 %v12844_v63, 16  ;;  %v3072_v36 = vsel %vm16105_vm13, %v2844_v37, 0.0  ;;  %vm20686_vm14 = vmmov %vm20677_vm6 }
 0x461   : > { %v4765_v32 = vsel %vm20678_vm12, %v4762_v9, %v4764_v51  ;;  %v1925_v5 = vadd.f32 %v1924_v47, %v14385_v48  ;;  %vm20681_vm2 = vcmask 31744   ;;  %v4766_v9 = vrot.slane %v12845_v46, 1  ;;  %3454 = vst.msk [vmem:[#allocation2 + $0xd4] sm:$0xf] %vm20686_vm14, %v11650_v25  ;;  %v12846_v4 = vld [vmem:[#allocation2 + $0xc0] sm:$0xff]  }
 0x462   : > { %12352 = vmatmul.mubr.msk.bf16.gmra.mxu0 %vm20681_vm2, %v4765_v32  ;;  %v3893_v63 = vshll.u32 %v12845_v46, 16  ;;  %vm16158_vm13 = vcmp.ge.s32.totalorder %v2169_v6, 1  ;;  %v20682_v55 = vmov 0  ;;  %vm16164_vm5 = vcmp.le.s32.totalorder %v2169_v6, 16  ;;  %vm20690_vm6 = vmmov %vm20681_vm2 }
 0x463   : > { %v20683_v55 = vsel %vm16158_vm13, 4294967295, %v20682_v55  ;;  %v11649_v24 = vpack.c.bf16 %v3072_v36, %v3072_v36  ;;  %vm20687_vm11 = vsmask.f32 7424  ;;  %v3891_v21 = vor.u32 %v3889_v20, %v3887_v53 }
 0x464   : > { %v3888_v17 = vsel %vm20687_vm11, %v3883_v42, %v3887_v53  ;;  %vm16176_vm0 = vcmp.ge.s32.totalorder %v2244_v41, 1  ;;  %v20688_v19 = vmov 0  ;;  %v2846_v6 = vmax.f32 %v1925_v5, 0.0  ;;  %v1934_v41 = vpop.f32.mrf.mxu0 }
 0x465   : > { %v20689_v19 = vsel %vm16176_vm0, 4294967295, %v20688_v19  ;;  %v1940_v57 = vadd.f32 %v12149_v23, %v14385_v48  ;;  %12220 = vmatmul.mubr.msk.bf16.gmra.mxu1 %vm20690_vm6, %v3888_v17  ;;  %v4767_v35 = vsel %vm20678_vm12, %v4764_v51, %v4766_v9  ;;  %v3895_v50 = vrot.slane %v3893_v63, 1  ;;  %vm20699_vm12 = vmand %vm16015_vm1, %vm16021_vm10 }
 0x466   : > { %vm16185_vm2 = vcmp.ge.s32.totalorder %v2170_v45, 1  ;;  %v20691_v59 = vmov 0  ;;  %vm16191_vm14 = vcmp.le.s32.totalorder %v2170_v45, 16  ;;  %v20693_v3 = vmov 0  ;;  %v12152_v32 = vpop.f32.mrf.mxu0 }
 0x467   : > { %v20692_v59 = vsel %vm16185_vm2, 4294967295, %v20691_v59  ;;  %v20694_v3 = vsel %vm16191_vm14, 4294967295, %v20693_v3  ;;  %vm20695_vm11 = vcmask 27648   ;;  %vm20696_vm6 = vnez %v20646_v16  ;;  %v16235_v5 = vld [vmem:[#allocation2 + $0xc8] sm:$0xff]  }
 0x468   : > { %3453 = vst.msk [vmem:[#allocation2 + $0xd0] sm:$0xf] %vm20695_vm11, %v11649_v24  ;;  %vm20697_vm3 = vcmask 31744   ;;  %v3897_v51 = vshrl.u32 %v12845_v46, 16  ;;  %v16202_v13 = vadd.s32 576, %v14173_v1  ;;  %v3074_v45 = vsel %vm16151_vm8, %v2846_v6, 0.0  ;;  %vm20708_vm10 = vmand %vm20696_vm6, %vm16055_vm4  ;;  %v1944_v16 = vpop.f32.mrf.mxu0 }
 0x469   : > { %12355 = vmatprep.mubr.msk.bf16.mxu0 %vm20697_vm3, %v4767_v35  ;;  %v2849_v37 = vmax.f32 %v1940_v57, 0.0  ;;  %v1935_v42 = vadd.f32 %v1934_v41, %v14385_v48  ;;  %vm20698_vm11 = vnez %v20653_v49  ;;  %vm20702_vm3 = vsmask.f32 7424 }
 0x46a   : > { %vm16214_vm2 = vmand %vm20699_vm12, %vm20698_vm11  ;;  %v3896_v46 = vsel %vm20702_vm3, %v3891_v21, %v3895_v50  ;;  %v11651_v47 = vpack.c.bf16 %v3074_v45, %v3074_v45  ;;  %vm20703_vm14 = vcmask 31744   ;;  %vm20704_vm8 = vnez %v20658_v8  ;;  %v12155_v27 = vpop.f32.mrf.mxu0 }
 0x46b   : > { %12223 = vmatprep.mubr.msk.bf16.mxu1 %vm20703_vm14, %v3896_v46  ;;  %vm20705_vm0 = vnez %v20656_v26  ;;  %v4768_v49 = vrot.slane %v12846_v4, 1  ;;  %v3901_v34 = vshll.u32 %v12846_v4, 16  ;;  %vm16226_vm1 = vcmp.le.s32.totalorder %v2246_v38, 16 }
 0x46c   : > { %vm2470_vm13 = vmand %vm20705_vm0, %vm20704_vm8  ;;  %v3077_v53 = vsel %vm20708_vm10, %v2849_v37, 0.0  ;;  %v2848_v20 = vmax.f32 %v1935_v42, 0.0  ;;  %v3899_v36 = vor.u32 %v3897_v51, %v3895_v50  ;;  %vm16239_vm14 = vcmp.ge.s32.totalorder %v2172_v33, 1 }
 0x46d   : > { %vm16245_vm12 = vcmp.le.s32.totalorder %v2172_v33, 16  ;;  %vm20713_vm11 = vcmask 27648   ;;  %v11654_v38 = vpack.c.bf16 %v3077_v53, %v3077_v53  ;;  %vm20714_vm4 = vcmask 1046528   ;;  %vm16261_vm6 = vmand %vm2470_vm13, %vm16117_vm15  ;;  %v5916_v53 = vld [vmem:[#allocation2 + $0x10] sm:$0xf] }
 0x46e   : > { %3455 = vst.msk [vmem:[#allocation2 + $0xd8] sm:$0xf] %vm20713_vm11, %v11651_v47  ;;  %v4769_v7 = vsel %vm20714_vm4, %v4766_v9, %v4768_v49  ;;  %v3903_v63 = vrot.slane %v3901_v34, 1  ;;  %v3905_v24 = vshrl.u32 %v12846_v4, 16  ;;  %v3076_v23 = vsel %vm16214_vm2, %v2848_v20, 0.0  ;;  %vm20722_vm15 = vmmov %vm20713_vm11 }
 0x46f   : > { %v1945_v17 = vadd.f32 %v1944_v16, %v14385_v48  ;;  %vm20717_vm3 = vcmask 31744   ;;  %v4770_v9 = vrot.slane %v16235_v5, 1  ;;  %v3909_v21 = vshll.u32 %v16235_v5, 16  ;;  %3458 = vst.msk [vmem:[#allocation2 + $0xe4] sm:$0xf] %vm20722_vm15, %v11654_v38  ;;  %v12848_v51 = vld [vmem:[#allocation2 + $0xd0] sm:$0xff]  }
 0x470   : > { %12356 = vmatmul.mubr.msk.bf16.gmra.mxu0 %vm20717_vm3, %v4769_v7  ;;  %vm16270_vm2 = vcmp.ge.s32.totalorder %v2173_v44, 1  ;;  %v20718_v6 = vmov 0  ;;  %vm16276_vm10 = vcmp.le.s32.totalorder %v2173_v44, 16  ;;  %v11653_v8 = vpack.c.bf16 %v3076_v23, %v3076_v23  ;;  %vm20726_vm11 = vmmov %vm20717_vm3  ;;  %v5917_v23 = vld [vmem:[#allocation2 + $0x14] sm:$0xf] }
 0x471   : > { %v20719_v6 = vsel %vm16270_vm2, 4294967295, %v20718_v6  ;;  %vm20723_vm13 = vsmask.f32 7424  ;;  %v3907_v35 = vor.u32 %v3905_v24, %v3903_v63  ;;  %vm16288_vm8 = vcmp.ge.s32.totalorder %v2248_v22, 1  ;;  %v1954_v22 = vpop.f32.mrf.mxu0 }
 0x472   : > { %v3904_v57 = vsel %vm20723_vm13, %v3899_v36, %v3903_v63  ;;  %v20724_v39 = vmov 0  ;;  %v2850_v44 = vmax.f32 %v1945_v17, 0.0  ;;  %v1960_v50 = vadd.f32 %v12155_v27, %v14385_v48 }
 0x473   : > { %v20725_v39 = vsel %vm16288_vm8, 4294967295, %v20724_v39  ;;  %12224 = vmatmul.mubr.msk.bf16.gmra.mxu1 %vm20726_vm11, %v3904_v57  ;;  %v4771_v4 = vsel %vm20714_vm4, %v4768_v49, %v4770_v9  ;;  %v3911_v41 = vrot.slane %v3909_v21, 1  ;;  %vm16297_vm3 = vcmp.ge.s32.totalorder %v2174_v43, 1  ;;  %vm20735_vm4 = vmand %vm16128_vm7, %vm16134_vm9  ;;  %v12158_v34 = vpop.f32.mrf.mxu0 }
 0x474   : > { %v20727_v45 = vmov 0  ;;  %vm16303_vm15 = vcmp.le.s32.totalorder %v2174_v43, 16  ;;  %v20729_v54 = vmov 0  ;;  %vm20731_vm13 = vcmask 27648  }
 0x475   : > { %v20728_v45 = vsel %vm16297_vm3, 4294967295, %v20727_v45  ;;  %v20730_v54 = vsel %vm16303_vm15, 4294967295, %v20729_v54  ;;  %3457 = vst.msk [vmem:[#allocation2 + $0xe0] sm:$0xf] %vm20731_vm13, %v11653_v8  ;;  %vm20732_vm11 = vnez %v20683_v55  ;;  %vm20733_vm0 = vcmask 31744   ;;  %v12849_v38 = vld [vmem:[#allocation2 + $0xd8] sm:$0xff]   ;;  %v1964_v52 = vpop.f32.mrf.mxu0 }
 0x476   : > { %12359 = vmatprep.mubr.msk.bf16.mxu0 %vm20733_vm0, %v4771_v4  ;;  %v3913_v37 = vshrl.u32 %v16235_v5, 16  ;;  %v2180_v42 = vshra.s32 %v16202_v13, 5  ;;  %v3078_v43 = vsel %vm16261_vm6, %v2850_v44, 0.0  ;;  %v2853_v25 = vmax.f32 %v1960_v50, 0.0  ;;  %vm20744_vm9 = vmand %vm20732_vm11, %vm16164_vm5 }
 0x477   : > { %v1955_v46 = vadd.f32 %v1954_v22, %v14385_v48  ;;  %vm20734_vm13 = vnez %v20689_v19  ;;  %vm20738_vm0 = vsmask.f32 7424  ;;  %v11655_v49 = vpack.c.bf16 %v3078_v43, %v3078_v43  ;;  %v12161_v18 = vpop.f32.mrf.mxu0 }
 0x478   : > { %vm16325_vm3 = vmand %vm20735_vm4, %vm20734_vm13  ;;  %v3912_v32 = vsel %vm20738_vm0, %v3907_v35, %v3911_v41  ;;  %vm20739_vm15 = vcmask 31744   ;;  %vm20740_vm6 = vnez %v20694_v3  ;;  %vm20741_vm8 = vnez %v20692_v59 }
 0x479   : > { %12227 = vmatprep.mubr.msk.bf16.mxu1 %vm20739_vm15, %v3912_v32  ;;  %vm2474_vm2 = vmand %vm20741_vm8, %vm20740_vm6  ;;  %v4772_v19 = vrot.slane %v12848_v51, 1  ;;  %v3917_v62 = vshll.u32 %v12848_v51, 16  ;;  %vm16337_vm7 = vcmp.le.s32.totalorder %v2250_v56, 16  ;;  %v3081_v20 = vsel %vm20744_vm9, %v2853_v25, 0.0 }
 0x47a   : > { %v2852_v36 = vmax.f32 %v1955_v46, 0.0  ;;  %v3915_v5 = vor.u32 %v3913_v37, %v3911_v41  ;;  %vm16348_vm15 = vcmp.ge.s32.totalorder %v2176_v61, 1  ;;  %vm16354_vm4 = vcmp.le.s32.totalorder %v2176_v61, 16  ;;  %vm16371_vm11 = vmand %vm2474_vm2, %vm16226_vm1 }
 0x47b   : > { %v2256_v56 = vand.u32 31, %v16202_v13  ;;  %vm20749_vm13 = vcmask 27648   ;;  %v11658_v55 = vpack.c.bf16 %v3081_v20, %v3081_v20  ;;  %vm20750_vm5 = vcmask 1046528  }
 0x47c   : > { %3459 = vst.msk [vmem:[#allocation2 + $0xe8] sm:$0xf] %vm20749_vm13, %v11655_v49  ;;  %v4773_v7 = vsel %vm20750_vm5, %v4770_v9, %v4772_v19  ;;  %v3919_v63 = vrot.slane %v3917_v62, 1  ;;  %v3921_v24 = vshrl.u32 %v12848_v51, 16  ;;  %v3080_v17 = vsel %vm16325_vm3, %v2852_v36, 0.0  ;;  %vm20758_vm1 = vmmov %vm20749_vm13  ;;  %v12850_v41 = vld [vmem:[#allocation2 + $0xe0] sm:$0xff]  }
 0x47d   : > { %v1965_v33 = vadd.f32 %v1964_v52, %v14385_v48  ;;  %vm20753_vm0 = vcmask 31744   ;;  %v4774_v9 = vrot.slane %v12849_v38, 1  ;;  %v3925_v21 = vshll.u32 %v12849_v38, 16  ;;  %3462 = vst.msk [vmem:[#allocation2 + $0xf4] sm:$0xf] %vm20758_vm1, %v11658_v55 }
 0x47e   : > { %12360 = vmatmul.mubr.msk.bf16.gmra.mxu0 %vm20753_vm0, %v4773_v7  ;;  %vm16378_vm3 = vcmp.ge.s32.totalorder %v2177_v14, 1  ;;  %v20754_v8 = vmov 0  ;;  %vm16384_vm9 = vcmp.le.s32.totalorder %v2177_v14, 16  ;;  %v11657_v3 = vpack.c.bf16 %v3080_v17, %v3080_v17  ;;  %vm20762_vm13 = vmmov %vm20753_vm0 }
 0x47f   : > { %v20755_v8 = vsel %vm16378_vm3, 4294967295, %v20754_v8  ;;  %vm20759_vm2 = vsmask.f32 7424  ;;  %v3923_v57 = vor.u32 %v3921_v24, %v3919_v63  ;;  %vm16396_vm6 = vcmp.ge.s32.totalorder %v2252_v60, 1  ;;  %v1974_v60 = vpop.f32.mrf.mxu0 }
 0x480   : > { %v3920_v27 = vsel %vm20759_vm2, %v3915_v5, %v3919_v63  ;;  %v20760_v12 = vmov 0  ;;  %v16400_v14 = vcombine.low %v5916_v53, %v5917_v23  ;;  %v2854_v35 = vmax.f32 %v1965_v33, 0.0 }
 0x481   : > { %v20761_v12 = vsel %vm16396_vm6, 4294967295, %v20760_v12  ;;  %v1980_v44 = vadd.f32 %v12161_v18, %v14385_v48  ;;  %12228 = vmatmul.mubr.msk.bf16.gmra.mxu1 %vm20762_vm13, %v3920_v27  ;;  %v4775_v50 = vsel %vm20750_vm5, %v4772_v19, %v4774_v9  ;;  %v3927_v4 = vrot.slane %v3925_v21, 1  ;;  %v12164_v32 = vpop.f32.mrf.mxu0  ;;  %v16499_v21 = vld [vmem:[#allocation2 + $0x18] sm:$0xff]  }
 0x482   : > { %vm16407_vm0 = vcmp.ge.s32.totalorder %v2178_v2, 1  ;;  %v20763_v51 = vmov 0  ;;  %vm16413_vm1 = vcmp.le.s32.totalorder %v2178_v2, 16  ;;  %v20765_v30 = vmov 0  ;;  %v12863_v32 = vld [vmem:[#allocation2 + $0x50] sm:$0xff]  }
 0x483   : > { %v20764_v51 = vsel %vm16407_vm0, 4294967295, %v20763_v51  ;;  %v20766_v30 = vsel %vm16413_vm1, 4294967295, %v20765_v30  ;;  %vm20767_vm2 = vcmask 27648   ;;  %vm20768_vm13 = vnez %v20719_v6  ;;  %v12851_v62 = vld [vmem:[#allocation2 + $0xe8] sm:$0xff]   ;;  %v1984_v36 = vpop.f32.mrf.mxu0 }
 0x484   : > { %3461 = vst.msk [vmem:[#allocation2 + $0xf0] sm:$0xf] %vm20767_vm2, %v11657_v3  ;;  %vm20769_vm8 = vcmask 31744   ;;  %v3929_v22 = vshrl.u32 %v12849_v38, 16  ;;  %v3082_v37 = vsel %vm16371_vm11, %v2854_v35, 0.0  ;;  %v2857_v43 = vmax.f32 %v1980_v44, 0.0  ;;  %vm20771_vm2 = vmand %vm16239_vm14, %vm16245_vm12 }
 0x485   : > { %12363 = vmatprep.mubr.msk.bf16.mxu0 %vm20769_vm8, %v4775_v50  ;;  %v1975_v2 = vadd.f32 %v1974_v60, %v14385_v48  ;;  %vm20770_vm0 = vnez %v20725_v39  ;;  %vm20774_vm5 = vsmask.f32 7424  ;;  %v11659_v47 = vpack.c.bf16 %v3082_v37, %v3082_v37  ;;  %vm20779_vm12 = vmand %vm20768_vm13, %vm16276_vm10  ;;  %v12167_v24 = vpop.f32.mrf.mxu0  ;;  %v12860_v35 = vld [vmem:[#allocation2 + $0x38] sm:$0xff]  }
 0x486   : > { %vm16433_vm1 = vmand %vm20771_vm2, %vm20770_vm0  ;;  %v3928_v46 = vsel %vm20774_vm5, %v3923_v57, %v3927_v4  ;;  %vm20775_vm11 = vnez %v20730_v54  ;;  %vm20776_vm6 = vnez %v20728_v45  ;;  %v4776_v39 = vrot.slane %v12850_v41, 1 }
 0x487   : > { %12231 = vmatprep.mubr.msk.bf16.mxu1 %vm20769_vm8, %v3928_v46  ;;  %vm2478_vm3 = vmand %vm20776_vm6, %vm20775_vm11  ;;  %v3933_v58 = vshll.u32 %v12850_v41, 16  ;;  %vm16445_vm14 = vcmp.le.s32.totalorder %v2254_v15, 16  ;;  %v3085_v49 = vsel %vm20779_vm12, %v2857_v43, 0.0  ;;  %v2856_v34 = vmax.f32 %v1975_v2, 0.0  ;;  %v1994_v3 = vpop.f32.mrf.mxu0 }
 0x488   : > { %v3931_v19 = vor.u32 %v3929_v22, %v3927_v4  ;;  %v6149_v53 = vshll.u32 %v16400_v14, 16  ;;  %vm20780_vm0 = vcmask 27648   ;;  %v11662_v20 = vpack.c.bf16 %v3085_v49, %v3085_v49  ;;  %vm16479_vm13 = vmand %vm2478_vm3, %vm16337_vm7 }
 0x489   : > { %3463 = vst.msk [vmem:[#allocation2 + $0xf8] sm:$0xf] %vm20780_vm0, %v11659_v47  ;;  %vm20781_vm5 = vcmask 1046528   ;;  %v3935_v15 = vrot.slane %v3933_v58, 1  ;;  %v3937_v5 = vshrl.u32 %v12850_v41, 16  ;;  %vm16459_vm2 = vcmp.ge.s32.totalorder %v2180_v42, 1  ;;  %vm20788_vm12 = vmmov %vm20780_vm0  ;;  %v12170_v4 = vpop.f32.mrf.mxu0 }
 0x48a   : > { %v4777_v0 = vsel %vm20781_vm5, %v4774_v9, %v4776_v39  ;;  %vm16465_vm10 = vcmp.le.s32.totalorder %v2180_v42, 16  ;;  %v3084_v38 = vsel %vm16433_vm1, %v2856_v34, 0.0  ;;  %v1985_v55 = vadd.f32 %v1984_v36, %v14385_v48  ;;  %3466 = vst.msk [vmem:[#allocation2 + $0x104] sm:$0xf] %vm20788_vm12, %v11662_v20  ;;  %vm2480_vm0 = vmand %vm16348_vm15, %vm16354_vm4 }
 0x48b   : > { %12364 = vmatmul.mubr.msk.bf16.gmra.mxu0 %vm20769_vm8, %v4777_v0  ;;  %v4778_v42 = vrot.slane %v12851_v62, 1  ;;  %v3941_v7 = vshll.u32 %v12851_v62, 16  ;;  %v11661_v63 = vpack.c.bf16 %v3084_v38, %v3084_v38  ;;  %vm20789_vm1 = vsmask.f32 7424  ;;  %vm20790_vm7 = vmmov %vm20769_vm8  ;;  %v12852_v61 = vld [vmem:[#allocation2 + $0xf0] sm:$0xff]   ;;  %v2004_v2 = vpop.f32.mrf.mxu0 }
 0x48c   : > { %v3936_v23 = vsel %vm20789_vm1, %v3931_v19, %v3935_v15  ;;  %v3939_v45 = vor.u32 %v3937_v5, %v3935_v15  ;;  %v2858_v54 = vmax.f32 %v1985_v55, 0.0  ;;  %v2000_v11 = vadd.f32 %v12167_v24, %v14385_v48  ;;  %vm20791_vm3 = vmmov %vm20781_vm5  ;;  %v12858_v5 = vld [vmem:[#allocation2 + $0x28] sm:$0xff]  }
 0x48d   : > { %12232 = vmatmul.mubr.msk.bf16.gmra.mxu1 %vm20790_vm7, %v3936_v23  ;;  %v4779_v17 = vsel %vm20791_vm3, %v4776_v39, %v4778_v42  ;;  %v3943_v33 = vrot.slane %v3941_v7, 1  ;;  %vm16495_vm6 = vcmp.ge.s32.totalorder %v2256_v56, 1  ;;  %vm20794_vm11 = vmmov %vm20788_vm12  ;;  %vm20795_vm5 = vnez %v20755_v8  ;;  %v12173_v34 = vpop.f32.mrf.mxu0 }
 0x48e   : > { %3465 = vst.msk [vmem:[#allocation2 + $0x100] sm:$0xf] %vm20794_vm11, %v11661_v63  ;;  %vm20796_vm12 = vmmov %vm20790_vm7  ;;  %v3945_v18 = vshrl.u32 %v12851_v62, 16  ;;  %v6151_v27 = vrot.slane %v6149_v53, 1  ;;  %v3086_v13 = vsel %vm16479_vm13, %v2858_v54, 0.0  ;;  %v2861_v56 = vmax.f32 %v2000_v11, 0.0 }
 0x48f   : > { %12367 = vmatprep.mubr.msk.bf16.mxu0 %vm20796_vm12, %v4779_v17  ;;  %v1995_v57 = vadd.f32 %v1994_v3, %v14385_v48  ;;  %vm20797_vm1 = vnez %v20761_v12  ;;  %vm20800_vm3 = vsmask.f32 7424  ;;  %v11663_v50 = vpack.c.bf16 %v3086_v13, %v3086_v13  ;;  %vm20801_vm11 = vmmov %vm20769_vm8  ;;  %v12857_v62 = vld [vmem:[#allocation2 + $0x20] sm:$0xff]   ;;  %v2014_v36 = vpop.f32.mrf.mxu0 }
 0x490   : > { %vm16517_vm7 = vmand %vm2480_vm0, %vm20797_vm1  ;;  %v3944_v44 = vsel %vm20800_vm3, %v3939_v45, %v3943_v33  ;;  %vm20802_vm13 = vnez %v20766_v30  ;;  %vm20803_vm12 = vnez %v20764_v51  ;;  %v4780_v12 = vrot.slane %v12852_v61, 1  ;;  %v12853_v22 = vld [vmem:[#allocation2 + $0xf8] sm:$0xff]  }
 0x491   : > { %12235 = vmatprep.mubr.msk.bf16.mxu1 %vm20801_vm11, %v3944_v44  ;;  %vm2482_vm8 = vmand %vm20803_vm12, %vm20802_vm13  ;;  %v3949_v16 = vshll.u32 %v12852_v61, 16  ;;  %v2860_v41 = vmax.f32 %v1995_v57, 0.0  ;;  %v3947_v60 = vor.u32 %v3945_v18, %v3943_v33  ;;  %v6154_v37 = vshll.u32 %v16499_v21, 16  ;;  %v12176_v52 = vpop.f32.mrf.mxu0  ;;  %v11417_v44 = vld [vmem:[%s19938_s3 + $0xc] sm:$0x3] }
 0x492   : > { %vm20804_vm15 = vmand %vm20795_vm5, %vm16384_vm9  ;;  %vm20805_vm4 = vcmask 27648   ;;  %vm20806_vm0 = vcmask 1046528   ;;  %v3953_v47 = vshrl.u32 %v12852_v61, 16  ;;  %v2005_v59 = vadd.f32 %v2004_v2, %v14385_v48 }
 0x493   : > { %v3089_v31 = vsel %vm20804_vm15, %v2861_v56, 0.0  ;;  %3467 = vst.msk [vmem:[#allocation2 + $0x108] sm:$0xf] %vm20805_vm4, %v11663_v50  ;;  %v4781_v25 = vsel %vm20806_vm0, %v4778_v42, %v4780_v12  ;;  %v3951_v46 = vrot.slane %v3949_v16, 1  ;;  %v3088_v8 = vsel %vm16517_vm7, %v2860_v41, 0.0  ;;  %vm16545_vm9 = vmand %vm2482_vm8, %vm16445_vm14  ;;  %v2024_v45 = vpop.f32.mrf.mxu0  ;;  %v12861_v41 = vld [vmem:[#allocation2 + $0x40] sm:$0xff]  }
 0x494   : > { %v11666_v43 = vpack.c.bf16 %v3089_v31, %v3089_v31  ;;  %vm20809_vm5 = vmmov %vm20801_vm11  ;;  %v4782_v39 = vrot.slane %v12853_v22, 1  ;;  %v3957_v58 = vshll.u32 %v12853_v22, 16  ;;  %v11665_v49 = vpack.c.bf16 %v3088_v8, %v3088_v8  ;;  %v11252_v16 = vld [vmem:[%s19938_s3 + $0x6] sm:$0x3] }
 0x495   : > { %12368 = vmatmul.mubr.msk.bf16.gmra.mxu0 %vm20809_vm5, %v4781_v25  ;;  %vm20810_vm1 = vmmov %vm20805_vm4  ;;  %v3955_v40 = vor.u32 %v3953_v47, %v3951_v46  ;;  %v6147_v51 = vshrl.u32 %v16400_v14, 16  ;;  %v2862_v30 = vmax.f32 %v2005_v59, 0.0  ;;  %v12854_v0 = vld [vmem:[#allocation2 + $0x100] ss:$0 sps:$4 sm:$0x11]   ;;  %v6156_v14 = vrot.slane %v6154_v37, 1 }
 0x496   : > { %3470 = vst.msk [vmem:[#allocation2 + $0x114] sm:$0xf] %vm20810_vm1, %v11666_v43  ;;  %vm20811_vm7 = vmmov %vm20800_vm3  ;;  %v3959_v20 = vrot.slane %v3957_v58, 1  ;;  %v2015_v26 = vadd.f32 %v2014_v36, %v14385_v48  ;;  %v4784_v42 = vrot.slane %v12854_v0, 1  ;;  %v3961_v7 = vshrl.u32 %v12853_v22, 16  ;;  %v13075_v43 = vld [vmem:[#allocation2 + $0x10] sm:$0xff]  }
 0x497   : > { %v3952_v19 = vsel %vm20811_vm7, %v3947_v60, %v3951_v46  ;;  %vm20812_vm3 = vmmov %vm20809_vm5  ;;  %v6152_v15 = vor.u32 %v6151_v27, %v6147_v51  ;;  %v3090_v38 = vsel %vm16545_vm9, %v2862_v30, 0.0  ;;  %v3965_v63 = vshll.u32 %v12854_v0, 16  ;;  %v12859_v27 = vld [vmem:[#allocation2 + $0x30] sm:$0xff]   ;;  %v13074_v60 = vld [vmem:[#allocation2 + $0x8] sm:$0xff]  }
 0x498   : > { %12236 = vmatmul.mubr.msk.bf16.gmra.mxu1 %vm20812_vm3, %v3952_v19  ;;  %vm2484_vm14 = vmand %vm16459_vm2, %vm16465_vm10  ;;  %v11667_v55 = vpack.c.bf16 %v3090_v38, %v3090_v38  ;;  %v2864_v24 = vmax.f32 %v2015_v26, 0.0  ;;  %v6162_v23 = vshll.u32 %v12857_v62, 16  ;;  %v3963_v48 = vor.u32 %v3961_v7, %v3959_v20  ;;  %v12862_v46 = vld [vmem:[#allocation2 + $0x48] sm:$0xff]   ;;  %v13076_v19 = vld [vmem:[#allocation2 + $0x18] sm:$0xff]  }
 0x499   : > { %vm20813_vm8 = vmmov %vm20806_vm0  ;;  %v3967_v11 = vrot.slane %v3965_v63, 1  ;;  %v6170_v61 = vshll.u32 %v12858_v5, 16  ;;  %v6158_v13 = vshrl.u32 %v16499_v21, 16  ;;  %v6166_v56 = vshrl.u32 %v12857_v62, 16  ;;  %v12864_v51 = vld [vmem:[#allocation2 + $0x58] sm:$0xff]   ;;  %v13077_v30 = vld [vmem:[#allocation2 + $0x20] sm:$0xff]  }
 0x49a   : > { %v4783_v53 = vsel %vm20813_vm8, %v4780_v12, %v4782_v39  ;;  %vm20814_vm11 = vmmov %vm20810_vm1  ;;  %v6164_v18 = vrot.slane %v6162_v23, 1  ;;  %v6178_v12 = vshll.u32 %v12859_v27, 16  ;;  %v6186_v31 = vshll.u32 %v12860_v35, 16  ;;  %v16601_v0 = vld [vmem:[#allocation2 + $0x68] sm:$0xff]   ;;  %v16605_v38 = vld [vmem:[#allocation2 + $0x78] sm:$0xff]  }
 0x49b   : > { %3469 = vst.msk [vmem:[#allocation2 + $0x110] sm:$0xf] %vm20814_vm11, %v11665_v49  ;;  %vm20815_vm13 = vmmov %vm20812_vm3  ;;  %v6172_v57 = vrot.slane %v6170_v61, 1  ;;  %v6160_v50 = vor.u32 %v6158_v13, %v6156_v14  ;;  %v6174_v37 = vshrl.u32 %v12858_v5, 16  ;;  %v6182_v2 = vshrl.u32 %v12859_v27, 16  ;;  %v16607_v26 = vld [vmem:[#allocation2 + $0x80] sm:$0xff]  }
 0x49c   : > { %12371 = vmatprep.mubr.msk.bf16.mxu0 %vm20815_vm13, %v4783_v53  ;;  %vm20816_vm12 = vmmov %vm20811_vm7  ;;  %v6168_v4 = vor.u32 %v6166_v56, %v6164_v18  ;;  %v6180_v22 = vrot.slane %v6178_v12, 1  ;;  %v6188_v25 = vrot.slane %v6186_v31, 1  ;;  %v6194_v8 = vshll.u32 %v12861_v41, 16  ;;  %v13078_v61 = vld [vmem:[#allocation2 + $0x28] sm:$0xff]   ;;  %v13079_v27 = vld [vmem:[#allocation2 + $0x30] sm:$0xff]  }
 0x49d   : > { %v3960_v6 = vsel %vm20816_vm12, %v3955_v40, %v3959_v20  ;;  %vm2636_vm2 = vmand %vm2484_vm14, %vm16495_vm6  ;;  %vm20827_vm14 = vcmask 1041408   ;;  %v6176_v47 = vor.u32 %v6174_v37, %v6172_v57  ;;  %v6202_v49 = vshll.u32 %v12862_v46, 16  ;;  %v16599_v20 = vld [vmem:[#allocation2 + $0x60] sm:$0xff]  }
 0x49e   : > { %vm20817_vm10 = vmmov %vm20812_vm3  ;;  %v3092_v17 = vsel %vm2636_vm2, %v2864_v24, 0.0  ;;  %12803 = vmatprep.subr.msk.bf16.mxu0 %vm20827_vm14, %v11417_v44  ;;  %v6184_v59 = vor.u32 %v6182_v2, %v6180_v22  ;;  %v6196_v34 = vrot.slane %v6194_v8, 1  ;;  %v6210_v40 = vshll.u32 %v12863_v32, 16  ;;  %v16612_v24 = vld [vmem:[#allocation2 + $0x88] sm:$0xff]  }
 0x49f   : > { %12239 = vmatprep.mubr.msk.bf16.mxu1 %vm20817_vm10, %v3960_v6  ;;  %vm20818_vm15 = vmmov %vm20810_vm1  ;;  %v11669_v9 = vpack.c.bf16 %v3092_v17, %v3092_v17  ;;  %v6190_v62 = vshrl.u32 %v12860_v35, 16  ;;  %v6198_v53 = vshrl.u32 %v12861_v41, 16  ;;  %v6204_v36 = vrot.slane %v6202_v49, 1 }
 0x4a0   : > { %3471 = vst.msk [vmem:[#allocation2 + $0x118] sm:$0xf] %vm20818_vm15, %v11667_v55  ;;  %vm20819_vm4 = vmmov %vm20806_vm0  ;;  %v6206_v6 = vshrl.u32 %v12862_v46, 16  ;;  %v6212_v55 = vrot.slane %v6210_v40, 1  ;;  %v6218_v52 = vshll.u32 %v12864_v51, 16  ;;  %v6226_v63 = vshll.u32 %v16599_v20, 16 }
 0x4a1   : > { %v4785_v54 = vsel %vm20819_vm4, %v4782_v39, %v4784_v42  ;;  %vm20820_vm0 = vmmov %vm20812_vm3  ;;  %v6200_v5 = vor.u32 %v6198_v53, %v6196_v34  ;;  %v6250_v17 = vshll.u32 %v16605_v38, 16  ;;  %v6222_v56 = vshrl.u32 %v12864_v51, 16  ;;  %v13080_v40 = vld [vmem:[#allocation2 + $0x38] sm:$0xff]  }
 0x4a2   : > { %12372 = vmatmul.mubr.msk.bf16.gmra.mxu0 %vm20820_vm0, %v4785_v54  ;;  %vm20821_vm9 = vmmov %vm20811_vm7  ;;  %v6234_v54 = vshll.u32 %v16601_v0, 16  ;;  %v6258_v35 = vshll.u32 %v16607_v26, 16  ;;  %v6238_v12 = vshrl.u32 %v16601_v0, 16  ;;  %v6266_v31 = vshll.u32 %v16612_v24, 16 }
 0x4a3   : > { %v6157_v33 = vsel %vm20821_vm9, %v6152_v15, %v6156_v14  ;;  %vm20822_vm6 = vmmov %vm20820_vm0  ;;  %v16603_v15 = vld [vmem:[#allocation2 + $0x70] sm:$0xff]   ;;  %v6192_v14 = vor.u32 %v6190_v62, %v6188_v25  ;;  %v6254_v2 = vshrl.u32 %v16605_v38, 16 }
 0x4a4   : > { %12443 = vmatprep.mubr.msk.bf16.mxu0 %vm20822_vm6, %v6157_v33  ;;  %vm20823_vm5 = vmmov %vm20811_vm7  ;;  %v6208_v33 = vor.u32 %v6206_v6, %v6204_v36 }
 0x4a5   : > { %v3968_v3 = vsel %vm20823_vm5, %v3963_v48, %v3967_v11  ;;  %vm20824_vm1 = vmmov %vm20820_vm0  ;;  %v6242_v48 = vshll.u32 %v16603_v15, 16  ;;  %v6214_v11 = vshrl.u32 %v12863_v32, 16 }
 0x4a6   : > { %12240 = vmatmul.mubr.msk.bf16.gmra.mxu1 %vm20824_vm1, %v3968_v3  ;;  %vm20825_vm7 = vmmov %vm20814_vm11  ;;  %v16622_v3 = vld [vmem:[#allocation2 + $0x90] sm:$0xff]  }
 0x4a7   : > { %3473 = vst.msk [vmem:[#allocation2 + $0x120] sm:$0xf] %vm20825_vm7, %v11669_v9  ;;  %vm20826_vm3 = vmmov %vm20820_vm0  ;;  %v6220_v9 = vrot.slane %v6218_v52, 1  ;;  %v6216_v13 = vor.u32 %v6214_v11, %v6212_v55  ;;  %v6274_v37 = vshll.u32 %v16622_v3, 16  ;;  %v6278_v6 = vshrl.u32 %v16622_v3, 16  ;;  %v16660_v52 = vld [vmem:[#allocation2 + $0xb0] sm:$0xff]  }
 0x4a8   : > { %12245 = vmatprep.mubr.msk.bf16.mxu1 %vm20826_vm3, %v14782_v28  ;;  %vm20828_vm8 = vmmov %vm20823_vm5 }
 0x4a9   : > { %v6165_v21 = vsel %vm20828_vm8, %v6160_v50, %v6164_v18  ;;  %vm20829_vm11 = vmmov %vm20827_vm14  ;;  %v16624_v18 = vld [vmem:[#allocation2 + $0x98] sm:$0xff]   ;;  %v6230_v50 = vshrl.u32 %v16599_v20, 16  ;;  %v6276_v53 = vrot.slane %v6274_v37, 1 }
 0x4aa   : > { %12800 = vmatprep.subr.msk.bf16.mxu1 %vm20829_vm11, %v11252_v16  ;;  %vm20830_vm13 = vmmov %vm20820_vm0  ;;  %v6282_v46 = vshll.u32 %v16624_v18, 16 }
 0x4ab   : > { %12444 = vmatmul.mubr.msk.bf16.vlgmr.msra.gmra.mxu0 %vm20830_vm13, %v6165_v21  ;;  %vm20831_vm12 = vmmov %vm20823_vm5 }
 0x4ac   : > { %v6173_v28 = vsel %vm20831_vm12, %v6168_v4, %v6172_v57  ;;  %vm20832_vm2 = vmmov %vm20820_vm0  ;;  %v6228_v57 = vrot.slane %v6226_v63, 1  ;;  %v6236_v4 = vrot.slane %v6234_v54, 1  ;;  %v20020_v63 = vrot.slane %v16599_v20, 1 }
 0x4ad   : > { %12447 = vmatprep.mubr.msk.bf16.mxu0 %vm20832_vm2, %v6173_v28  ;;  %vm20833_vm10 = vmmov %vm20820_vm0  ;;  %v6252_v28 = vrot.slane %v6250_v17, 1  ;;  %v6280_v17 = vor.u32 %v6278_v6, %v6276_v53  ;;  %v16743_v6 = vld [vmem:[#allocation2 + $0xe0] sm:$0xff]  }
 0x4ae   : > { %12246 = vmatmul.mubr.msk.bf16.vlgmr.msra.gmra.mxu1 %vm20833_vm10, %v13074_v60  ;;  %vm20834_vm15 = vmmov %vm20820_vm0  ;;  %v6224_v60 = vor.u32 %v6222_v56, %v6220_v9  ;;  %v6240_v8 = vor.u32 %v6238_v12, %v6236_v4  ;;  %v16681_v56 = vld [vmem:[#allocation2 + $0xb8] sm:$0xff]  }
 0x4af   : > { %12249 = vmatprep.mubr.msk.bf16.mxu1 %vm20834_vm15, %v13075_v43  ;;  %vm20835_vm4 = vmmov %vm20823_vm5  ;;  %v6232_v43 = vor.u32 %v6230_v50, %v6228_v57  ;;  %v6256_v49 = vor.u32 %v6254_v2, %v6252_v28  ;;  %v16686_v50 = vld [vmem:[#allocation2 + $0xc0] sm:$0xff]   ;;  %v6314_v2 = vshll.u32 %v16681_v56, 16 }
 0x4b0   : > { %v6181_v39 = vsel %vm20835_vm4, %v6176_v47, %v6180_v22  ;;  %vm20836_vm9 = vmmov %vm20835_vm4  ;;  %v6246_v22 = vshrl.u32 %v16603_v15, 16 }
 0x4b1   : > { %v6189_v58 = vsel %vm20836_vm9, %v6184_v59, %v6188_v25  ;;  %vm20837_vm6 = vmmov %vm20820_vm0  ;;  %v6260_v25 = vrot.slane %v6258_v35, 1 }
 0x4b2   : > { %vm20838_vm5 = vmmov %vm20820_vm0 }
 0x4b3   : > { %12448 = vmatmul.mubr.msk.bf16.gmra.mxu0 %vm20820_vm0, %v6181_v39  ;;  %vm20839_vm1 = vmmov %vm20820_vm0  ;;  %v16642_v39 = vld [vmem:[#allocation2 + $0xa8] sm:$0xff]  }
 0x4b4   : > { %12451 = vmatprep.mubr.msk.bf16.mxu0 %vm20837_vm6, %v6189_v58  ;;  %vm20840_vm7 = vmmov %vm20829_vm11  ;;  %v6298_v11 = vshll.u32 %v16642_v39, 16  ;;  %v6302_v35 = vshrl.u32 %v16642_v39, 16 }
 0x4b5   : > { %v7704_v42 = vsel %vm20840_vm7, %v11417_v44, 0  ;;  %vm20841_vm3 = vmmov %vm20835_vm4  ;;  %v16628_v44 = vld [vmem:[#allocation2 + $0xa0] sm:$0xff]  }
 0x4b6   : > { %12250 = vmatmul.mubr.msk.bf16.gmra.mxu1 %vm20838_vm5, %v13076_v19  ;;  %v6197_v7 = vsel %vm20841_vm3, %v6192_v14, %v6196_v34  ;;  %12574 = vmatpush3.bf16.msra.mxu0 %v7704_v42  ;;  %vm20842_vm14 = vmmov %vm20840_vm7  ;;  %v6290_v32 = vshll.u32 %v16628_v44, 16  ;;  %v6262_v34 = vshrl.u32 %v16607_v26, 16  ;;  %v6268_v19 = vrot.slane %v6266_v31, 1 }
 0x4b7   : > { %12253 = vmatprep.mubr.msk.bf16.mxu1 %vm20839_vm1, %v13077_v30  ;;  %v5561_v23 = vsel %vm20842_vm14, %v11252_v16, 0  ;;  %vm20843_vm8 = vmmov %vm20820_vm0  ;;  %v6244_v16 = vrot.slane %v6242_v48, 1  ;;  %v6270_v30 = vshrl.u32 %v16612_v24, 16  ;;  %v6286_v42 = vshrl.u32 %v16624_v18, 16 }
 0x4b8   : > { %vm20844_vm11 = vmmov %vm20841_vm3  ;;  %12376 = vmatpush3.bf16.msra.mxu1 %v5561_v23  ;;  %v6885_v23 = vrot.slane %v16601_v0, 1  ;;  %v6294_v48 = vshrl.u32 %v16628_v44, 16 }
 0x4b9   : > { %v6205_v45 = vsel %vm20844_vm11, %v6200_v5, %v6204_v36  ;;  %vm20845_vm13 = vmmov %vm20820_vm0  ;;  %v6248_v59 = vor.u32 %v6246_v22, %v6244_v16  ;;  %v13081_v36 = vld [vmem:[#allocation2 + $0x40] sm:$0xff]   ;;  %v6264_v5 = vor.u32 %v6262_v34, %v6260_v25  ;;  %v6272_v54 = vor.u32 %v6270_v30, %v6268_v19  ;;  %v13083_v22 = vld [vmem:[#allocation2 + $0x50] sm:$0xff]  }
 0x4ba   : > { %vm20846_vm12 = vmmov %vm20820_vm0  ;;  %vm20860_vm11 = vcmask 1046528   ;;  %v6903_v30 = vrot.slane %v16660_v52, 1 }
 0x4bb   : > { %12452 = vmatmul.mubr.msk.bf16.gmra.mxu0 %vm20843_vm8, %v6197_v7  ;;  %vm20847_vm2 = vmmov %vm20820_vm0  ;;  %v6292_v7 = vrot.slane %v6290_v32, 1  ;;  %v6901_v32 = vrot.slane %v16642_v39, 1  ;;  %v6316_v39 = vrot.slane %v6314_v2, 1 }
 0x4bc   : > { %12455 = vmatprep.mubr.msk.bf16.mxu0 %vm20845_vm13, %v6205_v45  ;;  %vm20848_vm10 = vmmov %vm20841_vm3 }
 0x4bd   : > { %v6213_v21 = vsel %vm20848_vm10, %v6208_v33, %v6212_v55  ;;  %vm20849_vm15 = vmmov %vm20841_vm3  ;;  %v6284_v55 = vrot.slane %v6282_v46, 1  ;;  %v16673_v33 = vsel %vm20860_vm11, %v20020_v63, %v6885_v23  ;;  %v6296_v31 = vor.u32 %v6294_v48, %v6292_v7 }
 0x4be   : > { %12254 = vmatmul.mubr.msk.bf16.gmra.mxu1 %vm20846_vm12, %v13078_v61  ;;  %v6221_v41 = vsel %vm20849_vm15, %v6216_v13, %v6220_v9  ;;  %vm20850_vm4 = vmmov %vm20820_vm0  ;;  %v6887_v61 = vrot.slane %v16603_v15, 1  ;;  %v6889_v9 = vrot.slane %v16605_v38, 1  ;;  %v6306_v13 = vshll.u32 %v16660_v52, 16 }
 0x4bf   : > { %12257 = vmatprep.mubr.msk.bf16.mxu1 %vm20847_vm2, %v13079_v27  ;;  %vm20851_vm0 = vmmov %vm20841_vm3  ;;  %v6288_v27 = vor.u32 %v6286_v42, %v6284_v55  ;;  %v6899_v46 = vrot.slane %v16628_v44, 1  ;;  %v6326_v44 = vshrl.u32 %v16686_v50, 16 }
 0x4c0   : > { %v6229_v47 = vsel %vm20851_vm0, %v6224_v60, %v6228_v57  ;;  %vm20852_vm9 = vmmov %vm20839_vm1  ;;  %v6891_v57 = vrot.slane %v16607_v26, 1  ;;  %v6300_v26 = vrot.slane %v6298_v11, 1  ;;  %v6897_v60 = vrot.slane %v16624_v18, 1 }
 0x4c1   : > { %vm20853_vm6 = vmmov %vm20851_vm0 }
 0x4c2   : > { %v6237_v58 = vsel %vm20853_vm6, %v6232_v43, %v6236_v4  ;;  %vm20854_vm5 = vmmov %vm20839_vm1  ;;  %v6893_v4 = vrot.slane %v16612_v24, 1  ;;  %v6895_v24 = vrot.slane %v16622_v3, 1  ;;  %v6308_v43 = vrot.slane %v6306_v13, 1  ;;  %v16720_v3 = vld [vmem:[#allocation2 + $0xd8] sm:$0xff]  }
 0x4c3   : > { %12456 = vmatmul.mubr.msk.bf16.gmra.mxu0 %vm20850_vm4, %v6213_v21  ;;  %vm20855_vm1 = vmmov %vm20851_vm0  ;;  %v16771_v13 = vld [vmem:[#allocation2 + $0xf8] sm:$0xff]  }
 0x4c4   : > { %12459 = vmatprep.mubr.msk.bf16.mxu0 %vm20852_vm9, %v6221_v41  ;;  %v16649_v51 = vsel %vm20855_vm1, %v6240_v8, %v6244_v16  ;;  %vm20856_vm7 = vmmov %vm20851_vm0  ;;  %v6310_v16 = vshrl.u32 %v16660_v52, 16  ;;  %v16711_v37 = vsel %vm20855_vm1, %v6288_v27, %v6292_v7  ;;  %v16718_v8 = vld [vmem:[#allocation2 + $0xd0] sm:$0xff]   ;;  %v16749_v7 = vld [vmem:[#allocation2 + $0xe8] sm:$0xff]  }
 0x4c5   : > { %v16652_v62 = vsel %vm20856_vm7, %v6248_v59, %v6252_v28  ;;  %vm20857_vm3 = vmmov %vm20847_vm2  ;;  %v13082_v28 = vld [vmem:[#allocation2 + $0x48] sm:$0xff]   ;;  %v16769_v27 = vld [vmem:[#allocation2 + $0xf0] sm:$0xff]  }
 0x4c6   : > { %12258 = vmatmul.mubr.msk.bf16.gmra.mxu1 %vm20854_vm5, %v13080_v40  ;;  %vm20858_vm14 = vmmov %vm20851_vm0 }
 0x4c7   : > { %12261 = vmatprep.mubr.msk.bf16.mxu1 %vm20857_vm3, %v13081_v36  ;;  %v16657_v14 = vsel %vm20858_vm14, %v6256_v49, %v6260_v25  ;;  %vm20859_vm8 = vmmov %vm20851_vm0  ;;  %v16714_v25 = vld [vmem:[#allocation2 + $0xc8] sm:$0xff]   ;;  %v6322_v49 = vshll.u32 %v16686_v50, 16  ;;  %v6312_v36 = vor.u32 %v6310_v16, %v6308_v43  ;;  %v16783_v16 = vld [vmem:[#allocation2 + $0x100] sm:$0xff]  }
 0x4c8   : > { %v16666_v45 = vsel %vm20859_vm8, %v6264_v5, %v6268_v19  ;;  %vm20861_vm13 = vmmov %vm20851_vm0  ;;  %v6304_v19 = vor.u32 %v6302_v35, %v6300_v26  ;;  %v6330_v5 = vshll.u32 %v16714_v25, 16  ;;  %v6334_v42 = vshrl.u32 %v16714_v25, 16  ;;  %v13085_v35 = vld [vmem:[#allocation2 + $0x60] sm:$0xff]  }
 0x4c9   : > { %v16678_v0 = vsel %vm20861_vm13, %v6272_v54, %v6276_v53  ;;  %vm20862_vm12 = vmmov %vm20847_vm2  ;;  %v6905_v53 = vrot.slane %v16681_v56, 1  ;;  %v6909_v54 = vrot.slane %v16714_v25, 1  ;;  %v6324_v11 = vrot.slane %v6322_v49, 1  ;;  %v8060_v49 = vld [vmem:[#allocation2 + $0x24] sm:$0xf] }
 0x4ca   : > { %vm20863_vm2 = vmmov %vm20860_vm11  ;;  %v6917_v25 = vrot.slane %v16749_v7, 1 }
 0x4cb   : > { %12460 = vmatmul.mubr.msk.bf16.gmra.mxu0 %vm20862_vm12, %v6229_v47  ;;  %v16689_v15 = vsel %vm20863_vm2, %v6885_v23, %v6887_v61  ;;  %vm20864_vm10 = vmmov %vm20863_vm2  ;;  %v6318_v47 = vshrl.u32 %v16681_v56, 16  ;;  %v6911_v56 = vrot.slane %v16718_v8, 1 }
 0x4cc   : > { %v16692_v38 = vsel %vm20864_vm10, %v6887_v61, %v6889_v9  ;;  %vm20865_vm15 = vmmov %vm20857_vm3  ;;  %v13084_v61 = vld [vmem:[#allocation2 + $0x58] sm:$0xff]  }
 0x4cd   : > { %12463 = vmatprep.mubr.msk.bf16.mxu0 %vm20865_vm15, %v6237_v58  ;;  %vm20866_vm4 = vmmov %vm20851_vm0 }
 0x4ce   : > { %v16697_v12 = vsel %vm20866_vm4, %v6280_v17, %v6284_v55  ;;  %vm20867_vm0 = vmmov %vm20863_vm2  ;;  %v6907_v55 = vrot.slane %v16686_v50, 1 }
 0x4cf   : > { %v16701_v21 = vsel %vm20867_vm0, %v6889_v9, %v6891_v57  ;;  %vm20868_vm9 = vmmov %vm20857_vm3  ;;  %v6342_v9 = vshrl.u32 %v16718_v8, 16 }
 0x4d0   : > { %12262 = vmatmul.mubr.msk.bf16.gmra.mxu1 %vm20868_vm9, %v13082_v28  ;;  %vm20869_vm6 = vmmov %vm20867_vm0  ;;  %v8059_v28 = vld [vmem:[#allocation2 + $0x20] sm:$0xf] }
 0x4d1   : > { %v16705_v41 = vsel %vm20869_vm6, %v6891_v57, %v6893_v4  ;;  %vm20870_vm5 = vmmov %vm20857_vm3  ;;  %v6913_v57 = vrot.slane %v16720_v3, 1 }
 0x4d2   : > { %12265 = vmatprep.mubr.msk.bf16.mxu1 %vm20870_vm5, %v13083_v22  ;;  %vm20871_vm7 = vmmov %vm20867_vm0  ;;  %v16788_v22 = vld [vmem:[#allocation2 + $0x110] ss:$0 sps:$4 sm:$0x11]  }
 0x4d3   : > { %v16723_v18 = vsel %vm20871_vm7, %v6893_v4, %v6895_v24  ;;  %vm20872_vm3 = vmmov %vm20867_vm0  ;;  %v6332_v4 = vrot.slane %v6330_v5, 1 }
 0x4d4   : > { %v16726_v59 = vsel %vm20872_vm3, %v6895_v24, %v6897_v60  ;;  %vm20873_vm14 = vmmov %vm20855_vm1  ;;  %v6320_v24 = vor.u32 %v6318_v47, %v6316_v39  ;;  %v11483_v47 = vcombine.low %v8059_v28, %v8060_v49  ;;  %v6927_v28 = vrot.slane %v16788_v22, 1  ;;  %v13087_v49 = vld [vmem:[#allocation2 + $0x70] sm:$0xff]  }
 0x4d5   : > { %v16730_v58 = vsel %vm20873_vm14, %v6296_v31, %v6300_v26  ;;  %vm20874_vm8 = vmmov %vm20867_vm0  ;;  %v6346_v26 = vshll.u32 %v16720_v3, 16  ;;  %v6915_v31 = vrot.slane %v16743_v6, 1  ;;  %v6336_v5 = vor.u32 %v6334_v42, %v6332_v4 }
 0x4d6   : > { %v16735_v34 = vsel %vm20874_vm8, %v6897_v60, %v6899_v46  ;;  %vm20875_vm11 = vmmov %vm20867_vm0  ;;  %v16786_v60 = vld [vmem:[#allocation2 + $0x108] sm:$0xff]  }
 0x4d7   : > { %v16738_v40 = vsel %vm20875_vm11, %v6899_v46, %v6901_v32  ;;  %vm20876_vm13 = vmmov %vm20870_vm5  ;;  %v6328_v46 = vor.u32 %v6326_v44, %v6324_v11  ;;  %v16809_v44 = vrot.slane %v6346_v26, 1  ;;  %v6925_v42 = vrot.slane %v16786_v60, 1 }
 0x4d8   : > { %12464 = vmatmul.mubr.msk.bf16.gmra.mxu0 %vm20876_vm13, %v16649_v51  ;;  %vm20877_vm12 = vmmov %vm20867_vm0  ;;  %v6338_v51 = vshll.u32 %v16718_v8, 16 }
 0x4d9   : > { %v16752_v23 = vsel %vm20877_vm12, %v6901_v32, %v6903_v30  ;;  %vm20878_vm2 = vmmov %vm20867_vm0 }
 0x4da   : > { %v16755_v52 = vsel %vm20878_vm2, %v6903_v30, %v6905_v53  ;;  %vm20879_vm10 = vmmov %vm20870_vm5  ;;  %v6340_v8 = vrot.slane %v6338_v51, 1  ;;  %v6923_v51 = vrot.slane %v16783_v16, 1 }
 0x4db   : > { %12467 = vmatprep.mubr.msk.bf16.mxu0 %vm20879_vm10, %v16652_v62  ;;  %vm20880_vm15 = vmmov %vm20855_vm1 }
 0x4dc   : > { %v16761_v48 = vsel %vm20880_vm15, %v6304_v19, %v6308_v43  ;;  %vm20881_vm4 = vmmov %vm20867_vm0 }
 0x4dd   : > { %v16765_v17 = vsel %vm20881_vm4, %v6905_v53, %v6907_v55  ;;  %vm20883_vm0 = vmmov %vm20870_vm5  ;;  %v6919_v53 = vrot.slane %v16769_v27, 1 }
 0x4de   : > { %20882 = vst [vmem:[#allocation8_spill] sm:$0xff] %v16765_v17  ;;  %12266 = vmatmul.mubr.msk.bf16.gmra.mxu1 %vm20883_vm0, %v13084_v61  ;;  %vm20884_vm9 = vmmov %vm20878_vm2 }
 0x4df   : > { %v16774_v62 = vsel %vm20884_vm9, %v6907_v55, %v6909_v54  ;;  %vm20886_vm6 = vmmov %vm20883_vm0  ;;  %v12952_v55 = vld [vmem:[#allocation2 + $0x28] sm:$0xff]  }
 0x4e0   : > { %20885 = vst [vmem:[#allocation9_spill] sm:$0xff] %v16774_v62  ;;  %12269 = vmatprep.mubr.msk.bf16.mxu1 %vm20886_vm6, %v13085_v35  ;;  %vm20887_vm5 = vmmov %vm20855_vm1  ;;  %v16826_v35 = vor.u32 %v6342_v9, %v6340_v8  ;;  %v8292_v9 = vshll.u32 %v11483_v47, 16  ;;  %v8297_v63 = vshll.u32 %v12952_v55, 16  ;;  %v8301_v26 = vshrl.u32 %v12952_v55, 16  ;;  %v12963_v55 = vld [vmem:[#allocation2 + $0x68] sm:$0xff]   ;;  %v12980_v62 = vld [vmem:[#allocation2 + $0xf0] sm:$0xff]  }
 0x4e1   : > { %v16780_v50 = vsel %vm20887_vm5, %v6312_v36, %v6316_v39  ;;  %vm20888_vm1 = vmmov %vm20878_vm2  ;;  %v6921_v36 = vrot.slane %v16771_v13, 1 }
 0x4e2   : > { %v16791_v43 = vsel %vm20888_vm1, %v6909_v54, %v6911_v56  ;;  %vm20890_vm7 = vmmov %vm20888_vm1  ;;  %v12956_v54 = vld [vmem:[#allocation2 + $0x30] sm:$0xff]   ;;  %v8299_v10 = vrot.slane %v8297_v63, 1 }
 0x4e3   : > { %20889 = vst [vmem:[#allocation10_spill] sm:$0xff] %v16791_v43  ;;  %v16794_v2 = vsel %vm20890_vm7, %v6911_v56, %v6913_v57  ;;  %vm20892_vm3 = vmmov %vm20888_vm1  ;;  %v12957_v56 = vld [vmem:[#allocation2 + $0x38] sm:$0xff]   ;;  %v8305_v32 = vshll.u32 %v12956_v54, 16  ;;  %v8309_v1 = vshrl.u32 %v12956_v54, 16 }
 0x4e4   : > { %20891 = vst [vmem:[#allocation11_spill] sm:$0xff] %v16794_v2  ;;  %v16799_v19 = vsel %vm20892_vm3, %v6913_v57, %v6915_v31  ;;  %vm20894_vm14 = vmmov %vm20888_vm1 }
 0x4e5   : > { %20893 = vst [vmem:[#allocation12_spill] sm:$0xff] %v16799_v19  ;;  %v16802_v30 = vsel %vm20894_vm14, %v6915_v31, %v6917_v25  ;;  %vm20896_vm8 = vmmov %vm20887_vm5  ;;  %v13086_v31 = vld [vmem:[#allocation2 + $0x68] sm:$0xff]   ;;  %v8307_v29 = vrot.slane %v8305_v32, 1  ;;  %v8303_v19 = vor.u32 %v8301_v26, %v8299_v10 }
 0x4e6   : > { %20895 = vst [vmem:[#allocation13_spill] sm:$0xff] %v16802_v30  ;;  %v16807_v39 = vsel %vm20896_vm8, %v6320_v24, %v6324_v11  ;;  %vm20897_vm11 = vmmov %vm20883_vm0  ;;  %v12962_v30 = vld [vmem:[#allocation2 + $0x60] sm:$0xff]  }
 0x4e7   : > { %12468 = vmatmul.mubr.msk.bf16.gmra.mxu0 %vm20897_vm11, %v16657_v14  ;;  %vm20898_vm13 = vmmov %vm20887_vm5  ;;  %v12958_v14 = vld [vmem:[#allocation2 + $0x40] sm:$0xff]  }
 0x4e8   : > { %v16815_v61 = vsel %vm20898_vm13, %v6328_v46, %v6332_v4  ;;  %vm20899_vm12 = vmmov %vm20888_vm1 }
 0x4e9   : > { %v16818_v57 = vsel %vm20899_vm12, %v6917_v25, %v6919_v53  ;;  %vm20901_vm2 = vmmov %vm20888_vm1  ;;  %v12959_v25 = vld [vmem:[#allocation2 + $0x48] sm:$0xff]  }
 0x4ea   : > { %20900 = vst [vmem:[#allocation14_spill] sm:$0xff] %v16818_v57  ;;  %v16821_v11 = vsel %vm20901_vm2, %v6919_v53, %v6921_v36  ;;  %vm20903_vm10 = vmmov %vm20883_vm0  ;;  %v12960_v53 = vld [vmem:[#allocation2 + $0x50] sm:$0xff]   ;;  %v8329_v57 = vshll.u32 %v12959_v25, 16 }
 0x4eb   : > { %20902 = vst [vmem:[#allocation15_spill] sm:$0xff] %v16821_v11  ;;  %12471 = vmatprep.mubr.msk.bf16.mxu0 %vm20903_vm10, %v16666_v45  ;;  %vm20904_vm15 = vmmov %vm20888_vm1  ;;  %v8290_v45 = vshrl.u32 %v11483_v47, 16 }
 0x4ec   : > { %v16830_v4 = vsel %vm20904_vm15, %v6921_v36, %v6923_v51  ;;  %vm20906_vm4 = vmmov %vm20883_vm0  ;;  %v8331_v32 = vrot.slane %v8329_v57, 1 }
 0x4ed   : > { %20905 = vst [vmem:[#allocation16_spill] sm:$0xff] %v16830_v4  ;;  %12270 = vmatmul.mubr.msk.bf16.gmra.mxu1 %vm20906_vm4, %v13086_v31  ;;  %vm20907_vm0 = vmmov %vm20887_vm5  ;;  %v8294_v31 = vrot.slane %v8292_v9, 1  ;;  %v12961_v4 = vld [vmem:[#allocation2 + $0x58] sm:$0xff]  }
 0x4ee   : > { %v16835_v24 = vsel %vm20907_vm0, %v6336_v5, %v6340_v8  ;;  %vm20908_vm9 = vmmov %vm20888_vm1  ;;  %v8313_v8 = vshll.u32 %v12957_v56, 16  ;;  %v8317_v5 = vshrl.u32 %v12957_v56, 16  ;;  %v8341_v56 = vshrl.u32 %v12960_v53, 16  ;;  %v13088_v9 = vld [vmem:[#allocation2 + $0x78] sm:$0xff]  }
 0x4ef   : > { %v16838_v46 = vsel %vm20908_vm9, %v6923_v51, %v6925_v42  ;;  %vm20910_vm6 = vmmov %vm20906_vm4  ;;  %v8321_v51 = vshll.u32 %v12958_v14, 16  ;;  %v8295_v47 = vor.u32 %v8294_v31, %v8290_v45  ;;  %v8349_v31 = vshrl.u32 %v12961_v4, 16 }
 0x4f0   : > { %20909 = vst [vmem:[#allocation17_spill] sm:$0xff] %v16838_v46  ;;  %12273 = vmatprep.mubr.msk.bf16.mxu1 %vm20910_vm6, %v13087_v49  ;;  %vm20911_vm5 = vmmov %vm20888_vm1  ;;  %v8325_v46 = vshrl.u32 %v12958_v14, 16  ;;  %v8315_v11 = vrot.slane %v8313_v8, 1  ;;  %v8333_v49 = vshrl.u32 %v12959_v25, 16  ;;  %v12964_v14 = vld [vmem:[#allocation2 + $0x70] sm:$0xff]   ;;  %v12965_v25 = vld [vmem:[#allocation2 + $0x78] sm:$0xff]  }
 0x4f1   : > { %v16842_v36 = vsel %vm20911_vm5, %v6925_v42, %v6927_v28  ;;  %v8311_v42 = vor.u32 %v8309_v1, %v8307_v29  ;;  %v8323_v28 = vrot.slane %v8321_v51, 1  ;;  %vm20913_vm1 = vmmov %vm20906_vm4  ;;  %v12966_v8 = vld [vmem:[#allocation2 + $0x80] sm:$0xff]  }
 0x4f2   : > { %20912 = vst [vmem:[#allocation18_spill] sm:$0xff] %v16842_v36  ;;  %v8337_v36 = vshll.u32 %v12960_v53, 16  ;;  %12472 = vmatmul.mubr.msk.bf16.gmra.mxu0 %vm20913_vm1, %v16678_v0  ;;  %vm20914_vm7 = vmmov %vm20907_vm0  ;;  %v8319_v63 = vor.u32 %v8317_v5, %v8315_v11  ;;  %v8335_v57 = vor.u32 %v8333_v49, %v8331_v32  ;;  %v8345_v53 = vshll.u32 %v12961_v4, 16 }
 0x4f3   : > { %v16847_v54 = vsel %vm20914_vm7, %v8295_v47, %v8299_v10  ;;  %vm20916_vm3 = vmmov %vm20913_vm1  ;;  %v8327_v45 = vor.u32 %v8325_v46, %v8323_v28  ;;  %v8357_v46 = vshrl.u32 %v12962_v30, 16  ;;  %v8361_v47 = vshll.u32 %v12963_v55, 16 }
 0x4f4   : > { %20915 = vst [vmem:[#allocation19_spill] sm:$0xff] %v16847_v54  ;;  %12475 = vmatprep.mubr.msk.bf16.mxu0 %vm20916_vm3, %v16697_v12  ;;  %vm20917_vm14 = vmmov %vm20907_vm0  ;;  %v8339_v0 = vrot.slane %v8337_v36, 1  ;;  %v13089_v12 = vld [vmem:[#allocation2 + $0x80] sm:$0xff]   ;;  %v12967_v36 = vld [vmem:[#allocation2 + $0x88] sm:$0xff]   ;;  %v8347_v51 = vrot.slane %v8345_v53, 1  ;;  %v8373_v4 = vshrl.u32 %v12964_v14, 16 }
 0x4f5   : > { %v16852_v26 = vsel %vm20917_vm14, %v8303_v19, %v8307_v29  ;;  %vm20919_vm8 = vmmov %vm20907_vm0  ;;  %v8389_v53 = vshrl.u32 %v12966_v8, 16  ;;  %v13092_v54 = vld [vmem:[#allocation2 + $0x98] sm:$0xff]  }
 0x4f6   : > { %20918 = vst [vmem:[#allocation20_spill] sm:$0xff] %v16852_v26  ;;  %v16855_v1 = vsel %vm20919_vm8, %v8311_v42, %v8315_v11  ;;  %vm20921_vm11 = vmmov %vm20913_vm1  ;;  %v8343_v19 = vor.u32 %v8341_v56, %v8339_v0  ;;  %v8353_v11 = vshll.u32 %v12962_v30, 16  ;;  %v8365_v42 = vshrl.u32 %v12963_v55, 16  ;;  %v12969_v55 = vld [vmem:[#allocation2 + $0x98] sm:$0xff]  }
 0x4f7   : > { %20920 = vst [vmem:[#allocation21_spill] sm:$0xff] %v16855_v1  ;;  %12274 = vmatmul.mubr.msk.bf16.gmra.mxu1 %vm20921_vm11, %v13088_v9  ;;  %vm20922_vm13 = vmmov %vm20907_vm0  ;;  %v12968_v9 = vld [vmem:[#allocation2 + $0x90] sm:$0xff]   ;;  %v8381_v56 = vshrl.u32 %v12965_v25, 16  ;;  %v8385_v1 = vshll.u32 %v12966_v8, 16 }
 0x4f8   : > { %v16859_v10 = vsel %vm20922_vm13, %v8319_v63, %v8323_v28  ;;  %vm20924_vm12 = vmmov %vm20913_vm1  ;;  %v8355_v49 = vrot.slane %v8353_v11, 1  ;;  %v8369_v28 = vshll.u32 %v12964_v14, 16  ;;  %v8377_v63 = vshll.u32 %v12965_v25, 16  ;;  %v12970_v25 = vld [vmem:[#allocation2 + $0xa0] sm:$0xff]  }
 0x4f9   : > { %20923 = vst [vmem:[#allocation22_spill] sm:$0xff] %v16859_v10  ;;  %12277 = vmatprep.mubr.msk.bf16.mxu1 %vm20924_vm12, %v13089_v12  ;;  %vm20925_vm2 = vmmov %vm20907_vm0 }
 0x4fa   : > { %v16863_v29 = vsel %vm20925_vm2, %v8327_v45, %v8331_v32  ;;  %vm20927_vm10 = vmmov %vm20907_vm0  ;;  %v8351_v32 = vor.u32 %v8349_v31, %v8347_v51  ;;  %v8363_v45 = vrot.slane %v8361_v47, 1  ;;  %v8371_v30 = vrot.slane %v8369_v28, 1  ;;  %v12971_v31 = vld [vmem:[#allocation2 + $0xa8] sm:$0xff]   ;;  %v16883_v28 = vpop.f32.mrf.mxu1 }
 0x4fb   : > { %20926 = vst [vmem:[#allocation23_spill] sm:$0xff] %v16863_v29  ;;  %v16866_v5 = vsel %vm20927_vm10, %v8335_v57, %v8339_v0  ;;  %vm20929_vm15 = vmmov %vm20907_vm0  ;;  %v8359_v29 = vor.u32 %v8357_v46, %v8355_v49  ;;  %v8379_v10 = vrot.slane %v8377_v63, 1  ;;  %v16871_v0 = vpop.f32.mrf.mxu0  ;;  %v8387_v47 = vrot.slane %v8385_v1, 1 }
 0x4fc   : > { %20928 = vst [vmem:[#allocation24_spill] sm:$0xff] %v16866_v5  ;;  %v16869_v12 = vsel %vm20929_vm15, %v8343_v19, %v8347_v51  ;;  %vm20931_vm4 = vmmov %vm20913_vm1  ;;  %v16876_v14 = vsel %vm20907_vm0, %v8351_v32, %v8355_v49  ;;  %v8367_v57 = vor.u32 %v8365_v42, %v8363_v45  ;;  %v8393_v19 = vshll.u32 %v12967_v36, 16  ;;  %v13091_v32 = vld [vmem:[#allocation2 + $0x90] sm:$0xff]  }
 0x4fd   : > { %20930 = vst [vmem:[#allocation25_spill] sm:$0xff] %v16869_v12  ;;  %12476 = vmatmul.mubr.msk.bf16.gmra.mxu0 %vm20931_vm4, %v16711_v37  ;;  %20932 = vst [vmem:[#allocation26_spill] sm:$0xff] %v16876_v14  ;;  %v8375_v46 = vor.u32 %v8373_v4, %v8371_v30  ;;  %v8383_v51 = vor.u32 %v8381_v56, %v8379_v10  ;;  %v13090_v37 = vld [vmem:[#allocation2 + $0x88] sm:$0xff]   ;;  %v16886_v49 = vpop.f32.mrf.mxu0  ;;  %v8401_v63 = vshll.u32 %v12968_v9, 16  ;;  %v8405_v56 = vshrl.u32 %v12968_v9, 16  ;;  %v12974_v14 = vld [vmem:[#allocation2 + $0xc0] sm:$0xff]  }
 0x4fe   : > { %vm20933_vm9 = vmmov %vm20913_vm1  ;;  %v8395_v42 = vrot.slane %v8393_v19, 1  ;;  %v8409_v19 = vshll.u32 %v12969_v55, 16  ;;  %v12975_v9 = vld [vmem:[#allocation2 + $0xc8] sm:$0xff]  }
 0x4ff   : > { %12479 = vmatprep.mubr.msk.bf16.mxu0 %vm20933_vm9, %v16730_v58  ;;  %vm20934_vm6 = vmmov %vm20907_vm0  ;;  %v8397_v58 = vshrl.u32 %v12967_v36, 16  ;;  %v8403_v36 = vrot.slane %v8401_v63, 1  ;;  %v8429_v63 = vshrl.u32 %v12971_v31, 16 }
 0x500   : > { %v16881_v11 = vsel %vm20934_vm6, %v8359_v29, %v8363_v45  ;;  %vm20936_vm5 = vmmov %vm20913_vm1  ;;  %v12972_v29 = vld [vmem:[#allocation2 + $0xb0] sm:$0xff]   ;;  %v8391_v45 = vor.u32 %v8389_v53, %v8387_v47 }
 0x501   : > { %20935 = vst [vmem:[#allocation27_spill] sm:$0xff] %v16881_v11  ;;  %12278 = vmatmul.mubr.msk.bf16.gmra.mxu1 %vm20936_vm5, %v13090_v37  ;;  %vm20937_vm1 = vmmov %vm20907_vm0  ;;  %v16898_v37 = vpop.f32.mrf.mxu1  ;;  %v16900_v11 = vpop.f32.mrf.mxu0  ;;  %v8433_v5 = vshll.u32 %v12972_v29, 16  ;;  %v8437_v26 = vshrl.u32 %v12972_v29, 16 }
 0x502   : > { %v16889_v8 = vsel %vm20937_vm1, %v8367_v57, %v8371_v30  ;;  %vm20939_vm7 = vmmov %vm20916_vm3  ;;  %v12973_v30 = vld [vmem:[#allocation2 + $0xb8] sm:$0xff]   ;;  %v8399_v57 = vor.u32 %v8397_v58, %v8395_v42  ;;  %v8411_v58 = vrot.slane %v8409_v19, 1  ;;  %v8449_v19 = vshll.u32 %v12974_v14, 16 }
 0x503   : > { %20938 = vst [vmem:[#allocation28_spill] sm:$0xff] %v16889_v8  ;;  %12281 = vmatprep.mubr.msk.bf16.mxu1 %vm20939_vm7, %v13091_v32  ;;  %vm20940_vm3 = vmmov %vm20907_vm0  ;;  %v8413_v8 = vshrl.u32 %v12969_v55, 16  ;;  %v16907_v53 = vpop.f32.mrf.mxu0 }
 0x504   : > { %v16893_v4 = vsel %vm20940_vm3, %v8375_v46, %v8379_v10  ;;  %vm20942_vm14 = vmmov %vm20907_vm0  ;;  %v8417_v10 = vshll.u32 %v12970_v25, 16  ;;  %v8421_v46 = vshrl.u32 %v12970_v25, 16  ;;  %v12976_v25 = vld [vmem:[#allocation2 + $0xd0] sm:$0xff]  }
 0x505   : > { %20941 = vst [vmem:[#allocation29_spill] sm:$0xff] %v16893_v4  ;;  %v16896_v1 = vsel %vm20942_vm14, %v8383_v51, %v8387_v47  ;;  %vm20944_vm8 = vmmov %vm20907_vm0  ;;  %v8425_v4 = vshll.u32 %v12971_v31, 16  ;;  %v16905_v51 = vpop.f32.mrf.mxu1  ;;  %v12977_v31 = vld [vmem:[#allocation2 + $0xd8] sm:$0xff]  }
 0x506   : > { %20943 = vst [vmem:[#allocation30_spill] sm:$0xff] %v16896_v1  ;;  %v16903_v32 = vsel %vm20944_vm8, %v8391_v45, %v8395_v42  ;;  %vm20946_vm11 = vmmov %vm20907_vm0  ;;  %v8407_v1 = vor.u32 %v8405_v56, %v8403_v36  ;;  %v8419_v12 = vrot.slane %v8417_v10, 1  ;;  %v16914_v45 = vpop.f32.mrf.mxu0  ;;  %v8445_v56 = vshrl.u32 %v12973_v30, 16 }
 0x507   : > { %20945 = vst [vmem:[#allocation31_spill] sm:$0xff] %v16903_v32  ;;  %v16910_v47 = vsel %vm20946_vm11, %v8399_v57, %v8403_v36  ;;  %v8427_v55 = vrot.slane %v8425_v4, 1  ;;  %v16912_v42 = vpop.f32.mrf.mxu1  ;;  %vm20948_vm13 = vmmov %vm20931_vm4  ;;  %v8415_v57 = vor.u32 %v8413_v8, %v8411_v58  ;;  %v8435_v36 = vrot.slane %v8433_v5, 1 }
 0x508   : > { %20947 = vst [vmem:[#allocation32_spill] sm:$0xff] %v16910_v47  ;;  %12480 = vmatmul.mubr.msk.bf16.gmra.mxu0 %vm20948_vm13, %v16761_v48  ;;  %vm20949_vm12 = vmmov %vm20907_vm0  ;;  %v8441_v47 = vshll.u32 %v12973_v30, 16  ;;  %v8423_v4 = vor.u32 %v8421_v46, %v8419_v12  ;;  %v16926_v48 = vpop.f32.mrf.mxu0  ;;  %v8453_v30 = vshrl.u32 %v12974_v14, 16 }
 0x509   : > { %v16919_v32 = vsel %vm20949_vm12, %v8407_v1, %v8411_v58  ;;  %vm20951_vm2 = vmmov %vm20931_vm4  ;;  %v8431_v29 = vor.u32 %v8429_v63, %v8427_v55  ;;  %v16923_v10 = vpop.f32.mrf.mxu1  ;;  %20953 = vst [vmem:[#allocation34_spill] sm:$0xff] %v16926_v48  ;;  %v8457_v58 = vshll.u32 %v12975_v9, 16  ;;  %v8439_v63 = vor.u32 %v8437_v26, %v8435_v36 }
 0x50a   : > { %20950 = vst [vmem:[#allocation33_spill] sm:$0xff] %v16919_v32  ;;  %12483 = vmatprep.mubr.msk.bf16.mxu0 %vm20951_vm2, %v16780_v50  ;;  %vm20952_vm10 = vmmov %vm20951_vm2  ;;  %v8443_v8 = vrot.slane %v8441_v47, 1  ;;  %v13093_v32 = vld [vmem:[#allocation2 + $0xa0] sm:$0xff]   ;;  %v16933_v5 = vsel %vm20907_vm0, %v8423_v4, %v8427_v55  ;;  %v16940_v43 = vpop.f32.mrf.mxu0  ;;  %v8469_v4 = vshrl.u32 %v12976_v25, 16 }
 0x50b   : > { %12282 = vmatmul.mubr.msk.bf16.gmra.mxu1 %vm20952_vm10, %v13092_v54  ;;  %vm20954_vm15 = vmmov %vm20907_vm0  ;;  %v12978_v50 = vld [vmem:[#allocation2 + $0xe0] sm:$0xff]   ;;  %20957 = vst [vmem:[#allocation36_spill] sm:$0xff] %v16933_v5  ;;  %v8451_v54 = vrot.slane %v8449_v19, 1  ;;  %v16938_v2 = vpop.f32.mrf.mxu1  ;;  %v8459_v14 = vrot.slane %v8457_v58, 1  ;;  %v8473_v5 = vshll.u32 %v12977_v31, 16  ;;  %v8477_v58 = vshrl.u32 %v12977_v31, 16 }
 0x50c   : > { %v16929_v1 = vsel %vm20954_vm15, %v8415_v57, %v8419_v12  ;;  %vm20956_vm4 = vmmov %vm20951_vm2  ;;  %20960 = vst [vmem:[#allocation38_spill] sm:$0xff] %v16940_v43  ;;  %v12979_v12 = vld [vmem:[#allocation2 + $0xe8] sm:$0xff]   ;;  %v8447_v47 = vor.u32 %v8445_v56, %v8443_v8  ;;  %v8461_v57 = vshrl.u32 %v12975_v9, 16  ;;  %v16947_v26 = vpop.f32.mrf.mxu0  ;;  %v12982_v9 = vld [vmem:[#allocation2 + $0x100] sm:$0xff]  }
 0x50d   : > { %20955 = vst [vmem:[#allocation35_spill] sm:$0xff] %v16929_v1  ;;  %12285 = vmatprep.mubr.msk.bf16.mxu1 %vm20956_vm4, %v13093_v32  ;;  %vm20958_vm9 = vmmov %vm20907_vm0  ;;  %v8465_v1 = vshll.u32 %v12976_v25, 16  ;;  %v8455_v55 = vor.u32 %v8453_v30, %v8451_v54  ;;  %v8485_v30 = vshrl.u32 %v12978_v50, 16  ;;  %v8489_v31 = vshll.u32 %v12979_v12, 16 }
 0x50e   : > { %v16936_v46 = vsel %vm20958_vm9, %v8431_v29, %v8435_v36  ;;  %vm20961_vm6 = vmmov %vm20907_vm0  ;;  %v16945_v29 = vpop.f32.mrf.mxu1  ;;  %20963 = vst [vmem:[#allocation40_spill] sm:$0xff] %v16947_v26  ;;  %v12981_v36 = vld [vmem:[#allocation2 + $0xf8] sm:$0xff]   ;;  %v12983_v26 = vld [vmem:[#allocation2 + $0x108] sm:$0xff]  }
 0x50f   : > { %20959 = vst [vmem:[#allocation37_spill] sm:$0xff] %v16936_v46  ;;  %v16943_v32 = vsel %vm20961_vm6, %v8439_v63, %v8443_v8  ;;  %vm20964_vm5 = vmmov %vm20907_vm0  ;;  %v8463_v46 = vor.u32 %v8461_v57, %v8459_v14  ;;  %v8467_v56 = vrot.slane %v8465_v1, 1  ;;  %v8475_v8 = vrot.slane %v8473_v5, 1 }
 0x510   : > { %20962 = vst [vmem:[#allocation39_spill] sm:$0xff] %v16943_v32  ;;  %v16950_v19 = vsel %vm20964_vm5, %v8447_v47, %v8451_v54  ;;  %vm20966_vm1 = vmmov %vm20907_vm0  ;;  %v8481_v63 = vshll.u32 %v12978_v50, 16  ;;  %v16955_v25 = vpop.f32.mrf.mxu1  ;;  %v16957_v32 = vpop.f32.mrf.mxu0  ;;  %v8493_v47 = vshrl.u32 %v12979_v12, 16  ;;  %v8497_v50 = vshll.u32 %v12980_v62, 16 }
 0x511   : > { %20965 = vst [vmem:[#allocation41_spill] sm:$0xff] %v16950_v19  ;;  %v16953_v17 = vsel %vm20966_vm1, %v8455_v55, %v8459_v14  ;;  %20968 = vst [vmem:[#allocation43_spill] sm:$0xff] %v16957_v32  ;;  %v8471_v1 = vor.u32 %v8469_v4, %v8467_v56  ;;  %v8479_v5 = vor.u32 %v8477_v58, %v8475_v8  ;;  %v8501_v57 = vshrl.u32 %v12980_v62, 16  ;;  %v12984_v19 = vld [vmem:[#allocation2 + $0x110] sm:$0xff]  }
 0x512   : > { %20967 = vst [vmem:[#allocation42_spill] sm:$0xff] %v16953_v17  ;;  %vm20969_vm7 = vmmov %vm20951_vm2  ;;  %v8483_v14 = vrot.slane %v8481_v63, 1  ;;  %v16966_v55 = vpop.f32.mrf.mxu1  ;;  %v13094_v17 = vld [vmem:[#allocation2 + $0xa8] sm:$0xff]   ;;  %v8491_v4 = vrot.slane %v8489_v31, 1  ;;  %v8505_v12 = vshll.u32 %v12981_v36, 16  ;;  %v8499_v63 = vrot.slane %v8497_v50, 1 }
 0x513   : > { %12484 = vmatmul.mubr.msk.bf16.gmra.mxu0 %vm20969_vm7, %v16807_v39  ;;  %vm20970_vm3 = vmmov %vm20907_vm0  ;;  %20973 = vst [vmem:[#allocation45_spill] sm:$0xff] %v16966_v55  ;;  %v16969_v39 = vpop.f32.mrf.mxu0  ;;  %v8513_v32 = vshll.u32 %v12982_v9, 16  ;;  %v8521_v31 = vshll.u32 %v12983_v26, 16  ;;  %v8525_v48 = vshrl.u32 %v12983_v26, 16 }
 0x514   : > { %v16962_v54 = vsel %vm20970_vm3, %v8463_v46, %v8467_v56  ;;  %vm20972_vm14 = vmmov %vm20951_vm2  ;;  %20975 = vst [vmem:[#allocation46_spill] sm:$0xff] %v16969_v39  ;;  %v8509_v56 = vshrl.u32 %v12981_v36, 16  ;;  %v8487_v58 = vor.u32 %v8485_v30, %v8483_v14  ;;  %v8495_v43 = vor.u32 %v8493_v47, %v8491_v4 }
 0x515   : > { %20971 = vst [vmem:[#allocation44_spill] sm:$0xff] %v16962_v54  ;;  %12487 = vmatprep.mubr.msk.bf16.mxu0 %vm20972_vm14, %v16815_v61  ;;  %vm20974_vm8 = vmmov %vm20951_vm2  ;;  %v13095_v54 = vld [vmem:[#allocation2 + $0xb0] sm:$0xff]   ;;  %v12985_v61 = vld [vmem:[#allocation2 + $0x118] sm:$0xff]   ;;  %v16980_v39 = vpop.f32.mrf.mxu0  ;;  %v8515_v55 = vrot.slane %v8513_v32, 1  ;;  %v8529_v47 = vshll.u32 %v12984_v19, 16 }
 0x516   : > { %12286 = vmatmul.mubr.msk.bf16.gmra.mxu1 %vm20974_vm8, %v13094_v17  ;;  %vm20976_vm11 = vmmov %vm20907_vm0  ;;  %v16978_v17 = vpop.f32.mrf.mxu1  ;;  %v8537_v32 = vshll.u32 %v12985_v61, 16 }
 0x517   : > { %v16972_v46 = vsel %vm20976_vm11, %v8471_v1, %v8475_v8  ;;  %vm20978_vm13 = vmmov %vm20951_vm2  ;;  %v8507_v8 = vrot.slane %v8505_v12, 1  ;;  %v8517_v1 = vshrl.u32 %v12982_v9, 16  ;;  %v16987_v30 = vpop.f32.mrf.mxu0 }
 0x518   : > { %20977 = vst [vmem:[#allocation47_spill] sm:$0xff] %v16972_v46  ;;  %12289 = vmatprep.mubr.msk.bf16.mxu1 %vm20978_vm13, %v13095_v54  ;;  %vm20979_vm12 = vmmov %vm20907_vm0  ;;  %v12986_v46 = vld [vmem:[#allocation2 + $0x120] ss:$0 sps:$4 sm:$0x11]   ;;  %v8503_v54 = vor.u32 %v8501_v57, %v8499_v63 }
 0x519   : > { %v16976_v62 = vsel %vm20979_vm12, %v8479_v5, %v8483_v14  ;;  %vm20981_vm2 = vmmov %vm20907_vm0  ;;  %v16985_v5 = vpop.f32.mrf.mxu1  ;;  %v8511_v50 = vor.u32 %v8509_v56, %v8507_v8  ;;  %v8519_v57 = vor.u32 %v8517_v1, %v8515_v55  ;;  %v17000_v12 = vpop.f32.mrf.mxu0  ;;  %v8541_v1 = vshrl.u32 %v12985_v61, 16 }
 0x51a   : > { %20980 = vst [vmem:[#allocation48_spill] sm:$0xff] %v16976_v62  ;;  %v16983_v36 = vsel %vm20981_vm2, %v8487_v58, %v8491_v4  ;;  %vm20983_vm10 = vmmov %vm20907_vm0  ;;  %v8523_v62 = vrot.slane %v8521_v31, 1  ;;  %v8531_v58 = vrot.slane %v8529_v47, 1  ;;  %v8545_v31 = vshll.u32 %v12986_v46, 16  ;;  %v13097_v47 = vld [vmem:[#allocation2 + $0xc0] sm:$0xff]  }
 0x51b   : > { %20982 = vst [vmem:[#allocation49_spill] sm:$0xff] %v16983_v36  ;;  %v16990_v14 = vsel %vm20983_vm10, %v8495_v43, %v8499_v63  ;;  %vm20985_vm15 = vmmov %vm20907_vm0  ;;  %v16998_v26 = vpop.f32.mrf.mxu1  ;;  %v8533_v63 = vshrl.u32 %v12984_v19, 16  ;;  %v6390_v36 = vshrl.u32 %v16783_v16, 16 }
 0x51c   : > { %20984 = vst [vmem:[#allocation50_spill] sm:$0xff] %v16990_v14  ;;  %v6349_v9 = vsel %vm20985_vm15, %v16826_v35, %v16809_v44  ;;  %vm20986_vm4 = vmmov %vm20907_vm0  ;;  %v8527_v56 = vor.u32 %v8525_v48, %v8523_v62  ;;  %v8547_v61 = vrot.slane %v8545_v31, 1 }
 0x51d   : > { %v16996_v4 = vsel %vm20986_vm4, %v8503_v54, %v8507_v8  ;;  %20988 = vst [vmem:[#allocation52_spill] sm:$0xff] %v17000_v12  ;;  %vm20989_vm0 = vmmov %vm20969_vm7  ;;  %v8539_v8 = vrot.slane %v8537_v32, 1  ;;  %v17011_v54 = vpop.f32.mrf.mxu1  ;;  %v21002_v32 = vshll.u32 %v16749_v7, 16 }
 0x51e   : > { %20987 = vst [vmem:[#allocation51_spill] sm:$0xff] %v16996_v4  ;;  %12488 = vmatmul.mubr.msk.bf16.gmra.mxu0 %vm20989_vm0, %v16835_v24  ;;  %vm20990_vm9 = vmmov %vm20966_vm1  ;;  %v13096_v4 = vld [vmem:[#allocation2 + $0xb8] sm:$0xff]   ;;  %v17014_v24 = vpop.f32.mrf.mxu0 }
 0x51f   : > { %v17005_v43 = vsel %vm20990_vm9, %v8511_v50, %v8515_v55  ;;  %vm20992_vm6 = vmmov %vm20989_vm0  ;;  %20996 = vst [vmem:[#allocation55_spill] sm:$0xff] %v17014_v24  ;;  %v20997_v55 = vshll.u32 %v16743_v6, 16  ;;  %v8535_v50 = vor.u32 %v8533_v63, %v8531_v58  ;;  %v8543_v46 = vor.u32 %v8541_v1, %v8539_v8 }
 0x520   : > { %20991 = vst [vmem:[#allocation53_spill] sm:$0xff] %v17005_v43  ;;  %12491 = vmatprep.mubr.msk.bf16.mxu0 %vm20992_vm6, %v6349_v9  ;;  %vm20993_vm5 = vmmov %vm20966_vm1  ;;  %v17023_v9 = vpop.f32.mrf.mxu1 }
 0x521   : > { %v17009_v35 = vsel %vm20993_vm5, %v8519_v57, %v8523_v62  ;;  %vm20995_vm1 = vmmov %vm20989_vm0  ;;  %v6356_v48 = vrot.slane %v20997_v55, 1  ;;  %v6350_v62 = vshrl.u32 %v16720_v3, 16  ;;  %v17025_v57 = vpop.f32.mrf.mxu0  ;;  %v6364_v55 = vrot.slane %v21002_v32, 1 }
 0x522   : > { %20994 = vst [vmem:[#allocation54_spill] sm:$0xff] %v17009_v35  ;;  %12290 = vmatmul.mubr.msk.bf16.gmra.mxu1 %vm20995_vm1, %v13096_v4  ;;  %vm20998_vm7 = vmmov %vm20981_vm2  ;;  %v6358_v4 = vshrl.u32 %v16743_v6, 16  ;;  %v17037_v63 = vpop.f32.mrf.mxu1 }
 0x523   : > { %v17019_v19 = vsel %vm20998_vm7, %v8527_v56, %v8531_v58  ;;  %vm21000_vm3 = vmmov %vm20989_vm0  ;;  %21001 = vst [vmem:[#allocation57_spill] sm:$0xff] %v17025_v57  ;;  %v6352_v58 = vor.u32 %v6350_v62, %v16809_v44  ;;  %v17039_v1 = vpop.f32.mrf.mxu0  ;;  %v13098_v62 = vld [vmem:[#allocation2 + $0xc8] sm:$0xff]   ;;  %v12943_v57 = vld [vmem:[#allocation2 + $0x100] sm:$0xff]  }
 0x524   : > { %20999 = vst [vmem:[#allocation56_spill] sm:$0xff] %v17019_v19  ;;  %12293 = vmatprep.mubr.msk.bf16.mxu1 %vm21000_vm3, %v13097_v47  ;;  %vm21003_vm14 = vmmov %vm20981_vm2  ;;  %v6360_v31 = vor.u32 %v6358_v4, %v6356_v48  ;;  %v6370_v47 = vshll.u32 %v16769_v27, 16  ;;  %v17043_v19 = vpop.f32.mrf.mxu1  ;;  %v13099_v4 = vld [vmem:[#allocation2 + $0xd0] sm:$0xff]  }
 0x525   : > { %v17031_v56 = vsel %vm21003_vm14, %v8535_v50, %v8539_v8  ;;  %vm21005_vm8 = vmmov %vm20981_vm2  ;;  %21007 = vst [vmem:[#allocation60_spill] sm:$0xff] %v17037_v63  ;;  %v17045_v32 = vpop.f32.mrf.mxu0  ;;  %v6378_v8 = vshll.u32 %v16771_v13, 16 }
 0x526   : > { %21004 = vst [vmem:[#allocation58_spill] sm:$0xff] %v17031_v56  ;;  %v17035_v3 = vsel %vm21005_vm8, %v8543_v46, %v8547_v61  ;;  %21008 = vst [vmem:[#allocation61_spill] sm:$0xff] %v17039_v1  ;;  %v17051_v50 = vpop.f32.mrf.mxu1  ;;  %v6366_v61 = vshrl.u32 %v16749_v7, 16 }
 0x527   : > { %21006 = vst [vmem:[#allocation59_spill] sm:$0xff] %v17035_v3  ;;  %vm21009_vm11 = vmmov %vm20981_vm2  ;;  %v17054_v46 = vpop.f32.mrf.mxu0 }
 0x528   : > { %v6357_v6 = vsel %vm21009_vm11, %v6352_v58, %v6356_v48  ;;  %21010 = vst [vmem:[#allocation62_spill] sm:$0xff] %v17043_v19  ;;  %21011 = vst [vmem:[#allocation63_spill] sm:$0xff] %v17045_v32  ;;  %v6372_v48 = vrot.slane %v6370_v47, 1  ;;  %v17058_v58 = vpop.f32.mrf.mxu1  ;;  %v6368_v3 = vor.u32 %v6366_v61, %v6364_v55  ;;  %v6386_v47 = vshll.u32 %v16783_v16, 16  ;;  %v12939_v32 = vld [vmem:[#allocation2 + $0xf0] sm:$0xff]  }
 0x529   : > { %vm21012_vm13 = vmmov %vm20989_vm0  ;;  %21015 = vst [vmem:[#allocation64_spill] sm:$0xff] %v17051_v50 }
 0x52a   : > { %12492 = vmatmul.mubr.msk.bf16.gmra.mxu0 %vm21012_vm13, %v6357_v6  ;;  %vm21013_vm12 = vmmov %vm20981_vm2  ;;  %21017 = vst [vmem:[#allocation65_spill] sm:$0xff] %v17054_v46  ;;  %v6374_v6 = vshrl.u32 %v16769_v27, 16  ;;  %v17063_v56 = vpop.f32.mrf.mxu1  ;;  %v6373_v7 = vsel %vm20986_vm4, %v6368_v3, %v6372_v48  ;;  %v6394_v27 = vshll.u32 %v16786_v60, 16  ;;  %v6388_v3 = vrot.slane %v6386_v47, 1 }
 0x52b   : > { %v6365_v44 = vsel %vm21013_vm12, %v6360_v31, %v6364_v55  ;;  %vm21014_vm2 = vmmov %vm20989_vm0  ;;  %21019 = vst [vmem:[#allocation66_spill] sm:$0xff] %v17058_v58  ;;  %v17060_v31 = vpop.f32.mrf.mxu0 }
 0x52c   : > { %12495 = vmatprep.mubr.msk.bf16.mxu0 %vm21014_vm2, %v6365_v44  ;;  %vm21016_vm10 = vmmov %vm20989_vm0  ;;  %21020 = vst [vmem:[#allocation67_spill] sm:$0xff] %v17060_v31  ;;  %v6380_v44 = vrot.slane %v6378_v8, 1  ;;  %v17069_v43 = vpop.f32.mrf.mxu1  ;;  %v13100_v8 = vld [vmem:[#allocation2 + $0xd8] sm:$0xff]  }
 0x52d   : > { %12294 = vmatmul.mubr.msk.bf16.gmra.mxu1 %vm21016_vm10, %v13098_v62  ;;  %vm21018_vm15 = vmmov %vm20989_vm0  ;;  %21021 = vst [vmem:[#allocation68_spill] sm:$0xff] %v17063_v56  ;;  %v17065_v35 = vpop.f32.mrf.mxu0  ;;  %v6376_v62 = vor.u32 %v6374_v6, %v6372_v48  ;;  %v6382_v48 = vshrl.u32 %v16771_v13, 16  ;;  %v13101_v6 = vld [vmem:[#allocation2 + $0xe0] sm:$0xff]   ;;  %v6402_v13 = vshll.u32 %v16788_v22, 16  ;;  %v13103_v22 = vld [vmem:[#allocation2 + $0xf0] sm:$0xff]  }
 0x52e   : > { %12297 = vmatprep.mubr.msk.bf16.mxu1 %vm21018_vm15, %v13099_v4  ;;  %21022 = vst [vmem:[#allocation69_spill] sm:$0xff] %v17065_v35  ;;  %21023 = vst [vmem:[#allocation70_spill] sm:$0xff] %v17069_v43  ;;  %v17077_v55 = vpop.f32.mrf.mxu1 }
 0x52f   : > { %v17071_v4 = vpop.f32.mrf.mxu0  ;;  %vm21025_vm9 = vmmov %vm20986_vm4  ;;  %21027 = vst [vmem:[#allocation72_spill] sm:$0xff] %v17077_v55 }
 0x530   : > { %21024 = vst [vmem:[#allocation71_spill] sm:$0xff] %v17071_v4  ;;  %v6381_v14 = vsel %vm21025_vm9, %v6376_v62, %v6380_v44  ;;  %vm21026_vm6 = vmmov %vm20989_vm0  ;;  %v6384_v4 = vor.u32 %v6382_v48, %v6380_v44  ;;  %v13102_v44 = vld [vmem:[#allocation2 + $0xe8] sm:$0xff]  }
 0x531   : > { %vm21028_vm5 = vmmov %vm20989_vm0  ;;  %v17080_v61 = vpop.f32.mrf.mxu0 }
 0x532   : > { %12496 = vmatmul.mubr.msk.bf16.gmra.mxu0 %vm20989_vm0, %v6373_v7  ;;  %21029 = vst [vmem:[#allocation73_spill] sm:$0xff] %v17080_v61  ;;  %vm21030_vm1 = vmmov %vm20989_vm0  ;;  %v17084_v7 = vpop.f32.mrf.mxu1 }
 0x533   : > { %12499 = vmatprep.mubr.msk.bf16.mxu0 %vm21026_vm6, %v6381_v14  ;;  %21031 = vst [vmem:[#allocation74_spill] sm:$0xff] %v17084_v7  ;;  %v17086_v62 = vpop.f32.mrf.mxu0  ;;  %v6396_v14 = vrot.slane %v6394_v27, 1  ;;  %vm21035_vm7 = vmmov %vm20986_vm4  ;;  %v6404_v27 = vrot.slane %v6402_v13, 1  ;;  %v12935_v7 = vld [vmem:[#allocation2 + $0xe0] sm:$0xff]  }
 0x534   : > { %21032 = vst [vmem:[#allocation75_spill] sm:$0xff] %v17086_v62  ;;  %v17089_v35 = vpop.f32.mrf.mxu1  ;;  %v6389_v47 = vsel %vm21035_vm7, %v6384_v4, %v6388_v3  ;;  %vm21038_vm3 = vmmov %vm20989_vm0  ;;  %v6398_v4 = vshrl.u32 %v16786_v60, 16  ;;  %v12889_v60 = vld [vmem:[#allocation2 + $0x10] sm:$0xff]  }
 0x535   : > { %12298 = vmatmul.mubr.msk.bf16.gmra.mxu1 %vm21028_vm5, %v13100_v8  ;;  %21033 = vst [vmem:[#allocation76_spill] sm:$0xff] %v17089_v35  ;;  %v17091_v31 = vpop.f32.mrf.mxu0  ;;  %v6392_v8 = vor.u32 %v6390_v36, %v6388_v3  ;;  %vm21039_vm14 = vmmov %vm20986_vm4 }
 0x536   : > { %12301 = vmatprep.mubr.msk.bf16.mxu1 %vm21030_vm1, %v13101_v6  ;;  %21034 = vst [vmem:[#allocation77_spill] sm:$0xff] %v17091_v31  ;;  %v17095_v61 = vpop.f32.mrf.mxu1  ;;  %vm21040_vm8 = vmmov %vm20989_vm0 }
 0x537   : > { %21036 = vst [vmem:[#allocation78_spill] sm:$0xff] %v17095_v61  ;;  %v17097_v6 = vpop.f32.mrf.mxu0  ;;  %v6397_v62 = vsel %vm21039_vm14, %v6392_v8, %v6396_v14  ;;  %vm21042_vm11 = vmmov %vm20989_vm0  ;;  %v6400_v8 = vor.u32 %v6398_v4, %v6396_v14 }
 0x538   : > { %21037 = vst [vmem:[#allocation79_spill] sm:$0xff] %v17097_v6  ;;  %v17102_v16 = vpop.f32.mrf.mxu1  ;;  %vm21044_vm13 = vmmov %vm20989_vm0 }
 0x539   : > { %21041 = vst [vmem:[#allocation80_spill] sm:$0xff] %v17102_v16  ;;  %v17105_v36 = vpop.f32.mrf.mxu0  ;;  %vm21049_vm12 = vmmov %vm20986_vm4 }
 0x53a   : > { %12500 = vmatmul.mubr.msk.bf16.gmra.mxu0 %vm21038_vm3, %v6389_v47  ;;  %21043 = vst [vmem:[#allocation81_spill] sm:$0xff] %v17105_v36  ;;  %v17109_v3 = vpop.f32.mrf.mxu1  ;;  %v6405_v6 = vsel %vm21049_vm12, %v6400_v8, %v6404_v27  ;;  %vm21052_vm2 = vmmov %vm20989_vm0 }
 0x53b   : > { %12503 = vmatprep.mubr.msk.bf16.mxu0 %vm21040_vm8, %v6397_v62  ;;  %21045 = vst [vmem:[#allocation82_spill] sm:$0xff] %v17109_v3  ;;  %v17111_v48 = vpop.f32.mrf.mxu0  ;;  %vm21053_vm10 = vmmov %vm20989_vm0  ;;  %v12931_v3 = vld [vmem:[#allocation2 + $0xd0] sm:$0xff]  }
 0x53c   : > { %21046 = vst [vmem:[#allocation83_spill] sm:$0xff] %v17111_v48  ;;  %v17113_v47 = vpop.f32.mrf.mxu1  ;;  %vm21055_vm15 = vmmov %vm20989_vm0 }
 0x53d   : > { %12302 = vmatmul.mubr.msk.bf16.gmra.mxu1 %vm21042_vm11, %v13102_v44  ;;  %21047 = vst [vmem:[#allocation84_spill] sm:$0xff] %v17113_v47  ;;  %v17115_v62 = vpop.f32.mrf.mxu0  ;;  %v12888_v44 = vld [vmem:[#allocation2 + $0x20] sm:$0xff]   ;;  %vm21057_vm4 = vmmov %vm20989_vm0  ;;  %vm21062_vm0 = vcmask 1041408  }
 0x53e   : > { %12305 = vmatprep.mubr.msk.bf16.mxu1 %vm21044_vm13, %v13103_v22  ;;  %21048 = vst [vmem:[#allocation85_spill] sm:$0xff] %v17115_v62  ;;  %v17118_v31 = vpop.f32.mrf.mxu1  ;;  %v13104_v22 = vld [vmem:[#allocation2 + $0xf8] sm:$0xff]   ;;  %vm21063_vm9 = vmmov %vm21062_vm0 }
 0x53f   : > { %21050 = vst [vmem:[#allocation86_spill] sm:$0xff] %v17118_v31  ;;  %v17120_v36 = vpop.f32.mrf.mxu0  ;;  %vm21066_vm6 = vmmov %vm21030_vm1 }
 0x540   : > { %21051 = vst [vmem:[#allocation87_spill] sm:$0xff] %v17120_v36  ;;  %v17124_v13 = vpop.f32.mrf.mxu1  ;;  %v12890_v36 = vld [vmem:[#allocation2 + $0x28] sm:$0xff]   ;;  %vm21067_vm5 = vmmov %vm21062_vm0 }
 0x541   : > { %21054 = vst [vmem:[#allocation88_spill] sm:$0xff] %v17124_v13  ;;  %v17127_v14 = vpop.f32.mrf.mxu0  ;;  %vm21068_vm1 = vmmov %vm21062_vm0  ;;  %v12895_v13 = vld [vmem:[#allocation2 + $0x40] sm:$0xff]  }
 0x542   : > { %12504 = vmatmul.mubr.msk.bf16.gmra.mxu0 %vm21052_vm2, %v6405_v6  ;;  %21056 = vst [vmem:[#allocation89_spill] sm:$0xff] %v17127_v14  ;;  %v17130_v4 = vpop.f32.mrf.mxu1  ;;  %v11548_v6 = vld [vmem:[%s19938_s3 + $0x10] sm:$0x3]  ;;  %vm21069_vm7 = vmmov %vm21052_vm2 }
 0x543   : > { %12575 = vmatprep.mubr.msk.bf16.mxu0 %vm21053_vm10, %v12888_v44  ;;  %21058 = vst [vmem:[#allocation90_spill] sm:$0xff] %v17130_v4  ;;  %v17132_v27 = vpop.f32.mrf.mxu0  ;;  %12805 = vmatprep.subr.msk.bf16.mxu0 %vm21062_vm0, %v11548_v6  ;;  %v12891_v14 = vld [vmem:[#allocation2 + $0x30] sm:$0xff]   ;;  %v12892_v4 = vld [vmem:[#allocation2 + $0x18] sm:$0xff]   ;;  %vm21072_vm3 = vmmov %vm21052_vm2 }
 0x544   : > { %21059 = vst [vmem:[#allocation91_spill] sm:$0xff] %v17132_v27  ;;  %v17137_v8 = vpop.f32.mrf.mxu1  ;;  %vm21073_vm14 = vmmov %vm21052_vm2 }
 0x545   : > { %12306 = vmatmul.mubr.msk.bf16.gmra.mxu1 %vm21055_vm15, %v13104_v22  ;;  %21060 = vst [vmem:[#allocation92_spill] sm:$0xff] %v17137_v8  ;;  %v17139_v44 = vpop.f32.mrf.mxu0  ;;  %v9169_v22 = vsel %vm21063_vm9, %v11548_v6, 0  ;;  %v12893_v8 = vld [vmem:[#allocation2 + $0x20] sm:$0xff]   ;;  %vm21080_vm8 = vmmov %vm21052_vm2 }
 0x546   : > { %12377 = vmatprep.mubr.msk.bf16.mxu1 %vm21057_vm4, %v12889_v60  ;;  %21061 = vst [vmem:[#allocation93_spill] sm:$0xff] %v17139_v44  ;;  %v11383_v60 = vld [vmem:[%s19938_s3 + $0xa] sm:$0x3]  ;;  %v17146_v62 = vpop.f32.mrf.mxu1  ;;  %vm21081_vm11 = vmmov %vm21052_vm2 }
 0x547   : > { %21064 = vst [vmem:[#allocation94_spill] sm:$0xff] %v17146_v62  ;;  %v17148_v27 = vpop.f32.mrf.mxu0  ;;  %12802 = vmatprep.subr.msk.bf16.mxu1 %vm21067_vm5, %v11383_v60  ;;  %v7026_v44 = vsel %vm21068_vm1, %v11383_v60, 0  ;;  %vm21084_vm13 = vmmov %vm21052_vm2 }
 0x548   : > { %21065 = vst [vmem:[#allocation95_spill] sm:$0xff] %v17148_v27  ;;  %v17154_v6 = vpop.f32.mrf.mxu1  ;;  %vm21085_vm12 = vmmov %vm21052_vm2 }
 0x549   : > { %21070 = vst [vmem:[#allocation96_spill] sm:$0xff] %v17154_v6  ;;  %v17156_v48 = vpop.f32.mrf.mxu0  ;;  %vm21092_vm10 = vmmov %vm21052_vm2 }
 0x54a   : > { %12576 = vmatmul.mubr.msk.bf16.vlgmr.msra.gmra.mxu0 %vm21066_vm6, %v12890_v36  ;;  %21071 = vst [vmem:[#allocation97_spill] sm:$0xff] %v17156_v48  ;;  %v17160_v27 = vpop.f32.mrf.mxu1  ;;  %vm21095_vm15 = vmmov %vm21052_vm2 }
 0x54b   : > { %12579 = vmatprep.mubr.msk.bf16.mxu0 %vm21069_vm7, %v12891_v14  ;;  %12706 = vmatpush3.bf16.msra.mxu0 %v9169_v22  ;;  %21074 = vst [vmem:[#allocation98_spill] sm:$0xff] %v17160_v27  ;;  %v17162_v36 = vpop.f32.mrf.mxu0  ;;  %v12894_v14 = vld [vmem:[#allocation2 + $0x38] sm:$0xff]   ;;  %vm21096_vm4 = vmmov %vm21052_vm2 }
 0x54c   : > { %21075 = vst [vmem:[#allocation99_spill] sm:$0xff] %v17162_v36  ;;  %v17164_v62 = vpop.f32.mrf.mxu1  ;;  %vm21103_vm0 = vmmov %vm21052_vm2 }
 0x54d   : > { %12378 = vmatmul.mubr.msk.bf16.vlgmr.msra.gmra.mxu1 %vm21072_vm3, %v12892_v4  ;;  %21076 = vst [vmem:[#allocation100_spill] sm:$0xff] %v17164_v62  ;;  %v17166_v60 = vpop.f32.mrf.mxu0  ;;  %v12896_v4 = vld [vmem:[#allocation2 + $0x28] sm:$0xff]   ;;  %v12899_v62 = vld [vmem:[#allocation2 + $0x50] sm:$0xff]   ;;  %vm21104_vm9 = vmmov %vm21103_vm0 }
 0x54e   : > { %12381 = vmatprep.mubr.msk.bf16.mxu1 %vm21073_vm14, %v12893_v8  ;;  %12508 = vmatpush3.bf16.msra.mxu1 %v7026_v44  ;;  %21077 = vst [vmem:[#allocation101_spill] sm:$0xff] %v17166_v60  ;;  %v17168_v22 = vpop.f32.mrf.mxu1  ;;  %v12897_v8 = vld [vmem:[#allocation2 + $0x30] sm:$0xff]   ;;  %vm21107_vm6 = vmmov %vm21103_vm0 }
 0x54f   : > { %21078 = vst [vmem:[#allocation102_spill] sm:$0xff] %v17168_v22  ;;  %v17170_v6 = vpop.f32.mrf.mxu0  ;;  %vm21108_vm5 = vmmov %vm21103_vm0 }
 0x550   : > { %21079 = vst [vmem:[#allocation103_spill] sm:$0xff] %v17170_v6  ;;  %v17174_v44 = vpop.f32.mrf.mxu1  ;;  %vm21115_vm1 = vmmov %vm21103_vm0 }
 0x551   : > { %21082 = vst [vmem:[#allocation104_spill] sm:$0xff] %v17174_v44  ;;  %v17176_v48 = vpop.f32.mrf.mxu0  ;;  %vm21116_vm7 = vmmov %vm21103_vm0 }
 0x552   : > { %12580 = vmatmul.mubr.msk.bf16.gmra.mxu0 %vm21080_vm8, %v12894_v14  ;;  %21083 = vst [vmem:[#allocation105_spill] sm:$0xff] %v17176_v48  ;;  %v17180_v60 = vpop.f32.mrf.mxu1  ;;  %v12898_v14 = vld [vmem:[#allocation2 + $0x48] sm:$0xff]   ;;  %v12900_v48 = vld [vmem:[#allocation2 + $0x38] sm:$0xff]   ;;  %vm21119_vm3 = vmmov %vm21103_vm0 }
 0x553   : > { %12583 = vmatprep.mubr.msk.bf16.mxu0 %vm21081_vm11, %v12895_v13  ;;  %21086 = vst [vmem:[#allocation106_spill] sm:$0xff] %v17180_v60  ;;  %v17182_v36 = vpop.f32.mrf.mxu0  ;;  %vm21120_vm14 = vmmov %vm21103_vm0 }
 0x554   : > { %21087 = vst [vmem:[#allocation107_spill] sm:$0xff] %v17182_v36  ;;  %v17184_v22 = vpop.f32.mrf.mxu1  ;;  %vm21127_vm8 = vmmov %vm21103_vm0 }
 0x555   : > { %12382 = vmatmul.mubr.msk.bf16.gmra.mxu1 %vm21084_vm13, %v12896_v4  ;;  %21088 = vst [vmem:[#allocation108_spill] sm:$0xff] %v17184_v22  ;;  %v17186_v6 = vpop.f32.mrf.mxu0  ;;  %v12901_v4 = vld [vmem:[#allocation2 + $0x40] sm:$0xff]   ;;  %vm21128_vm11 = vmmov %vm21103_vm0 }
 0x556   : > { %12385 = vmatprep.mubr.msk.bf16.mxu1 %vm21085_vm12, %v12897_v8  ;;  %21089 = vst [vmem:[#allocation109_spill] sm:$0xff] %v17186_v6  ;;  %v17188_v13 = vpop.f32.mrf.mxu1  ;;  %v12903_v22 = vld [vmem:[#allocation2 + $0x60] sm:$0xff]   ;;  %vm21131_vm13 = vmmov %vm21103_vm0 }
 0x557   : > { %21090 = vst [vmem:[#allocation110_spill] sm:$0xff] %v17188_v13  ;;  %v17190_v27 = vpop.f32.mrf.mxu0  ;;  %vm21132_vm12 = vmmov %vm21103_vm0 }
 0x558   : > { %21091 = vst [vmem:[#allocation111_spill] sm:$0xff] %v17190_v27  ;;  %v17194_v8 = vpop.f32.mrf.mxu1 }
 0x559   : > { %21093 = vst [vmem:[#allocation112_spill] sm:$0xff] %v17194_v8  ;;  %v17196_v60 = vpop.f32.mrf.mxu0 }
 0x55a   : > { %12584 = vmatmul.mubr.msk.bf16.gmra.mxu0 %vm21052_vm2, %v12898_v14  ;;  %21094 = vst [vmem:[#allocation113_spill] sm:$0xff] %v17196_v60  ;;  %v17200_v6 = vpop.f32.mrf.mxu1  ;;  %v12902_v14 = vld [vmem:[#allocation2 + $0x58] sm:$0xff]   ;;  %v12904_v60 = vld [vmem:[#allocation2 + $0x48] sm:$0xff]   ;;  %vm21139_vm2 = vmmov %vm21103_vm0 }
 0x55b   : > { %12587 = vmatprep.mubr.msk.bf16.mxu0 %vm21092_vm10, %v12899_v62  ;;  %21097 = vst [vmem:[#allocation114_spill] sm:$0xff] %v17200_v6  ;;  %v17202_v36 = vpop.f32.mrf.mxu0  ;;  %vm21140_vm10 = vmmov %vm21103_vm0 }
 0x55c   : > { %21098 = vst [vmem:[#allocation115_spill] sm:$0xff] %v17202_v36  ;;  %v17204_v13 = vpop.f32.mrf.mxu1 }
 0x55d   : > { %12386 = vmatmul.mubr.msk.bf16.gmra.mxu1 %vm21095_vm15, %v12900_v48  ;;  %21099 = vst [vmem:[#allocation116_spill] sm:$0xff] %v17204_v13  ;;  %v17206_v27 = vpop.f32.mrf.mxu0  ;;  %v12905_v48 = vld [vmem:[#allocation2 + $0x50] sm:$0xff]   ;;  %vm21143_vm15 = vmmov %vm21103_vm0 }
 0x55e   : > { %12389 = vmatprep.mubr.msk.bf16.mxu1 %vm21096_vm4, %v12901_v4  ;;  %21100 = vst [vmem:[#allocation117_spill] sm:$0xff] %v17206_v27  ;;  %v17208_v62 = vpop.f32.mrf.mxu1  ;;  %v12907_v13 = vld [vmem:[#allocation2 + $0x70] sm:$0xff]   ;;  %vm21144_vm4 = vmmov %vm21103_vm0 }
 0x55f   : > { %21101 = vst [vmem:[#allocation118_spill] sm:$0xff] %v17208_v62  ;;  %v17210_v44 = vpop.f32.mrf.mxu0 }
 0x560   : > { %21102 = vst [vmem:[#allocation119_spill] sm:$0xff] %v17210_v44  ;;  %v17214_v4 = vpop.f32.mrf.mxu1 }
 0x561   : > { %21105 = vst [vmem:[#allocation120_spill] sm:$0xff] %v17214_v4  ;;  %v17216_v6 = vpop.f32.mrf.mxu0 }
 0x562   : > { %12588 = vmatmul.mubr.msk.bf16.gmra.mxu0 %vm21103_vm0, %v12902_v14  ;;  %21106 = vst [vmem:[#allocation121_spill] sm:$0xff] %v17216_v6  ;;  %v17220_v27 = vpop.f32.mrf.mxu1  ;;  %v12906_v14 = vld [vmem:[#allocation2 + $0x68] sm:$0xff]   ;;  %v12908_v6 = vld [vmem:[#allocation2 + $0x58] sm:$0xff]  }
 0x563   : > { %12591 = vmatprep.mubr.msk.bf16.mxu0 %vm21104_vm9, %v12903_v22  ;;  %21109 = vst [vmem:[#allocation122_spill] sm:$0xff] %v17220_v27  ;;  %v17222_v36 = vpop.f32.mrf.mxu0  ;;  %vm21151_vm9 = vmmov %vm21103_vm0 }
 0x564   : > { %21110 = vst [vmem:[#allocation123_spill] sm:$0xff] %v17222_v36  ;;  %v17224_v62 = vpop.f32.mrf.mxu1 }
 0x565   : > { %12390 = vmatmul.mubr.msk.bf16.gmra.mxu1 %vm21107_vm6, %v12904_v60  ;;  %21111 = vst [vmem:[#allocation124_spill] sm:$0xff] %v17224_v62  ;;  %v17226_v44 = vpop.f32.mrf.mxu0  ;;  %v12909_v60 = vld [vmem:[#allocation2 + $0x60] sm:$0xff]   ;;  %vm21154_vm6 = vmmov %vm21103_vm0 }
 0x566   : > { %12393 = vmatprep.mubr.msk.bf16.mxu1 %vm21108_vm5, %v12905_v48  ;;  %21112 = vst [vmem:[#allocation125_spill] sm:$0xff] %v17226_v44  ;;  %v17228_v22 = vpop.f32.mrf.mxu1  ;;  %v12911_v62 = vld [vmem:[#allocation2 + $0x80] sm:$0xff]   ;;  %vm21155_vm5 = vmmov %vm21103_vm0 }
 0x567   : > { %21113 = vst [vmem:[#allocation126_spill] sm:$0xff] %v17228_v22  ;;  %v17230_v8 = vpop.f32.mrf.mxu0 }
 0x568   : > { %21114 = vst [vmem:[#allocation127_spill] sm:$0xff] %v17230_v8  ;;  %v17234_v48 = vpop.f32.mrf.mxu1 }
 0x569   : > { %21117 = vst [vmem:[#allocation128_spill] sm:$0xff] %v17234_v48  ;;  %v17236_v27 = vpop.f32.mrf.mxu0 }
 0x56a   : > { %12592 = vmatmul.mubr.msk.bf16.gmra.mxu0 %vm21115_vm1, %v12906_v14  ;;  %21118 = vst [vmem:[#allocation129_spill] sm:$0xff] %v17236_v27  ;;  %v17240_v44 = vpop.f32.mrf.mxu1  ;;  %v12910_v14 = vld [vmem:[#allocation2 + $0x78] sm:$0xff]   ;;  %v12912_v27 = vld [vmem:[#allocation2 + $0x68] sm:$0xff]   ;;  %vm21162_vm1 = vmmov %vm21103_vm0 }
 0x56b   : > { %12595 = vmatprep.mubr.msk.bf16.mxu0 %vm21116_vm7, %v12907_v13  ;;  %21121 = vst [vmem:[#allocation130_spill] sm:$0xff] %v17240_v44  ;;  %v17242_v36 = vpop.f32.mrf.mxu0  ;;  %vm21163_vm7 = vmmov %vm21103_vm0 }
 0x56c   : > { %21122 = vst [vmem:[#allocation131_spill] sm:$0xff] %v17242_v36  ;;  %v17244_v22 = vpop.f32.mrf.mxu1 }
 0x56d   : > { %12394 = vmatmul.mubr.msk.bf16.gmra.mxu1 %vm21119_vm3, %v12908_v6  ;;  %21123 = vst [vmem:[#allocation132_spill] sm:$0xff] %v17244_v22  ;;  %v17246_v8 = vpop.f32.mrf.mxu0  ;;  %v12913_v6 = vld [vmem:[#allocation2 + $0x70] sm:$0xff]   ;;  %vm21164_vm3 = vmmov %vm21103_vm0 }
 0x56e   : > { %12397 = vmatprep.mubr.msk.bf16.mxu1 %vm21120_vm14, %v12909_v60  ;;  %21124 = vst [vmem:[#allocation133_spill] sm:$0xff] %v17246_v8  ;;  %v17248_v13 = vpop.f32.mrf.mxu1  ;;  %v12915_v22 = vld [vmem:[#allocation2 + $0x90] sm:$0xff]   ;;  %vm21166_vm14 = vmmov %vm21103_vm0 }
 0x56f   : > { %21125 = vst [vmem:[#allocation134_spill] sm:$0xff] %v17248_v13  ;;  %v17250_v4 = vpop.f32.mrf.mxu0 }
 0x570   : > { %21126 = vst [vmem:[#allocation135_spill] sm:$0xff] %v17250_v4  ;;  %v17254_v60 = vpop.f32.mrf.mxu1 }
 0x571   : > { %21129 = vst [vmem:[#allocation136_spill] sm:$0xff] %v17254_v60  ;;  %v17256_v44 = vpop.f32.mrf.mxu0 }
 0x572   : > { %12596 = vmatmul.mubr.msk.bf16.gmra.mxu0 %vm21127_vm8, %v12910_v14  ;;  %21130 = vst [vmem:[#allocation137_spill] sm:$0xff] %v17256_v44  ;;  %v17260_v8 = vpop.f32.mrf.mxu1  ;;  %v12914_v14 = vld [vmem:[#allocation2 + $0x88] sm:$0xff]   ;;  %v12916_v44 = vld [vmem:[#allocation2 + $0x78] sm:$0xff]   ;;  %vm21170_vm8 = vmmov %vm21103_vm0 }
 0x573   : > { %12599 = vmatprep.mubr.msk.bf16.mxu0 %vm21128_vm11, %v12911_v62  ;;  %21133 = vst [vmem:[#allocation138_spill] sm:$0xff] %v17260_v8  ;;  %v17262_v36 = vpop.f32.mrf.mxu0  ;;  %vm21171_vm11 = vmmov %vm21103_vm0 }
 0x574   : > { %21134 = vst [vmem:[#allocation139_spill] sm:$0xff] %v17262_v36  ;;  %v17264_v13 = vpop.f32.mrf.mxu1 }
 0x575   : > { %12398 = vmatmul.mubr.msk.bf16.gmra.mxu1 %vm21131_vm13, %v12912_v27  ;;  %21135 = vst [vmem:[#allocation140_spill] sm:$0xff] %v17264_v13  ;;  %v17266_v4 = vpop.f32.mrf.mxu0  ;;  %v12917_v27 = vld [vmem:[#allocation2 + $0x80] sm:$0xff]   ;;  %vm21172_vm13 = vmmov %vm21103_vm0 }
 0x576   : > { %12401 = vmatprep.mubr.msk.bf16.mxu1 %vm21132_vm12, %v12913_v6  ;;  %21136 = vst [vmem:[#allocation141_spill] sm:$0xff] %v17266_v4  ;;  %v17268_v62 = vpop.f32.mrf.mxu1  ;;  %v12919_v13 = vld [vmem:[#allocation2 + $0xa0] sm:$0xff]   ;;  %vm21174_vm12 = vmmov %vm21103_vm0 }
 0x577   : > { %21137 = vst [vmem:[#allocation142_spill] sm:$0xff] %v17268_v62  ;;  %v17270_v48 = vpop.f32.mrf.mxu0 }
 0x578   : > { %21138 = vst [vmem:[#allocation143_spill] sm:$0xff] %v17270_v48  ;;  %v17274_v6 = vpop.f32.mrf.mxu1 }
 0x579   : > { %21141 = vst [vmem:[#allocation144_spill] sm:$0xff] %v17274_v6  ;;  %v17276_v8 = vpop.f32.mrf.mxu0 }
 0x57a   : > { %12600 = vmatmul.mubr.msk.bf16.gmra.mxu0 %vm21139_vm2, %v12914_v14  ;;  %21142 = vst [vmem:[#allocation145_spill] sm:$0xff] %v17276_v8  ;;  %v17280_v4 = vpop.f32.mrf.mxu1  ;;  %v12918_v14 = vld [vmem:[#allocation2 + $0x98] sm:$0xff]   ;;  %v12920_v8 = vld [vmem:[#allocation2 + $0x88] sm:$0xff]   ;;  %vm21178_vm2 = vmmov %vm21103_vm0 }
 0x57b   : > { %12603 = vmatprep.mubr.msk.bf16.mxu0 %vm21140_vm10, %v12915_v22  ;;  %21145 = vst [vmem:[#allocation146_spill] sm:$0xff] %v17280_v4  ;;  %v17282_v36 = vpop.f32.mrf.mxu0  ;;  %vm21179_vm10 = vmmov %vm21103_vm0 }
 0x57c   : > { %21146 = vst [vmem:[#allocation147_spill] sm:$0xff] %v17282_v36  ;;  %v17284_v62 = vpop.f32.mrf.mxu1 }
 0x57d   : > { %12402 = vmatmul.mubr.msk.bf16.gmra.mxu1 %vm21143_vm15, %v12916_v44  ;;  %21147 = vst [vmem:[#allocation148_spill] sm:$0xff] %v17284_v62  ;;  %v17286_v48 = vpop.f32.mrf.mxu0  ;;  %v12921_v44 = vld [vmem:[#allocation2 + $0x90] sm:$0xff]   ;;  %vm21180_vm15 = vmmov %vm21103_vm0 }
 0x57e   : > { %12405 = vmatprep.mubr.msk.bf16.mxu1 %vm21144_vm4, %v12917_v27  ;;  %21148 = vst [vmem:[#allocation149_spill] sm:$0xff] %v17286_v48  ;;  %v17288_v22 = vpop.f32.mrf.mxu1  ;;  %v12923_v62 = vld [vmem:[#allocation2 + $0xb0] sm:$0xff]   ;;  %vm21182_vm4 = vmmov %vm21103_vm0 }
 0x57f   : > { %21149 = vst [vmem:[#allocation150_spill] sm:$0xff] %v17288_v22  ;;  %v17290_v60 = vpop.f32.mrf.mxu0 }
 0x580   : > { %21150 = vst [vmem:[#allocation151_spill] sm:$0xff] %v17290_v60  ;;  %v17294_v27 = vpop.f32.mrf.mxu1 }
 0x581   : > { %21152 = vst [vmem:[#allocation152_spill] sm:$0xff] %v17294_v27  ;;  %v17296_v4 = vpop.f32.mrf.mxu0 }
 0x582   : > { %12604 = vmatmul.mubr.msk.bf16.gmra.mxu0 %vm21103_vm0, %v12918_v14  ;;  %21153 = vst [vmem:[#allocation153_spill] sm:$0xff] %v17296_v4  ;;  %v17300_v48 = vpop.f32.mrf.mxu1  ;;  %v12922_v14 = vld [vmem:[#allocation2 + $0xa8] sm:$0xff]   ;;  %v12924_v4 = vld [vmem:[#allocation2 + $0x98] sm:$0xff]  }
 0x583   : > { %12607 = vmatprep.mubr.msk.bf16.mxu0 %vm21151_vm9, %v12919_v13  ;;  %21156 = vst [vmem:[#allocation154_spill] sm:$0xff] %v17300_v48  ;;  %v17302_v36 = vpop.f32.mrf.mxu0  ;;  %v12927_v48 = vld [vmem:[#allocation2 + $0xc0] sm:$0xff]   ;;  %vm21186_vm9 = vmmov %vm21103_vm0 }
 0x584   : > { %21157 = vst [vmem:[#allocation155_spill] sm:$0xff] %v17302_v36  ;;  %v17304_v22 = vpop.f32.mrf.mxu1 }
 0x585   : > { %12406 = vmatmul.mubr.msk.bf16.gmra.mxu1 %vm21154_vm6, %v12920_v8  ;;  %21158 = vst [vmem:[#allocation156_spill] sm:$0xff] %v17304_v22  ;;  %v17306_v60 = vpop.f32.mrf.mxu0  ;;  %v12925_v8 = vld [vmem:[#allocation2 + $0xa0] sm:$0xff]   ;;  %vm21187_vm6 = vmmov %vm21103_vm0 }
 0x586   : > { %12409 = vmatprep.mubr.msk.bf16.mxu1 %vm21155_vm5, %v12921_v44  ;;  %21159 = vst [vmem:[#allocation157_spill] sm:$0xff] %v17306_v60  ;;  %v17308_v13 = vpop.f32.mrf.mxu1  ;;  %vm21189_vm5 = vmmov %vm21103_vm0 }
 0x587   : > { %21160 = vst [vmem:[#allocation158_spill] sm:$0xff] %v17308_v13  ;;  %v17310_v6 = vpop.f32.mrf.mxu0 }
 0x588   : > { %21161 = vst [vmem:[#allocation159_spill] sm:$0xff] %v17310_v6  ;;  %v17314_v44 = vpop.f32.mrf.mxu1 }
 0x589   : > { %v17317_v36 = vpop.f32.mrf.mxu0 }
 0x58a   : > { %12608 = vmatmul.mubr.msk.bf16.gmra.mxu0 %vm21162_vm1, %v12922_v14  ;;  %21165 = vst [vmem:[#allocation160_spill] sm:$0xff] %v17317_v36  ;;  %v17320_v60 = vpop.f32.mrf.mxu1  ;;  %v12926_v14 = vld [vmem:[#allocation2 + $0xb8] sm:$0xff]   ;;  %vm21195_vm1 = vmmov %vm21103_vm0 }
 0x58b   : > { %12611 = vmatprep.mubr.msk.bf16.mxu0 %vm21163_vm7, %v12923_v62  ;;  %v17322_v22 = vpop.f32.mrf.mxu0  ;;  %vm21196_vm7 = vmmov %vm21103_vm0 }
 0x58c   : > { %21167 = vst [vmem:[#allocation161_spill] sm:$0xff] %v17322_v22  ;;  %v17324_v13 = vpop.f32.mrf.mxu1 }
 0x58d   : > { %12410 = vmatmul.mubr.msk.bf16.gmra.mxu1 %vm21164_vm3, %v12924_v4  ;;  %v17326_v6 = vpop.f32.mrf.mxu0  ;;  %v12928_v4 = vld [vmem:[#allocation2 + $0xa8] sm:$0xff]   ;;  %vm21198_vm3 = vmmov %vm21103_vm0 }
 0x58e   : > { %12413 = vmatprep.mubr.msk.bf16.mxu1 %vm21166_vm14, %v12925_v8  ;;  %21168 = vst [vmem:[#allocation162_spill] sm:$0xff] %v17326_v6  ;;  %v17328_v62 = vpop.f32.mrf.mxu1  ;;  %v12929_v8 = vld [vmem:[#allocation2 + $0xb0] sm:$0xff]   ;;  %vm21200_vm14 = vmmov %vm21103_vm0 }
 0x58f   : > { %v17330_v27 = vpop.f32.mrf.mxu0 }
 0x590   : > { %21169 = vst [vmem:[#allocation163_spill] sm:$0xff] %v17330_v27  ;;  %v17334_v36 = vpop.f32.mrf.mxu1 }
 0x591   : > { %v17337_v22 = vpop.f32.mrf.mxu0 }
 0x592   : > { %12612 = vmatmul.mubr.msk.bf16.gmra.mxu0 %vm21170_vm8, %v12926_v14  ;;  %21173 = vst [vmem:[#allocation164_spill] sm:$0xff] %v17337_v22  ;;  %v17340_v6 = vpop.f32.mrf.mxu1  ;;  %v12930_v14 = vld [vmem:[#allocation2 + $0xc8] sm:$0xff]   ;;  %vm21207_vm8 = vmmov %vm21103_vm0 }
 0x593   : > { %12615 = vmatprep.mubr.msk.bf16.mxu0 %vm21171_vm11, %v12927_v48  ;;  %v17342_v31 = vpop.f32.mrf.mxu0  ;;  %vm21208_vm11 = vmmov %vm21103_vm0 }
 0x594   : > { %21175 = vst [vmem:[#allocation165_spill] sm:$0xff] %v17342_v31  ;;  %v17344_v47 = vpop.f32.mrf.mxu1 }
 0x595   : > { %12414 = vmatmul.mubr.msk.bf16.gmra.mxu1 %vm21172_vm13, %v12928_v4  ;;  %v17346_v27 = vpop.f32.mrf.mxu0  ;;  %v12932_v4 = vld [vmem:[#allocation2 + $0xb8] sm:$0xff]   ;;  %vm21210_vm13 = vmmov %vm21103_vm0 }
 0x596   : > { %12417 = vmatprep.mubr.msk.bf16.mxu1 %vm21174_vm12, %v12929_v8  ;;  %21176 = vst [vmem:[#allocation166_spill] sm:$0xff] %v17346_v27  ;;  %v17348_v48 = vpop.f32.mrf.mxu1  ;;  %v12933_v8 = vld [vmem:[#allocation2 + $0xc0] sm:$0xff]   ;;  %vm21212_vm12 = vmmov %vm21103_vm0 }
 0x597   : > { %v17350_v16 = vpop.f32.mrf.mxu0 }
 0x598   : > { %21177 = vst [vmem:[#allocation167_spill] sm:$0xff] %v17350_v16  ;;  %v17354_v22 = vpop.f32.mrf.mxu1 }
 0x599   : > { %v17357_v31 = vpop.f32.mrf.mxu0 }
 0x59a   : > { %12616 = vmatmul.mubr.msk.bf16.gmra.mxu0 %vm21178_vm2, %v12930_v14  ;;  %21181 = vst [vmem:[#allocation168_spill] sm:$0xff] %v17357_v31  ;;  %v17360_v27 = vpop.f32.mrf.mxu1  ;;  %v12934_v14 = vld [vmem:[#allocation2 + $0xd8] sm:$0xff]   ;;  %vm21219_vm2 = vmmov %vm21103_vm0 }
 0x59b   : > { %12619 = vmatprep.mubr.msk.bf16.mxu0 %vm21179_vm10, %v12931_v3  ;;  %v17362_v61 = vpop.f32.mrf.mxu0  ;;  %vm21220_vm10 = vmmov %vm21103_vm0 }
 0x59c   : > { %21183 = vst [vmem:[#allocation169_spill] sm:$0xff] %v17362_v61  ;;  %v17364_v35 = vpop.f32.mrf.mxu1 }
 0x59d   : > { %12418 = vmatmul.mubr.msk.bf16.gmra.mxu1 %vm21180_vm15, %v12932_v4  ;;  %v17366_v16 = vpop.f32.mrf.mxu0  ;;  %v12936_v4 = vld [vmem:[#allocation2 + $0xc8] sm:$0xff]   ;;  %vm21222_vm15 = vmmov %vm21103_vm0 }
 0x59e   : > { %12421 = vmatprep.mubr.msk.bf16.mxu1 %vm21182_vm4, %v12933_v8  ;;  %21184 = vst [vmem:[#allocation170_spill] sm:$0xff] %v17366_v16  ;;  %v17368_v3 = vpop.f32.mrf.mxu1  ;;  %v12937_v8 = vld [vmem:[#allocation2 + $0xd0] sm:$0xff]   ;;  %vm21224_vm4 = vmmov %vm21103_vm0 }
 0x59f   : > { %v17370_v55 = vpop.f32.mrf.mxu0 }
 0x5a0   : > { %21185 = vst [vmem:[#allocation171_spill] sm:$0xff] %v17370_v55  ;;  %v17374_v31 = vpop.f32.mrf.mxu1 }
 0x5a1   : > { %v17377_v61 = vpop.f32.mrf.mxu0 }
 0x5a2   : > { %12620 = vmatmul.mubr.msk.bf16.gmra.mxu0 %vm21103_vm0, %v12934_v14  ;;  %21188 = vst [vmem:[#allocation172_spill] sm:$0xff] %v17377_v61  ;;  %v17380_v16 = vpop.f32.mrf.mxu1  ;;  %v12938_v14 = vld [vmem:[#allocation2 + $0xe8] sm:$0xff]  }
 0x5a3   : > { %12623 = vmatprep.mubr.msk.bf16.mxu0 %vm21186_vm9, %v12935_v7  ;;  %v17382_v46 = vpop.f32.mrf.mxu0  ;;  %vm21230_vm9 = vcmask 1046528  }
 0x5a4   : > { %21190 = vst [vmem:[#allocation173_spill] sm:$0xff] %v17382_v46  ;;  %v17384_v43 = vpop.f32.mrf.mxu1 }
 0x5a5   : > { %12422 = vmatmul.mubr.msk.bf16.gmra.mxu1 %vm21187_vm6, %v12936_v4  ;;  %21191 = vst [vmem:[#allocation174_spill] sm:$0xff] %v17384_v43  ;;  %v17386_v55 = vpop.f32.mrf.mxu0  ;;  %v12940_v4 = vld [vmem:[#allocation2 + $0xd8] sm:$0xff]   ;;  %vm21231_vm6 = vmmov %vm21103_vm0 }
 0x5a6   : > { %12425 = vmatprep.mubr.msk.bf16.mxu1 %vm21189_vm5, %v12937_v8  ;;  %21192 = vst [vmem:[#allocation175_spill] sm:$0xff] %v17386_v55  ;;  %v17388_v7 = vpop.f32.mrf.mxu1  ;;  %v12941_v8 = vld [vmem:[#allocation2 + $0xe0] sm:$0xff]   ;;  %v13108_v43 = vld [vmem:[#allocation2 + $0x18] sm:$0xff]   ;;  %vm21233_vm5 = vmmov %vm21103_vm0 }
 0x5a7   : > { %21193 = vst [vmem:[#allocation176_spill] sm:$0xff] %v17388_v7  ;;  %v17390_v56 = vpop.f32.mrf.mxu0  ;;  %v13107_v7 = vld [vmem:[#allocation2 + $0x14] sm:$0xf] }
 0x5a8   : > { %21194 = vst [vmem:[#allocation177_spill] sm:$0xff] %v17390_v56  ;;  %v17394_v61 = vpop.f32.mrf.mxu1 }
 0x5a9   : > { %21197 = vst [vmem:[#allocation178_spill] sm:$0xff] %v17394_v61  ;;  %v17397_v46 = vpop.f32.mrf.mxu0 }
 0x5aa   : > { %12624 = vmatmul.mubr.msk.bf16.gmra.mxu0 %vm21195_vm1, %v12938_v14  ;;  %21199 = vst [vmem:[#allocation179_spill] sm:$0xff] %v17397_v46  ;;  %v17400_v55 = vpop.f32.mrf.mxu1  ;;  %v12942_v14 = vld [vmem:[#allocation2 + $0xf8] sm:$0xff]   ;;  %vm21235_vm1 = vmmov %vm21230_vm9 }
 0x5ab   : > { %12627 = vmatprep.mubr.msk.bf16.mxu0 %vm21196_vm7, %v12939_v32  ;;  %21201 = vst [vmem:[#allocation180_spill] sm:$0xff] %v17400_v55  ;;  %v17402_v1 = vpop.f32.mrf.mxu0  ;;  %v12947_v55 = vld [vmem:[#allocation2 + $0x110] sm:$0xff]   ;;  %vm21236_vm7 = vmmov %vm21103_vm0 }
 0x5ac   : > { %21202 = vst [vmem:[#allocation181_spill] sm:$0xff] %v17402_v1  ;;  %v17404_v58 = vpop.f32.mrf.mxu1 }
 0x5ad   : > { %12426 = vmatmul.mubr.msk.bf16.gmra.mxu1 %vm21198_vm3, %v12940_v4  ;;  %21203 = vst [vmem:[#allocation182_spill] sm:$0xff] %v17404_v58  ;;  %v17406_v56 = vpop.f32.mrf.mxu0  ;;  %v12944_v4 = vld [vmem:[#allocation2 + $0xe8] sm:$0xff]   ;;  %vm21241_vm3 = vmmov %vm21235_vm1 }
 0x5ae   : > { %12429 = vmatprep.mubr.msk.bf16.mxu1 %vm21200_vm14, %v12941_v8  ;;  %21204 = vst [vmem:[#allocation183_spill] sm:$0xff] %v17406_v56  ;;  %v17408_v32 = vpop.f32.mrf.mxu1  ;;  %v12945_v8 = vld [vmem:[#allocation2 + $0xf0] sm:$0xff]   ;;  %vm21244_vm14 = vmmov %vm21103_vm0 }
 0x5af   : > { %21205 = vst [vmem:[#allocation184_spill] sm:$0xff] %v17408_v32  ;;  %v17410_v50 = vpop.f32.mrf.mxu0 }
 0x5b0   : > { %21206 = vst [vmem:[#allocation185_spill] sm:$0xff] %v17410_v50  ;;  %v17414_v46 = vpop.f32.mrf.mxu1 }
 0x5b1   : > { %21209 = vst [vmem:[#allocation186_spill] sm:$0xff] %v17414_v46  ;;  %v17417_v1 = vpop.f32.mrf.mxu0 }
 0x5b2   : > { %12628 = vmatmul.mubr.msk.bf16.gmra.mxu0 %vm21207_vm8, %v12942_v14  ;;  %21211 = vst [vmem:[#allocation187_spill] sm:$0xff] %v17417_v1  ;;  %v17420_v56 = vpop.f32.mrf.mxu1  ;;  %v12946_v14 = vld [vmem:[#allocation2 + $0x108] sm:$0xff]   ;;  %v6858_v1 = vld [vmem:[#allocation2 + $0x10] sm:$0xe]  ;;  %vm21245_vm8 = vmmov %vm21235_vm1 }
 0x5b3   : > { %12631 = vmatprep.mubr.msk.bf16.mxu0 %vm21208_vm11, %v12943_v57  ;;  %21213 = vst [vmem:[#allocation188_spill] sm:$0xff] %v17420_v56  ;;  %v17422_v58 = vpop.f32.mrf.mxu0  ;;  %v9001_v57 = vld [vmem:[#allocation2 + $0x20] sm:$0xe]  ;;  %vm21246_vm11 = vcmask 1041408  }
 0x5b4   : > { %21214 = vst [vmem:[#allocation189_spill] sm:$0xff] %v17422_v58  ;;  %v17424_v32 = vpop.f32.mrf.mxu1 }
 0x5b5   : > { %12430 = vmatmul.mubr.msk.bf16.gmra.mxu1 %vm21210_vm13, %v12944_v4  ;;  %21215 = vst [vmem:[#allocation190_spill] sm:$0xff] %v17424_v32  ;;  %v17426_v50 = vpop.f32.mrf.mxu0  ;;  %v12948_v4 = vld [vmem:[#allocation2 + $0xf8] sm:$0xff]   ;;  %vm21247_vm13 = vmmov %vm21246_vm11 }
 0x5b6   : > { %12433 = vmatprep.mubr.msk.bf16.mxu1 %vm21212_vm12, %v12945_v8  ;;  %21216 = vst [vmem:[#allocation191_spill] sm:$0xff] %v17426_v50  ;;  %v17428_v61 = vpop.f32.mrf.mxu1  ;;  %v12949_v8 = vld [vmem:[#allocation2 + $0x100] sm:$0xff]   ;;  %vm21248_vm12 = vmmov %vm21103_vm0 }
 0x5b7   : > { %21217 = vst [vmem:[#allocation192_spill] sm:$0xff] %v17428_v61  ;;  %v17430_v46 = vpop.f32.mrf.mxu0  ;;  %v13105_v50 = vld [vmem:[#allocation2 + $0x24] sm:$0xf] }
 0x5b8   : > { %21218 = vst [vmem:[#allocation193_spill] sm:$0xff] %v17430_v46  ;;  %v17434_v56 = vpop.f32.mrf.mxu1  ;;  %v11549_v32 = vcombine.low %v9001_v57, %v13105_v50 }
 0x5b9   : > { %21221 = vst [vmem:[#allocation194_spill] sm:$0xff] %v17434_v56  ;;  %v17437_v58 = vpop.f32.mrf.mxu0  ;;  %v12950_v56 = vld [vmem:[#allocation2 + $0x118] sm:$0xff]  }
 0x5ba   : > { %12632 = vmatmul.mubr.msk.bf16.gmra.mxu0 %vm21219_vm2, %v12946_v14  ;;  %21223 = vst [vmem:[#allocation195_spill] sm:$0xff] %v17437_v58  ;;  %v17440_v61 = vpop.f32.mrf.mxu1  ;;  %v13106_v14 = vld [vmem:[#allocation2 + $0x28] sm:$0xff]   ;;  %v6865_v58 = vrot.slane %v13108_v43, 1  ;;  %vm21249_vm2 = vmmov %vm21235_vm1 }
 0x5bb   : > { %12635 = vmatprep.mubr.msk.bf16.mxu0 %vm21220_vm10, %v12947_v55  ;;  %v17442_v46 = vpop.f32.mrf.mxu0  ;;  %v9008_v24 = vrot.slane %v13106_v14, 1  ;;  %v11384_v55 = vcombine.low %v6858_v1, %v13107_v7  ;;  %vm21252_vm10 = vmmov %vm21103_vm0 }
 0x5bc   : > { %21225 = vst [vmem:[#allocation196_spill] sm:$0xff] %v17442_v46  ;;  %v17444_v19 = vpop.f32.mrf.mxu1  ;;  %v13111_v46 = vld [vmem:[#allocation2 + $0x20] sm:$0xff]  }
 0x5bd   : > { %12434 = vmatmul.mubr.msk.bf16.gmra.mxu1 %vm21222_vm15, %v12948_v4  ;;  %21226 = vst [vmem:[#allocation197_spill] sm:$0xff] %v17444_v19  ;;  %v17446_v12 = vpop.f32.mrf.mxu0  ;;  %v9007_v4 = vrot.slane %v11549_v32, 1  ;;  %v6864_v14 = vrot.slane %v11384_v55, 1  ;;  %v13109_v32 = vld [vmem:[#allocation2 + $0x30] sm:$0xff]   ;;  %vm21253_vm15 = vmmov %vm21235_vm1 }
 0x5be   : > { %12437 = vmatprep.mubr.msk.bf16.mxu1 %vm21224_vm4, %v12949_v8  ;;  %21227 = vst [vmem:[#allocation198_spill] sm:$0xff] %v17446_v12  ;;  %v17448_v63 = vpop.f32.mrf.mxu1  ;;  %v12954_v8 = vld [vmem:[#allocation2 + $0x108] sm:$0xff]   ;;  %vm21254_vm4 = vmmov %vm21103_vm0 }
 0x5bf   : > { %21228 = vst [vmem:[#allocation199_spill] sm:$0xff] %v17448_v63  ;;  %v17450_v50 = vpop.f32.mrf.mxu0  ;;  %v9009_v57 = vsel %vm21230_vm9, %v9007_v4, %v9008_v24  ;;  %v6866_v43 = vsel %vm21235_vm1, %v6864_v14, %v6865_v58  ;;  %v13110_v4 = vld [vmem:[#allocation2 + $0x38] sm:$0xff]   ;;  %vm21262_vm9 = vmmov %vm21254_vm4 }
 0x5c0   : > { %21229 = vst [vmem:[#allocation200_spill] sm:$0xff] %v17450_v50  ;;  %v17455_v1 = vpop.f32.mrf.mxu1  ;;  %v9010_v50 = vrot.slane %v13109_v32, 1  ;;  %v9012_v55 = vrot.slane %v13110_v4, 1 }
 0x5c1   : > { %21232 = vst [vmem:[#allocation201_spill] sm:$0xff] %v17455_v1  ;;  %v17458_v7 = vpop.f32.mrf.mxu0 }
 0x5c2   : > { %12636 = vmatmul.mubr.msk.bf16.gmra.mxu0 %vm21103_vm0, %v12950_v56  ;;  %21234 = vst [vmem:[#allocation202_spill] sm:$0xff] %v17458_v7  ;;  %v17462_v12 = vpop.f32.mrf.mxu1  ;;  %v9011_v14 = vsel %vm21241_vm3, %v9008_v24, %v9010_v50  ;;  %vm21259_vm0 = vmmov %vm21235_vm1 }
 0x5c3   : > { %12707 = vmatprep.mubr.msk.bf16.mxu0 %vm21231_vm6, %v9009_v57  ;;  %21237 = vst [vmem:[#allocation203_spill] sm:$0xff] %v17462_v12  ;;  %v17464_v56 = vpop.f32.mrf.mxu0  ;;  %v6867_v57 = vrot.slane %v13111_v46, 1  ;;  %v9013_v46 = vsel %vm21245_vm8, %v9010_v50, %v9012_v55  ;;  %vm21263_vm6 = vmmov %vm21259_vm0 }
 0x5c4   : > { %21238 = vst [vmem:[#allocation204_spill] sm:$0xff] %v17464_v56  ;;  %v17466_v63 = vpop.f32.mrf.mxu1  ;;  %vm21265_vm1 = vmmov %vm21259_vm0 }
 0x5c5   : > { %12438 = vmatmul.mubr.msk.bf16.gmra.mxu1 %vm21233_vm5, %v12954_v8  ;;  %21239 = vst [vmem:[#allocation205_spill] sm:$0xff] %v17466_v63  ;;  %v17468_v1 = vpop.f32.mrf.mxu0  ;;  %v13112_v8 = vld [vmem:[#allocation2 + $0x28] sm:$0xff]   ;;  %v6868_v24 = vsel %vm21249_vm2, %v6865_v58, %v6867_v57  ;;  %v13115_v58 = vld [vmem:[#allocation2 + $0x30] sm:$0xff]   ;;  %vm21264_vm5 = vmmov %vm21254_vm4 }
 0x5c6   : > { %12509 = vmatprep.mubr.msk.bf16.mxu1 %vm21236_vm7, %v6866_v43  ;;  %21240 = vst [vmem:[#allocation206_spill] sm:$0xff] %v17468_v1  ;;  %v6869_v7 = vrot.slane %v13112_v8, 1  ;;  %v11482_v43 = vld [vmem:[%s19938_s3 + $0xe] sm:$0x3]  ;;  %v17474_v32 = vpop.f32.mrf.mxu1  ;;  %v6871_v63 = vrot.slane %v13115_v58, 1  ;;  %vm21268_vm7 = vmmov %vm21254_vm4 }
 0x5c7   : > { %21242 = vst [vmem:[#allocation207_spill] sm:$0xff] %v17474_v32  ;;  %v17476_v12 = vpop.f32.mrf.mxu0  ;;  %12804 = vmatprep.subr.msk.bf16.mxu1 %vm21246_vm11, %v11482_v43  ;;  %v8646_v4 = vsel %vm21247_vm13, %v11482_v43, 0  ;;  %vm21269_vm3 = vmmov %vm21259_vm0 }
 0x5c8   : > { %21243 = vst [vmem:[#allocation208_spill] sm:$0xff] %v17476_v12  ;;  %v17484_v8 = vpop.f32.mrf.mxu1  ;;  %v6870_v12 = vsel %vm21253_vm15, %v6867_v57, %v6869_v7  ;;  %vm21275_vm8 = vmmov %vm21259_vm0 }
 0x5c9   : > { %21250 = vst [vmem:[#allocation209_spill] sm:$0xff] %v17484_v8  ;;  %v17486_v1 = vpop.f32.mrf.mxu0  ;;  %vm21278_vm11 = vmmov %vm21254_vm4 }
 0x5ca   : > { %12708 = vmatmul.mubr.msk.bf16.vlgmr.msra.gmra.mxu0 %vm21244_vm14, %v9011_v14  ;;  %21251 = vst [vmem:[#allocation210_spill] sm:$0xff] %v17486_v1  ;;  %v13113_v14 = vld [vmem:[#allocation2 + $0x40] sm:$0xff]   ;;  %v17491_v56 = vpop.f32.mrf.mxu1  ;;  %vm21270_vm14 = vmmov %vm21254_vm4 }
 0x5cb   : > { %12711 = vmatprep.mubr.msk.bf16.mxu0 %vm21248_vm12, %v9013_v46  ;;  %v9014_v50 = vrot.slane %v13113_v14, 1  ;;  %21255 = vst [vmem:[#allocation211_spill] sm:$0xff] %v17491_v56  ;;  %v17493_v43 = vpop.f32.mrf.mxu0  ;;  %v13114_v46 = vld [vmem:[#allocation2 + $0x48] sm:$0xff]   ;;  %vm21279_vm13 = vmmov %vm21259_vm0 }
 0x5cc   : > { %21256 = vst [vmem:[#allocation212_spill] sm:$0xff] %v17493_v43  ;;  %v9016_v32 = vrot.slane %v13114_v46, 1  ;;  %v17495_v8 = vpop.f32.mrf.mxu1  ;;  %v6872_v46 = vsel %vm21265_vm1, %v6869_v7, %v6871_v63  ;;  %vm21280_vm12 = vmmov %vm21254_vm4 }
 0x5cd   : > { %12510 = vmatmul.mubr.msk.bf16.vlgmr.msra.gmra.mxu1 %vm21252_vm10, %v6868_v24  ;;  %21257 = vst [vmem:[#allocation213_spill] sm:$0xff] %v17495_v8  ;;  %v17497_v1 = vpop.f32.mrf.mxu0  ;;  %v13116_v24 = vld [vmem:[#allocation2 + $0x38] sm:$0xff]   ;;  %v9015_v57 = vsel %vm21259_vm0, %v9012_v55, %v9014_v50  ;;  %vm21281_vm2 = vmmov %vm21259_vm0 }
 0x5ce   : > { %12513 = vmatprep.mubr.msk.bf16.mxu1 %vm21254_vm4, %v6870_v12  ;;  %12640 = vmatpush3.bf16.msra.mxu1 %v8646_v4  ;;  %21258 = vst [vmem:[#allocation214_spill] sm:$0xff] %v17497_v1  ;;  %v6873_v19 = vrot.slane %v13116_v24, 1  ;;  %v17500_v12 = vpop.f32.mrf.mxu1  ;;  %v9017_v4 = vsel %vm21263_vm6, %v9014_v50, %v9016_v32  ;;  %v13117_v24 = vld [vmem:[#allocation2 + $0x50] sm:$0xff]   ;;  %v13118_v50 = vld [vmem:[#allocation2 + $0x58] sm:$0xff]   ;;  %vm21284_vm10 = vmmov %vm21254_vm4 }
 0x5cf   : > { %21260 = vst [vmem:[#allocation215_spill] sm:$0xff] %v17500_v12  ;;  %v17502_v14 = vpop.f32.mrf.mxu0  ;;  %v13119_v12 = vld [vmem:[#allocation2 + $0x40] sm:$0xff]   ;;  %vm21285_vm15 = vmmov %vm21259_vm0 }
 0x5d0   : > { %21261 = vst [vmem:[#allocation216_spill] sm:$0xff] %v17502_v14  ;;  %v17508_v58 = vpop.f32.mrf.mxu1  ;;  %v6874_v55 = vsel %vm21269_vm3, %v6871_v63, %v6873_v19  ;;  %v9018_v14 = vrot.slane %v13117_v24, 1  ;;  %v6875_v7 = vrot.slane %v13119_v12, 1  ;;  %vm21291_vm6 = vmmov %vm21259_vm0 }
 0x5d1   : > { %21266 = vst [vmem:[#allocation217_spill] sm:$0xff] %v17508_v58  ;;  %v17510_v43 = vpop.f32.mrf.mxu0  ;;  %vm21293_vm1 = vmmov %vm21259_vm0 }
 0x5d2   : > { %12712 = vmatmul.mubr.msk.bf16.gmra.mxu0 %vm21262_vm9, %v9015_v57  ;;  %21267 = vst [vmem:[#allocation218_spill] sm:$0xff] %v17510_v43  ;;  %v17515_v1 = vpop.f32.mrf.mxu1  ;;  %v13120_v43 = vld [vmem:[#allocation2 + $0x48] sm:$0xff]   ;;  %v9019_v63 = vsel %vm21275_vm8, %v9016_v32, %v9018_v14  ;;  %v6876_v12 = vsel %vm21281_vm2, %v6873_v19, %v6875_v7  ;;  %vm21290_vm9 = vmmov %vm21254_vm4 }
 0x5d3   : > { %12715 = vmatprep.mubr.msk.bf16.mxu0 %vm21264_vm5, %v9017_v4  ;;  %21271 = vst [vmem:[#allocation219_spill] sm:$0xff] %v17515_v1  ;;  %v17517_v57 = vpop.f32.mrf.mxu0  ;;  %v9020_v4 = vrot.slane %v13118_v50, 1  ;;  %vm21292_vm5 = vmmov %vm21254_vm4 }
 0x5d4   : > { %21272 = vst [vmem:[#allocation220_spill] sm:$0xff] %v17517_v57  ;;  %v17519_v8 = vpop.f32.mrf.mxu1  ;;  %vm21297_vm3 = vmmov %vm21259_vm0 }
 0x5d5   : > { %12514 = vmatmul.mubr.msk.bf16.gmra.mxu1 %vm21268_vm7, %v6872_v46  ;;  %21273 = vst [vmem:[#allocation221_spill] sm:$0xff] %v17519_v8  ;;  %v17521_v58 = vpop.f32.mrf.mxu0  ;;  %v6877_v46 = vrot.slane %v13120_v43, 1  ;;  %v9021_v24 = vsel %vm21279_vm13, %v9018_v14, %v9020_v4  ;;  %v13121_v43 = vld [vmem:[#allocation2 + $0x60] sm:$0xff]   ;;  %v13122_v14 = vld [vmem:[#allocation2 + $0x68] sm:$0xff]   ;;  %vm21296_vm7 = vmmov %vm21254_vm4 }
 0x5d6   : > { %12517 = vmatprep.mubr.msk.bf16.mxu1 %vm21270_vm14, %v6874_v55  ;;  %21274 = vst [vmem:[#allocation222_spill] sm:$0xff] %v17521_v58  ;;  %v17524_v56 = vpop.f32.mrf.mxu1  ;;  %vm21298_vm14 = vmmov %vm21254_vm4 }
 0x5d7   : > { %21276 = vst [vmem:[#allocation223_spill] sm:$0xff] %v17524_v56  ;;  %v17526_v55 = vpop.f32.mrf.mxu0  ;;  %v6878_v32 = vsel %vm21285_vm15, %v6875_v7, %v6877_v46  ;;  %v13123_v56 = vld [vmem:[#allocation2 + $0x50] sm:$0xff]   ;;  %vm21301_vm8 = vmmov %vm21259_vm0 }
 0x5d8   : > { %21277 = vst [vmem:[#allocation224_spill] sm:$0xff] %v17526_v55  ;;  %v17532_v50 = vpop.f32.mrf.mxu1  ;;  %v9022_v55 = vrot.slane %v13121_v43, 1  ;;  %v6879_v19 = vrot.slane %v13123_v56, 1  ;;  %vm21304_vm13 = vmmov %vm21259_vm0 }
 0x5d9   : > { %21282 = vst [vmem:[#allocation225_spill] sm:$0xff] %v17532_v50  ;;  %v17534_v57 = vpop.f32.mrf.mxu0  ;;  %vm21307_vm2 = vmmov %vm21259_vm0 }
 0x5da   : > { %12716 = vmatmul.mubr.msk.bf16.gmra.mxu0 %vm21278_vm11, %v9019_v63  ;;  %21283 = vst [vmem:[#allocation226_spill] sm:$0xff] %v17534_v57  ;;  %v17539_v58 = vpop.f32.mrf.mxu1  ;;  %v13124_v57 = vld [vmem:[#allocation2 + $0x58] sm:$0xff]   ;;  %v9023_v7 = vsel %vm21259_vm0, %v9020_v4, %v9022_v55  ;;  %v6880_v56 = vsel %vm21293_vm1, %v6877_v46, %v6879_v19  ;;  %v13125_v4 = vld [vmem:[#allocation2 + $0x70] sm:$0xff]   ;;  %vm21303_vm11 = vmmov %vm21254_vm4 }
 0x5db   : > { %12719 = vmatprep.mubr.msk.bf16.mxu0 %vm21280_vm12, %v9021_v24  ;;  %v17541_v63 = vpop.f32.mrf.mxu0  ;;  %v9024_v24 = vrot.slane %v13122_v14, 1  ;;  %vm21305_vm12 = vmmov %vm21254_vm4 }
 0x5dc   : > { %21286 = vst [vmem:[#allocation227_spill] sm:$0xff] %v17541_v63  ;;  %v17543_v8 = vpop.f32.mrf.mxu1  ;;  %vm21310_vm15 = vmmov %vm21254_vm4 }
 0x5dd   : > { %12518 = vmatmul.mubr.msk.bf16.gmra.mxu1 %vm21284_vm10, %v6876_v12  ;;  %v17545_v50 = vpop.f32.mrf.mxu0  ;;  %v6881_v12 = vrot.slane %v13124_v57, 1  ;;  %v9025_v43 = vsel %vm21291_vm6, %v9022_v55, %v9024_v24  ;;  %v13126_v55 = vld [vmem:[#allocation2 + $0x78] sm:$0xff]   ;;  %vm21309_vm10 = vmmov %vm21254_vm4 }
 0x5de   : > { %12521 = vmatprep.mubr.msk.bf16.mxu1 %vm21254_vm4, %v6878_v32  ;;  %21287 = vst [vmem:[#allocation228_spill] sm:$0xff] %v17545_v50  ;;  %v17548_v1 = vpop.f32.mrf.mxu1  ;;  %vm21313_vm4 = vmmov %vm21259_vm0 }
 0x5df   : > { %21288 = vst [vmem:[#allocation229_spill] sm:$0xff] %v17548_v1  ;;  %v17550_v32 = vpop.f32.mrf.mxu0  ;;  %v6882_v57 = vsel %vm21297_vm3, %v6879_v19, %v6881_v12  ;;  %vm21316_vm0 = vmmov %vm21292_vm5 }
 0x5e0   : > { %21289 = vst [vmem:[#allocation230_spill] sm:$0xff] %v17550_v32  ;;  %v9026_v32 = vrot.slane %v13125_v4, 1  ;;  %vm21318_vm6 = vmmov %vm21316_vm0 }
 0x5e1   : > { %v17558_v63 = vpop.f32.mrf.mxu0  ;;  %vm21328_vm3 = vmmov %vm21316_vm0 }
 0x5e2   : > { %12720 = vmatmul.mubr.msk.bf16.gmra.mxu0 %vm21290_vm9, %v9023_v7  ;;  %v17556_v14 = vpop.f32.mrf.mxu1  ;;  %21295 = vst [vmem:[#allocation232_spill] sm:$0xff] %v17558_v63  ;;  %v9027_v63 = vsel %vm21301_vm8, %v9024_v24, %v9026_v32  ;;  %v13127_v24 = vld [vmem:[#allocation2 + $0x80] sm:$0xff]   ;;  %vm21317_vm9 = vmmov %vm21293_vm1 }
 0x5e3   : > { %12723 = vmatprep.mubr.msk.bf16.mxu0 %vm21292_vm5, %v9025_v43  ;;  %21294 = vst [vmem:[#allocation231_spill] sm:$0xff] %v17556_v14  ;;  %v17565_v7 = vpop.f32.mrf.mxu0  ;;  %v9028_v43 = vrot.slane %v13126_v55, 1  ;;  %vm21321_vm5 = vmmov %vm21316_vm0 }
 0x5e4   : > { %v17563_v50 = vpop.f32.mrf.mxu1  ;;  %21299 = vst [vmem:[#allocation233_spill] sm:$0xff] %v17565_v7  ;;  %vm21322_vm1 = vmmov %vm21316_vm0 }
 0x5e5   : > { %12522 = vmatmul.mubr.msk.bf16.gmra.mxu1 %vm21296_vm7, %v6880_v56  ;;  %v17569_v46 = vpop.f32.mrf.mxu0  ;;  %v9029_v19 = vsel %vm21304_vm13, %v9026_v32, %v9028_v43  ;;  %vm21325_vm7 = vmmov %vm21307_vm2 }
 0x5e6   : > { %12525 = vmatprep.mubr.msk.bf16.mxu1 %vm21298_vm14, %v6882_v57  ;;  %v17567_v1 = vpop.f32.mrf.mxu1  ;;  %21300 = vst [vmem:[#allocation234_spill] sm:$0xff] %v17569_v46  ;;  %v21306_v57 = vrot.slane %v16599_v20, 1  ;;  %vm21329_vm14 = vmmov %vm21307_vm2 }
 0x5e7   : > { %vm21330_vm8 = vmmov %vm21316_vm0 }
 0x5e8   : > { %v17572_v14 = vpop.f32.mrf.mxu1  ;;  %v6884_v4 = vsel %vm21307_vm2, %v6881_v12, %v21306_v57  ;;  %vm21334_vm13 = vmmov %vm21316_vm0 }
 0x5ea   : > { %v17574_v56 = vpop.f32.mrf.mxu0  ;;  %12724 = vmatmul.mubr.msk.bf16.gmra.mxu0 %vm21303_vm11, %v9027_v63  ;;  %vm21333_vm11 = vmmov %vm21316_vm0 }
 0x5eb   : > { %21302 = vst [vmem:[#allocation235_spill] sm:$0xff] %v17574_v56  ;;  %12727 = vmatprep.mubr.msk.bf16.mxu0 %vm21305_vm12, %v9029_v19  ;;  %v9030_v56 = vrot.slane %v13127_v24, 1  ;;  %v13128_v19 = vld [vmem:[#allocation2 + $0x88] sm:$0xff]   ;;  %vm21337_vm12 = vmmov %vm21307_vm2 }
 0x5ec   : > { %v17584_v7 = vpop.f32.mrf.mxu0  ;;  %v9032_v46 = vrot.slane %v13128_v19, 1  ;;  %vm21340_vm2 = vmmov %vm21316_vm0 }
 0x5ed   : > { %v17582_v55 = vpop.f32.mrf.mxu1  ;;  %21308 = vst [vmem:[#allocation236_spill] sm:$0xff] %v17584_v7  ;;  %12526 = vmatmul.mubr.msk.bf16.gmra.mxu1 %vm21309_vm10, %v6884_v4  ;;  %v9031_v57 = vsel %vm21313_vm4, %v9028_v43, %v9030_v56  ;;  %v13129_v43 = vld [vmem:[#allocation2 + $0x90] sm:$0xff]   ;;  %vm21341_vm10 = vmmov %vm21313_vm4 }
 0x5ee   : > { %12529 = vmatprep.mubr.msk.bf16.mxu1 %vm21310_vm15, %v16673_v33  ;;  %v17591_v32 = vpop.f32.mrf.mxu0  ;;  %v9033_v33 = vsel %vm21317_vm9, %v9030_v56, %v9032_v46  ;;  %v9034_v19 = vrot.slane %v13129_v43, 1  ;;  %vm21342_vm15 = vmmov %vm21316_vm0 }
 0x5ef   : > { %v17589_v63 = vpop.f32.mrf.mxu1  ;;  %21311 = vst [vmem:[#allocation237_spill] sm:$0xff] %v17591_v32  ;;  %vm21345_vm4 = vmmov %vm21316_vm0 }
 0x5f0   : > { %v17595_v12 = vpop.f32.mrf.mxu0  ;;  %vm21348_vm9 = vmmov %vm21325_vm7 }
 0x5f1   : > { %v17593_v20 = vpop.f32.mrf.mxu1  ;;  %21312 = vst [vmem:[#allocation238_spill] sm:$0xff] %v17595_v12 }
 0x5f2   : > { %v17600_v4 = vpop.f32.mrf.mxu0  ;;  %12728 = vmatmul.mubr.msk.bf16.gmra.mxu0 %vm21316_vm0, %v9031_v57  ;;  %v13130_v57 = vld [vmem:[#allocation2 + $0x98] sm:$0xff]  }
 0x5f3   : > { %v17598_v7 = vpop.f32.mrf.mxu1  ;;  %21315 = vst [vmem:[#allocation240_spill] sm:$0xff] %v17600_v4  ;;  %12731 = vmatprep.mubr.msk.bf16.mxu0 %vm21318_vm6, %v9033_v33  ;;  %v9036_v56 = vrot.slane %v13130_v57, 1  ;;  %vm21350_vm6 = vmmov %vm21316_vm0 }
 0x5f4   : > { %21314 = vst [vmem:[#allocation239_spill] sm:$0xff] %v17598_v7  ;;  %v17607_v32 = vpop.f32.mrf.mxu0 }
 0x5f5   : > { %v17605_v24 = vpop.f32.mrf.mxu1  ;;  %21320 = vst [vmem:[#allocation242_spill] sm:$0xff] %v17607_v32  ;;  %12530 = vmatmul.mubr.msk.bf16.gmra.mxu1 %vm21321_vm5, %v16689_v15  ;;  %v9035_v32 = vsel %vm21325_vm7, %v9032_v46, %v9034_v19  ;;  %v13131_v46 = vld [vmem:[#allocation2 + $0xa0] sm:$0xff]   ;;  %vm21351_vm5 = vmmov %vm21325_vm7 }
 0x5f6   : > { %21319 = vst [vmem:[#allocation241_spill] sm:$0xff] %v17605_v24  ;;  %12533 = vmatprep.mubr.msk.bf16.mxu1 %vm21322_vm1, %v16692_v38  ;;  %v17615_v4 = vpop.f32.mrf.mxu0  ;;  %v9037_v38 = vsel %vm21329_vm14, %v9034_v19, %v9036_v56  ;;  %v9038_v57 = vrot.slane %v13131_v46, 1  ;;  %vm21352_vm1 = vmmov %vm21316_vm0 }
 0x5f7   : > { %v17613_v12 = vpop.f32.mrf.mxu1  ;;  %21323 = vst [vmem:[#allocation243_spill] sm:$0xff] %v17615_v4  ;;  %vm21353_vm7 = vmmov %vm21316_vm0 }
 0x5f8   : > { %v17619_v33 = vpop.f32.mrf.mxu0  ;;  %vm21358_vm14 = vmmov %vm21351_vm5 }
 0x5f9   : > { %v17617_v7 = vpop.f32.mrf.mxu1  ;;  %21324 = vst [vmem:[#allocation244_spill] sm:$0xff] %v17619_v33 }
 0x5fa   : > { %v17624_v15 = vpop.f32.mrf.mxu0  ;;  %12732 = vmatmul.mubr.msk.bf16.gmra.mxu0 %vm21328_vm3, %v9035_v32  ;;  %v13132_v32 = vld [vmem:[#allocation2 + $0xa8] sm:$0xff]   ;;  %vm21355_vm3 = vmmov %vm21316_vm0 }
 0x5fb   : > { %v17622_v24 = vpop.f32.mrf.mxu1  ;;  %21327 = vst [vmem:[#allocation246_spill] sm:$0xff] %v17624_v15  ;;  %12735 = vmatprep.mubr.msk.bf16.mxu0 %vm21330_vm8, %v9037_v38  ;;  %v9040_v19 = vrot.slane %v13132_v32, 1  ;;  %vm21360_vm8 = vmmov %vm21316_vm0 }
 0x5fc   : > { %21326 = vst [vmem:[#allocation245_spill] sm:$0xff] %v17622_v24  ;;  %v17631_v4 = vpop.f32.mrf.mxu0 }
 0x5fd   : > { %v17629_v43 = vpop.f32.mrf.mxu1  ;;  %21332 = vst [vmem:[#allocation248_spill] sm:$0xff] %v17631_v4  ;;  %12534 = vmatmul.mubr.msk.bf16.gmra.mxu1 %vm21333_vm11, %v16701_v21  ;;  %v9039_v4 = vsel %vm21337_vm12, %v9036_v56, %v9038_v57  ;;  %v13133_v56 = vld [vmem:[#allocation2 + $0xb0] sm:$0xff]   ;;  %vm21361_vm11 = vmmov %vm21351_vm5 }
 0x5fe   : > { %21331 = vst [vmem:[#allocation247_spill] sm:$0xff] %v17629_v43  ;;  %12537 = vmatprep.mubr.msk.bf16.mxu1 %vm21334_vm13, %v16705_v41  ;;  %v17639_v15 = vpop.f32.mrf.mxu0  ;;  %v9041_v41 = vsel %vm21341_vm10, %v9038_v57, %v9040_v19  ;;  %v9042_v32 = vrot.slane %v13133_v56, 1  ;;  %vm21362_vm13 = vmmov %vm21316_vm0 }
 0x5ff   : > { %v17637_v33 = vpop.f32.mrf.mxu1  ;;  %21335 = vst [vmem:[#allocation249_spill] sm:$0xff] %v17639_v15  ;;  %vm21363_vm12 = vmmov %vm21316_vm0 }
 0x600   : > { %v17643_v38 = vpop.f32.mrf.mxu0  ;;  %vm21372_vm10 = vmmov %vm21351_vm5 }
 0x601   : > { %v17641_v24 = vpop.f32.mrf.mxu1  ;;  %21336 = vst [vmem:[#allocation250_spill] sm:$0xff] %v17643_v38 }
 0x602   : > { %v17648_v21 = vpop.f32.mrf.mxu0  ;;  %12736 = vmatmul.mubr.msk.bf16.gmra.mxu0 %vm21340_vm2, %v9039_v4  ;;  %v13134_v4 = vld [vmem:[#allocation2 + $0xb8] sm:$0xff]   ;;  %vm21365_vm2 = vmmov %vm21316_vm0 }
 0x603   : > { %v17646_v43 = vpop.f32.mrf.mxu1  ;;  %21339 = vst [vmem:[#allocation252_spill] sm:$0xff] %v17648_v21  ;;  %12739 = vmatprep.mubr.msk.bf16.mxu0 %vm21342_vm15, %v9041_v41  ;;  %v9044_v57 = vrot.slane %v13134_v4, 1  ;;  %v4468_v41 = vadd.f32 %v17314_v44, %v16883_v28  ;;  %v4471_v28 = vadd.f32 %v17324_v13, %v16905_v51  ;;  %v13135_v13 = vld [vmem:[#allocation2 + $0xc0] sm:$0xff]   ;;  %vm21374_vm15 = vmmov %vm21316_vm0 }
 0x604   : > { %21338 = vst [vmem:[#allocation251_spill] sm:$0xff] %v17646_v43  ;;  %v17655_v15 = vpop.f32.mrf.mxu0 }
 0x605   : > { %v17653_v46 = vpop.f32.mrf.mxu1  ;;  %21344 = vst [vmem:[#allocation254_spill] sm:$0xff] %v17655_v15  ;;  %12538 = vmatmul.mubr.msk.bf16.gmra.mxu1 %vm21345_vm4, %v16723_v18  ;;  %v4460_v18 = vadd.f32 %v17320_v60, %v16898_v37  ;;  %v9045_v4 = vsel %vm21351_vm5, %v9042_v32, %v9044_v57  ;;  %v5176_v44 = vadd.f32 %v16871_v0, %v4468_v41  ;;  %v13136_v41 = vld [vmem:[#allocation2 + $0xc8] sm:$0xff]   ;;  %vm21375_vm4 = vmmov %vm21351_vm5 }
 0x606   : > { %21343 = vst [vmem:[#allocation253_spill] sm:$0xff] %v17653_v46  ;;  %12541 = vmatprep.mubr.msk.bf16.mxu1 %vm21316_vm0, %v16726_v59  ;;  %v17663_v21 = vpop.f32.mrf.mxu0  ;;  %v9043_v59 = vsel %vm21348_vm9, %v9040_v19, %v9042_v32  ;;  %v4463_v60 = vadd.f32 %v17328_v62, %v16912_v42  ;;  %v9046_v32 = vrot.slane %v13135_v13, 1  ;;  %v5177_v42 = vadd.f32 %v16900_v11, %v4471_v28  ;;  %vm21378_vm9 = vmmov %vm21316_vm0 }
 0x607   : > { %v17661_v38 = vpop.f32.mrf.mxu1  ;;  %21346 = vst [vmem:[#allocation255_spill] sm:$0xff] %v17663_v21  ;;  %v5174_v51 = vadd.f32 %v16886_v49, %v4460_v18  ;;  %v4487_v11 = vadd.f32 %v17344_v47, %v16945_v29  ;;  %v21366_v29 = vld [vmem:[#allocation34_spill] sm:$0xff]  ;;  %vm21385_vm5 = vmmov %vm21375_vm4 }
 0x608   : > { %v17669_v15 = vpop.f32.mrf.mxu0  ;;  %v5175_v18 = vadd.f32 %v16907_v53, %v4463_v60  ;;  %v13137_v60 = vld [vmem:[#allocation2 + $0xd0] sm:$0xff]  }
 0x609   : > { %v17667_v46 = vpop.f32.mrf.mxu1  ;;  %21347 = vst [vmem:[#allocation256_spill] sm:$0xff] %v17669_v15 }
 0x60a   : > { %v17676_v56 = vpop.f32.mrf.mxu0  ;;  %12740 = vmatmul.mubr.msk.bf16.gmra.mxu0 %vm21350_vm6, %v9043_v59  ;;  %vm21381_vm6 = vmmov %vm21316_vm0 }
 0x60b   : > { %v17674_v43 = vpop.f32.mrf.mxu1  ;;  %21349 = vst [vmem:[#allocation257_spill] sm:$0xff] %v17676_v56  ;;  %12743 = vmatprep.mubr.msk.bf16.mxu0 %vm21352_vm1, %v9045_v4  ;;  %v9048_v4 = vrot.slane %v13136_v41, 1  ;;  %vm21387_vm1 = vmmov %vm21316_vm0 }
 0x60c   : > { %v17686_v37 = vpop.f32.mrf.mxu0 }
 0x60d   : > { %v12379_v15 = vpop.f32.mrf.mxu1  ;;  %12542 = vmatmul.mubr.msk.bf16.gmra.mxu1 %vm21353_vm7, %v16735_v34  ;;  %21354 = vst [vmem:[#allocation258_spill] sm:$0xff] %v17686_v37  ;;  %v4484_v34 = vadd.f32 %v17334_v36, %v16923_v10  ;;  %v9049_v10 = vsel %vm21361_vm11, %v9046_v32, %v9048_v4  ;;  %vm21388_vm7 = vmmov %vm21375_vm4 }
 0x60e   : > { %v17690_v19 = vadd.f32 %v12379_v15, %v5176_v44  ;;  %12545 = vmatprep.mubr.msk.bf16.mxu1 %vm21355_vm3, %v16738_v40  ;;  %v17695_v0 = vpop.f32.mrf.mxu0  ;;  %v4476_v40 = vadd.f32 %v17340_v6, %v16938_v2  ;;  %v9047_v44 = vsel %vm21358_vm14, %v9044_v57, %v9046_v32  ;;  %v4479_v57 = vadd.f32 %v17348_v48, %v16955_v25  ;;  %v21369_v25 = vld [vmem:[#allocation38_spill] sm:$0xff]  ;;  %vm21391_vm3 = vmmov %vm21316_vm0 }
 0x60f   : > { %v5597_v59 = vpop.f32.mrf.mxu1  ;;  %21356 = vst [vmem:[#allocation259_spill] sm:$0xff] %v17695_v0  ;;  %v5180_v2 = vadd.f32 %v16914_v45, %v4484_v34  ;;  %v5181_v48 = vadd.f32 %v21369_v25, %v4487_v11  ;;  %v4503_v11 = vadd.f32 %v17364_v35, %v16985_v5  ;;  %v21382_v5 = vld [vmem:[#allocation46_spill] sm:$0xff]  ;;  %vm21394_vm14 = vmmov %vm21316_vm0 }
 0x610   : > { %v17699_v37 = vadd.f32 %v5597_v59, %v5174_v51  ;;  %v17702_v15 = vpop.f32.mrf.mxu0  ;;  %v5178_v47 = vadd.f32 %v21366_v29, %v4476_v40  ;;  %v9050_v51 = vrot.slane %v13137_v60, 1  ;;  %v13138_v59 = vld [vmem:[#allocation2 + $0xd8] sm:$0xff]   ;;  %vm21409_vm11 = vmmov %vm21375_vm4 }
 0x611   : > { %v12380_v62 = vpop.f32.mrf.mxu1  ;;  %21357 = vst [vmem:[#allocation260_spill] sm:$0xff] %v17702_v15  ;;  %v9052_v34 = vrot.slane %v13138_v59, 1 }
 0x612   : > { %v17706_v49 = vadd.f32 %v12380_v62, %v5177_v42  ;;  %v17710_v41 = vpop.f32.mrf.mxu0  ;;  %12744 = vmatmul.mubr.msk.bf16.gmra.mxu0 %vm21360_vm8, %v9047_v44  ;;  %vm21399_vm8 = vmmov %vm21316_vm0 }
 0x613   : > { %v5600_v13 = vpop.f32.mrf.mxu1  ;;  %21359 = vst [vmem:[#allocation261_spill] sm:$0xff] %v17710_v41  ;;  %12747 = vmatprep.mubr.msk.bf16.mxu0 %vm21362_vm13, %v9049_v10  ;;  %vm21411_vm13 = vmmov %vm21316_vm0 }
 0x614   : > { %v17716_v36 = vadd.f32 %v5600_v13, %v5175_v18  ;;  %v17722_v53 = vpop.f32.mrf.mxu0  ;;  %v21371_v13 = vld [vmem:[#allocation40_spill] sm:$0xff] }
 0x615   : > { %v12383_v6 = vpop.f32.mrf.mxu1  ;;  %12546 = vmatmul.mubr.msk.bf16.gmra.mxu1 %vm21363_vm12, %v16752_v23  ;;  %21364 = vst [vmem:[#allocation262_spill] sm:$0xff] %v17722_v53  ;;  %v21368_v23 = vld [vmem:[#allocation45_spill] sm:$0xff]  ;;  %v5179_v10 = vadd.f32 %v21371_v13, %v4479_v57  ;;  %v21377_v57 = vld [vmem:[#allocation8_spill] sm:$0xff]  ;;  %vm21412_vm12 = vmmov %vm21375_vm4 }
 0x616   : > { %v17726_v28 = vadd.f32 %v12383_v6, %v5180_v2  ;;  %12549 = vmatprep.mubr.msk.bf16.mxu1 %vm21365_vm2, %v16755_v52  ;;  %v17731_v45 = vpop.f32.mrf.mxu0  ;;  %v4500_v42 = vadd.f32 %v17354_v22, %v21368_v23  ;;  %v4492_v52 = vadd.f32 %v17360_v27, %v16978_v17  ;;  %v9051_v2 = vsel %vm21372_vm10, %v9048_v4, %v9050_v51  ;;  %v21376_v17 = vld [vmem:[#allocation43_spill] sm:$0xff]  ;;  %v13139_v23 = vld [vmem:[#allocation2 + $0xe0] sm:$0xff]   ;;  %vm21415_vm2 = vmmov %vm21316_vm0 }
 0x617   : > { %v5613_v32 = vpop.f32.mrf.mxu1  ;;  %21367 = vst [vmem:[#allocation34_spill] sm:$0xff] %v17731_v45  ;;  %v9053_v22 = vsel %vm21375_vm4, %v9050_v51, %v9052_v34  ;;  %v21380_v51 = vld [vmem:[#allocation9_spill] sm:$0xff]  ;;  %v9054_v25 = vrot.slane %v13139_v23, 1  ;;  %vm21418_vm10 = vmmov %vm21316_vm0 }
 0x618   : > { %v17735_v62 = vadd.f32 %v5613_v32, %v5178_v47  ;;  %v17738_v44 = vpop.f32.mrf.mxu0  ;;  %v5184_v27 = vadd.f32 %v21376_v17, %v4500_v42  ;;  %v4495_v32 = vadd.f32 %v17368_v3, %v16998_v26  ;;  %v5182_v35 = vadd.f32 %v21382_v5, %v4492_v52 }
 0x619   : > { %v12384_v18 = vpop.f32.mrf.mxu1  ;;  %21370 = vst [vmem:[#allocation45_spill] sm:$0xff] %v17738_v44  ;;  %v5185_v26 = vadd.f32 %v16980_v39, %v4503_v11  ;;  %v4508_v52 = vadd.f32 %v17380_v16, %v17023_v9  ;;  %v21389_v39 = vld [vmem:[#allocation60_spill] sm:$0xff] }
 0x61a   : > { %v17742_v40 = vadd.f32 %v12384_v18, %v5181_v48  ;;  %v17746_v29 = vpop.f32.mrf.mxu0  ;;  %12748 = vmatmul.mubr.msk.bf16.gmra.mxu0 %vm21374_vm15, %v9051_v2  ;;  %v13140_v18 = vld [vmem:[#allocation2 + $0xe8] sm:$0xff]   ;;  %v5183_v17 = vadd.f32 %v16987_v30, %v4495_v32  ;;  %v21392_v9 = vld [vmem:[#allocation52_spill] sm:$0xff]  ;;  %v21393_v30 = vld [vmem:[#allocation10_spill] sm:$0xff] }
 0x61b   : > { %v5616_v6 = vpop.f32.mrf.mxu1  ;;  %21373 = vst [vmem:[#allocation38_spill] sm:$0xff] %v17746_v29  ;;  %12751 = vmatprep.mubr.msk.bf16.mxu0 %vm21316_vm0, %v9053_v22  ;;  %v9056_v13 = vrot.slane %v13140_v18, 1  ;;  %v21396_v32 = vld [vmem:[#allocation62_spill] sm:$0xff]  ;;  %v21400_v18 = vld [vmem:[#allocation55_spill] sm:$0xff]  ;;  %vm21423_vm15 = vmmov %vm21316_vm0 }
 0x61c   : > { %v17752_v47 = vadd.f32 %v5616_v6, %v5179_v10  ;;  %v17758_v4 = vpop.f32.mrf.mxu0  ;;  %v4516_v10 = vadd.f32 %v17374_v31, %v17011_v54  ;;  %v21390_v31 = vld [vmem:[#allocation174_spill] sm:$0xff] }
 0x61d   : > { %v12387_v60 = vpop.f32.mrf.mxu1  ;;  %12550 = vmatmul.mubr.msk.bf16.gmra.mxu1 %vm21378_vm9, %v21377_v57  ;;  %21379 = vst [vmem:[#allocation40_spill] sm:$0xff] %v17758_v4  ;;  %v9057_v54 = vsel %vm21388_vm7, %v9054_v25, %v9056_v13  ;;  %v4519_v11 = vadd.f32 %v21390_v31, %v21389_v39  ;;  %v21402_v39 = vld [vmem:[#allocation64_spill] sm:$0xff]  ;;  %v21403_v31 = vld [vmem:[#allocation178_spill] sm:$0xff]  ;;  %vm21435_vm9 = vmmov %vm21375_vm4 }
 0x61e   : > { %v17762_v59 = vadd.f32 %v12387_v60, %v5184_v27  ;;  %12553 = vmatprep.mubr.msk.bf16.mxu1 %vm21381_vm6, %v21380_v51  ;;  %v17767_v42 = vpop.f32.mrf.mxu0  ;;  %v9055_v27 = vsel %vm21385_vm5, %v9052_v34, %v9054_v25  ;;  %v5188_v16 = vadd.f32 %v21392_v9, %v4516_v10  ;;  %v21398_v25 = vld [vmem:[#allocation11_spill] sm:$0xff]  ;;  %v4532_v9 = vadd.f32 %v21403_v31, %v21402_v39  ;;  %v21432_v4 = vld [vmem:[#allocation188_spill] sm:$0xff]  ;;  %vm21439_vm6 = vmmov %vm21316_vm0 }
 0x61f   : > { %v5629_v48 = vpop.f32.mrf.mxu1  ;;  %21383 = vst [vmem:[#allocation43_spill] sm:$0xff] %v17767_v42  ;;  %vm21442_vm5 = vmmov %vm21316_vm0 }
 0x620   : > { %v17771_v2 = vadd.f32 %v5629_v48, %v5182_v35  ;;  %v17774_v6 = vpop.f32.mrf.mxu0  ;;  %v21397_v35 = vld [vmem:[#allocation176_spill] sm:$0xff]  ;;  %vm21457_vm7 = vmmov %vm21375_vm4 }
 0x621   : > { %v12388_v3 = vpop.f32.mrf.mxu1  ;;  %21384 = vst [vmem:[#allocation8_spill] sm:$0xff] %v17774_v6  ;;  %v4511_v23 = vadd.f32 %v21397_v35, %v21396_v32  ;;  %v21404_v32 = vld [vmem:[#allocation57_spill] sm:$0xff] }
 0x622   : > { %v17778_v22 = vadd.f32 %v12388_v3, %v5185_v26  ;;  %v17782_v57 = vpop.f32.mrf.mxu0  ;;  %12752 = vmatmul.mubr.msk.bf16.gmra.mxu0 %vm21387_vm1, %v9055_v27  ;;  %v5186_v26 = vadd.f32 %v21400_v18, %v4508_v52  ;;  %v13141_v3 = vld [vmem:[#allocation2 + $0xf0] sm:$0xff]   ;;  %vm21447_vm1 = vmmov %vm21316_vm0 }
 0x623   : > { %v5632_v60 = vpop.f32.mrf.mxu1  ;;  %21386 = vst [vmem:[#allocation9_spill] sm:$0xff] %v17782_v57  ;;  %12755 = vmatprep.mubr.msk.bf16.mxu0 %vm21391_vm3, %v9057_v54  ;;  %vm21459_vm3 = vmmov %vm21316_vm0 }
 0x624   : > { %v17788_v51 = vadd.f32 %v5632_v60, %v5183_v17  ;;  %v17794_v34 = vpop.f32.mrf.mxu0  ;;  %v9058_v17 = vrot.slane %v13141_v3, 1  ;;  %v13142_v60 = vld [vmem:[#allocation2 + $0xf8] sm:$0xff]  }
 0x625   : > { %v12391_v5 = vpop.f32.mrf.mxu1  ;;  %12554 = vmatmul.mubr.msk.bf16.gmra.mxu1 %vm21394_vm14, %v21393_v30  ;;  %21395 = vst [vmem:[#allocation46_spill] sm:$0xff] %v17794_v34  ;;  %v9060_v54 = vrot.slane %v13142_v60, 1  ;;  %v21407_v34 = vld [vmem:[#allocation180_spill] sm:$0xff]  ;;  %v21408_v3 = vld [vmem:[#allocation61_spill] sm:$0xff]  ;;  %vm21460_vm14 = vmmov %vm21375_vm4 }
 0x626   : > { %v17798_v48 = vadd.f32 %v12391_v5, %v5188_v16  ;;  %12557 = vmatprep.mubr.msk.bf16.mxu1 %vm21399_vm8, %v21398_v25  ;;  %v17803_v10 = vpop.f32.mrf.mxu0  ;;  %v5189_v16 = vadd.f32 %v21404_v32, %v4519_v11  ;;  %v21406_v25 = vld [vmem:[#allocation66_spill] sm:$0xff]  ;;  %v5187_v57 = vadd.f32 %v21408_v3, %v4511_v23  ;;  %v21413_v11 = vld [vmem:[#allocation68_spill] sm:$0xff]  ;;  %vm21463_vm8 = vmmov %vm21316_vm0 }
 0x627   : > { %v5645_v27 = vpop.f32.mrf.mxu1  ;;  %21401 = vst [vmem:[#allocation60_spill] sm:$0xff] %v17803_v10  ;;  %v4524_v52 = vadd.f32 %v21407_v34, %v21406_v25  ;;  %v9059_v10 = vsel %vm21409_vm11, %v9056_v13, %v9058_v17  ;;  %v21416_v34 = vld [vmem:[#allocation63_spill] sm:$0xff]  ;;  %v21417_v23 = vld [vmem:[#allocation12_spill] sm:$0xff]  ;;  %vm21466_vm11 = vmmov %vm21316_vm0 }
 0x628   : > { %v17807_v30 = vadd.f32 %v5645_v27, %v5186_v26  ;;  %v17810_v35 = vpop.f32.mrf.mxu0  ;;  %v9061_v26 = vsel %vm21412_vm12, %v9058_v17, %v9060_v54  ;;  %v21414_v27 = vld [vmem:[#allocation182_spill] sm:$0xff]  ;;  %v5192_v32 = vadd.f32 %v21416_v34, %v4532_v9  ;;  %v21421_v25 = vld [vmem:[#allocation184_spill] sm:$0xff]  ;;  %v21422_v17 = vld [vmem:[#allocation13_spill] sm:$0xff] }
 0x629   : > { %v12392_v5 = vpop.f32.mrf.mxu1  ;;  %21405 = vst [vmem:[#allocation174_spill] sm:$0xff] %v17810_v35  ;;  %v4535_v39 = vadd.f32 %v21414_v27, %v21413_v11  ;;  %v13143_v11 = vld [vmem:[#allocation2 + $0x100] sm:$0xff]   ;;  %v13144_v34 = vld [vmem:[#allocation2 + $0x108] sm:$0xff]   ;;  %vm21482_vm12 = vmmov %vm21375_vm4 }
 0x62a   : > { %v17814_v18 = vadd.f32 %v12392_v5, %v5189_v16  ;;  %v17818_v6 = vpop.f32.mrf.mxu0  ;;  %12756 = vmatmul.mubr.msk.bf16.gmra.mxu0 %vm21411_vm13, %v9059_v10  ;;  %v21420_v5 = vld [vmem:[#allocation70_spill] sm:$0xff]  ;;  %vm21471_vm13 = vmmov %vm21316_vm0 }
 0x62b   : > { %v5648_v60 = vpop.f32.mrf.mxu1  ;;  %21410 = vst [vmem:[#allocation52_spill] sm:$0xff] %v17818_v6  ;;  %12759 = vmatprep.mubr.msk.bf16.mxu0 %vm21415_vm2, %v9061_v26  ;;  %v4527_v10 = vadd.f32 %v21421_v25, %v21420_v5  ;;  %v9062_v26 = vrot.slane %v13143_v11, 1  ;;  %v9064_v6 = vrot.slane %v13144_v34, 1  ;;  %v21427_v35 = vld [vmem:[#allocation186_spill] sm:$0xff]  ;;  %v21429_v5 = vld [vmem:[#allocation67_spill] sm:$0xff]  ;;  %v21433_v11 = vld [vmem:[#allocation69_spill] sm:$0xff] }
 0x62c   : > { %v17824_v31 = vadd.f32 %v5648_v60, %v5187_v57  ;;  %v17830_v13 = vpop.f32.mrf.mxu0  ;;  %v21424_v57 = vld [vmem:[#allocation65_spill] sm:$0xff]  ;;  %vm21484_vm2 = vmmov %vm21316_vm0 }
 0x62d   : > { %v12395_v16 = vpop.f32.mrf.mxu1  ;;  %12558 = vmatmul.mubr.msk.bf16.gmra.mxu1 %vm21418_vm10, %v21417_v23  ;;  %21419 = vst [vmem:[#allocation10_spill] sm:$0xff] %v17830_v13  ;;  %v5190_v60 = vadd.f32 %v21424_v57, %v4524_v52  ;;  %v21426_v23 = vld [vmem:[#allocation72_spill] sm:$0xff]  ;;  %v5191_v29 = vadd.f32 %v21433_v11, %v4527_v10  ;;  %v21441_v10 = vld [vmem:[#allocation14_spill] sm:$0xff]  ;;  %vm21489_vm10 = vmmov %vm21316_vm0 }
 0x62e   : > { %v17834_v3 = vadd.f32 %v12395_v16, %v5192_v32  ;;  %12561 = vmatprep.mubr.msk.bf16.mxu1 %vm21423_vm15, %v21422_v17  ;;  %v17839_v9 = vpop.f32.mrf.mxu0  ;;  %v4548_v13 = vadd.f32 %v21427_v35, %v21426_v23  ;;  %v5193_v32 = vadd.f32 %v21429_v5, %v4535_v39  ;;  %v21431_v17 = vld [vmem:[#allocation74_spill] sm:$0xff]  ;;  %v9065_v35 = vsel %vm21435_vm9, %v9062_v26, %v9064_v6  ;;  %v21436_v39 = vld [vmem:[#allocation76_spill] sm:$0xff]  ;;  %vm21494_vm15 = vmmov %vm21316_vm0 }
 0x62f   : > { %v5661_v27 = vpop.f32.mrf.mxu1  ;;  %21425 = vst [vmem:[#allocation62_spill] sm:$0xff] %v17839_v9  ;;  %v4540_v52 = vadd.f32 %v21432_v4, %v21431_v17  ;;  %v9063_v9 = vsel %vm21375_vm4, %v9060_v54, %v9062_v26  ;;  %v21440_v4 = vld [vmem:[#allocation71_spill] sm:$0xff]  ;;  %v21445_v17 = vld [vmem:[#allocation192_spill] sm:$0xff]  ;;  %vm21511_vm4 = vmmov %vm21316_vm0 }
 0x630   : > { %v17843_v42 = vadd.f32 %v5661_v27, %v5190_v60  ;;  %v17846_v25 = vpop.f32.mrf.mxu0  ;;  %v21437_v60 = vld [vmem:[#allocation190_spill] sm:$0xff]  ;;  %v5196_v5 = vadd.f32 %v21440_v4, %v4548_v13  ;;  %v21446_v26 = vld [vmem:[#allocation15_spill] sm:$0xff]  ;;  %v13146_v4 = vld [vmem:[#allocation2 + $0x118] sm:$0xff]  }
 0x631   : > { %v12396_v16 = vpop.f32.mrf.mxu1  ;;  %21430 = vst [vmem:[#allocation11_spill] sm:$0xff] %v17846_v25  ;;  %v4551_v27 = vadd.f32 %v21437_v60, %v21436_v39  ;;  %v13145_v39 = vld [vmem:[#allocation2 + $0x110] sm:$0xff]   ;;  %v21451_v25 = vld [vmem:[#allocation194_spill] sm:$0xff]  ;;  %vm21533_vm9 = vmmov %vm21316_vm0 }
 0x632   : > { %21428 = vst [vmem:[#allocation176_spill] sm:$0xff] %v17843_v42  ;;  %v17850_v57 = vadd.f32 %v12396_v16, %v5193_v32  ;;  %v17854_v44 = vpop.f32.mrf.mxu0  ;;  %12760 = vmatmul.mubr.msk.bf16.gmra.mxu0 %vm21316_vm0, %v9063_v9  ;;  %v21444_v16 = vld [vmem:[#allocation78_spill] sm:$0xff] }
 0x633   : > { %v5664_v34 = vpop.f32.mrf.mxu1  ;;  %21434 = vst [vmem:[#allocation55_spill] sm:$0xff] %v17854_v44  ;;  %12763 = vmatprep.mubr.msk.bf16.mxu0 %vm21439_vm6, %v9065_v35  ;;  %v4543_v9 = vadd.f32 %v21445_v17, %v21444_v16  ;;  %v9066_v35 = vrot.slane %v13145_v39, 1  ;;  %v9068_v44 = vrot.slane %v13146_v4, 1  ;;  %v21453_v16 = vld [vmem:[#allocation75_spill] sm:$0xff]  ;;  %v21456_v39 = vld [vmem:[#allocation77_spill] sm:$0xff]  ;;  %vm21537_vm6 = vmmov %vm21316_vm0 }
 0x634   : > { %v17860_v23 = vadd.f32 %v5664_v34, %v5191_v29  ;;  %v17866_v54 = vpop.f32.mrf.mxu0  ;;  %v21448_v29 = vld [vmem:[#allocation73_spill] sm:$0xff] }
 0x635   : > { %v12399_v32 = vpop.f32.mrf.mxu1  ;;  %12562 = vmatmul.mubr.msk.bf16.gmra.mxu1 %vm21442_vm5, %v21441_v10  ;;  %21443 = vst [vmem:[#allocation178_spill] sm:$0xff] %v17866_v54  ;;  %v5194_v34 = vadd.f32 %v21448_v29, %v4540_v52  ;;  %v21450_v10 = vld [vmem:[#allocation80_spill] sm:$0xff]  ;;  %v5195_v53 = vadd.f32 %v21456_v39, %v4543_v9  ;;  %vm21553_vm5 = vmmov %vm21316_vm0 }
 0x636   : > { %21438 = vst [vmem:[#allocation64_spill] sm:$0xff] %v17860_v23  ;;  %v17870_v11 = vadd.f32 %v12399_v32, %v5196_v5  ;;  %12565 = vmatprep.mubr.msk.bf16.mxu1 %vm21447_vm1, %v21446_v26  ;;  %v17875_v13 = vpop.f32.mrf.mxu0  ;;  %v4564_v54 = vadd.f32 %v21451_v25, %v21450_v10  ;;  %v5197_v5 = vadd.f32 %v21453_v16, %v4551_v27  ;;  %v21455_v26 = vld [vmem:[#allocation82_spill] sm:$0xff]  ;;  %v21461_v27 = vld [vmem:[#allocation84_spill] sm:$0xff]  ;;  %v21507_v23 = vld [vmem:[#allocation213_spill] sm:$0xff] }
 0x637   : > { %v5677_v60 = vpop.f32.mrf.mxu1  ;;  %21449 = vst [vmem:[#allocation57_spill] sm:$0xff] %v17875_v13  ;;  %v4556_v52 = vadd.f32 %v17440_v61, %v21455_v26  ;;  %v9067_v13 = vsel %vm21457_vm7, %v9064_v6, %v9066_v35  ;;  %v9069_v25 = vsel %vm21460_vm14, %v9066_v35, %v9068_v44  ;;  %v21464_v61 = vld [vmem:[#allocation79_spill] sm:$0xff]  ;;  %v21465_v9 = vld [vmem:[#allocation16_spill] sm:$0xff]  ;;  %v21470_v35 = vld [vmem:[#allocation17_spill] sm:$0xff] }
 0x638   : > { %v17879_v45 = vadd.f32 %v5677_v60, %v5194_v34  ;;  %v17882_v17 = vpop.f32.mrf.mxu0  ;;  %v21462_v34 = vld [vmem:[#allocation197_spill] sm:$0xff]  ;;  %v5200_v16 = vadd.f32 %v21464_v61, %v4564_v54  ;;  %v21469_v26 = vld [vmem:[#allocation199_spill] sm:$0xff]  ;;  %v21474_v61 = vld [vmem:[#allocation88_spill] sm:$0xff] }
 0x639   : > { %v12400_v32 = vpop.f32.mrf.mxu1  ;;  %21454 = vst [vmem:[#allocation180_spill] sm:$0xff] %v17882_v17  ;;  %v4567_v60 = vadd.f32 %v21462_v34, %v21461_v27  ;;  %v13147_v27 = vld [vmem:[#allocation2 + $0x120] ss:$0 sps:$4 sm:$0x11]   ;;  %vm21557_vm1 = vmmov %vm21316_vm0 }
 0x63a   : > { %21452 = vst [vmem:[#allocation66_spill] sm:$0xff] %v17879_v45  ;;  %v17886_v29 = vadd.f32 %v12400_v32, %v5197_v5  ;;  %v17890_v41 = vpop.f32.mrf.mxu0  ;;  %12764 = vmatmul.mubr.msk.bf16.gmra.mxu0 %vm21459_vm3, %v9067_v13  ;;  %v21468_v32 = vld [vmem:[#allocation86_spill] sm:$0xff]  ;;  %vm21571_vm7 = vmmov %vm21316_vm0 }
 0x63b   : > { %v5680_v4 = vpop.f32.mrf.mxu1  ;;  %21458 = vst [vmem:[#allocation61_spill] sm:$0xff] %v17890_v41  ;;  %12767 = vmatprep.mubr.msk.bf16.mxu0 %vm21463_vm8, %v9069_v25  ;;  %v4559_v13 = vadd.f32 %v21469_v26, %v21468_v32  ;;  %v9070_v25 = vrot.slane %v13147_v27, 1  ;;  %v21475_v41 = vld [vmem:[#allocation201_spill] sm:$0xff]  ;;  %v21480_v26 = vld [vmem:[#allocation203_spill] sm:$0xff]  ;;  %vm21574_vm3 = vmmov %vm21316_vm0 }
 0x63c   : > { %v17896_v10 = vadd.f32 %v5680_v4, %v5195_v53  ;;  %v17902_v6 = vpop.f32.mrf.mxu0  ;;  %v21472_v53 = vld [vmem:[#allocation81_spill] sm:$0xff]  ;;  %vm21589_vm14 = vmmov %vm21316_vm0 }
 0x63d   : > { %v12403_v5 = vpop.f32.mrf.mxu1  ;;  %12566 = vmatmul.mubr.msk.bf16.gmra.mxu1 %vm21466_vm11, %v21465_v9  ;;  %21467 = vst [vmem:[#allocation68_spill] sm:$0xff] %v17902_v6  ;;  %v5198_v4 = vadd.f32 %v21472_v53, %v4556_v52  ;;  %v4580_v9 = vadd.f32 %v21475_v41, %v21474_v61  ;;  %v21477_v6 = vld [vmem:[#allocation83_spill] sm:$0xff]  ;;  %v21481_v52 = vld [vmem:[#allocation85_spill] sm:$0xff]  ;;  %v9071_v27 = vsel %vm21482_vm12, %v9068_v44, %v9070_v25  ;;  %v21485_v41 = vld [vmem:[#allocation92_spill] sm:$0xff] }
 0x63e   : > { %v17906_v39 = vadd.f32 %v12403_v5, %v5200_v16  ;;  %12569 = vmatprep.mubr.msk.bf16.mxu1 %vm21471_vm13, %v21470_v35  ;;  %v17911_v54 = vpop.f32.mrf.mxu0  ;;  %v5201_v15 = vadd.f32 %v21477_v6, %v4567_v60  ;;  %v21479_v5 = vld [vmem:[#allocation90_spill] sm:$0xff]  ;;  %v5199_v53 = vadd.f32 %v21481_v52, %v4559_v13  ;;  %v21492_v44 = vld [vmem:[#allocation207_spill] sm:$0xff]  ;;  %v21495_v52 = vld [vmem:[#allocation89_spill] sm:$0xff] }
 0x63f   : > { %v5693_v34 = vpop.f32.mrf.mxu1  ;;  %21473 = vst [vmem:[#allocation182_spill] sm:$0xff] %v17911_v54  ;;  %v4572_v35 = vadd.f32 %v21480_v26, %v21479_v5  ;;  %v21488_v5 = vld [vmem:[#allocation18_spill] sm:$0xff]  ;;  %v21493_v26 = vld [vmem:[#allocation19_spill] sm:$0xff]  ;;  %vm21593_vm8 = vmmov %vm21316_vm0 }
 0x640   : > { %v17915_v17 = vadd.f32 %v5693_v34, %v5198_v4  ;;  %v17918_v16 = vpop.f32.mrf.mxu0  ;;  %v21486_v4 = vld [vmem:[#allocation205_spill] sm:$0xff]  ;;  %v21487_v34 = vld [vmem:[#allocation87_spill] sm:$0xff]  ;;  %v21491_v13 = vld [vmem:[#allocation94_spill] sm:$0xff] }
 0x641   : > { %v12404_v32 = vpop.f32.mrf.mxu1  ;;  %21478 = vst [vmem:[#allocation12_spill] sm:$0xff] %v17918_v16  ;;  %v4583_v60 = vadd.f32 %v21486_v4, %v21485_v41  ;;  %v5204_v61 = vadd.f32 %v21487_v34, %v4580_v9  ;;  %v4575_v25 = vadd.f32 %v21492_v44, %v21491_v13  ;;  %v21497_v9 = vld [vmem:[#allocation96_spill] sm:$0xff]  ;;  %v21498_v41 = vld [vmem:[#allocation209_spill] sm:$0xff]  ;;  %vm21609_vm11 = vmmov %vm21316_vm0 }
 0x642   : > { %21476 = vst [vmem:[#allocation63_spill] sm:$0xff] %v17915_v17  ;;  %v17922_v0 = vadd.f32 %v12404_v32, %v5201_v15  ;;  %v17926_v56 = vpop.f32.mrf.mxu0  ;;  %12768 = vmatmul.mubr.msk.bf16.gmra.mxu0 %vm21484_vm2, %v9071_v27  ;;  %v5202_v27 = vadd.f32 %v21495_v52, %v4572_v35  ;;  %v4596_v4 = vadd.f32 %v21498_v41, %v21497_v9  ;;  %vm21613_vm13 = vmmov %vm21316_vm0 }
 0x643   : > { %v5696_v54 = vpop.f32.mrf.mxu1  ;;  %21483 = vst [vmem:[#allocation70_spill] sm:$0xff] %v17926_v56  ;;  %vm21629_vm12 = vmmov %vm21316_vm0 }
 0x644   : > { %v17931_v6 = vadd.f32 %v5696_v54, %v5199_v53  ;;  %v17936_v15 = vpop.f32.mrf.mxu0  ;;  %vm21633_vm2 = vmmov %vm21316_vm0 }
 0x645   : > { %v12407_v16 = vpop.f32.mrf.mxu1  ;;  %12570 = vmatmul.mubr.msk.bf16.gmra.mxu1 %vm21489_vm10, %v21488_v5  ;;  %21490 = vst [vmem:[#allocation184_spill] sm:$0xff] %v17936_v15  ;;  %v21500_v5 = vld [vmem:[#allocation91_spill] sm:$0xff]  ;;  %vm21646_vm10 = vmmov %vm21316_vm0 }
 0x646   : > { %v17940_v32 = vadd.f32 %v12407_v16, %v5204_v61  ;;  %12641 = vmatprep.mubr.msk.bf16.mxu1 %vm21494_vm15, %v21493_v26  ;;  %v17945_v53 = vpop.f32.mrf.mxu0  ;;  %v5205_v15 = vadd.f32 %v21500_v5, %v4583_v60  ;;  %v21502_v16 = vld [vmem:[#allocation98_spill] sm:$0xff]  ;;  %v21503_v61 = vld [vmem:[#allocation211_spill] sm:$0xff]  ;;  %v21504_v26 = vld [vmem:[#allocation93_spill] sm:$0xff] }
 0x647   : > { %v5709_v54 = vpop.f32.mrf.mxu1  ;;  %21496 = vst [vmem:[#allocation13_spill] sm:$0xff] %v17945_v53  ;;  %v4588_v13 = vadd.f32 %v21503_v61, %v21502_v16  ;;  %v5203_v35 = vadd.f32 %v21504_v26, %v4575_v25  ;;  %v21506_v53 = vld [vmem:[#allocation100_spill] sm:$0xff]  ;;  %v21515_v61 = vld [vmem:[#allocation21_spill] sm:$0xff]  ;;  %vm21650_vm15 = vmmov %vm21316_vm0 }
 0x648   : > { %v17949_v34 = vadd.f32 %v5709_v54, %v5202_v27  ;;  %v17952_v21 = vpop.f32.mrf.mxu0  ;;  %v4599_v9 = vadd.f32 %v21507_v23, %v21506_v53  ;;  %v21508_v54 = vld [vmem:[#allocation95_spill] sm:$0xff]  ;;  %v21516_v26 = vld [vmem:[#allocation97_spill] sm:$0xff] }
 0x649   : > { %v12408_v56 = vpop.f32.mrf.mxu1  ;;  %21501 = vst [vmem:[#allocation72_spill] sm:$0xff] %v17952_v21  ;;  %v5208_v60 = vadd.f32 %v21508_v54, %v4596_v4  ;;  %v21510_v21 = vld [vmem:[#allocation20_spill] sm:$0xff]  ;;  %v5206_v23 = vadd.f32 %v21516_v26, %v4588_v13 }
 0x64a   : > { %21499 = vst [vmem:[#allocation65_spill] sm:$0xff] %v17949_v34  ;;  %v17956_v44 = vadd.f32 %v12408_v56, %v5205_v15  ;;  %v17959_v17 = vpop.f32.mrf.mxu0  ;;  %v21512_v56 = vld [vmem:[#allocation102_spill] sm:$0xff]  ;;  %v21513_v15 = vld [vmem:[#allocation215_spill] sm:$0xff]  ;;  %v21518_v4 = vld [vmem:[#allocation104_spill] sm:$0xff] }
 0x64b   : > { %v5712_v52 = vpop.f32.mrf.mxu1  ;;  %21505 = vst [vmem:[#allocation186_spill] sm:$0xff] %v17959_v17  ;;  %v4591_v16 = vadd.f32 %v21513_v15, %v21512_v56  ;;  %v21520_v17 = vld [vmem:[#allocation99_spill] sm:$0xff] }
 0x64c   : > { %v17963_v27 = vadd.f32 %v5712_v52, %v5203_v35  ;;  %v17966_v5 = vpop.f32.mrf.mxu0  ;;  %v21519_v52 = vld [vmem:[#allocation217_spill] sm:$0xff] }
 0x64d   : > { %v12411_v41 = vpop.f32.mrf.mxu1  ;;  %21509 = vst [vmem:[#allocation67_spill] sm:$0xff] %v17966_v5  ;;  %12642 = vmatmul.mubr.msk.bf16.vlgmr.msra.gmra.mxu1 %vm21511_vm4, %v21510_v21  ;;  %v4612_v54 = vadd.f32 %v21519_v52, %v21518_v4  ;;  %v5209_v21 = vadd.f32 %v21520_v17, %v4599_v9  ;;  %vm21657_vm4 = vmmov %vm21316_vm0 }
 0x64e   : > { %v17972_v25 = vadd.f32 %v12411_v41, %v5208_v60  ;;  %12645 = vmatprep.mubr.msk.bf16.mxu1 %vm21316_vm0, %v21515_v61  ;;  %v17977_v35 = vpop.f32.mrf.mxu0  ;;  %v21522_v60 = vld [vmem:[#allocation106_spill] sm:$0xff]  ;;  %v21523_v41 = vld [vmem:[#allocation219_spill] sm:$0xff]  ;;  %v21525_v61 = vld [vmem:[#allocation101_spill] sm:$0xff] }
 0x64f   : > { %v5725_v53 = vpop.f32.mrf.mxu1  ;;  %21517 = vst [vmem:[#allocation188_spill] sm:$0xff] %v17977_v35  ;;  %v4604_v56 = vadd.f32 %v21523_v41, %v21522_v60  ;;  %v5207_v13 = vadd.f32 %v21525_v61, %v4591_v16  ;;  %v21527_v35 = vld [vmem:[#allocation108_spill] sm:$0xff]  ;;  %v21536_v41 = vld [vmem:[#allocation23_spill] sm:$0xff]  ;;  %v21538_v61 = vld [vmem:[#allocation105_spill] sm:$0xff] }
 0x650   : > { %21514 = vst [vmem:[#allocation74_spill] sm:$0xff] %v17972_v25  ;;  %v17981_v5 = vadd.f32 %v5725_v53, %v5206_v23  ;;  %v17984_v45 = vpop.f32.mrf.mxu0  ;;  %v21528_v25 = vld [vmem:[#allocation221_spill] sm:$0xff]  ;;  %v21530_v53 = vld [vmem:[#allocation103_spill] sm:$0xff] }
 0x651   : > { %v12412_v34 = vpop.f32.mrf.mxu1  ;;  %21521 = vst [vmem:[#allocation69_spill] sm:$0xff] %v17984_v45  ;;  %v4615_v4 = vadd.f32 %v21528_v25, %v21527_v35  ;;  %v5212_v17 = vadd.f32 %v21530_v53, %v4612_v54  ;;  %v21532_v45 = vld [vmem:[#allocation22_spill] sm:$0xff]  ;;  %v5210_v25 = vadd.f32 %v21538_v61, %v4604_v56  ;;  %v21540_v54 = vld [vmem:[#allocation112_spill] sm:$0xff] }
 0x652   : > { %v17988_v15 = vadd.f32 %v12412_v34, %v5209_v21  ;;  %v17991_v42 = vpop.f32.mrf.mxu0  ;;  %v21534_v34 = vld [vmem:[#allocation110_spill] sm:$0xff]  ;;  %v21535_v21 = vld [vmem:[#allocation223_spill] sm:$0xff] }
 0x653   : > { %v5728_v26 = vpop.f32.mrf.mxu1  ;;  %21526 = vst [vmem:[#allocation190_spill] sm:$0xff] %v17991_v42  ;;  %v4607_v60 = vadd.f32 %v21535_v21, %v21534_v34  ;;  %v21542_v42 = vld [vmem:[#allocation107_spill] sm:$0xff]  ;;  %v21546_v21 = vld [vmem:[#allocation109_spill] sm:$0xff] }
 0x654   : > { %21524 = vst [vmem:[#allocation76_spill] sm:$0xff] %v17988_v15  ;;  %v17995_v23 = vadd.f32 %v5728_v26, %v5207_v13  ;;  %v17998_v52 = vpop.f32.mrf.mxu0  ;;  %v21541_v26 = vld [vmem:[#allocation225_spill] sm:$0xff] }
 0x655   : > { %v12415_v9 = vpop.f32.mrf.mxu1  ;;  %21531 = vst [vmem:[#allocation14_spill] sm:$0xff] %v17998_v52  ;;  %12646 = vmatmul.mubr.msk.bf16.gmra.mxu1 %vm21533_vm9, %v21532_v45  ;;  %v4628_v53 = vadd.f32 %v21541_v26, %v21540_v54  ;;  %v5213_v45 = vadd.f32 %v21542_v42, %v4615_v4  ;;  %v5211_v56 = vadd.f32 %v21546_v21, %v4607_v60  ;;  %v21558_v21 = vld [vmem:[#allocation113_spill] sm:$0xff]  ;;  %vm21665_vm9 = vmmov %vm21316_vm0 }
 0x656   : > { %21529 = vst [vmem:[#allocation71_spill] sm:$0xff] %v17995_v23  ;;  %v18004_v16 = vadd.f32 %v12415_v9, %v5212_v17  ;;  %12649 = vmatprep.mubr.msk.bf16.mxu1 %vm21537_vm6, %v21536_v41  ;;  %v18009_v13 = vpop.f32.mrf.mxu0  ;;  %v21544_v17 = vld [vmem:[#allocation114_spill] sm:$0xff]  ;;  %vm21668_vm6 = vmmov %vm21316_vm0 }
 0x657   : > { %v5741_v35 = vpop.f32.mrf.mxu1  ;;  %21539 = vst [vmem:[#allocation78_spill] sm:$0xff] %v18009_v13  ;;  %v4620_v9 = vadd.f32 %v17539_v58, %v21544_v17  ;;  %v21548_v13 = vld [vmem:[#allocation116_spill] sm:$0xff]  ;;  %v21554_v58 = vld [vmem:[#allocation118_spill] sm:$0xff]  ;;  %v21556_v17 = vld [vmem:[#allocation25_spill] sm:$0xff] }
 0x658   : > { %v18013_v52 = vadd.f32 %v5741_v35, %v5210_v25  ;;  %v18016_v15 = vpop.f32.mrf.mxu0  ;;  %v4631_v54 = vadd.f32 %v17543_v8, %v21548_v13  ;;  %v21550_v35 = vld [vmem:[#allocation111_spill] sm:$0xff] }
 0x659   : > { %v12416_v23 = vpop.f32.mrf.mxu1  ;;  %21543 = vst [vmem:[#allocation192_spill] sm:$0xff] %v18016_v15  ;;  %v5216_v42 = vadd.f32 %v21550_v35, %v4628_v53  ;;  %v21552_v15 = vld [vmem:[#allocation24_spill] sm:$0xff]  ;;  %v5214_v8 = vadd.f32 %v21558_v21, %v4620_v9 }
 0x65a   : > { %v18020_v34 = vadd.f32 %v12416_v23, %v5213_v45  ;;  %v18023_v61 = vpop.f32.mrf.mxu0  ;;  %v21555_v23 = vld [vmem:[#allocation229_spill] sm:$0xff]  ;;  %v21560_v53 = vld [vmem:[#allocation120_spill] sm:$0xff] }
 0x65b   : > { %v5744_v41 = vpop.f32.mrf.mxu1  ;;  %21547 = vst [vmem:[#allocation73_spill] sm:$0xff] %v18023_v61  ;;  %v4623_v45 = vadd.f32 %v21555_v23, %v21554_v58  ;;  %v21562_v61 = vld [vmem:[#allocation115_spill] sm:$0xff]  ;;  %v21565_v23 = vld [vmem:[#allocation117_spill] sm:$0xff] }
 0x65c   : > { %21545 = vst [vmem:[#allocation15_spill] sm:$0xff] %v18020_v34  ;;  %v18027_v25 = vadd.f32 %v5744_v41, %v5211_v56  ;;  %v18030_v26 = vpop.f32.mrf.mxu0  ;;  %v21561_v41 = vld [vmem:[#allocation231_spill] sm:$0xff] }
 0x65d   : > { %v12419_v4 = vpop.f32.mrf.mxu1  ;;  %21551 = vst [vmem:[#allocation194_spill] sm:$0xff] %v18030_v26  ;;  %12650 = vmatmul.mubr.msk.bf16.gmra.mxu1 %vm21553_vm5, %v21552_v15  ;;  %v4644_v35 = vadd.f32 %v21561_v41, %v21560_v53  ;;  %v5217_v15 = vadd.f32 %v21562_v61, %v4631_v54  ;;  %v5215_v9 = vadd.f32 %v21565_v23, %v4623_v45  ;;  %vm21675_vm5 = vmmov %vm21316_vm0 }
 0x65e   : > { %21549 = vst [vmem:[#allocation80_spill] sm:$0xff] %v18027_v25  ;;  %v18036_v60 = vadd.f32 %v12419_v4, %v5216_v42  ;;  %12653 = vmatprep.mubr.msk.bf16.mxu1 %vm21557_vm1, %v21556_v17  ;;  %v18041_v56 = vpop.f32.mrf.mxu0  ;;  %v21564_v42 = vld [vmem:[#allocation122_spill] sm:$0xff]  ;;  %vm21678_vm1 = vmmov %vm21316_vm0 }
 0x65f   : > { %v5757_v13 = vpop.f32.mrf.mxu1  ;;  %21559 = vst [vmem:[#allocation75_spill] sm:$0xff] %v18041_v56  ;;  %v4636_v4 = vadd.f32 %v17563_v50, %v21564_v42  ;;  %v21567_v56 = vld [vmem:[#allocation124_spill] sm:$0xff]  ;;  %v21572_v50 = vld [vmem:[#allocation126_spill] sm:$0xff]  ;;  %v21575_v42 = vld [vmem:[#allocation121_spill] sm:$0xff] }
 0x660   : > { %v18045_v26 = vadd.f32 %v5757_v13, %v5214_v8  ;;  %v18048_v34 = vpop.f32.mrf.mxu0  ;;  %v4647_v53 = vadd.f32 %v17567_v1, %v21567_v56  ;;  %v21568_v13 = vld [vmem:[#allocation119_spill] sm:$0xff] }
 0x661   : > { %v12420_v25 = vpop.f32.mrf.mxu1  ;;  %21563 = vst [vmem:[#allocation82_spill] sm:$0xff] %v18048_v34  ;;  %v5220_v61 = vadd.f32 %v21568_v13, %v4644_v35  ;;  %v21570_v34 = vld [vmem:[#allocation26_spill] sm:$0xff]  ;;  %v5218_v1 = vadd.f32 %v21575_v42, %v4636_v4  ;;  %v21577_v35 = vld [vmem:[#allocation128_spill] sm:$0xff]  ;;  %v21578_v13 = vld [vmem:[#allocation123_spill] sm:$0xff] }
 0x662   : > { %v18052_v58 = vadd.f32 %v12420_v25, %v5217_v15  ;;  %v18055_v21 = vpop.f32.mrf.mxu0  ;;  %v4639_v25 = vadd.f32 %v17572_v14, %v21572_v50  ;;  %v21573_v15 = vld [vmem:[#allocation27_spill] sm:$0xff]  ;;  %v21580_v14 = vld [vmem:[#allocation130_spill] sm:$0xff]  ;;  %v21582_v50 = vld [vmem:[#allocation125_spill] sm:$0xff] }
 0x663   : > { %v5760_v17 = vpop.f32.mrf.mxu1  ;;  %21566 = vst [vmem:[#allocation77_spill] sm:$0xff] %v18055_v21 }
 0x664   : > { %v18059_v8 = vadd.f32 %v5760_v17, %v5215_v9  ;;  %v18062_v41 = vpop.f32.mrf.mxu0  ;;  %v4660_v9 = vadd.f32 %v17582_v55, %v21577_v35  ;;  %v5219_v4 = vadd.f32 %v21582_v50, %v4639_v25  ;;  %v21594_v50 = vld [vmem:[#allocation129_spill] sm:$0xff] }
 0x665   : > { %v12423_v54 = vpop.f32.mrf.mxu1  ;;  %21569 = vst [vmem:[#allocation84_spill] sm:$0xff] %v18062_v41  ;;  %12654 = vmatmul.mubr.msk.bf16.gmra.mxu1 %vm21571_vm7, %v21570_v34  ;;  %v5221_v34 = vadd.f32 %v21578_v13, %v4647_v53  ;;  %vm21685_vm7 = vmmov %vm21316_vm0 }
 0x666   : > { %v18068_v45 = vadd.f32 %v12423_v54, %v5220_v61  ;;  %12657 = vmatprep.mubr.msk.bf16.mxu1 %vm21574_vm3, %v21573_v15  ;;  %v18073_v23 = vpop.f32.mrf.mxu0  ;;  %v4652_v61 = vadd.f32 %v17589_v63, %v21580_v14  ;;  %v21590_v63 = vld [vmem:[#allocation134_spill] sm:$0xff]  ;;  %v21592_v14 = vld [vmem:[#allocation29_spill] sm:$0xff]  ;;  %vm21688_vm3 = vmmov %vm21316_vm0 }
 0x667   : > { %v5773_v56 = vpop.f32.mrf.mxu1  ;;  %21576 = vst [vmem:[#allocation197_spill] sm:$0xff] %v18073_v23  ;;  %v21584_v23 = vld [vmem:[#allocation132_spill] sm:$0xff] }
 0x668   : > { %v18077_v17 = vadd.f32 %v5773_v56, %v5218_v1  ;;  %v18080_v21 = vpop.f32.mrf.mxu0  ;;  %v4663_v55 = vadd.f32 %v17593_v20, %v21584_v23  ;;  %v21586_v56 = vld [vmem:[#allocation127_spill] sm:$0xff]  ;;  %v5222_v20 = vadd.f32 %v21594_v50, %v4652_v61 }
 0x669   : > { %v12424_v41 = vpop.f32.mrf.mxu1  ;;  %21579 = vst [vmem:[#allocation79_spill] sm:$0xff] %v18080_v21  ;;  %v5224_v53 = vadd.f32 %v21586_v56, %v4660_v9  ;;  %v21588_v21 = vld [vmem:[#allocation28_spill] sm:$0xff] }
 0x66a   : > { %v18084_v54 = vadd.f32 %v12424_v41, %v5221_v34  ;;  %v18087_v42 = vpop.f32.mrf.mxu0  ;;  %v21591_v41 = vld [vmem:[#allocation239_spill] sm:$0xff]  ;;  %v21596_v9 = vld [vmem:[#allocation136_spill] sm:$0xff] }
 0x66b   : > { %v5776_v15 = vpop.f32.mrf.mxu1  ;;  %21583 = vst [vmem:[#allocation86_spill] sm:$0xff] %v18087_v42  ;;  %v4655_v34 = vadd.f32 %v21591_v41, %v21590_v63  ;;  %v21598_v42 = vld [vmem:[#allocation131_spill] sm:$0xff]  ;;  %v21602_v41 = vld [vmem:[#allocation133_spill] sm:$0xff] }
 0x66c   : > { %21581 = vst [vmem:[#allocation16_spill] sm:$0xff] %v18084_v54  ;;  %v18091_v1 = vadd.f32 %v5776_v15, %v5219_v4  ;;  %v18094_v13 = vpop.f32.mrf.mxu0  ;;  %v21597_v15 = vld [vmem:[#allocation241_spill] sm:$0xff] }
 0x66d   : > { %v12427_v35 = vpop.f32.mrf.mxu1  ;;  %21587 = vst [vmem:[#allocation17_spill] sm:$0xff] %v18094_v13  ;;  %12658 = vmatmul.mubr.msk.bf16.gmra.mxu1 %vm21589_vm14, %v21588_v21  ;;  %v4676_v56 = vadd.f32 %v21597_v15, %v21596_v9  ;;  %v5225_v21 = vadd.f32 %v21598_v42, %v4663_v55  ;;  %v5223_v61 = vadd.f32 %v21602_v41, %v4655_v34  ;;  %v21614_v41 = vld [vmem:[#allocation137_spill] sm:$0xff]  ;;  %vm21695_vm14 = vmmov %vm21316_vm0 }
 0x66e   : > { %21585 = vst [vmem:[#allocation199_spill] sm:$0xff] %v18091_v1  ;;  %v18100_v25 = vadd.f32 %v12427_v35, %v5224_v53  ;;  %12661 = vmatprep.mubr.msk.bf16.mxu1 %vm21593_vm8, %v21592_v14  ;;  %v18105_v4 = vpop.f32.mrf.mxu0  ;;  %v21600_v53 = vld [vmem:[#allocation138_spill] sm:$0xff]  ;;  %vm21698_vm8 = vmmov %vm21316_vm0 }
 0x66f   : > { %v5789_v23 = vpop.f32.mrf.mxu1  ;;  %21595 = vst [vmem:[#allocation81_spill] sm:$0xff] %v18105_v4  ;;  %v4668_v35 = vadd.f32 %v17613_v12, %v21600_v53  ;;  %v21604_v4 = vld [vmem:[#allocation140_spill] sm:$0xff]  ;;  %v21610_v12 = vld [vmem:[#allocation142_spill] sm:$0xff]  ;;  %v21612_v53 = vld [vmem:[#allocation31_spill] sm:$0xff] }
 0x670   : > { %v18109_v13 = vadd.f32 %v5789_v23, %v5222_v20  ;;  %v18112_v54 = vpop.f32.mrf.mxu0  ;;  %v4679_v9 = vadd.f32 %v17617_v7, %v21604_v4  ;;  %v21606_v23 = vld [vmem:[#allocation135_spill] sm:$0xff] }
 0x671   : > { %v12428_v1 = vpop.f32.mrf.mxu1  ;;  %21599 = vst [vmem:[#allocation88_spill] sm:$0xff] %v18112_v54  ;;  %v5228_v42 = vadd.f32 %v21606_v23, %v4676_v56  ;;  %v21608_v54 = vld [vmem:[#allocation30_spill] sm:$0xff]  ;;  %v5226_v7 = vadd.f32 %v21614_v41, %v4668_v35  ;;  %v21616_v56 = vld [vmem:[#allocation144_spill] sm:$0xff] }
 0x672   : > { %v18116_v63 = vadd.f32 %v12428_v1, %v5225_v21  ;;  %v18119_v50 = vpop.f32.mrf.mxu0  ;;  %v21611_v1 = vld [vmem:[#allocation245_spill] sm:$0xff] }
 0x673   : > { %v5792_v14 = vpop.f32.mrf.mxu1  ;;  %21603 = vst [vmem:[#allocation83_spill] sm:$0xff] %v18119_v50  ;;  %v4671_v21 = vadd.f32 %v21611_v1, %v21610_v12  ;;  %v21618_v50 = vld [vmem:[#allocation139_spill] sm:$0xff]  ;;  %v21622_v1 = vld [vmem:[#allocation141_spill] sm:$0xff] }
 0x674   : > { %21601 = vst [vmem:[#allocation201_spill] sm:$0xff] %v18116_v63  ;;  %v18123_v20 = vadd.f32 %v5792_v14, %v5223_v61  ;;  %v18126_v15 = vpop.f32.mrf.mxu0  ;;  %v21617_v14 = vld [vmem:[#allocation247_spill] sm:$0xff] }
 0x675   : > { %v12431_v55 = vpop.f32.mrf.mxu1  ;;  %21607 = vst [vmem:[#allocation203_spill] sm:$0xff] %v18126_v15  ;;  %12662 = vmatmul.mubr.msk.bf16.gmra.mxu1 %vm21609_vm11, %v21608_v54  ;;  %v4692_v23 = vadd.f32 %v21617_v14, %v21616_v56  ;;  %v5229_v54 = vadd.f32 %v21618_v50, %v4679_v9  ;;  %v5227_v35 = vadd.f32 %v21622_v1, %v4671_v21  ;;  %v21634_v1 = vld [vmem:[#allocation145_spill] sm:$0xff]  ;;  %vm21704_vm11 = vmmov %vm21316_vm0 }
 0x676   : > { %21605 = vst [vmem:[#allocation90_spill] sm:$0xff] %v18123_v20  ;;  %v18132_v34 = vadd.f32 %v12431_v55, %v5228_v42  ;;  %12665 = vmatprep.mubr.msk.bf16.mxu1 %vm21613_vm13, %v21612_v53  ;;  %v18137_v61 = vpop.f32.mrf.mxu0  ;;  %v21620_v42 = vld [vmem:[#allocation146_spill] sm:$0xff]  ;;  %vm21708_vm13 = vmmov %vm21316_vm0 }
 0x677   : > { %v5805_v4 = vpop.f32.mrf.mxu1  ;;  %21615 = vst [vmem:[#allocation85_spill] sm:$0xff] %v18137_v61  ;;  %v4684_v55 = vadd.f32 %v17637_v33, %v21620_v42  ;;  %v21624_v61 = vld [vmem:[#allocation148_spill] sm:$0xff]  ;;  %v21630_v33 = vld [vmem:[#allocation150_spill] sm:$0xff]  ;;  %v21632_v42 = vld [vmem:[#allocation33_spill] sm:$0xff] }
 0x678   : > { %v18141_v15 = vadd.f32 %v5805_v4, %v5226_v7  ;;  %v18144_v63 = vpop.f32.mrf.mxu0  ;;  %v4695_v56 = vadd.f32 %v17641_v24, %v21624_v61  ;;  %v21626_v4 = vld [vmem:[#allocation143_spill] sm:$0xff] }
 0x679   : > { %v12432_v20 = vpop.f32.mrf.mxu1  ;;  %21619 = vst [vmem:[#allocation92_spill] sm:$0xff] %v18144_v63  ;;  %v5232_v50 = vadd.f32 %v21626_v4, %v4692_v23  ;;  %v21628_v63 = vld [vmem:[#allocation32_spill] sm:$0xff]  ;;  %v5230_v24 = vadd.f32 %v21634_v1, %v4684_v55 }
 0x67a   : > { %v18148_v12 = vadd.f32 %v12432_v20, %v5229_v54  ;;  %v18151_v41 = vpop.f32.mrf.mxu0  ;;  %v21631_v20 = vld [vmem:[#allocation251_spill] sm:$0xff]  ;;  %v21636_v23 = vld [vmem:[#allocation152_spill] sm:$0xff] }
 0x67b   : > { %v5808_v53 = vpop.f32.mrf.mxu1  ;;  %21623 = vst [vmem:[#allocation87_spill] sm:$0xff] %v18151_v41  ;;  %v4687_v54 = vadd.f32 %v21631_v20, %v21630_v33  ;;  %v21638_v41 = vld [vmem:[#allocation147_spill] sm:$0xff]  ;;  %v21641_v20 = vld [vmem:[#allocation149_spill] sm:$0xff] }
 0x67c   : > { %21621 = vst [vmem:[#allocation205_spill] sm:$0xff] %v18148_v12  ;;  %v18155_v7 = vadd.f32 %v5808_v53, %v5227_v35  ;;  %v18158_v14 = vpop.f32.mrf.mxu0  ;;  %v21637_v53 = vld [vmem:[#allocation253_spill] sm:$0xff] }
 0x67d   : > { %v12435_v9 = vpop.f32.mrf.mxu1  ;;  %21627 = vst [vmem:[#allocation94_spill] sm:$0xff] %v18158_v14  ;;  %12666 = vmatmul.mubr.msk.bf16.gmra.mxu1 %vm21629_vm12, %v21628_v63  ;;  %v4708_v4 = vadd.f32 %v21637_v53, %v21636_v23  ;;  %v5233_v63 = vadd.f32 %v21638_v41, %v4695_v56  ;;  %v5231_v55 = vadd.f32 %v21641_v20, %v4687_v54  ;;  %v21645_v53 = vld [vmem:[#allocation35_spill] sm:$0xff]  ;;  %vm21714_vm12 = vmmov %vm21316_vm0 }
 0x67e   : > { %21625 = vst [vmem:[#allocation18_spill] sm:$0xff] %v18155_v7  ;;  %v18164_v21 = vadd.f32 %v12435_v9, %v5232_v50  ;;  %12669 = vmatprep.mubr.msk.bf16.mxu1 %vm21633_vm2, %v21632_v42  ;;  %v18169_v35 = vpop.f32.mrf.mxu0  ;;  %v21640_v50 = vld [vmem:[#allocation154_spill] sm:$0xff]  ;;  %vm21718_vm2 = vmmov %vm21316_vm0 }
 0x67f   : > { %v5821_v61 = vpop.f32.mrf.mxu1  ;;  %21635 = vst [vmem:[#allocation207_spill] sm:$0xff] %v18169_v35  ;;  %v4700_v9 = vadd.f32 %v17661_v38, %v21640_v50  ;;  %v21643_v35 = vld [vmem:[#allocation156_spill] sm:$0xff]  ;;  %v21651_v50 = vld [vmem:[#allocation153_spill] sm:$0xff] }
 0x680   : > { %v18173_v14 = vadd.f32 %v5821_v61, %v5230_v24  ;;  %v18176_v12 = vpop.f32.mrf.mxu0  ;;  %v4711_v23 = vadd.f32 %v17667_v46, %v21643_v35  ;;  %v21644_v61 = vld [vmem:[#allocation151_spill] sm:$0xff] }
 0x681   : > { %v12436_v7 = vpop.f32.mrf.mxu1  ;;  %21639 = vst [vmem:[#allocation19_spill] sm:$0xff] %v18176_v12  ;;  %v5236_v41 = vadd.f32 %v21644_v61, %v4708_v4  ;;  %v21647_v12 = vld [vmem:[#allocation158_spill] sm:$0xff]  ;;  %v5234_v46 = vadd.f32 %v21651_v50, %v4700_v9  ;;  %v21652_v4 = vld [vmem:[#allocation155_spill] sm:$0xff]  ;;  %v21656_v9 = vld [vmem:[#allocation37_spill] sm:$0xff] }
 0x682   : > { %v18180_v33 = vadd.f32 %v12436_v7, %v5233_v63  ;;  %v18183_v1 = vpop.f32.mrf.mxu0  ;;  %v4703_v38 = vadd.f32 %v17674_v43, %v21647_v12  ;;  %v21649_v63 = vld [vmem:[#allocation36_spill] sm:$0xff]  ;;  %v21654_v43 = vld [vmem:[#allocation157_spill] sm:$0xff] }
 0x683   : > { %v5824_v42 = vpop.f32.mrf.mxu1  ;;  %21642 = vst [vmem:[#allocation89_spill] sm:$0xff] %v18183_v1 }
 0x684   : > { %v18187_v24 = vadd.f32 %v5824_v42, %v5231_v55  ;;  %v18196_v54 = vpop.f32.mrf.mxu0  ;;  %v5237_v55 = vadd.f32 %v21652_v4, %v4711_v23  ;;  %v5235_v12 = vadd.f32 %v21654_v43, %v4703_v38 }
 0x685   : > { %v12439_v56 = vpop.f32.mrf.mxu1  ;;  %12670 = vmatmul.mubr.msk.bf16.gmra.mxu1 %vm21646_vm10, %v21645_v53  ;;  %21648 = vst [vmem:[#allocation96_spill] sm:$0xff] %v18196_v54  ;;  %v21655_v54 = vld [vmem:[#allocation159_spill] sm:$0xff]  ;;  %vm21725_vm10 = vmmov %vm21316_vm0 }
 0x686   : > { %v18194_v7 = vadd.f32 %v12439_v56, %v5236_v41  ;;  %12673 = vmatprep.mubr.msk.bf16.mxu1 %vm21650_vm15, %v21649_v63  ;;  %v18204_v61 = vpop.f32.mrf.mxu0  ;;  %v6796_v63 = vadd.f32 %v21655_v54, %v17690_v19  ;;  %vm9524_vm15 = vcmask 64512  }
 0x687   : > { %v5837_v35 = vpop.f32.mrf.mxu1  ;;  %21653 = vst [vmem:[#allocation209_spill] sm:$0xff] %v18204_v61 }
 0x688   : > { %v18201_v20 = vadd.f32 %v5837_v35, %v5234_v46  ;;  %v18215_v50 = vpop.f32.mrf.mxu0  ;;  %v21659_v46 = vld [vmem:[#allocation39_spill] sm:$0xff]  ;;  %v21660_v35 = vld [vmem:[#allocation160_spill] sm:$0xff] }
 0x689   : > { %v12440_v42 = vpop.f32.mrf.mxu1  ;;  %21658 = vst [vmem:[#allocation91_spill] sm:$0xff] %v18215_v50  ;;  %v6794_v38 = vadd.f32 %v21660_v35, %v17699_v37 }
 0x68a   : > { %v18206_v53 = vadd.f32 %v12440_v42, %v5237_v55  ;;  %v21661_v42 = vld [vmem:[#allocation161_spill] sm:$0xff]  ;;  %v18227_v43 = vpop.f32.mrf.mxu0 }
 0x68b   : > { %v5840_v41 = vpop.f32.mrf.mxu1  ;;  %v6797_v19 = vadd.f32 %v21661_v42, %v17706_v49  ;;  %v21667_v42 = vld [vmem:[#allocation42_spill] sm:$0xff] }
 0x68c   : > { %v18209_v56 = vadd.f32 %v5840_v41, %v5235_v12 }
 0x68d   : > { %v12511_v1 = vpop.f32.mrf.mxu1  ;;  %12674 = vmatmul.mubr.msk.bf16.gmra.mxu1 %vm21657_vm4, %v21656_v9  ;;  %vm21997_vm4 = vmmov %vm21316_vm0 }
 0x68e   : > { %v18217_v23 = vadd.f32 %v12511_v1, %v6796_v63  ;;  %12677 = vmatprep.mubr.msk.bf16.mxu1 %vm21316_vm0, %v21659_v46  ;;  %v21662_v1 = vld [vmem:[#allocation162_spill] sm:$0xff]  ;;  %v21663_v46 = vld [vmem:[#allocation163_spill] sm:$0xff] }
 0x68f   : > { %v7062_v4 = vpop.f32.mrf.mxu1  ;;  %v6795_v41 = vadd.f32 %v21662_v1, %v17716_v36  ;;  %v6800_v37 = vadd.f32 %v21663_v46, %v17726_v28 }
 0x690   : > { %v18223_v55 = vadd.f32 %v7062_v4, %v6794_v38  ;;  %v21664_v38 = vld [vmem:[#allocation41_spill] sm:$0xff]  ;;  %v18239_v4 = vpop.f32.mrf.mxu0 }
 0x691   : > { %v12512_v54 = vpop.f32.mrf.mxu1  ;;  %21666 = vst [vmem:[#allocation98_spill] sm:$0xff] %v18239_v4 }
 0x692   : > { %v18229_v12 = vadd.f32 %v12512_v54, %v6797_v19  ;;  %v21669_v19 = vld [vmem:[#allocation164_spill] sm:$0xff]  ;;  %v18251_v46 = vpop.f32.mrf.mxu0 }
 0x693   : > { %v7065_v63 = vpop.f32.mrf.mxu1  ;;  %v6798_v36 = vadd.f32 %v21669_v19, %v17735_v62  ;;  %21671 = vst [vmem:[#allocation211_spill] sm:$0xff] %v18251_v46 }
 0x694   : > { %v18233_v9 = vadd.f32 %v7065_v63, %v6795_v41  ;;  %v21670_v41 = vld [vmem:[#allocation165_spill] sm:$0xff] }
 0x695   : > { %v12515_v35 = vpop.f32.mrf.mxu1  ;;  %12678 = vmatmul.mubr.msk.bf16.gmra.mxu1 %vm21665_vm9, %v21664_v38  ;;  %v6801_v28 = vadd.f32 %v21670_v41, %v17742_v40  ;;  %v21677_v41 = vld [vmem:[#allocation47_spill] sm:$0xff]  ;;  %vm22000_vm9 = vmmov %vm21316_vm0 }
 0x696   : > { %v18241_v49 = vadd.f32 %v12515_v35, %v6800_v37  ;;  %12681 = vmatprep.mubr.msk.bf16.mxu1 %vm21668_vm6, %v21667_v42  ;;  %v21672_v37 = vld [vmem:[#allocation166_spill] sm:$0xff]  ;;  %v21673_v42 = vld [vmem:[#allocation167_spill] sm:$0xff]  ;;  %vm22003_vm6 = vmmov %vm21316_vm0 }
 0x697   : > { %v7078_v54 = vpop.f32.mrf.mxu1  ;;  %v6799_v35 = vadd.f32 %v21672_v37, %v17752_v47  ;;  %v6804_v62 = vadd.f32 %v21673_v42, %v17762_v59  ;;  %v21680_v37 = vld [vmem:[#allocation169_spill] sm:$0xff] }
 0x698   : > { %v18247_v1 = vadd.f32 %v7078_v54, %v6798_v36  ;;  %v21674_v36 = vld [vmem:[#allocation44_spill] sm:$0xff]  ;;  %v18263_v54 = vpop.f32.mrf.mxu0  ;;  %v6805_v59 = vadd.f32 %v21680_v37, %v17778_v22  ;;  %v21687_v37 = vld [vmem:[#allocation49_spill] sm:$0xff] }
 0x699   : > { %v12516_v63 = vpop.f32.mrf.mxu1  ;;  %21676 = vst [vmem:[#allocation93_spill] sm:$0xff] %v18263_v54 }
 0x69a   : > { %v18253_v38 = vadd.f32 %v12516_v63, %v6801_v28  ;;  %v21679_v28 = vld [vmem:[#allocation168_spill] sm:$0xff]  ;;  %v18275_v42 = vpop.f32.mrf.mxu0 }
 0x69b   : > { %v7081_v50 = vpop.f32.mrf.mxu1  ;;  %v6802_v47 = vadd.f32 %v21679_v28, %v17771_v2  ;;  %21681 = vst [vmem:[#allocation100_spill] sm:$0xff] %v18275_v42 }
 0x69c   : > { %v18257_v61 = vadd.f32 %v7081_v50, %v6799_v35 }
 0x69d   : > { %v12519_v19 = vpop.f32.mrf.mxu1  ;;  %12682 = vmatmul.mubr.msk.bf16.gmra.mxu1 %vm21675_vm5, %v21674_v36  ;;  %vm22006_vm5 = vmmov %vm21316_vm0 }
 0x69e   : > { %v18265_v40 = vadd.f32 %v12519_v19, %v6804_v62  ;;  %12685 = vmatprep.mubr.msk.bf16.mxu1 %vm21678_vm1, %v21677_v41  ;;  %v21682_v62 = vld [vmem:[#allocation170_spill] sm:$0xff]  ;;  %v21683_v41 = vld [vmem:[#allocation171_spill] sm:$0xff]  ;;  %vm22009_vm1 = vmmov %vm21316_vm0 }
 0x69f   : > { %v7094_v63 = vpop.f32.mrf.mxu1  ;;  %v6803_v19 = vadd.f32 %v21682_v62, %v17788_v51  ;;  %v6808_v2 = vadd.f32 %v21683_v41, %v17798_v48  ;;  %v21690_v62 = vld [vmem:[#allocation173_spill] sm:$0xff] }
 0x6a0   : > { %v18271_v50 = vadd.f32 %v7094_v63, %v6802_v47  ;;  %v21684_v47 = vld [vmem:[#allocation48_spill] sm:$0xff]  ;;  %v18287_v63 = vpop.f32.mrf.mxu0  ;;  %v6809_v48 = vadd.f32 %v21690_v62, %v17814_v18  ;;  %v21697_v62 = vld [vmem:[#allocation51_spill] sm:$0xff] }
 0x6a1   : > { %v12520_v35 = vpop.f32.mrf.mxu1  ;;  %21686 = vst [vmem:[#allocation213_spill] sm:$0xff] %v18287_v63 }
 0x6a2   : > { %v18277_v36 = vadd.f32 %v12520_v35, %v6805_v59  ;;  %v21689_v59 = vld [vmem:[#allocation172_spill] sm:$0xff]  ;;  %v18299_v41 = vpop.f32.mrf.mxu0 }
 0x6a3   : > { %v7097_v54 = vpop.f32.mrf.mxu1  ;;  %v6806_v51 = vadd.f32 %v21689_v59, %v17807_v30  ;;  %21691 = vst [vmem:[#allocation95_spill] sm:$0xff] %v18299_v41  ;;  %v21707_v41 = vld [vmem:[#allocation54_spill] sm:$0xff] }
 0x6a4   : > { %v18281_v46 = vadd.f32 %v7097_v54, %v6803_v19 }
 0x6a5   : > { %v12523_v28 = vpop.f32.mrf.mxu1  ;;  %12686 = vmatmul.mubr.msk.bf16.gmra.mxu1 %vm21685_vm7, %v21684_v47  ;;  %vm22010_vm7 = vmmov %vm21316_vm0 }
 0x6a6   : > { %v18289_v22 = vadd.f32 %v12523_v28, %v6808_v2  ;;  %12689 = vmatprep.mubr.msk.bf16.mxu1 %vm21688_vm3, %v21687_v37  ;;  %v21692_v2 = vld [vmem:[#allocation175_spill] sm:$0xff]  ;;  %v21693_v37 = vld [vmem:[#allocation177_spill] sm:$0xff]  ;;  %vm22013_vm3 = vmmov %vm21316_vm0 }
 0x6a7   : > { %v7110_v35 = vpop.f32.mrf.mxu1  ;;  %v6807_v28 = vadd.f32 %v21692_v2, %v17824_v31  ;;  %v6812_v30 = vadd.f32 %v21693_v37, %v17834_v3  ;;  %v21699_v31 = vld [vmem:[#allocation181_spill] sm:$0xff] }
 0x6a8   : > { %v18295_v54 = vadd.f32 %v7110_v35, %v6806_v51  ;;  %v21694_v51 = vld [vmem:[#allocation50_spill] sm:$0xff]  ;;  %v18311_v35 = vpop.f32.mrf.mxu0  ;;  %v21702_v37 = vld [vmem:[#allocation185_spill] sm:$0xff] }
 0x6a9   : > { %v12524_v19 = vpop.f32.mrf.mxu1  ;;  %21696 = vst [vmem:[#allocation20_spill] sm:$0xff] %v18311_v35 }
 0x6aa   : > { %v18301_v47 = vadd.f32 %v12524_v19, %v6809_v48  ;;  %v18321_v2 = vpop.f32.mrf.mxu0 }
 0x6ab   : > { %v7113_v63 = vpop.f32.mrf.mxu1  ;;  %21700 = vst [vmem:[#allocation102_spill] sm:$0xff] %v18321_v2 }
 0x6ac   : > { %v18305_v42 = vadd.f32 %v7113_v63, %v6807_v28  ;;  %v6813_v63 = vadd.f32 %v21699_v31, %v17850_v57  ;;  %v21709_v31 = vld [vmem:[#allocation189_spill] sm:$0xff] }
 0x6ad   : > { %v12527_v59 = vpop.f32.mrf.mxu1  ;;  %12690 = vmatmul.mubr.msk.bf16.gmra.mxu1 %vm21695_vm14, %v21694_v51  ;;  %v6816_v51 = vadd.f32 %v21702_v37, %v17870_v11  ;;  %v21711_v37 = vld [vmem:[#allocation191_spill] sm:$0xff]  ;;  %vm22016_vm14 = vmmov %vm21316_vm0 }
 0x6ae   : > { %v18313_v18 = vadd.f32 %v12527_v59, %v6812_v30  ;;  %12693 = vmatprep.mubr.msk.bf16.mxu1 %vm21698_vm8, %v21697_v62  ;;  %v21703_v59 = vld [vmem:[#allocation53_spill] sm:$0xff]  ;;  %v18331_v62 = vpop.f32.mrf.mxu0  ;;  %vm22018_vm8 = vmmov %vm21316_vm0 }
 0x6af   : > { %v18317_v48 = vpop.f32.mrf.mxu1  ;;  %21705 = vst [vmem:[#allocation21_spill] sm:$0xff] %v18331_v62 }
 0x6b0   : > { %v18341_v2 = vpop.f32.mrf.mxu0 }
 0x6b1   : > { %v12528_v19 = vpop.f32.mrf.mxu1  ;;  %21710 = vst [vmem:[#allocation104_spill] sm:$0xff] %v18341_v2  ;;  %v21724_v2 = vld [vmem:[#allocation59_spill] sm:$0xff] }
 0x6b2   : > { %v18323_v3 = vadd.f32 %v12528_v19, %v6813_v63  ;;  %v6817_v63 = vadd.f32 %v21709_v31, %v17886_v29  ;;  %v21717_v31 = vld [vmem:[#allocation58_spill] sm:$0xff] }
 0x6b3   : > { %v18325_v28 = vpop.f32.mrf.mxu1 }
 0x6b4   : > { %21701 = vst [vmem:[#allocation215_spill] sm:$0xff] %v18323_v3  ;;  %v18353_v3 = vpop.f32.mrf.mxu0 }
 0x6b5   : > { %v12531_v30 = vpop.f32.mrf.mxu1  ;;  %12694 = vmatmul.mubr.msk.bf16.gmra.mxu1 %vm21704_vm11, %v21703_v59  ;;  %v6815_v59 = vadd.f32 %v21711_v37, %v17896_v10  ;;  %21715 = vst [vmem:[#allocation217_spill] sm:$0xff] %v18353_v3  ;;  %v21719_v10 = vld [vmem:[#allocation196_spill] sm:$0xff]  ;;  %vm22019_vm11 = vmmov %vm21316_vm0 }
 0x6b6   : > { %v18333_v35 = vadd.f32 %v12531_v30, %v6816_v51  ;;  %12697 = vmatprep.mubr.msk.bf16.mxu1 %vm21708_vm13, %v21707_v41  ;;  %v21712_v51 = vld [vmem:[#allocation193_spill] sm:$0xff]  ;;  %v18363_v37 = vpop.f32.mrf.mxu0  ;;  %vm22021_vm13 = vmmov %vm21316_vm0 }
 0x6b7   : > { %v18337_v57 = vpop.f32.mrf.mxu1  ;;  %v6820_v30 = vadd.f32 %v21712_v51, %v17906_v39  ;;  %21720 = vst [vmem:[#allocation106_spill] sm:$0xff] %v18363_v37 }
 0x6b8   : > { %21706 = vst [vmem:[#allocation97_spill] sm:$0xff] %v18333_v35  ;;  %v21713_v35 = vld [vmem:[#allocation56_spill] sm:$0xff] }
 0x6b9   : > { %v12532_v19 = vpop.f32.mrf.mxu1 }
 0x6ba   : > { %v18343_v11 = vadd.f32 %v12532_v19, %v6817_v63 }
 0x6bb   : > { %v7145_v4 = vpop.f32.mrf.mxu1 }
 0x6bc   : > { %v18347_v62 = vadd.f32 %v7145_v4, %v6815_v59  ;;  %v6821_v4 = vadd.f32 %v21719_v10, %v17922_v0  ;;  %v21721_v59 = vld [vmem:[#allocation198_spill] sm:$0xff] }
 0x6bd   : > { %v12535_v41 = vpop.f32.mrf.mxu1  ;;  %12698 = vmatmul.mubr.msk.bf16.gmra.mxu1 %vm21714_vm12, %v21713_v35  ;;  %v6819_v35 = vadd.f32 %v21721_v59, %v17931_v6  ;;  %vm22024_vm12 = vmmov %vm21316_vm0 }
 0x6be   : > { %v18355_v29 = vadd.f32 %v12535_v41, %v6820_v30  ;;  %12701 = vmatprep.mubr.msk.bf16.mxu1 %vm21718_vm2, %v21717_v31  ;;  %v21723_v30 = vld [vmem:[#allocation200_spill] sm:$0xff]  ;;  %vm22026_vm2 = vmmov %vm21316_vm0 }
 0x6bf   : > { %v18359_v63 = vpop.f32.mrf.mxu1  ;;  %v6824_v41 = vadd.f32 %v21723_v30, %v17940_v32  ;;  %v21731_v32 = vld [vmem:[#allocation206_spill] sm:$0xff] }
 0x6c0   : > { %21716 = vst [vmem:[#allocation99_spill] sm:$0xff] %v18355_v29  ;;  %v18375_v29 = vpop.f32.mrf.mxu0 }
 0x6c1   : > { %v12536_v19 = vpop.f32.mrf.mxu1  ;;  %21726 = vst [vmem:[#allocation101_spill] sm:$0xff] %v18375_v29  ;;  %v21734_v29 = vld [vmem:[#allocation208_spill] sm:$0xff] }
 0x6c2   : > { %v18365_v39 = vadd.f32 %v12536_v19, %v6821_v4  ;;  %v21728_v4 = vld [vmem:[#allocation204_spill] sm:$0xff]  ;;  %v18383_v59 = vpop.f32.mrf.mxu0 }
 0x6c3   : > { %v7161_v51 = vpop.f32.mrf.mxu1  ;;  %v6825_v19 = vadd.f32 %v21728_v4, %v17956_v44  ;;  %21729 = vst [vmem:[#allocation221_spill] sm:$0xff] %v18383_v59  ;;  %v21736_v44 = vld [vmem:[#allocation210_spill] sm:$0xff] }
 0x6c4   : > { %v18369_v3 = vadd.f32 %v7161_v51, %v6819_v35  ;;  %v6823_v51 = vadd.f32 %v21731_v32, %v17963_v27  ;;  %v6826_v4 = vadd.f32 %v21736_v44, %v17981_v5 }
 0x6c5   : > { %v12539_v31 = vpop.f32.mrf.mxu1  ;;  %12702 = vmatmul.mubr.msk.bf16.gmra.mxu1 %vm21725_vm10, %v21724_v2  ;;  %v21733_v2 = vld [vmem:[#allocation74_spill] sm:$0xff]  ;;  %vm22027_vm10 = vmmov %vm21316_vm0 }
 0x6c6   : > { %21722 = vst [vmem:[#allocation219_spill] sm:$0xff] %v18369_v3  ;;  %v18377_v0 = vadd.f32 %v12539_v31, %v6824_v41  ;;  %v6828_v41 = vadd.f32 %v21734_v29, %v21733_v2  ;;  %v21741_v29 = vld [vmem:[#allocation71_spill] sm:$0xff]  ;;  %v21742_v2 = vld [vmem:[#allocation214_spill] sm:$0xff] }
 0x6c7   : > { %v18379_v10 = vpop.f32.mrf.mxu1 }
 0x6c8   : > { %21727 = vst [vmem:[#allocation108_spill] sm:$0xff] %v18377_v0  ;;  %v18393_v0 = vpop.f32.mrf.mxu0 }
 0x6c9   : > { %v12540_v6 = vpop.f32.mrf.mxu1  ;;  %21735 = vst [vmem:[#allocation110_spill] sm:$0xff] %v18393_v0 }
 0x6ca   : > { %v18385_v35 = vadd.f32 %v12540_v6, %v6825_v19  ;;  %v21737_v6 = vld [vmem:[#allocation76_spill] sm:$0xff] }
 0x6cb   : > { %v7177_v30 = vpop.f32.mrf.mxu1 }
 0x6cc   : > { %21730 = vst [vmem:[#allocation103_spill] sm:$0xff] %v18385_v35  ;;  %v18389_v37 = vadd.f32 %v7177_v30, %v6823_v51  ;;  %v21738_v35 = vld [vmem:[#allocation212_spill] sm:$0xff]  ;;  %v18403_v51 = vpop.f32.mrf.mxu0 }
 0x6cd   : > { %v12543_v31 = vpop.f32.mrf.mxu1  ;;  %v6829_v27 = vadd.f32 %v21738_v35, %v21737_v6  ;;  %21739 = vst [vmem:[#allocation223_spill] sm:$0xff] %v18403_v51  ;;  %v21746_v35 = vld [vmem:[#allocation218_spill] sm:$0xff] }
 0x6ce   : > { %21732 = vst [vmem:[#allocation22_spill] sm:$0xff] %v18389_v37  ;;  %v18395_v3 = vadd.f32 %v12543_v31, %v6828_v41  ;;  %v6827_v37 = vadd.f32 %v21742_v2, %v21741_v29  ;;  %v21744_v31 = vld [vmem:[#allocation216_spill] sm:$0xff]  ;;  %v6830_v6 = vadd.f32 %v21746_v35, %v18013_v52 }
 0x6cf   : > { %v7190_v59 = vpop.f32.mrf.mxu1  ;;  %v6832_v5 = vadd.f32 %v21744_v31, %v18004_v16  ;;  %v21750_v16 = vld [vmem:[#allocation80_spill] sm:$0xff]  ;;  %v21751_v31 = vld [vmem:[#allocation222_spill] sm:$0xff] }
 0x6d0   : > { %v18399_v19 = vadd.f32 %v7190_v59, %v6826_v4  ;;  %v18413_v59 = vpop.f32.mrf.mxu0 }
 0x6d1   : > { %v12544_v32 = vpop.f32.mrf.mxu1  ;;  %21745 = vst [vmem:[#allocation112_spill] sm:$0xff] %v18413_v59 }
 0x6d2   : > { %v18405_v30 = vadd.f32 %v12544_v32, %v6829_v27  ;;  %v21747_v32 = vld [vmem:[#allocation15_spill] sm:$0xff] }
 0x6d3   : > { %v7193_v0 = vpop.f32.mrf.mxu1 }
 0x6d4   : > { %21740 = vst [vmem:[#allocation23_spill] sm:$0xff] %v18405_v30  ;;  %v18409_v41 = vadd.f32 %v7193_v0, %v6827_v37  ;;  %v21748_v30 = vld [vmem:[#allocation220_spill] sm:$0xff]  ;;  %v18423_v37 = vpop.f32.mrf.mxu0 }
 0x6d5   : > { %v12547_v44 = vpop.f32.mrf.mxu1  ;;  %v6833_v29 = vadd.f32 %v21748_v30, %v21747_v32  ;;  %21749 = vst [vmem:[#allocation225_spill] sm:$0xff] %v18423_v37  ;;  %v21754_v30 = vld [vmem:[#allocation226_spill] sm:$0xff] }
 0x6d6   : > { %21743 = vst [vmem:[#allocation105_spill] sm:$0xff] %v18409_v41  ;;  %v18415_v4 = vadd.f32 %v12547_v44, %v6832_v5  ;;  %v6831_v41 = vadd.f32 %v21751_v31, %v21750_v16  ;;  %v21752_v44 = vld [vmem:[#allocation224_spill] sm:$0xff]  ;;  %v6834_v32 = vadd.f32 %v21754_v30, %v18045_v26 }
 0x6d7   : > { %v7206_v51 = vpop.f32.mrf.mxu1  ;;  %v6836_v52 = vadd.f32 %v21752_v44, %v18036_v60  ;;  %v21758_v60 = vld [vmem:[#allocation228_spill] sm:$0xff] }
 0x6d8   : > { %v18419_v27 = vadd.f32 %v7206_v51, %v6830_v6  ;;  %v18433_v51 = vpop.f32.mrf.mxu0  ;;  %v6835_v44 = vadd.f32 %v21758_v60, %v18059_v8 }
 0x6d9   : > { %v12548_v2 = vpop.f32.mrf.mxu1  ;;  %21753 = vst [vmem:[#allocation107_spill] sm:$0xff] %v18433_v51 }
 0x6da   : > { %v18425_v0 = vadd.f32 %v12548_v2, %v6833_v29  ;;  %v21755_v2 = vld [vmem:[#allocation227_spill] sm:$0xff] }
 0x6db   : > { %v7209_v59 = vpop.f32.mrf.mxu1  ;;  %v6837_v16 = vadd.f32 %v21755_v2, %v18052_v58  ;;  %v21762_v58 = vld [vmem:[#allocation232_spill] sm:$0xff] }
 0x6dc   : > { %v18429_v5 = vadd.f32 %v7209_v59, %v6831_v41  ;;  %v18443_v41 = vpop.f32.mrf.mxu0  ;;  %v6838_v2 = vadd.f32 %v21762_v58, %v18077_v17 }
 0x6dd   : > { %v12551_v35 = vpop.f32.mrf.mxu1  ;;  %21756 = vst [vmem:[#allocation114_spill] sm:$0xff] %v18443_v41 }
 0x6de   : > { %v18435_v6 = vadd.f32 %v12551_v35, %v6836_v52  ;;  %v21760_v35 = vld [vmem:[#allocation230_spill] sm:$0xff] }
 0x6df   : > { %v7222_v37 = vpop.f32.mrf.mxu1  ;;  %v6840_v26 = vadd.f32 %v21760_v35, %v18068_v45  ;;  %v21767_v45 = vld [vmem:[#allocation199_spill] sm:$0xff]  ;;  %v21768_v35 = vld [vmem:[#allocation234_spill] sm:$0xff] }
 0x6e0   : > { %v18439_v29 = vadd.f32 %v7222_v37, %v6834_v32  ;;  %v18453_v37 = vpop.f32.mrf.mxu0 }
 0x6e1   : > { %v12552_v31 = vpop.f32.mrf.mxu1  ;;  %21761 = vst [vmem:[#allocation111_spill] sm:$0xff] %v18453_v37 }
 0x6e2   : > { %v18445_v59 = vadd.f32 %v12552_v31, %v6837_v16  ;;  %v21763_v31 = vld [vmem:[#allocation16_spill] sm:$0xff] }
 0x6e3   : > { %v7225_v51 = vpop.f32.mrf.mxu1 }
 0x6e4   : > { %21757 = vst [vmem:[#allocation109_spill] sm:$0xff] %v18445_v59  ;;  %v18449_v52 = vadd.f32 %v7225_v51, %v6835_v44  ;;  %v21764_v59 = vld [vmem:[#allocation233_spill] sm:$0xff]  ;;  %v18463_v51 = vpop.f32.mrf.mxu0 }
 0x6e5   : > { %v12555_v30 = vpop.f32.mrf.mxu1  ;;  %v6841_v8 = vadd.f32 %v21764_v59, %v21763_v31  ;;  %21765 = vst [vmem:[#allocation24_spill] sm:$0xff] %v18463_v51  ;;  %v21772_v59 = vld [vmem:[#allocation236_spill] sm:$0xff] }
 0x6e6   : > { %21759 = vst [vmem:[#allocation116_spill] sm:$0xff] %v18449_v52  ;;  %v18455_v32 = vadd.f32 %v12555_v30, %v6840_v26  ;;  %v6839_v52 = vadd.f32 %v21768_v35, %v21767_v45  ;;  %v21770_v30 = vld [vmem:[#allocation235_spill] sm:$0xff]  ;;  %v6842_v31 = vadd.f32 %v21772_v59, %v18109_v13 }
 0x6e7   : > { %v7238_v41 = vpop.f32.mrf.mxu1  ;;  %v6844_v17 = vadd.f32 %v21770_v30, %v18100_v25  ;;  %v21777_v25 = vld [vmem:[#allocation90_spill] sm:$0xff] }
 0x6e8   : > { %v18459_v16 = vadd.f32 %v7238_v41, %v6838_v2  ;;  %v18473_v41 = vpop.f32.mrf.mxu0  ;;  %v21778_v30 = vld [vmem:[#allocation238_spill] sm:$0xff] }
 0x6e9   : > { %v12556_v60 = vpop.f32.mrf.mxu1  ;;  %21771 = vst [vmem:[#allocation25_spill] sm:$0xff] %v18473_v41 }
 0x6ea   : > { %v18465_v44 = vadd.f32 %v12556_v60, %v6841_v8  ;;  %v21773_v60 = vld [vmem:[#allocation201_spill] sm:$0xff] }
 0x6eb   : > { %v7241_v37 = vpop.f32.mrf.mxu1 }
 0x6ec   : > { %21766 = vst [vmem:[#allocation118_spill] sm:$0xff] %v18465_v44  ;;  %v18469_v26 = vadd.f32 %v7241_v37, %v6839_v52  ;;  %v21774_v44 = vld [vmem:[#allocation237_spill] sm:$0xff]  ;;  %v18483_v52 = vpop.f32.mrf.mxu0 }
 0x6ed   : > { %v12559_v58 = vpop.f32.mrf.mxu1  ;;  %v6845_v45 = vadd.f32 %v21774_v44, %v21773_v60  ;;  %21775 = vst [vmem:[#allocation113_spill] sm:$0xff] %v18483_v52  ;;  %v21782_v44 = vld [vmem:[#allocation242_spill] sm:$0xff] }
 0x6ee   : > { %21769 = vst [vmem:[#allocation229_spill] sm:$0xff] %v18469_v26  ;;  %v18475_v2 = vadd.f32 %v12559_v58, %v6844_v17  ;;  %v6843_v26 = vadd.f32 %v21778_v30, %v21777_v25  ;;  %v21780_v58 = vld [vmem:[#allocation240_spill] sm:$0xff]  ;;  %v6846_v60 = vadd.f32 %v21782_v44, %v18141_v15 }
 0x6ef   : > { %v7254_v51 = vpop.f32.mrf.mxu1  ;;  %v6848_v13 = vadd.f32 %v21780_v58, %v18132_v34  ;;  %v21786_v34 = vld [vmem:[#allocation18_spill] sm:$0xff]  ;;  %v21787_v58 = vld [vmem:[#allocation244_spill] sm:$0xff] }
 0x6f0   : > { %v18479_v8 = vadd.f32 %v7254_v51, %v6842_v31  ;;  %v18493_v51 = vpop.f32.mrf.mxu0 }
 0x6f1   : > { %v12560_v35 = vpop.f32.mrf.mxu1  ;;  %21781 = vst [vmem:[#allocation115_spill] sm:$0xff] %v18493_v51 }
 0x6f2   : > { %v18485_v37 = vadd.f32 %v12560_v35, %v6845_v45  ;;  %v21783_v35 = vld [vmem:[#allocation205_spill] sm:$0xff] }
 0x6f3   : > { %v7257_v41 = vpop.f32.mrf.mxu1 }
 0x6f4   : > { %21776 = vst [vmem:[#allocation120_spill] sm:$0xff] %v18485_v37  ;;  %v18489_v17 = vadd.f32 %v7257_v41, %v6843_v26  ;;  %v21784_v37 = vld [vmem:[#allocation243_spill] sm:$0xff]  ;;  %v18503_v26 = vpop.f32.mrf.mxu0 }
 0x6f5   : > { %v12563_v59 = vpop.f32.mrf.mxu1  ;;  %v6849_v25 = vadd.f32 %v21784_v37, %v21783_v35  ;;  %21785 = vst [vmem:[#allocation122_spill] sm:$0xff] %v18503_v26  ;;  %v21792_v37 = vld [vmem:[#allocation248_spill] sm:$0xff] }
 0x6f6   : > { %21779 = vst [vmem:[#allocation231_spill] sm:$0xff] %v18489_v17  ;;  %v18495_v31 = vadd.f32 %v12563_v59, %v6848_v13  ;;  %v6847_v17 = vadd.f32 %v21787_v58, %v21786_v34  ;;  %v21789_v59 = vld [vmem:[#allocation246_spill] sm:$0xff]  ;;  %v6850_v35 = vadd.f32 %v21792_v37, %v18173_v14 }
 0x6f7   : > { %v7270_v52 = vpop.f32.mrf.mxu1  ;;  %v6852_v15 = vadd.f32 %v21789_v59, %v18164_v21  ;;  %v21797_v21 = vld [vmem:[#allocation250_spill] sm:$0xff] }
 0x6f8   : > { %v18499_v45 = vadd.f32 %v7270_v52, %v6846_v60  ;;  %v18513_v52 = vpop.f32.mrf.mxu0  ;;  %v6851_v59 = vadd.f32 %v21797_v21, %v18187_v24  ;;  %v21807_v21 = vld [vmem:[#allocation64_spill] sm:$0xff] }
 0x6f9   : > { %v12564_v30 = vpop.f32.mrf.mxu1  ;;  %21790 = vst [vmem:[#allocation124_spill] sm:$0xff] %v18513_v52 }
 0x6fa   : > { %v18505_v41 = vadd.f32 %v12564_v30, %v6849_v25  ;;  %v21794_v30 = vld [vmem:[#allocation249_spill] sm:$0xff] }
 0x6fb   : > { %v7273_v51 = vpop.f32.mrf.mxu1  ;;  %v6853_v34 = vadd.f32 %v21794_v30, %v18180_v33  ;;  %v21802_v33 = vld [vmem:[#allocation254_spill] sm:$0xff] }
 0x6fc   : > { %v18509_v13 = vadd.f32 %v7273_v51, %v6847_v17  ;;  %v18523_v17 = vpop.f32.mrf.mxu0  ;;  %v6854_v30 = vadd.f32 %v21802_v33, %v18201_v20  ;;  %v21813_v20 = vld [vmem:[#allocation255_spill] sm:$0xff] }
 0x6fd   : > { %v12567_v44 = vpop.f32.mrf.mxu1  ;;  %21795 = vst [vmem:[#allocation126_spill] sm:$0xff] %v18523_v17  ;;  %v21803_v17 = vld [vmem:[#allocation176_spill] sm:$0xff]  ;;  %v6857_v33 = vadd.f32 %v21813_v20, %v18206_v53 }
 0x6fe   : > { %21788 = vst [vmem:[#allocation117_spill] sm:$0xff] %v18509_v13  ;;  %v18515_v60 = vadd.f32 %v12567_v44, %v6852_v15  ;;  %v21799_v44 = vld [vmem:[#allocation252_spill] sm:$0xff]  ;;  %v21811_v13 = vld [vmem:[#allocation65_spill] sm:$0xff] }
 0x6ff   : > { %v7286_v26 = vpop.f32.mrf.mxu1  ;;  %v6856_v14 = vadd.f32 %v21799_v44, %v18194_v7  ;;  %v21810_v7 = vld [vmem:[#allocation195_spill] sm:$0xff]  ;;  %v21819_v53 = vld [vmem:[#allocation260_spill] sm:$0xff] }
 0x700   : > { %21791 = vst [vmem:[#allocation119_spill] sm:$0xff] %v18515_v60  ;;  %v18519_v25 = vadd.f32 %v7286_v26, %v6850_v35  ;;  %v18533_v26 = vpop.f32.mrf.mxu0  ;;  %v21809_v60 = vld [vmem:[#allocation63_spill] sm:$0xff] }
 0x701   : > { %v12568_v58 = vpop.f32.mrf.mxu1  ;;  %21800 = vst [vmem:[#allocation128_spill] sm:$0xff] %v18533_v26  ;;  %v6818_v44 = vadd.f32 %v21810_v7, %v21809_v60  ;;  %v21812_v26 = vld [vmem:[#allocation202_spill] sm:$0xff] }
 0x702   : > { %21793 = vst [vmem:[#allocation26_spill] sm:$0xff] %v18519_v25  ;;  %v18525_v51 = vadd.f32 %v12568_v58, %v6853_v34  ;;  %v21804_v34 = vld [vmem:[#allocation179_spill] sm:$0xff]  ;;  %v18559_v60 = vpop.f32.mrf.mxu0 }
 0x703   : > { %v7289_v52 = vpop.f32.mrf.mxu1  ;;  %v6810_v58 = vadd.f32 %v21804_v34, %v21803_v17  ;;  %v21806_v25 = vld [vmem:[#allocation187_spill] sm:$0xff]  ;;  %v21814_v17 = vld [vmem:[#allocation256_spill] sm:$0xff]  ;;  %21817 = vst [vmem:[#allocation130_spill] sm:$0xff] %v18559_v60 }
 0x704   : > { %21796 = vst [vmem:[#allocation27_spill] sm:$0xff] %v18525_v51  ;;  %v18529_v15 = vadd.f32 %v7289_v52, %v6851_v59  ;;  %v21805_v51 = vld [vmem:[#allocation66_spill] sm:$0xff]  ;;  %v21808_v52 = vld [vmem:[#allocation183_spill] sm:$0xff]  ;;  %v6855_v34 = vadd.f32 %v21814_v17, %v18209_v56 }
 0x705   : > { %v12571_v37 = vpop.f32.mrf.mxu1  ;;  %v6814_v24 = vadd.f32 %v21806_v25, %v21805_v51  ;;  %v6811_v59 = vadd.f32 %v21808_v52, %v21807_v21  ;;  %v21815_v25 = vld [vmem:[#allocation257_spill] sm:$0xff]  ;;  %v21816_v21 = vld [vmem:[#allocation258_spill] sm:$0xff]  ;;  %v7333_v20 = vadd.f32 %v18317_v48, %v6810_v58  ;;  %v21826_v58 = vld [vmem:[#allocation40_spill] sm:$0xff] }
 0x706   : > { %21798 = vst [vmem:[#allocation121_spill] sm:$0xff] %v18529_v15  ;;  %v18535_v35 = vadd.f32 %v12571_v37, %v6856_v14  ;;  %v6822_v14 = vadd.f32 %v21812_v26, %v21811_v13  ;;  %v7997_v51 = vadd.f32 %v21815_v25, %v18217_v23  ;;  %v7995_v52 = vadd.f32 %v21816_v21, %v18223_v55  ;;  %v21818_v13 = vld [vmem:[#allocation259_spill] sm:$0xff]  ;;  %v21821_v17 = vld [vmem:[#allocation262_spill] sm:$0xff] }
 0x707   : > { %v7302_v15 = vpop.f32.mrf.mxu1  ;;  %v7996_v26 = vadd.f32 %v21819_v53, %v18233_v9  ;;  %v18572_v25 = vadd.f32 %v21821_v17, %v18247_v1  ;;  %v21822_v55 = vld [vmem:[#allocation34_spill] sm:$0xff]  ;;  %v7334_v9 = vadd.f32 %v18325_v28, %v6811_v59  ;;  %v18591_v1 = vadd.f32 %v21826_v58, %v18271_v50  ;;  %v21827_v53 = vld [vmem:[#allocation43_spill] sm:$0xff]  ;;  %v21829_v59 = vld [vmem:[#allocation9_spill] sm:$0xff] }
 0x708   : > { %21801 = vst [vmem:[#allocation123_spill] sm:$0xff] %v18535_v35  ;;  %v18549_v37 = vadd.f32 %v7302_v15, %v6854_v30  ;;  %v7998_v15 = vadd.f32 %v21818_v13, %v18229_v12  ;;  %v21820_v30 = vld [vmem:[#allocation261_spill] sm:$0xff]  ;;  %v7337_v13 = vadd.f32 %v18337_v57, %v6814_v24  ;;  %v21831_v57 = vld [vmem:[#allocation46_spill] sm:$0xff] }
 0x709   : > { %v12572_v35 = vpop.f32.mrf.mxu1  ;;  %v8001_v56 = vadd.f32 %v21820_v30, %v18241_v49  ;;  %v21825_v49 = vld [vmem:[#allocation38_spill] sm:$0xff]  ;;  %v18596_v30 = vadd.f32 %v21827_v53, %v18277_v36  ;;  %v18611_v24 = vadd.f32 %v21831_v57, %v18295_v54  ;;  %v21832_v36 = vld [vmem:[#allocation60_spill] sm:$0xff] }
 0x70a   : > { %v18561_v7 = vadd.f32 %v12572_v35, %v6857_v33  ;;  %v18576_v35 = vadd.f32 %v21822_v55, %v18253_v38  ;;  %v21823_v33 = vld [vmem:[#allocation45_spill] sm:$0xff]  ;;  %v18587_v48 = vadd.f32 %v21825_v49, %v18265_v40  ;;  %v7341_v40 = vadd.f32 %v18359_v63, %v6818_v44  ;;  %v21834_v63 = vld [vmem:[#allocation52_spill] sm:$0xff] }
 0x70b   : > { %v7305_v23 = vpop.f32.mrf.mxu1  ;;  %v18580_v12 = vadd.f32 %v21823_v33, %v18257_v61  ;;  %v21828_v61 = vld [vmem:[#allocation8_spill] sm:$0xff]  ;;  %v18615_v17 = vadd.f32 %v21832_v36, %v18301_v47  ;;  %v21833_v33 = vld [vmem:[#allocation174_spill] sm:$0xff]  ;;  %v18624_v44 = vadd.f32 %v21834_v63, %v18313_v18  ;;  %v21837_v47 = vld [vmem:[#allocation215_spill] sm:$0xff] }
 0x70c   : > { %v18583_v21 = vadd.f32 %v7305_v23, %v6855_v34  ;;  %v18600_v28 = vadd.f32 %v21828_v61, %v18281_v46  ;;  %v18604_v34 = vadd.f32 %v21829_v59, %v18289_v22  ;;  %v18607_v23 = vpop.f32.mrf.mxu0  ;;  %v7345_v46 = vadd.f32 %v18379_v10, %v6822_v14  ;;  %v21839_v10 = vld [vmem:[#allocation11_spill] sm:$0xff]  ;;  %v21840_v61 = vld [vmem:[#allocation97_spill] sm:$0xff]  ;;  %v21842_v18 = vld [vmem:[#allocation178_spill] sm:$0xff] }
 0x70d   : > { %v12643_v38 = vpop.f32.mrf.mxu1  ;;  %21830 = vst [vmem:[#allocation132_spill] sm:$0xff] %v18607_v23  ;;  %v18620_v22 = vadd.f32 %v21833_v33, %v18305_v42  ;;  %v18637_v14 = vadd.f32 %v21839_v10, %v7334_v9  ;;  %v21841_v59 = vld [vmem:[#allocation55_spill] sm:$0xff]  ;;  %v18644_v36 = vadd.f32 %v21842_v18, %v7337_v13  ;;  %v21846_v9 = vld [vmem:[#allocation98_spill] sm:$0xff] }
 0x70e   : > { %21824 = vst [vmem:[#allocation125_spill] sm:$0xff] %v18583_v21  ;;  %v8939_v50 = vadd.f32 %v12643_v38, %v7997_v51  ;;  %v21835_v51 = vld [vmem:[#allocation10_spill] sm:$0xff]  ;;  %v18641_v57 = vadd.f32 %v21841_v59, %v21840_v61  ;;  %v21848_v13 = vld [vmem:[#allocation99_spill] sm:$0xff] }
 0x70f   : > { %v8682_v55 = vpop.f32.mrf.mxu1  ;;  %v18627_v49 = vadd.f32 %v21835_v51, %v7333_v20  ;;  %v21838_v38 = vld [vmem:[#allocation62_spill] sm:$0xff]  ;;  %v21843_v20 = vld [vmem:[#allocation57_spill] sm:$0xff]  ;;  %v21852_v59 = vld [vmem:[#allocation219_spill] sm:$0xff] }
 0x710   : > { %v18630_v54 = vadd.f32 %v18227_v43, %v8939_v50  ;;  %v8937_v58 = vadd.f32 %v8682_v55, %v7995_v52  ;;  %v18634_v53 = vadd.f32 %v21838_v38, %v21837_v47  ;;  %v18648_v43 = vadd.f32 %v21843_v20, %v18343_v11  ;;  %v21844_v52 = vld [vmem:[#allocation180_spill] sm:$0xff]  ;;  %v18654_v55 = vpop.f32.mrf.mxu0  ;;  %v21849_v11 = vld [vmem:[#allocation61_spill] sm:$0xff]  ;;  %v21851_v10 = vld [vmem:[#allocation182_spill] sm:$0xff] }
 0x711   : > { %v12644_v42 = vpop.f32.mrf.mxu1  ;;  %v18652_v50 = vadd.f32 %v21844_v52, %v18347_v62  ;;  %21845 = vst [vmem:[#allocation28_spill] sm:$0xff] %v18654_v55  ;;  %v18665_v51 = vadd.f32 %v21849_v11, %v21848_v13  ;;  %v21850_v47 = vld [vmem:[#allocation68_spill] sm:$0xff]  ;;  %v18672_v61 = vadd.f32 %v21851_v10, %v18365_v39  ;;  %v21859_v11 = vld [vmem:[#allocation103_spill] sm:$0xff]  ;;  %v21860_v39 = vld [vmem:[#allocation13_spill] sm:$0xff] }
 0x712   : > { %21836 = vst [vmem:[#allocation127_spill] sm:$0xff] %v18630_v54  ;;  %9527 = vst.msk [vmem:[#allocation3 + $0x10] sm:$0xff] %vm9524_vm15, %v18630_v54  ;;  %v18659_v33 = vadd.f32 %v21846_v9, %v8937_v58  ;;  %v8940_v63 = vadd.f32 %v12644_v42, %v7998_v15  ;;  %9987 = vrot.lane.b32.xlu1 %v18630_v54, %s13159_s10  ;;  %v18668_v62 = vadd.f32 %v21850_v47, %v7341_v40  ;;  %v21853_v58 = vld [vmem:[#allocation12_spill] sm:$0xff]  ;;  %v21855_v42 = vld [vmem:[#allocation70_spill] sm:$0xff] }
 0x713   : > { %v8685_v38 = vpop.f32.mrf.mxu1  ;;  %v18676_v18 = vadd.f32 %v21853_v58, %v21852_v59  ;;  %v21854_v15 = vld [vmem:[#allocation108_spill] sm:$0xff]  ;;  %v21857_v40 = vld [vmem:[#allocation211_spill] sm:$0xff]  ;;  %v18692_v47 = vadd.f32 %v21860_v39, %v21859_v11  ;;  %v21861_v10 = vld [vmem:[#allocation22_spill] sm:$0xff] }
 0x714   : > { %21847 = vst [vmem:[#allocation134_spill] sm:$0xff] %v18659_v33  ;;  %v18680_v20 = vadd.f32 %v21855_v42, %v21854_v15  ;;  %v21856_v52 = vld [vmem:[#allocation184_spill] sm:$0xff]  ;;  %9525 = vst.msk [vmem:[#allocation3] sm:$0xff] %vm9524_vm15, %v18659_v33  ;;  %v18688_v13 = vadd.f32 %v21857_v40, %v8940_v63  ;;  %v21863_v15 = vld [vmem:[#allocation186_spill] sm:$0xff] }
 0x715   : > { %v18683_v9 = vadd.f32 %v21856_v52, %v7345_v46  ;;  %v21862_v59 = vld [vmem:[#allocation72_spill] sm:$0xff]  ;;  %v18700_v42 = vadd.f32 %v21863_v15, %v18395_v3  ;;  %v8938_v46 = vadd.f32 %v8685_v38, %v7996_v26  ;;  %v12647_v52 = vpop.f32.mrf.mxu1  ;;  %v21864_v21 = vld [vmem:[#allocation67_spill] sm:$0xff]  ;;  %v21867_v11 = vld [vmem:[#allocation105_spill] sm:$0xff] }
 0x716   : > { %21858 = vst [vmem:[#allocation239_spill] sm:$0xff] %v18688_v13  ;;  %v18696_v58 = vadd.f32 %v21862_v59, %v21861_v10  ;;  %v18704_v55 = vadd.f32 %v21864_v21, %v18399_v19  ;;  %v21865_v63 = vld [vmem:[#allocation23_spill] sm:$0xff]  ;;  %v21866_v40 = vld [vmem:[#allocation188_spill] sm:$0xff]  ;;  %v21868_v39 = vld [vmem:[#allocation69_spill] sm:$0xff]  ;;  %v18714_v10 = vpop.f32.mrf.mxu0  ;;  %v8943_v3 = vadd.f32 %v12647_v52, %v8001_v56  ;;  %9989 = vrot.lane.b32.xlu0 %v18688_v13, %s13159_s10 }
 0x717   : > { %v18708_v23 = vadd.f32 %v21866_v40, %v21865_v63  ;;  %v18712_v60 = vadd.f32 %v21868_v39, %v21867_v11  ;;  %9528 = vst.msk [vmem:[#allocation3 + $0x18] sm:$0xff] %vm9524_vm15, %v18688_v13  ;;  %9983 = vrot.lane.b32.xlu1 %v18659_v33, %s13159_s10  ;;  %v21869_v19 = vld [vmem:[#allocation190_spill] sm:$0xff]  ;;  %v9722_v59 = vmul.f32 %v18659_v33, %v18659_v33  ;;  %v21873_v15 = vld [vmem:[#allocation93_spill] sm:$0xff]  ;;  %v8698_v56 = vpop.f32.mrf.mxu1  ;;  %v21877_v11 = vld [vmem:[#allocation192_spill] sm:$0xff] }
 0x718   : > { %v18724_v26 = vadd.f32 %v21869_v19, %v18415_v4  ;;  %v21871_v21 = vld [vmem:[#allocation14_spill] sm:$0xff]  ;;  %v18733_v63 = vadd.f32 %v21873_v15, %v8938_v46  ;;  %v18741_v39 = vadd.f32 %v21877_v11, %v18429_v5  ;;  %v9724_v4 = vmul.f32 %v18630_v54, %v18630_v54  ;;  %v21881_v46 = vld [vmem:[#allocation73_spill] sm:$0xff] }
 0x719   : > { %v18728_v38 = vadd.f32 %v21871_v21, %v18419_v27  ;;  %v21875_v52 = vld [vmem:[#allocation78_spill] sm:$0xff]  ;;  %v21879_v27 = vld [vmem:[#allocation100_spill] sm:$0xff]  ;;  %v8941_v21 = vadd.f32 %v8698_v56, %v18572_v25  ;;  %v18751_v15 = vadd.f32 %v21881_v46, %v18435_v6  ;;  %v18765_v56 = vpop.f32.mrf.mxu0  ;;  %v9592_v6 = vsel %vm9524_vm15, %v18630_v54, 0.0  ;;  %v21885_v46 = vld [vmem:[#allocation213_spill] sm:$0xff] }
 0x71a   : > { %21870 = vst [vmem:[#allocation29_spill] sm:$0xff] %v18724_v26  ;;  %21874 = vst [vmem:[#allocation136_spill] sm:$0xff] %v18733_v63  ;;  %v18737_v40 = vadd.f32 %v21875_v52, %v18425_v0  ;;  %v18746_v19 = vadd.f32 %v21879_v27, %v8943_v3  ;;  %v9589_v0 = vsel %vm9524_vm15, %v18659_v33, 0.0  ;;  %v9590_v5 = vsel %vm9524_vm15, %v18733_v63, 0.0  ;;  %v12648_v3 = vpop.f32.mrf.mxu1  ;;  %v21883_v11 = vld [vmem:[#allocation194_spill] sm:$0xff]  ;;  %9985 = vrot.lane.b32.xlu0 %v18733_v63, %s13159_s10 }
 0x71b   : > { %21872 = vst [vmem:[#allocation129_spill] sm:$0xff] %v18728_v38  ;;  %21878 = vst [vmem:[#allocation131_spill] sm:$0xff] %v18741_v39  ;;  %v9723_v52 = vmul.f32 %v18733_v63, %v18733_v63  ;;  %v18763_v25 = vadd.f32 %v21883_v11, %v18439_v29  ;;  %v9591_v27 = vadd.f32 %v9590_v5, %v9589_v0  ;;  %v21887_v29 = vld [vmem:[#allocation109_spill] sm:$0xff]  ;;  %v21888_v11 = vld [vmem:[#allocation75_spill] sm:$0xff]  ;;  %v9789_v54 = vsel %vm9524_vm15, %v9724_v4, 0.0 }
 0x71c   : > { %21876 = vst [vmem:[#allocation241_spill] sm:$0xff] %v18737_v40  ;;  %21880 = vst [vmem:[#allocation138_spill] sm:$0xff] %v18746_v19  ;;  %v18772_v33 = vadd.f32 %v21885_v46, %v8941_v21  ;;  %9995 = vrot.lane.b32.xlu1 %v18746_v19, %s13159_s10  ;;  %v9725_v0 = vmul.f32 %v18688_v13, %v18688_v13  ;;  %v8944_v21 = vadd.f32 %v12648_v3, %v18576_v35  ;;  %v8701_v46 = vpop.f32.mrf.mxu1  ;;  %v21890_v40 = vld [vmem:[#allocation116_spill] sm:$0xff]  ;;  %v21891_v38 = vld [vmem:[#allocation82_spill] sm:$0xff]  ;;  %v18800_v3 = vpop.f32.mrf.mxu0 }
 0x71d   : > { %21882 = vst [vmem:[#allocation133_spill] sm:$0xff] %v18751_v15  ;;  %9526 = vst.msk [vmem:[#allocation3 + $0x8] sm:$0xff] %vm9524_vm15, %v18733_v63  ;;  %v9786_v15 = vsel %vm9524_vm15, %v9722_v59, 0.0  ;;  %v9787_v5 = vsel %vm9524_vm15, %v9723_v52, 0.0  ;;  %v9593_v63 = vadd.f32 %v9592_v6, %v9591_v27  ;;  %v18790_v26 = vadd.f32 %v21891_v38, %v21890_v40  ;;  %v21894_v38 = vld [vmem:[#allocation77_spill] sm:$0xff] }
 0x71e   : > { %21884 = vst [vmem:[#allocation140_spill] sm:$0xff] %v18763_v25  ;;  %9531 = vst.msk [vmem:[#allocation3 + $0x30] sm:$0xff] %vm9524_vm15, %v18746_v19  ;;  %v18780_v25 = vadd.f32 %v21888_v11, %v21887_v29  ;;  %v9788_v39 = vadd.f32 %v9787_v5, %v9786_v15  ;;  %v9594_v29 = vsel %vm9524_vm15, %v18688_v13, 0.0  ;;  %v9726_v59 = vmul.f32 %v18772_v33, %v18772_v33  ;;  %v21892_v11 = vld [vmem:[#allocation95_spill] sm:$0xff]  ;;  %v12651_v52 = vpop.f32.mrf.mxu1 }
 0x71f   : > { %21886 = vst [vmem:[#allocation135_spill] sm:$0xff] %v18772_v33  ;;  %v8942_v35 = vadd.f32 %v8701_v46, %v18580_v12  ;;  %v9595_v15 = vadd.f32 %v9594_v29, %v9593_v63  ;;  %v8947_v6 = vadd.f32 %v12651_v52, %v18587_v48  ;;  %v18807_v40 = vadd.f32 %v21894_v38, %v18455_v32  ;;  %v21895_v12 = vld [vmem:[#allocation20_spill] sm:$0xff] }
 0x720   : > { %21889 = vst [vmem:[#allocation30_spill] sm:$0xff] %v18780_v25  ;;  %v18797_v25 = vadd.f32 %v21892_v11, %v8944_v21  ;;  %v9790_v4 = vadd.f32 %v9789_v54, %v9788_v39  ;;  %9991 = vrot.lane.b32.xlu1 %v18772_v33, %s13159_s10  ;;  %v9791_v27 = vsel %vm9524_vm15, %v9725_v0, 0.0  ;;  %v9596_v5 = vsel %vm9524_vm15, %v18772_v33, 0.0  ;;  %v8714_v48 = vpop.f32.mrf.mxu1  ;;  %v21897_v63 = vld [vmem:[#allocation84_spill] sm:$0xff]  ;;  %v21898_v0 = vld [vmem:[#allocation102_spill] sm:$0xff] }
 0x721   : > { %v18815_v54 = vadd.f32 %v21895_v12, %v8942_v35  ;;  %v18821_v39 = vadd.f32 %v21897_v63, %v18459_v16  ;;  %v9597_v32 = vadd.f32 %v9596_v5, %v9595_v15  ;;  %v18824_v46 = vadd.f32 %v21898_v0, %v8947_v6  ;;  %v18835_v15 = vpop.f32.mrf.mxu0  ;;  %v21901_v5 = vld [vmem:[#allocation197_spill] sm:$0xff] }
 0x722   : > { %21893 = vst [vmem:[#allocation142_spill] sm:$0xff] %v18797_v25  ;;  %9532 = vst.msk [vmem:[#allocation3 + $0x38] sm:$0xff] %vm9524_vm15, %v18797_v25  ;;  %9997 = vrot.lane.b32.xlu0 %v18797_v25, %s13159_s10  ;;  %v9792_v21 = vadd.f32 %v9791_v27, %v9790_v4  ;;  %v8945_v29 = vadd.f32 %v8714_v48, %v18591_v1  ;;  %v9728_v35 = vmul.f32 %v18746_v19, %v18746_v19  ;;  %v12652_v4 = vpop.f32.mrf.mxu1  ;;  %v21902_v0 = vld [vmem:[#allocation21_spill] sm:$0xff] }
 0x723   : > { %21896 = vst [vmem:[#allocation245_spill] sm:$0xff] %v18815_v54  ;;  %21899 = vst [vmem:[#allocation31_spill] sm:$0xff] %v18824_v46  ;;  %v9793_v52 = vsel %vm9524_vm15, %v9726_v59, 0.0  ;;  %v9598_v38 = vsel %vm9524_vm15, %v18815_v54, 0.0  ;;  %v9727_v16 = vmul.f32 %v18815_v54, %v18815_v54  ;;  %v9600_v1 = vsel %vm9524_vm15, %v18746_v19, 0.0  ;;  %v21900_v59 = vld [vmem:[#allocation118_spill] sm:$0xff] }
 0x724   : > { %v10654_v11 = vld [vmem:[#allocation3] ss:$2 sm:$0xff]  ;;  %v9794_v6 = vadd.f32 %v9793_v52, %v9792_v21  ;;  %v9599_v27 = vadd.f32 %v9598_v38, %v9597_v32  ;;  %9535 = vst.msk [vmem:[#allocation3 + $0x50] sm:$0xff] %vm9524_vm15, %v18824_v46  ;;  %10003 = vrot.lane.b32.xlu1 %v18824_v46, %s13159_s10  ;;  %v18845_v12 = vadd.f32 %v21901_v5, %v21900_v59  ;;  %v8717_v21 = vpop.f32.mrf.mxu1  ;;  %v21905_v5 = vld [vmem:[#allocation79_spill] sm:$0xff]  ;;  %v9797_v13 = vsel %vm9524_vm15, %v9728_v35, 0.0 }
 0x725   : > { %12773 = vmatprep.mubr.msk.f32.mxu0 %vm9524_vm15, %v10654_v11  ;;  %v9729_v48 = vmul.f32 %v18797_v25, %v18797_v25  ;;  %v9795_v63 = vsel %vm9524_vm15, %v9727_v16, 0.0  ;;  %v18851_v11 = vadd.f32 %v21902_v0, %v8945_v29  ;;  %v8948_v32 = vadd.f32 %v12652_v4, %v18596_v30  ;;  %v21904_v59 = vld [vmem:[#allocation229_spill] sm:$0xff]  ;;  %v21906_v16 = vld [vmem:[#allocation104_spill] sm:$0xff] }
 0x726   : > { %9993 = vrot.lane.b32.xlu0 %v18815_v54, %s13159_s10  ;;  %v9601_v52 = vadd.f32 %v9600_v1, %v9599_v27  ;;  %v9796_v38 = vadd.f32 %v9795_v63, %v9794_v6  ;;  %v8946_v33 = vadd.f32 %v8717_v21, %v18600_v28  ;;  %v18859_v19 = vadd.f32 %v21905_v5, %v21904_v59  ;;  %v12655_v1 = vpop.f32.mrf.mxu1  ;;  %v18871_v28 = vpop.f32.mrf.mxu0  ;;  %v21908_v63 = vld [vmem:[#allocation217_spill] sm:$0xff]  ;;  %v21920_v54 = vld [vmem:[#allocation231_spill] sm:$0xff] }
 0x727   : > { %21903 = vst [vmem:[#allocation137_spill] sm:$0xff] %v18851_v11  ;;  %v9602_v29 = vsel %vm9524_vm15, %v18797_v25, 0.0  ;;  %9533 = vst.msk [vmem:[#allocation3 + $0x40] sm:$0xff] %vm9524_vm15, %v18851_v11  ;;  %v9730_v30 = vmul.f32 %v18851_v11, %v18851_v11  ;;  %v18869_v4 = vadd.f32 %v21906_v16, %v8948_v32  ;;  %v8951_v35 = vadd.f32 %v12655_v1, %v18604_v34  ;;  %v21911_v34 = vld [vmem:[#allocation17_spill] sm:$0xff]  ;;  %v21912_v1 = vld [vmem:[#allocation106_spill] sm:$0xff] }
 0x728   : > { %v9798_v6 = vadd.f32 %v9797_v13, %v9796_v38  ;;  %v9603_v27 = vadd.f32 %v9602_v29, %v9601_v52  ;;  %v18874_v0 = vadd.f32 %v21908_v63, %v8946_v33  ;;  %9999 = vrot.lane.b32.xlu1 %v18851_v11, %s13159_s10  ;;  %v9799_v21 = vsel %vm9524_vm15, %v9729_v48, 0.0  ;;  %v8730_v13 = vpop.f32.mrf.mxu1  ;;  %v21910_v33 = vld [vmem:[#allocation86_spill] sm:$0xff]  ;;  %v21921_v25 = vld [vmem:[#allocation88_spill] sm:$0xff] }
 0x729   : > { %21907 = vst [vmem:[#allocation144_spill] sm:$0xff] %v18869_v4  ;;  %v9604_v59 = vsel %vm9524_vm15, %v18851_v11, 0.0  ;;  %9536 = vst.msk [vmem:[#allocation3 + $0x58] sm:$0xff] %vm9524_vm15, %v18869_v4  ;;  %v18888_v32 = vadd.f32 %v21910_v33, %v18475_v2  ;;  %v18892_v52 = vadd.f32 %v21911_v34, %v18479_v8  ;;  %v9732_v16 = vmul.f32 %v18824_v46, %v18824_v46 }
 0x72a   : > { %21909 = vst [vmem:[#allocation247_spill] sm:$0xff] %v18874_v0  ;;  %10005 = vrot.lane.b32.xlu0 %v18869_v4, %s13159_s10  ;;  %v9605_v38 = vadd.f32 %v9604_v59, %v9603_v27  ;;  %v9800_v48 = vadd.f32 %v9799_v21, %v9798_v6  ;;  %9534 = vst.msk [vmem:[#allocation3 + $0x48] sm:$0xff] %vm9524_vm15, %v18874_v0  ;;  %v9606_v5 = vsel %vm9524_vm15, %v18874_v0, 0.0  ;;  %v9801_v2 = vsel %vm9524_vm15, %v9730_v30, 0.0  ;;  %v12656_v6 = vpop.f32.mrf.mxu1  ;;  %v18907_v27 = vpop.f32.mrf.mxu0 }
 0x72b   : > { %v9731_v29 = vmul.f32 %v18874_v0, %v18874_v0  ;;  %v18904_v63 = vadd.f32 %v21912_v1, %v8951_v35  ;;  %v8949_v8 = vadd.f32 %v8730_v13, %v18611_v24  ;;  %v8952_v34 = vadd.f32 %v12656_v6, %v18615_v17  ;;  %v21914_v35 = vld [vmem:[#allocation101_spill] sm:$0xff]  ;;  %v21916_v17 = vld [vmem:[#allocation120_spill] sm:$0xff] }
 0x72c   : > { %v9802_v21 = vadd.f32 %v9801_v2, %v9800_v48  ;;  %v9607_v59 = vadd.f32 %v9606_v5, %v9605_v38  ;;  %v9608_v11 = vsel %vm9524_vm15, %v18824_v46, 0.0  ;;  %v9733_v30 = vmul.f32 %v18869_v4, %v18869_v4  ;;  %v8733_v13 = vpop.f32.mrf.mxu1  ;;  %v21917_v38 = vld [vmem:[#allocation81_spill] sm:$0xff] }
 0x72d   : > { %21913 = vst [vmem:[#allocation139_spill] sm:$0xff] %v18904_v63  ;;  %v9803_v33 = vsel %vm9524_vm15, %v9731_v29, 0.0  ;;  %9539 = vst.msk [vmem:[#allocation3 + $0x70] sm:$0xff] %vm9524_vm15, %v18904_v63  ;;  %v18918_v24 = vadd.f32 %v21914_v35, %v8949_v8  ;;  %10011 = vrot.lane.b32.xlu1 %v18904_v63, %s13159_s10  ;;  %v18926_v48 = vadd.f32 %v21917_v38, %v21916_v17  ;;  %v21918_v2 = vld [vmem:[#allocation221_spill] sm:$0xff]  ;;  %v9805_v8 = vsel %vm9524_vm15, %v9732_v16, 0.0 }
 0x72e   : > { %10001 = vrot.lane.b32.xlu0 %v18874_v0, %s13159_s10  ;;  %v9609_v5 = vadd.f32 %v9608_v11, %v9607_v59  ;;  %v9804_v29 = vadd.f32 %v9803_v33, %v9802_v21  ;;  %v18929_v1 = vadd.f32 %v21918_v2, %v8952_v34  ;;  %v8950_v6 = vadd.f32 %v8733_v13, %v18620_v22  ;;  %v12659_v46 = vpop.f32.mrf.mxu1  ;;  %v18941_v11 = vpop.f32.mrf.mxu0  ;;  %v21922_v22 = vld [vmem:[#allocation83_spill] sm:$0xff] }
 0x72f   : > { %21915 = vst [vmem:[#allocation146_spill] sm:$0xff] %v18918_v24  ;;  %v9610_v35 = vsel %vm9524_vm15, %v18869_v4, 0.0  ;;  %v9734_v0 = vmul.f32 %v18918_v24, %v18918_v24  ;;  %v18939_v17 = vadd.f32 %v21921_v25, %v21920_v54  ;;  %v18947_v16 = vadd.f32 %v21922_v22, %v18495_v31  ;;  %v21923_v33 = vld [vmem:[#allocation203_spill] sm:$0xff]  ;;  %v21924_v54 = vld [vmem:[#allocation110_spill] sm:$0xff] }
 0x730   : > { %21919 = vst [vmem:[#allocation141_spill] sm:$0xff] %v18929_v1  ;;  %v9806_v21 = vadd.f32 %v9805_v8, %v9804_v29  ;;  %v9611_v59 = vadd.f32 %v9610_v35, %v9609_v5  ;;  %9540 = vst.msk [vmem:[#allocation3 + $0x78] sm:$0xff] %vm9524_vm15, %v18929_v1  ;;  %v18951_v34 = vadd.f32 %v21923_v33, %v18499_v45  ;;  %v9807_v13 = vsel %vm9524_vm15, %v9733_v30, 0.0  ;;  %v8746_v31 = vpop.f32.mrf.mxu1  ;;  %v18975_v33 = vpop.f32.mrf.mxu0 }
 0x731   : > { %v9612_v25 = vsel %vm9524_vm15, %v18918_v24, 0.0  ;;  %v18957_v38 = vadd.f32 %v21924_v54, %v8950_v6  ;;  %v8955_v5 = vadd.f32 %v12659_v46, %v18624_v44  ;;  %10007 = vrot.lane.b32.xlu1 %v18918_v24, %s13159_s10  ;;  %v9736_v45 = vmul.f32 %v18904_v63, %v18904_v63  ;;  %v21926_v46 = vld [vmem:[#allocation223_spill] sm:$0xff] }
 0x732   : > { %10013 = vrot.lane.b32.xlu0 %v18929_v1, %s13159_s10  ;;  %v9613_v29 = vadd.f32 %v9612_v25, %v9611_v59  ;;  %v9808_v30 = vadd.f32 %v9807_v13, %v9806_v21  ;;  %v8953_v2 = vadd.f32 %v8746_v31, %v18627_v49  ;;  %v9809_v8 = vsel %vm9524_vm15, %v9734_v0, 0.0  ;;  %v12660_v22 = vpop.f32.mrf.mxu1  ;;  %v21928_v59 = vld [vmem:[#allocation112_spill] sm:$0xff] }
 0x733   : > { %21925 = vst [vmem:[#allocation148_spill] sm:$0xff] %v18957_v38  ;;  %v9614_v6 = vsel %vm9524_vm15, %v18957_v38, 0.0  ;;  %v9735_v44 = vmul.f32 %v18957_v38, %v18957_v38  ;;  %v18973_v35 = vadd.f32 %v21926_v46, %v8955_v5  ;;  %v8956_v49 = vadd.f32 %v12660_v22, %v18634_v53  ;;  %v21930_v53 = vld [vmem:[#allocation85_spill] sm:$0xff] }
 0x734   : > { %v9810_v54 = vadd.f32 %v9809_v8, %v9808_v30  ;;  %v9615_v24 = vadd.f32 %v9614_v6, %v9613_v29  ;;  %v18978_v21 = vadd.f32 %v21928_v59, %v8953_v2  ;;  %v9616_v0 = vsel %vm9524_vm15, %v18904_v63, 0.0  ;;  %v8749_v5 = vpop.f32.mrf.mxu1  ;;  %v21931_v8 = vld [vmem:[#allocation117_spill] sm:$0xff]  ;;  %v21932_v6 = vld [vmem:[#allocation92_spill] sm:$0xff] }
 0x735   : > { %21927 = vst [vmem:[#allocation143_spill] sm:$0xff] %v18973_v35  ;;  %v9737_v13 = vmul.f32 %v18929_v1, %v18929_v1  ;;  %v9811_v25 = vsel %vm9524_vm15, %v9735_v44, 0.0  ;;  %9543 = vst.msk [vmem:[#allocation3 + $0x90] sm:$0xff] %vm9524_vm15, %v18973_v35  ;;  %10019 = vrot.lane.b32.xlu1 %v18973_v35, %s13159_s10  ;;  %v18994_v31 = vadd.f32 %v21930_v53, %v18505_v41  ;;  %v9813_v29 = vsel %vm9524_vm15, %v9736_v45, 0.0  ;;  %v21933_v59 = vld [vmem:[#allocation225_spill] sm:$0xff] }
 0x736   : > { %21929 = vst [vmem:[#allocation32_spill] sm:$0xff] %v18978_v21  ;;  %10009 = vrot.lane.b32.xlu0 %v18957_v38, %s13159_s10  ;;  %v9617_v30 = vadd.f32 %v9616_v0, %v9615_v24  ;;  %v9812_v2 = vadd.f32 %v9811_v25, %v9810_v54  ;;  %9541 = vst.msk [vmem:[#allocation3 + $0x80] sm:$0xff] %vm9524_vm15, %v18978_v21  ;;  %v19001_v44 = vadd.f32 %v21932_v6, %v21931_v8  ;;  %v12663_v24 = vpop.f32.mrf.mxu1  ;;  %v19011_v54 = vpop.f32.mrf.mxu0  ;;  %v21935_v8 = vld [vmem:[#allocation119_spill] sm:$0xff] }
 0x737   : > { %v9618_v46 = vsel %vm9524_vm15, %v18929_v1, 0.0  ;;  %v9738_v22 = vmul.f32 %v18978_v21, %v18978_v21  ;;  %v19008_v41 = vadd.f32 %v21933_v59, %v8956_v49  ;;  %v8954_v45 = vadd.f32 %v8749_v5, %v18637_v14  ;;  %v21936_v6 = vld [vmem:[#allocation87_spill] sm:$0xff]  ;;  %v21939_v5 = vld [vmem:[#allocation26_spill] sm:$0xff] }
 0x738   : > { %v9814_v0 = vadd.f32 %v9813_v29, %v9812_v2  ;;  %v9619_v25 = vadd.f32 %v9618_v46, %v9617_v30  ;;  %v8959_v53 = vadd.f32 %v12663_v24, %v18641_v57  ;;  %v19016_v38 = vadd.f32 %v21936_v6, %v21935_v8  ;;  %v21937_v14 = vld [vmem:[#allocation107_spill] sm:$0xff]  ;;  %v8762_v57 = vpop.f32.mrf.mxu1  ;;  %v21940_v29 = vld [vmem:[#allocation94_spill] sm:$0xff] }
 0x739   : > { %21934 = vst [vmem:[#allocation150_spill] sm:$0xff] %v19008_v41  ;;  %v9815_v1 = vsel %vm9524_vm15, %v9737_v13, 0.0  ;;  %v9620_v63 = vsel %vm9524_vm15, %v18978_v21, 0.0  ;;  %9544 = vst.msk [vmem:[#allocation3 + $0x98] sm:$0xff] %vm9524_vm15, %v19008_v41  ;;  %v19024_v49 = vadd.f32 %v21937_v14, %v8954_v45  ;;  %10015 = vrot.lane.b32.xlu1 %v18978_v21, %s13159_s10  ;;  %v19032_v30 = vadd.f32 %v21940_v29, %v21939_v5  ;;  %v21941_v46 = vld [vmem:[#allocation114_spill] sm:$0xff]  ;;  %v21944_v14 = vld [vmem:[#allocation207_spill] sm:$0xff] }
 0x73a   : > { %10021 = vrot.lane.b32.xlu0 %v19008_v41, %s13159_s10  ;;  %v9621_v13 = vadd.f32 %v9620_v63, %v9619_v25  ;;  %v9816_v2 = vadd.f32 %v9815_v1, %v9814_v0  ;;  %v19035_v59 = vadd.f32 %v21941_v46, %v8959_v53  ;;  %v8957_v24 = vadd.f32 %v8762_v57, %v18644_v36  ;;  %v12664_v1 = vpop.f32.mrf.mxu1  ;;  %v19047_v0 = vpop.f32.mrf.mxu0  ;;  %v21945_v46 = vld [vmem:[#allocation111_spill] sm:$0xff] }
 0x73b   : > { %21938 = vst [vmem:[#allocation251_spill] sm:$0xff] %v19024_v49  ;;  %v9740_v45 = vmul.f32 %v18973_v35, %v18973_v35  ;;  %v9817_v8 = vsel %vm9524_vm15, %v9738_v22, 0.0  ;;  %9542 = vst.msk [vmem:[#allocation3 + $0x88] sm:$0xff] %vm9524_vm15, %v19024_v49  ;;  %v9622_v6 = vsel %vm9524_vm15, %v19024_v49, 0.0  ;;  %v9739_v63 = vmul.f32 %v19024_v49, %v19024_v49  ;;  %v21943_v22 = vld [vmem:[#allocation27_spill] sm:$0xff] }
 0x73c   : > { %21942 = vst [vmem:[#allocation33_spill] sm:$0xff] %v19035_v59  ;;  %v9624_v36 = vsel %vm9524_vm15, %v18973_v35, 0.0  ;;  %v9818_v25 = vadd.f32 %v9817_v8, %v9816_v2  ;;  %v9623_v53 = vadd.f32 %v9622_v6, %v9621_v13  ;;  %9547 = vst.msk [vmem:[#allocation3 + $0xb0] sm:$0xff] %vm9524_vm15, %v19035_v59  ;;  %v19055_v57 = vadd.f32 %v21944_v14, %v21943_v22  ;;  %v8765_v13 = vpop.f32.mrf.mxu1  ;;  %v21947_v22 = vld [vmem:[#allocation121_spill] sm:$0xff]  ;;  %v21948_v14 = vld [vmem:[#allocation19_spill] sm:$0xff] }
 0x73d   : > { %v9741_v5 = vmul.f32 %v19008_v41, %v19008_v41  ;;  %v9819_v29 = vsel %vm9524_vm15, %v9739_v63, 0.0  ;;  %v19061_v21 = vadd.f32 %v21945_v46, %v8957_v24  ;;  %v8960_v4 = vadd.f32 %v12664_v1, %v18648_v43  ;;  %10027 = vrot.lane.b32.xlu1 %v19035_v59, %s13159_s10  ;;  %v21950_v1 = vld [vmem:[#allocation24_spill] sm:$0xff] }
 0x73e   : > { %10017 = vrot.lane.b32.xlu0 %v19024_v49, %s13159_s10  ;;  %v9625_v2 = vadd.f32 %v9624_v36, %v9623_v53  ;;  %v9820_v8 = vadd.f32 %v9819_v29, %v9818_v25  ;;  %v8958_v6 = vadd.f32 %v8765_v13, %v18652_v50  ;;  %v19071_v35 = vadd.f32 %v21948_v14, %v21947_v22  ;;  %v12667_v49 = vpop.f32.mrf.mxu1  ;;  %v19081_v36 = vpop.f32.mrf.mxu0  ;;  %v21952_v53 = vld [vmem:[#allocation25_spill] sm:$0xff] }
 0x73f   : > { %21946 = vst [vmem:[#allocation145_spill] sm:$0xff] %v19061_v21  ;;  %v9821_v24 = vsel %vm9524_vm15, %v9740_v45, 0.0  ;;  %v9626_v43 = vsel %vm9524_vm15, %v19008_v41, 0.0  ;;  %v9742_v63 = vmul.f32 %v19061_v21, %v19061_v21  ;;  %v19079_v46 = vadd.f32 %v21950_v1, %v8960_v4 }
 0x740   : > { %21949 = vst [vmem:[#allocation152_spill] sm:$0xff] %v19071_v35  ;;  %v9822_v25 = vadd.f32 %v9821_v24, %v9820_v8  ;;  %v9627_v50 = vadd.f32 %v9626_v43, %v9625_v2  ;;  %v19084_v29 = vadd.f32 %v21952_v53, %v8958_v6  ;;  %v8963_v13 = vadd.f32 %v12667_v49, %v18665_v51  ;;  %v8778_v4 = vpop.f32.mrf.mxu1  ;;  %v21954_v2 = vld [vmem:[#allocation123_spill] sm:$0xff]  ;;  %v21955_v8 = vld [vmem:[#allocation89_spill] sm:$0xff]  ;;  %v21957_v51 = vld [vmem:[#allocation96_spill] sm:$0xff] }
 0x741   : > { %21951 = vst [vmem:[#allocation253_spill] sm:$0xff] %v19079_v46  ;;  %v9823_v45 = vsel %vm9524_vm15, %v9741_v5, 0.0  ;;  %v9628_v22 = vsel %vm9524_vm15, %v19061_v21, 0.0  ;;  %9548 = vst.msk [vmem:[#allocation3 + $0xb8] sm:$0xff] %vm9524_vm15, %v19079_v46  ;;  %10023 = vrot.lane.b32.xlu1 %v19061_v21, %s13159_s10  ;;  %v19098_v6 = vadd.f32 %v21955_v8, %v21954_v2  ;;  %v19102_v49 = vadd.f32 %v21957_v51, %v18549_v37  ;;  %v21959_v8 = vld [vmem:[#allocation113_spill] sm:$0xff] }
 0x742   : > { %21953 = vst [vmem:[#allocation147_spill] sm:$0xff] %v19084_v29  ;;  %10029 = vrot.lane.b32.xlu0 %v19079_v46, %s13159_s10  ;;  %v9629_v5 = vadd.f32 %v9628_v22, %v9627_v50  ;;  %v9824_v14 = vadd.f32 %v9823_v45, %v9822_v25  ;;  %v9630_v24 = vsel %vm9524_vm15, %v19084_v29, 0.0  ;;  %v9743_v43 = vmul.f32 %v19084_v29, %v19084_v29  ;;  %v10658_v1 = vld [vmem:[#allocation3 + $0x80] ss:$2 sm:$0xff]  ;;  %v12668_v25 = vpop.f32.mrf.mxu1  ;;  %v19116_v45 = vpop.f32.mrf.mxu0 }
 0x743   : > { %21956 = vst [vmem:[#allocation154_spill] sm:$0xff] %v19098_v6  ;;  %21958 = vst [vmem:[#allocation149_spill] sm:$0xff] %v19102_v49  ;;  %v10374_v53 = vld [vmem:[#allocation3 + $0x10] ss:$32 sm:$0x2]  ;;  %v9744_v21 = vmul.f32 %v19035_v59, %v19035_v59  ;;  %v9825_v2 = vsel %vm9524_vm15, %v9742_v63, 0.0  ;;  %v19112_v41 = vadd.f32 %v21959_v8, %v8963_v13  ;;  %v8961_v37 = vadd.f32 %v8778_v4, %v18668_v62 }
 0x744   : > { %12776 = vmatprep.mubr.msk.f32.mxu1 %vm9524_vm15, %v10658_v1  ;;  %v10373_v50 = vld [vmem:[#allocation3 + $0x10] ss:$32 sm:$0x1]  ;;  %v9826_v22 = vadd.f32 %v9825_v2, %v9824_v14  ;;  %v9631_v51 = vadd.f32 %v9630_v24, %v9629_v5  ;;  %v9827_v49 = vsel %vm9524_vm15, %v9743_v43, 0.0  ;;  %v8964_v6 = vadd.f32 %v12668_v25, %v18672_v61  ;;  %v21961_v62 = vld [vmem:[#allocation115_spill] sm:$0xff]  ;;  %v8781_v61 = vpop.f32.mrf.mxu1 }
 0x745   : > { %21960 = vst [vmem:[#allocation156_spill] sm:$0xff] %v19112_v41  ;;  %v10448_v35 = vld [vmem:[#allocation3 + $0x1f] ss:$32 sm:$0x2]  ;;  %v9632_v63 = vsel %vm9524_vm15, %v19035_v59, 0.0  ;;  %v9745_v13 = vmul.f32 %v19079_v46, %v19079_v46  ;;  %9551 = vst.msk [vmem:[#allocation3 + $0xd0] sm:$0xff] %vm9524_vm15, %v19112_v41  ;;  %v19127_v4 = vadd.f32 %v21961_v62, %v8961_v37  ;;  %10035 = vrot.lane.b32.xlu1 %v19112_v41, %s13159_s10 }
 0x746   : > { %10025 = vrot.lane.b32.xlu0 %v19084_v29, %s13159_s10  ;;  %v10375_v5 = vor.u32 %v10374_v53, %v10373_v50  ;;  %v10376_v14 = vld [vmem:[#allocation3 + $0x10] ss:$32 sm:$0x4]  ;;  %v9633_v24 = vadd.f32 %v9632_v63, %v9631_v51  ;;  %v9828_v43 = vadd.f32 %v9827_v49, %v9826_v22  ;;  %v8962_v8 = vadd.f32 %v8781_v61, %v18676_v18  ;;  %v12671_v53 = vpop.f32.mrf.mxu1  ;;  %v21964_v50 = vld [vmem:[#allocation209_spill] sm:$0xff]  ;;  %v19148_v22 = vpop.f32.mrf.mxu0 }
 0x747   : > { %21962 = vst [vmem:[#allocation151_spill] sm:$0xff] %v19127_v4  ;;  %v21963_v1 = vld [vmem:[#allocation122_spill] sm:$0xff]  ;;  %v9829_v25 = vsel %vm9524_vm15, %v9744_v21, 0.0  ;;  %v9634_v37 = vsel %vm9524_vm15, %v19079_v46, 0.0  ;;  %9549 = vst.msk [vmem:[#allocation3 + $0xc0] sm:$0xff] %vm9524_vm15, %v19127_v4  ;;  %v9746_v62 = vmul.f32 %v19127_v4, %v19127_v4  ;;  %v19146_v49 = vadd.f32 %v21964_v50, %v18561_v7  ;;  %v21965_v46 = vld [vmem:[#allocation124_spill] sm:$0xff] }
 0x748   : > { %v19134_v2 = vadd.f32 %v21963_v1, %v8964_v6  ;;  %v10447_v6 = vld [vmem:[#allocation3 + $0x1f] ss:$32 sm:$0x1]  ;;  %v9830_v18 = vadd.f32 %v9829_v25, %v9828_v43  ;;  %v9635_v51 = vadd.f32 %v9634_v37, %v9633_v24  ;;  %v10377_v21 = vor.u32 %v10376_v14, %v10375_v5  ;;  %v8794_v24 = vpop.f32.mrf.mxu1  ;;  %v21967_v25 = vld [vmem:[#allocation126_spill] sm:$0xff] }
 0x749   : > { %v10449_v63 = vor.u32 %v10448_v35, %v10447_v6  ;;  %v9831_v61 = vsel %vm9524_vm15, %v9745_v13, 0.0  ;;  %v9636_v1 = vsel %vm9524_vm15, %v19127_v4, 0.0  ;;  %v19156_v59 = vadd.f32 %v21965_v46, %v8962_v8  ;;  %10031 = vrot.lane.b32.xlu1 %v19127_v4, %s13159_s10  ;;  %v10450_v43 = vld [vmem:[#allocation3 + $0x1f] ss:$32 sm:$0x4]  ;;  %v19176_v6 = vpop.f32.mrf.mxu0 }
 0x74a   : > { %9552 = vst.msk [vmem:[#allocation3 + $0xd8] sm:$0xff] %vm9524_vm15, %v19134_v2  ;;  %v8967_v7 = vadd.f32 %v12671_v53, %v18680_v20  ;;  %10037 = vrot.lane.b32.xlu0 %v19134_v2, %s13159_s10  ;;  %v9748_v35 = vmul.f32 %v19112_v41, %v19112_v41  ;;  %v9637_v5 = vadd.f32 %v9636_v1, %v9635_v51  ;;  %v9833_v46 = vsel %vm9524_vm15, %v9746_v62, 0.0  ;;  %v12672_v53 = vpop.f32.mrf.mxu1  ;;  %v10378_v50 = vld [vmem:[#allocation3 + $0x10] ss:$32 sm:$0x8]  ;;  %v21968_v51 = vld [vmem:[#allocation128_spill] sm:$0xff] }
 0x74b   : > { %21966 = vst [vmem:[#allocation35_spill] sm:$0xff] %v19156_v59  ;;  %v9832_v13 = vadd.f32 %v9831_v61, %v9830_v18  ;;  %v8965_v14 = vadd.f32 %v8794_v24, %v18683_v9  ;;  %9550 = vst.msk [vmem:[#allocation3 + $0xc8] sm:$0xff] %vm9524_vm15, %v19156_v59  ;;  %v9638_v20 = vsel %vm9524_vm15, %v19156_v59, 0.0  ;;  %v9747_v8 = vmul.f32 %v19156_v59, %v19156_v59 }
 0x74c   : > { %v19174_v37 = vadd.f32 %v21967_v25, %v8967_v7  ;;  %v9639_v18 = vadd.f32 %v9638_v20, %v9637_v5  ;;  %v8968_v61 = vadd.f32 %v12672_v53, %v18692_v47  ;;  %v9640_v1 = vsel %vm9524_vm15, %v19112_v41, 0.0  ;;  %v8797_v5 = vpop.f32.mrf.mxu1  ;;  %v10452_v47 = vld [vmem:[#allocation3 + $0x1f] ss:$32 sm:$0x8]  ;;  %v21969_v41 = vld [vmem:[#allocation130_spill] sm:$0xff] }
 0x74d   : > { %v9834_v9 = vadd.f32 %v9833_v46, %v9832_v13  ;;  %v19179_v62 = vadd.f32 %v21968_v51, %v8965_v14  ;;  %v9749_v24 = vmul.f32 %v19134_v2, %v19134_v2  ;;  %v9835_v7 = vsel %vm9524_vm15, %v9747_v8, 0.0  ;;  %v10380_v53 = vld [vmem:[#allocation3 + $0x10] ss:$32 sm:$0x10] }
 0x74e   : > { %9555 = vst.msk [vmem:[#allocation3 + $0xf0] sm:$0xff] %vm9524_vm15, %v19174_v37  ;;  %10033 = vrot.lane.b32.xlu0 %v19156_v59, %s13159_s10  ;;  %10043 = vrot.lane.b32.xlu1 %v19174_v37, %s13159_s10  ;;  %v10451_v13 = vor.u32 %v10450_v43, %v10449_v63  ;;  %v9837_v14 = vsel %vm9524_vm15, %v9748_v35, 0.0  ;;  %v9641_v46 = vadd.f32 %v9640_v1, %v9639_v18  ;;  %v9642_v8 = vsel %vm9524_vm15, %v19134_v2, 0.0  ;;  %v12675_v29 = vpop.f32.mrf.mxu1  ;;  %v19202_v63 = vpop.f32.mrf.mxu0 }
 0x74f   : > { %v9836_v20 = vadd.f32 %v9835_v7, %v9834_v9  ;;  %v10379_v25 = vor.u32 %v10378_v50, %v10377_v21  ;;  %v9750_v51 = vmul.f32 %v19179_v62, %v19179_v62  ;;  %v19199_v59 = vadd.f32 %v21969_v41, %v8968_v61  ;;  %v21970_v41 = vld [vmem:[#allocation132_spill] sm:$0xff] }
 0x750   : > { %v8966_v4 = vadd.f32 %v8797_v5, %v18696_v58  ;;  %v9643_v35 = vadd.f32 %v9642_v8, %v9641_v46  ;;  %v8971_v9 = vadd.f32 %v12675_v29, %v18700_v42  ;;  %v10453_v21 = vor.u32 %v10452_v47, %v10451_v13  ;;  %v8810_v58 = vpop.f32.mrf.mxu1  ;;  %v10454_v29 = vld [vmem:[#allocation3 + $0x1f] ss:$32 sm:$0x10]  ;;  %v21971_v7 = vld [vmem:[#allocation28_spill] sm:$0xff] }
 0x751   : > { %v9838_v43 = vadd.f32 %v9837_v14, %v9836_v20  ;;  %v9839_v50 = vsel %vm9524_vm15, %v9749_v24, 0.0  ;;  %v9644_v18 = vsel %vm9524_vm15, %v19179_v62, 0.0  ;;  %9556 = vst.msk [vmem:[#allocation3 + $0xf8] sm:$0xff] %vm9524_vm15, %v19199_v59  ;;  %v10381_v42 = vor.u32 %v10380_v53, %v10379_v25  ;;  %v10382_v25 = vld [vmem:[#allocation3 + $0x10] ss:$32 sm:$0x20]  ;;  %v19228_v53 = vpop.f32.mrf.mxu0 }
 0x752   : > { %v19211_v61 = vadd.f32 %v21970_v41, %v8966_v4  ;;  %10045 = vrot.lane.b32.xlu0 %v19199_v59, %s13159_s10  ;;  %10039 = vrot.lane.b32.xlu1 %v19179_v62, %s13159_s10  ;;  %v9645_v1 = vadd.f32 %v9644_v18, %v9643_v35  ;;  %v19218_v5 = vadd.f32 %v21971_v7, %v8971_v9  ;;  %v9841_v47 = vsel %vm9524_vm15, %v9750_v51, 0.0  ;;  %v12676_v20 = vpop.f32.mrf.mxu1 }
 0x753   : > { %v9840_v24 = vadd.f32 %v9839_v50, %v9838_v43  ;;  %v8969_v13 = vadd.f32 %v8810_v58, %v18704_v55  ;;  %v9752_v4 = vmul.f32 %v19174_v37, %v19174_v37  ;;  %v9648_v8 = vsel %vm9524_vm15, %v19174_v37, 0.0 }
 0x754   : > { %v9646_v14 = vsel %vm9524_vm15, %v19211_v61, 0.0  ;;  %v9751_v46 = vmul.f32 %v19211_v61, %v19211_v61  ;;  %9559 = vst.msk [vmem:[#allocation3 + $0x110] sm:$0xff] %vm9524_vm15, %v19218_v5  ;;  %v19234_v35 = vor.u32 %v10454_v29, %v10453_v21  ;;  %v9753_v51 = vmul.f32 %v19199_v59, %v19199_v59  ;;  %v8813_v41 = vpop.f32.mrf.mxu1 }
 0x755   : > { %v9842_v43 = vadd.f32 %v9841_v47, %v9840_v24  ;;  %v9647_v55 = vadd.f32 %v9646_v14, %v9645_v1  ;;  %v19240_v50 = vadd.f32 %v18714_v10, %v8969_v13  ;;  %v8972_v18 = vadd.f32 %v12676_v20, %v18708_v23  ;;  %v10384_v24 = vld [vmem:[#allocation3 + $0x10] ss:$32 sm:$0x40]  ;;  %v19258_v14 = vpop.f32.mrf.mxu0 }
 0x756   : > { %v9843_v9 = vsel %vm9524_vm15, %v9751_v46, 0.0  ;;  %10041 = vrot.lane.b32.xlu0 %v19211_v61, %s13159_s10  ;;  %10051 = vrot.lane.b32.xlu1 %v19218_v5, %s13159_s10  ;;  %v8970_v29 = vadd.f32 %v8813_v41, %v18712_v60  ;;  %v10383_v1 = vor.u32 %v10382_v25, %v10381_v42  ;;  %v9845_v7 = vsel %vm9524_vm15, %v9752_v4, 0.0  ;;  %v12679_v47 = vpop.f32.mrf.mxu1  ;;  %v21973_v4 = vld [vmem:[#allocation29_spill] sm:$0xff]  ;;  %v10386_v25 = vld [vmem:[#allocation3 + $0x10] ss:$32 sm:$0x80] }
 0x757   : > { %21972 = vst [vmem:[#allocation158_spill] sm:$0xff] %v19240_v50  ;;  %v9649_v58 = vadd.f32 %v9648_v8, %v9647_v55  ;;  %v9844_v21 = vadd.f32 %v9843_v9, %v9842_v43  ;;  %v9650_v10 = vsel %vm9524_vm15, %v19199_v59, 0.0  ;;  %9557 = vst.msk [vmem:[#allocation3 + $0x100] sm:$0xff] %vm9524_vm15, %v19240_v50  ;;  %v9754_v23 = vmul.f32 %v19240_v50, %v19240_v50 }
 0x758   : > { %v19256_v13 = vadd.f32 %v18765_v56, %v8972_v18  ;;  %v19261_v46 = vadd.f32 %v18800_v3, %v8970_v29  ;;  %v8975_v20 = vadd.f32 %v12679_v47, %v21973_v4  ;;  %v9847_v8 = vsel %vm9524_vm15, %v9753_v51, 0.0  ;;  %v8826_v3 = vpop.f32.mrf.mxu1  ;;  %v19288_v47 = vpop.f32.mrf.mxu0 }
 0x759   : > { %v9846_v60 = vadd.f32 %v9845_v7, %v9844_v21  ;;  %v9651_v42 = vadd.f32 %v9650_v10, %v9649_v58  ;;  %v9756_v43 = vmul.f32 %v19218_v5, %v19218_v5  ;;  %v9652_v56 = vsel %vm9524_vm15, %v19240_v50, 0.0  ;;  %v10456_v58 = vld [vmem:[#allocation3 + $0x1f] ss:$32 sm:$0x20]  ;;  %v21974_v7 = vld [vmem:[#allocation129_spill] sm:$0xff] }
 0x75a   : > { %9560 = vst.msk [vmem:[#allocation3 + $0x118] sm:$0xff] %vm9524_vm15, %v19256_v13  ;;  %10053 = vrot.lane.b32.xlu0 %v19256_v13, %s13159_s10  ;;  %10047 = vrot.lane.b32.xlu1 %v19240_v50, %s13159_s10  ;;  %v10385_v55 = vor.u32 %v10384_v24, %v10383_v1  ;;  %9558 = vst.msk [vmem:[#allocation3 + $0x108] sm:$0xff] %vm9524_vm15, %v19261_v46  ;;  %v9654_v51 = vsel %vm9524_vm15, %v19261_v46, 0.0  ;;  %v9755_v41 = vmul.f32 %v19261_v46, %v19261_v46  ;;  %v12680_v1 = vpop.f32.mrf.mxu1 }
 0x75b   : > { %v9653_v9 = vadd.f32 %v9652_v56, %v9651_v42  ;;  %v9848_v18 = vadd.f32 %v9847_v8, %v9846_v60  ;;  %v9849_v21 = vsel %vm9524_vm15, %v9754_v23, 0.0  ;;  %v19283_v29 = vadd.f32 %v18835_v15, %v8975_v20  ;;  %v21975_v8 = vld [vmem:[#allocation241_spill] sm:$0xff] }
 0x75c   : > { %v8973_v10 = vadd.f32 %v8826_v3, %v21974_v7  ;;  %v19286_v24 = vor.u32 %v10386_v25, %v10385_v55  ;;  %v9851_v4 = vsel %vm9524_vm15, %v9755_v41, 0.0  ;;  %v8976_v56 = vadd.f32 %v12680_v1, %v21975_v8  ;;  %v8829_v20 = vpop.f32.mrf.mxu1  ;;  %v10458_v3 = vld [vmem:[#allocation3 + $0x1f] ss:$32 sm:$0x40]  ;;  %v21978_v1 = vld [vmem:[#allocation125_spill] sm:$0xff] }
 0x75d   : > { %v9850_v60 = vadd.f32 %v9849_v21, %v9848_v18  ;;  %v9655_v42 = vadd.f32 %v9654_v51, %v9653_v9  ;;  %v9656_v50 = vsel %vm9524_vm15, %v19218_v5, 0.0  ;;  %v9757_v15 = vmul.f32 %v19256_v13, %v19256_v13  ;;  %9563 = vst.msk [vmem:[#allocation3 + $0x130] sm:$0xff] %vm9524_vm15, %v19283_v29  ;;  %v21977_v51 = vld [vmem:[#allocation131_spill] sm:$0xff] }
 0x75e   : > { %v19299_v23 = vadd.f32 %v18871_v28, %v8973_v10  ;;  %10049 = vrot.lane.b32.xlu0 %v19261_v46, %s13159_s10  ;;  %10059 = vrot.lane.b32.xlu1 %v19283_v29, %s13159_s10  ;;  %v10457_v25 = vor.u32 %v10456_v58, %v19234_v35  ;;  %v19307_v18 = vadd.f32 %v18907_v27, %v8976_v56  ;;  %v9853_v28 = vsel %vm9524_vm15, %v9756_v43, 0.0  ;;  %v12683_v10 = vpop.f32.mrf.mxu1  ;;  %v21979_v8 = vld [vmem:[#allocation91_spill] sm:$0xff] }
 0x75f   : > { %v9657_v55 = vadd.f32 %v9656_v50, %v9655_v42  ;;  %v9852_v9 = vadd.f32 %v9851_v4, %v9850_v60  ;;  %v8974_v41 = vadd.f32 %v8829_v20, %v21977_v51  ;;  %v9658_v21 = vsel %vm9524_vm15, %v19256_v13, 0.0  ;;  %v19319_v50 = vpop.f32.mrf.mxu0  ;;  %v21980_v20 = vld [vmem:[#allocation133_spill] sm:$0xff] }
 0x760   : > { %21976 = vst [vmem:[#allocation36_spill] sm:$0xff] %v19299_v23  ;;  %v9758_v7 = vmul.f32 %v19299_v23, %v19299_v23  ;;  %v19317_v35 = vadd.f32 %v21979_v8, %v21978_v1  ;;  %9564 = vst.msk [vmem:[#allocation3 + $0x138] sm:$0xff] %vm9524_vm15, %v19307_v18  ;;  %v10414_v43 = vmul.f32 %v19286_v24, %v19286_v24  ;;  %v9855_v42 = vsel %vm9524_vm15, %v9757_v15, 0.0 }
 0x761   : > { %v9854_v58 = vadd.f32 %v9853_v28, %v9852_v9  ;;  %v9659_v27 = vadd.f32 %v9658_v21, %v9657_v55  ;;  %v10459_v60 = vor.u32 %v10458_v3, %v10457_v25  ;;  %v9660_v4 = vsel %vm9524_vm15, %v19299_v23, 0.0  ;;  %v8842_v55 = vpop.f32.mrf.mxu1  ;;  %v21981_v9 = vld [vmem:[#allocation140_spill] sm:$0xff]  ;;  %v10460_v21 = vld [vmem:[#allocation3 + $0x1f] ss:$32 sm:$0x80] }
 0x762   : > { %v19329_v56 = vadd.f32 %v18941_v11, %v8974_v41  ;;  %v8979_v51 = vadd.f32 %v12683_v10, %v21980_v20  ;;  %10061 = vrot.lane.b32.xlu0 %v19307_v18, %s13159_s10  ;;  %10055 = vrot.lane.b32.xlu1 %v19299_v23, %s13159_s10  ;;  %v9760_v25 = vmul.f32 %v19283_v29, %v19283_v29  ;;  %v9857_v11 = vsel %vm9524_vm15, %v9758_v7, 0.0  ;;  %v19347_v20 = vpop.f32.mrf.mxu0 }
 0x763   : > { %v9661_v3 = vadd.f32 %v9660_v4, %v9659_v27  ;;  %v9856_v15 = vadd.f32 %v9855_v42, %v9854_v58  ;;  %v8977_v28 = vadd.f32 %v8842_v55, %v21981_v9  ;;  %v12684_v8 = vpop.f32.mrf.mxu1  ;;  %v21983_v42 = vld [vmem:[#allocation30_spill] sm:$0xff]  ;;  %v9664_v7 = vsel %vm9524_vm15, %v19283_v29, 0.0 }
 0x764   : > { %v9662_v41 = vsel %vm9524_vm15, %v19329_v56, 0.0  ;;  %v9759_v10 = vmul.f32 %v19329_v56, %v19329_v56  ;;  %v19345_v1 = vadd.f32 %v18975_v33, %v8979_v51  ;;  %v8980_v4 = vadd.f32 %v12684_v8, %v21983_v42 }
 0x765   : > { %v9858_v23 = vadd.f32 %v9857_v11, %v9856_v15  ;;  %v9663_v27 = vadd.f32 %v9662_v41, %v9661_v3  ;;  %v19350_v58 = vadd.f32 %v19011_v54, %v8977_v28  ;;  %v9761_v55 = vmul.f32 %v19307_v18, %v19307_v18  ;;  %v8845_v33 = vpop.f32.mrf.mxu1 }
 0x766   : > { %21982 = vst [vmem:[#allocation153_spill] sm:$0xff] %v19345_v1  ;;  %v9859_v9 = vsel %vm9524_vm15, %v9759_v10, 0.0  ;;  %9567 = vst.msk [vmem:[#allocation3 + $0x150] sm:$0xff] %vm9524_vm15, %v19345_v1  ;;  %10057 = vrot.lane.b32.xlu0 %v19329_v56, %s13159_s10  ;;  %10067 = vrot.lane.b32.xlu1 %v19345_v1, %s13159_s10  ;;  %v19364_v54 = vor.u32 %v10460_v21, %v10459_v60  ;;  %v9861_v51 = vsel %vm9524_vm15, %v9760_v25, 0.0  ;;  %v19371_v28 = vsel %vm9524_vm15, %v19286_v24, 0.0 }
 0x767   : > { %v9665_v3 = vadd.f32 %v9664_v7, %v9663_v27  ;;  %v9860_v15 = vadd.f32 %v9859_v9, %v9858_v23  ;;  %9565 = vst.msk [vmem:[#allocation3 + $0x140] sm:$0xff] %vm9524_vm15, %v19350_v58  ;;  %v9666_v11 = vsel %vm9524_vm15, %v19307_v18, 0.0  ;;  %v9762_v41 = vmul.f32 %v19350_v58, %v19350_v58  ;;  %v12687_v21 = vpop.f32.mrf.mxu1  ;;  %v19381_v23 = vpop.f32.mrf.mxu0 }
 0x768   : > { %21984 = vst [vmem:[#allocation155_spill] sm:$0xff] %v19364_v54  ;;  %v19378_v60 = vadd.f32 %v19047_v0, %v8980_v4  ;;  %v8978_v25 = vadd.f32 %v8845_v33, %v18790_v26  ;;  %v8983_v27 = vadd.f32 %v12687_v21, %v18807_v40  ;;  %v19385_v42 = vsel %vm9524_vm15, %v10414_v43, 0.0 }
 0x769   : > { %v9862_v10 = vadd.f32 %v9861_v51, %v9860_v15  ;;  %v9667_v8 = vadd.f32 %v9666_v11, %v9665_v3  ;;  %v9863_v7 = vsel %vm9524_vm15, %v9761_v55, 0.0  ;;  %v9668_v9 = vsel %vm9524_vm15, %v19350_v58, 0.0  ;;  %v8858_v40 = vpop.f32.mrf.mxu1 }
 0x76a   : > { %21985 = vst [vmem:[#allocation157_spill] sm:$0xff] %v19378_v60  ;;  %9568 = vst.msk [vmem:[#allocation3 + $0x158] sm:$0xff] %vm9524_vm15, %v19378_v60  ;;  %v19393_v26 = vadd.f32 %v19081_v36, %v8978_v25  ;;  %10069 = vrot.lane.b32.xlu0 %v19378_v60, %s13159_s10  ;;  %10063 = vrot.lane.b32.xlu1 %v19350_v58, %s13159_s10  ;;  %v10488_v0 = vmul.f32 %v19364_v54, %v19364_v54  ;;  %v9865_v51 = vsel %vm9524_vm15, %v9762_v41, 0.0  ;;  %v19414_v25 = vpop.f32.mrf.mxu0 }
 0x76b   : > { %v9669_v43 = vadd.f32 %v9668_v9, %v9667_v8  ;;  %v9864_v4 = vadd.f32 %v9863_v7, %v9862_v10  ;;  %v19402_v55 = vadd.f32 %v19116_v45, %v8983_v27  ;;  %v8981_v33 = vadd.f32 %v8858_v40, %v18821_v39  ;;  %v12688_v11 = vpop.f32.mrf.mxu1 }
 0x76c   : > { %21986 = vst [vmem:[#allocation159_spill] sm:$0xff] %v19393_v26  ;;  %v9764_v36 = vmul.f32 %v19345_v1, %v19345_v1  ;;  %9566 = vst.msk [vmem:[#allocation3 + $0x148] sm:$0xff] %vm9524_vm15, %v19393_v26  ;;  %v9670_v3 = vsel %vm9524_vm15, %v19393_v26, 0.0  ;;  %v9763_v15 = vmul.f32 %v19393_v26, %v19393_v26  ;;  %v9672_v39 = vsel %vm9524_vm15, %v19345_v1, 0.0 }
 0x76d   : > { %v9866_v45 = vadd.f32 %v9865_v51, %v9864_v4  ;;  %v9671_v21 = vadd.f32 %v9670_v3, %v9669_v43  ;;  %9571 = vst.msk [vmem:[#allocation3 + $0x170] sm:$0xff] %vm9524_vm15, %v19402_v55  ;;  %v19422_v41 = vsel %vm9524_vm15, %v19364_v54, 0.0  ;;  %v9765_v10 = vmul.f32 %v19378_v60, %v19378_v60  ;;  %v8861_v9 = vpop.f32.mrf.mxu1  ;;  %v10390_v51 = vld [vmem:[#allocation3 + $0x110] ss:$32 sm:$0x2] }
 0x76e   : > { %v9867_v8 = vsel %vm9524_vm15, %v9763_v15, 0.0  ;;  %v19428_v27 = vadd.f32 %v19148_v22, %v8981_v33  ;;  %v8984_v7 = vadd.f32 %v12688_v11, %v18845_v12  ;;  %10065 = vrot.lane.b32.xlu0 %v19393_v26, %s13159_s10  ;;  %10075 = vrot.lane.b32.xlu1 %v19402_v55, %s13159_s10  ;;  %v8982_v4 = vadd.f32 %v8861_v9, %v18859_v19 }
 0x76f   : > { %v9673_v40 = vadd.f32 %v9672_v39, %v9671_v21  ;;  %v9868_v43 = vadd.f32 %v9867_v8, %v9866_v45  ;;  %v19437_v3 = vsel %vm9524_vm15, %v10488_v0, 0.0  ;;  %v9869_v22 = vsel %vm9524_vm15, %v9764_v36, 0.0  ;;  %v12691_v11 = vpop.f32.mrf.mxu1  ;;  %v19447_v39 = vpop.f32.mrf.mxu0  ;;  %v10389_v36 = vld [vmem:[#allocation3 + $0x110] ss:$32 sm:$0x1] }
 0x770   : > { %21987 = vst [vmem:[#allocation37_spill] sm:$0xff] %v19428_v27  ;;  %v9674_v12 = vsel %vm9524_vm15, %v19378_v60, 0.0  ;;  %v9766_v33 = vmul.f32 %v19428_v27, %v19428_v27  ;;  %v19445_v15 = vadd.f32 %v19176_v6, %v8984_v7  ;;  %v19450_v21 = vadd.f32 %v19202_v63, %v8982_v4  ;;  %v10464_v7 = vld [vmem:[#allocation3 + $0x11f] ss:$32 sm:$0x2] }
 0x771   : > { %v9870_v45 = vadd.f32 %v9869_v22, %v9868_v43  ;;  %v9675_v19 = vadd.f32 %v9674_v12, %v9673_v40  ;;  %v8987_v0 = vadd.f32 %v12691_v11, %v18888_v32  ;;  %v9871_v8 = vsel %vm9524_vm15, %v9765_v10, 0.0  ;;  %v8874_v63 = vpop.f32.mrf.mxu1  ;;  %v10392_v22 = vld [vmem:[#allocation3 + $0x110] ss:$32 sm:$0x4] }
 0x772   : > { %v9768_v9 = vmul.f32 %v19402_v55, %v19402_v55  ;;  %v9676_v6 = vsel %vm9524_vm15, %v19428_v27, 0.0  ;;  %9572 = vst.msk [vmem:[#allocation3 + $0x178] sm:$0xff] %vm9524_vm15, %v19445_v15  ;;  %10077 = vrot.lane.b32.xlu0 %v19445_v15, %s13159_s10  ;;  %10071 = vrot.lane.b32.xlu1 %v19428_v27, %s13159_s10  ;;  %v10391_v32 = vor.u32 %v10390_v51, %v10389_v36  ;;  %v9678_v43 = vsel %vm9524_vm15, %v19450_v21, 0.0  ;;  %v10466_v26 = vld [vmem:[#allocation3 + $0x11f] ss:$32 sm:$0x4] }
 0x773   : > { %v9677_v40 = vadd.f32 %v9676_v6, %v9675_v19  ;;  %v9872_v10 = vadd.f32 %v9871_v8, %v9870_v45  ;;  %v9767_v4 = vmul.f32 %v19450_v21, %v19450_v21  ;;  %v9873_v12 = vsel %vm9524_vm15, %v9766_v33, 0.0  ;;  %v12692_v36 = vpop.f32.mrf.mxu1  ;;  %v10463_v19 = vld [vmem:[#allocation3 + $0x11f] ss:$32 sm:$0x1]  ;;  %v19475_v45 = vpop.f32.mrf.mxu0 }
 0x774   : > { %v9769_v11 = vmul.f32 %v19445_v15, %v19445_v15  ;;  %v19472_v60 = vadd.f32 %v19228_v53, %v8987_v0  ;;  %v8985_v51 = vadd.f32 %v8874_v63, %v18892_v52  ;;  %v8988_v1 = vadd.f32 %v12692_v36, %v18926_v48 }
 0x775   : > { %v9874_v8 = vadd.f32 %v9873_v12, %v9872_v10  ;;  %v9679_v6 = vadd.f32 %v9678_v43, %v9677_v40  ;;  %v9875_v27 = vsel %vm9524_vm15, %v9767_v4, 0.0  ;;  %v9680_v33 = vsel %vm9524_vm15, %v19402_v55, 0.0  ;;  %v8877_v52 = vpop.f32.mrf.mxu1 }
 0x776   : > { %9575 = vst.msk [vmem:[#allocation3 + $0x190] sm:$0xff] %vm9524_vm15, %v19472_v60  ;;  %v19484_v53 = vadd.f32 %v19258_v14, %v8985_v51  ;;  %10073 = vrot.lane.b32.xlu0 %v19450_v21, %s13159_s10  ;;  %10083 = vrot.lane.b32.xlu1 %v19472_v60, %s13159_s10  ;;  %v19490_v0 = vor.u32 %v10392_v22, %v10391_v32  ;;  %v9877_v14 = vsel %vm9524_vm15, %v9768_v9, 0.0  ;;  %v9682_v4 = vsel %vm9524_vm15, %v19445_v15, 0.0 }
 0x777   : > { %v10465_v48 = vor.u32 %v10464_v7, %v10463_v19  ;;  %v9681_v63 = vadd.f32 %v9680_v33, %v9679_v6  ;;  %v9876_v40 = vadd.f32 %v9875_v27, %v9874_v8  ;;  %v19493_v10 = vadd.f32 %v19288_v47, %v8988_v1  ;;  %v12695_v22 = vpop.f32.mrf.mxu1  ;;  %v19505_v27 = vpop.f32.mrf.mxu0 }
 0x778   : > { %v8986_v43 = vadd.f32 %v8877_v52, %v18939_v17  ;;  %9573 = vst.msk [vmem:[#allocation3 + $0x180] sm:$0xff] %vm9524_vm15, %v19484_v53  ;;  %v9770_v32 = vmul.f32 %v19484_v53, %v19484_v53  ;;  %v9879_v47 = vsel %vm9524_vm15, %v9769_v11, 0.0  ;;  %v9688_v17 = vsel %vm9524_vm15, %v19472_v60, 0.0  ;;  %v10394_v52 = vld [vmem:[#allocation3 + $0x110] ss:$32 sm:$0x8] }
 0x779   : > { %v19503_v7 = vor.u32 %v10466_v26, %v10465_v48  ;;  %v9878_v1 = vadd.f32 %v9877_v14, %v9876_v40  ;;  %v9683_v9 = vadd.f32 %v9682_v4, %v9681_v63  ;;  %9576 = vst.msk [vmem:[#allocation3 + $0x198] sm:$0xff] %vm9524_vm15, %v19493_v10  ;;  %v9772_v12 = vmul.f32 %v19472_v60, %v19472_v60  ;;  %v8890_v11 = vpop.f32.mrf.mxu1  ;;  %v19537_v14 = vpop.f32.mrf.mxu0 }
 0x77a   : > { %v9684_v51 = vsel %vm9524_vm15, %v19484_v53, 0.0  ;;  %v19517_v26 = vadd.f32 %v19319_v50, %v8986_v43  ;;  %v8991_v36 = vadd.f32 %v12695_v22, %v18947_v16  ;;  %10085 = vrot.lane.b32.xlu0 %v19493_v10, %s13159_s10  ;;  %10079 = vrot.lane.b32.xlu1 %v19484_v53, %s13159_s10  ;;  %v9773_v6 = vmul.f32 %v19493_v10, %v19493_v10  ;;  %v10468_v43 = vld [vmem:[#allocation3 + $0x11f] ss:$32 sm:$0x8] }
 0x77b   : > { %v9685_v19 = vadd.f32 %v9684_v51, %v9683_v9  ;;  %v9880_v8 = vadd.f32 %v9879_v47, %v9878_v1  ;;  %v8989_v33 = vadd.f32 %v8890_v11, %v18951_v34  ;;  %v9881_v50 = vsel %vm9524_vm15, %v9770_v32, 0.0  ;;  %v12696_v40 = vpop.f32.mrf.mxu1 }
 0x77c   : > { %9574 = vst.msk [vmem:[#allocation3 + $0x188] sm:$0xff] %vm9524_vm15, %v19517_v26  ;;  %v9686_v16 = vsel %vm9524_vm15, %v19517_v26, 0.0  ;;  %v9771_v48 = vmul.f32 %v19517_v26, %v19517_v26  ;;  %v19535_v63 = vadd.f32 %v19347_v20, %v8991_v36  ;;  %v8992_v22 = vadd.f32 %v12696_v40, %v18994_v31 }
 0x77d   : > { %v9882_v34 = vadd.f32 %v9881_v50, %v9880_v8  ;;  %v9687_v4 = vadd.f32 %v9686_v16, %v9685_v19  ;;  %v19540_v32 = vadd.f32 %v19381_v23, %v8989_v33  ;;  %v9885_v47 = vsel %vm9524_vm15, %v9772_v12, 0.0  ;;  %v8893_v20 = vpop.f32.mrf.mxu1  ;;  %v10396_v36 = vld [vmem:[#allocation3 + $0x110] ss:$32 sm:$0x10] }
 0x77e   : > { %v9690_v1 = vsel %vm9524_vm15, %v19493_v10, 0.0  ;;  %v9883_v9 = vsel %vm9524_vm15, %v9771_v48, 0.0  ;;  %9579 = vst.msk [vmem:[#allocation3 + $0x1b0] sm:$0xff] %vm9524_vm15, %v19535_v63  ;;  %10081 = vrot.lane.b32.xlu0 %v19517_v26, %s13159_s10  ;;  %10091 = vrot.lane.b32.xlu1 %v19535_v63, %s13159_s10  ;;  %v10395_v23 = vor.u32 %v10394_v52, %v19490_v0  ;;  %v9887_v31 = vsel %vm9524_vm15, %v9773_v6, 0.0  ;;  %v9432_v0 = vpop.f32.mrf.mxu0 }
 0x77f   : > { %v9689_v12 = vadd.f32 %v9688_v17, %v9687_v4  ;;  %v9884_v51 = vadd.f32 %v9883_v9, %v9882_v34  ;;  %v10469_v11 = vor.u32 %v10468_v43, %v19503_v7  ;;  %v9776_v19 = vmul.f32 %v19535_v63, %v19535_v63  ;;  %v12699_v16 = vpop.f32.mrf.mxu1 }
 0x780   : > { %v9774_v8 = vmul.f32 %v19540_v32, %v19540_v32  ;;  %v19561_v33 = vadd.f32 %v19414_v25, %v8992_v22  ;;  %v8990_v50 = vadd.f32 %v8893_v20, %v19001_v44  ;;  %v9696_v17 = vsel %vm9524_vm15, %v19535_v63, 0.0  ;;  %v10470_v43 = vld [vmem:[#allocation3 + $0x11f] ss:$32 sm:$0x10] }
 0x781   : > { %v9886_v52 = vadd.f32 %v9885_v47, %v9884_v51  ;;  %v9691_v6 = vadd.f32 %v9690_v1, %v9689_v12  ;;  %v8995_v7 = vadd.f32 %v12699_v16, %v19016_v38  ;;  %v9692_v48 = vsel %vm9524_vm15, %v19540_v32, 0.0  ;;  %v8906_v40 = vpop.f32.mrf.mxu1  ;;  %v12769_v12 = vpop.f32.mrf.mxu0 }
 0x782   : > { %21988 = vst [vmem:[#allocation39_spill] sm:$0xff] %v19561_v33  ;;  %9580 = vst.msk [vmem:[#allocation3 + $0x1b8] sm:$0xff] %vm9524_vm15, %v19561_v33  ;;  %v9777_v25 = vmul.f32 %v19561_v33, %v19561_v33  ;;  %v19574_v44 = vadd.f32 %v19447_v39, %v8990_v50  ;;  %10093 = vrot.lane.b32.xlu0 %v19561_v33, %s13159_s10  ;;  %10087 = vrot.lane.b32.xlu1 %v19540_v32, %s13159_s10  ;;  %v9893_v39 = vsel %vm9524_vm15, %v9776_v19, 0.0 }
 0x783   : > { %v19580_v38 = vor.u32 %v10396_v36, %v10395_v23  ;;  %v9693_v34 = vadd.f32 %v9692_v48, %v9691_v6  ;;  %v9888_v4 = vadd.f32 %v9887_v31, %v9886_v52  ;;  %v19583_v22 = vadd.f32 %v19475_v45, %v8995_v7  ;;  %v12700_v23 = vpop.f32.mrf.mxu1  ;;  %v21991_v48 = vld [vmem:[#allocation152_spill] sm:$0xff] }
 0x784   : > { %v8993_v47 = vadd.f32 %v8906_v40, %v19032_v30  ;;  %v9889_v1 = vsel %vm9524_vm15, %v9774_v8, 0.0  ;;  %v9694_v9 = vsel %vm9524_vm15, %v19574_v44, 0.0  ;;  %v9775_v20 = vmul.f32 %v19574_v44, %v19574_v44 }
 0x785   : > { %21989 = vst [vmem:[#allocation160_spill] sm:$0xff] %v19583_v22  ;;  %v9890_v51 = vadd.f32 %v9889_v1, %v9888_v4  ;;  %v9698_v31 = vsel %vm9524_vm15, %v19561_v33, 0.0  ;;  %v9695_v45 = vadd.f32 %v9694_v9, %v9693_v34  ;;  %9583 = vst.msk [vmem:[#allocation3 + $0x1d0] sm:$0xff] %vm9524_vm15, %v19583_v22  ;;  %v19596_v30 = vld [vmem:[#allocation3 + $0x110] ss:$32 sm:$0x20]  ;;  %v19598_v36 = vor.u32 %v10470_v43, %v10469_v11  ;;  %v8909_v52 = vpop.f32.mrf.mxu1  ;;  %v9988_v43 = vpop.permute.xlu1 %9987 }
 0x786   : > { %v9891_v19 = vsel %vm9524_vm15, %v9775_v20, 0.0  ;;  %v9780_v8 = vmul.f32 %v19583_v22, %v19583_v22  ;;  %v19604_v50 = vadd.f32 %v19505_v27, %v8993_v47  ;;  %v8996_v16 = vadd.f32 %v12700_v23, %v19055_v57  ;;  %10089 = vrot.lane.b32.xlu0 %v19574_v44, %s13159_s10  ;;  %10099 = vrot.lane.b32.xlu1 %v19583_v22, %s13159_s10  ;;  %v21992_v20 = vld [vmem:[#allocation154_spill] sm:$0xff] }
 0x787   : > { %v9895_v11 = vsel %vm9524_vm15, %v9777_v25, 0.0  ;;  %v9697_v6 = vadd.f32 %v9696_v17, %v9695_v45  ;;  %v9892_v7 = vadd.f32 %v9891_v19, %v9890_v51  ;;  %v8994_v40 = vadd.f32 %v8909_v52, %v21991_v48  ;;  %v12703_v4 = vpop.f32.mrf.mxu1  ;;  %v9445_v25 = vpop.f32.mrf.mxu0  ;;  %v21993_v19 = vld [vmem:[#allocation127_spill] sm:$0xff] }
 0x788   : > { %21990 = vst [vmem:[#allocation161_spill] sm:$0xff] %v19604_v50  ;;  %v9704_v27 = vsel %vm9524_vm15, %v19583_v22, 0.0  ;;  %9581 = vst.msk [vmem:[#allocation3 + $0x1c0] sm:$0xff] %vm9524_vm15, %v19604_v50  ;;  %v9778_v57 = vmul.f32 %v19604_v50, %v19604_v50  ;;  %v19620_v34 = vadd.f32 %v19537_v14, %v8996_v16  ;;  %v8999_v23 = vadd.f32 %v12703_v4, %v21992_v20  ;;  %v21996_v20 = vld [vmem:[#allocation239_spill] sm:$0xff] }
 0x789   : > { %v9894_v47 = vadd.f32 %v9893_v39, %v9892_v7  ;;  %v9699_v1 = vadd.f32 %v9698_v31, %v9697_v6  ;;  %v19624_v9 = vadd.f32 %v9432_v0, %v8994_v40  ;;  %v9901_v51 = vsel %vm9524_vm15, %v9780_v8, 0.0  ;;  %v8922_v0 = vpop.f32.mrf.mxu1  ;;  %v9990_v6 = vpop.permute.xlu0 %9989 }
 0x78a   : > { %v9700_v45 = vsel %vm9524_vm15, %v19604_v50, 0.0  ;;  %9584 = vst.msk [vmem:[#allocation3 + $0x1d8] sm:$0xff] %vm9524_vm15, %v19620_v34  ;;  %v9781_v14 = vmul.f32 %v19620_v34, %v19620_v34  ;;  %v10177_v16 = vmul.f32 %v9988_v43, %v21993_v19  ;;  %10101 = vrot.lane.b32.xlu0 %v19620_v34, %s13159_s10  ;;  %10095 = vrot.lane.b32.xlu1 %v19604_v50, %s13159_s10  ;;  %v9984_v7 = vpop.permute.xlu1 %9983  ;;  %v9897_v48 = vsel %vm9524_vm15, %v9778_v57, 0.0  ;;  %v21995_v43 = vld [vmem:[#allocation149_spill] sm:$0xff]  ;;  %v21998_v57 = vld [vmem:[#allocation134_spill] sm:$0xff] }
 0x78b   : > { %v9701_v39 = vadd.f32 %v9700_v45, %v9699_v1  ;;  %v9896_v31 = vadd.f32 %v9895_v11, %v9894_v47  ;;  %9582 = vst.msk [vmem:[#allocation3 + $0x1c8] sm:$0xff] %vm9524_vm15, %v19624_v9  ;;  %v9702_v8 = vsel %vm9524_vm15, %v19624_v9, 0.0  ;;  %v9779_v52 = vmul.f32 %v19624_v9, %v19624_v9  ;;  %v12704_v11 = vpop.f32.mrf.mxu1  ;;  %v12770_v47 = vpop.f32.mrf.mxu0 }
 0x78c   : > { %v19646_v40 = vadd.f32 %v12769_v12, %v8999_v23  ;;  %v8997_v4 = vadd.f32 %v8922_v0, %v21995_v43  ;;  %v10178_v1 = vmul.f32 %v9990_v6, %v21996_v20  ;;  %v9706_v19 = vsel %vm9524_vm15, %v19620_v34, 0.0  ;;  %v10400_v43 = vld [vmem:[#allocation3 + $0x110] ss:$32 sm:$0x40]  ;;  %v21999_v20 = vld [vmem:[#allocation136_spill] sm:$0xff] }
 0x78d   : > { %v9898_v45 = vadd.f32 %v9897_v48, %v9896_v31  ;;  %v9703_v17 = vadd.f32 %v9702_v8, %v9701_v39  ;;  %v9899_v22 = vsel %vm9524_vm15, %v9779_v52, 0.0  ;;  %v9903_v50 = vsel %vm9524_vm15, %v9781_v14, 0.0  ;;  %v8925_v0 = vpop.f32.mrf.mxu1  ;;  %v9986_v8 = vpop.permute.xlu0 %9985 }
 0x78e   : > { %21994 = vst [vmem:[#allocation162_spill] sm:$0xff] %v19646_v40  ;;  %v10242_v33 = vsel %vm21997_vm4, %v10177_v16, 0.0  ;;  %9587 = vst.msk [vmem:[#allocation3 + $0x1f0] sm:$0xff] %vm9524_vm15, %v19646_v40  ;;  %v19657_v12 = vadd.f32 %v9445_v25, %v8997_v4  ;;  %v10175_v23 = vmul.f32 %v9984_v7, %v21998_v57  ;;  %10097 = vrot.lane.b32.xlu0 %v19624_v9, %s13159_s10  ;;  %10107 = vrot.lane.b32.xlu1 %v19646_v40, %s13159_s10  ;;  %v9996_v52 = vpop.permute.xlu1 %9995 }
 0x78f   : > { %v9705_v39 = vadd.f32 %v9704_v27, %v9703_v17  ;;  %v9900_v31 = vadd.f32 %v9899_v22, %v9898_v45  ;;  %v9712_v14 = vsel %vm9524_vm15, %v19646_v40, 0.0  ;;  %v9000_v16 = vadd.f32 %v12704_v11, %v19146_v49  ;;  %v9448_v27 = vpop.f32.mrf.mxu0  ;;  %vm22029_vm4 = vmmov %vm21316_vm0 }
 0x790   : > { %v9784_v25 = vmul.f32 %v19646_v40, %v19646_v40  ;;  %v9782_v6 = vmul.f32 %v19657_v12, %v19657_v12  ;;  %v10244_v7 = vsel %vm21316_vm0, %v10178_v1, 0.0  ;;  %v8998_v48 = vadd.f32 %v8925_v0, %v19317_v35 }
 0x791   : > { %v9902_v22 = vadd.f32 %v9901_v51, %v9900_v31  ;;  %v9707_v17 = vadd.f32 %v9706_v19, %v9705_v39  ;;  %v19673_v4 = vadd.f32 %v12770_v47, %v9000_v16  ;;  %v10176_v49 = vmul.f32 %v9986_v8, %v21999_v20  ;;  %v22001_v51 = vld [vmem:[#allocation138_spill] sm:$0xff] }
 0x792   : > { %v9708_v11 = vsel %vm9524_vm15, %v19657_v12, 0.0  ;;  %v9905_v45 = vsel %vm9524_vm15, %v9782_v6, 0.0  ;;  %v10239_v57 = vsel %vm22000_vm9, %v10175_v23, 0.0  ;;  %v19680_v40 = vadd.f32 %v9448_v27, %v8998_v48  ;;  %10103 = vrot.lane.b32.xlu1 %v19657_v12, %s13159_s10  ;;  %v9992_v19 = vpop.permute.xlu1 %9991  ;;  %vm22032_vm9 = vmmov %vm21316_vm0 }
 0x793   : > { %v9709_v35 = vadd.f32 %v9708_v11, %v9707_v17  ;;  %v9904_v1 = vadd.f32 %v9903_v50, %v9902_v22  ;;  %9588 = vst.msk [vmem:[#allocation3 + $0x1f8] sm:$0xff] %vm9524_vm15, %v19673_v4  ;;  %v10181_v47 = vmul.f32 %v9996_v52, %v22001_v51  ;;  %10109 = vrot.lane.b32.xlu0 %v19673_v4, %s13159_s10  ;;  %v10240_v16 = vsel %vm22003_vm6, %v10176_v49, 0.0  ;;  %v10472_v52 = vld [vmem:[#allocation3 + $0x11f] ss:$32 sm:$0x20]  ;;  %vm22034_vm6 = vmmov %vm21316_vm0 }
 0x794   : > { %v22002_v0 = vor.u32 %v19596_v30, %v19580_v38  ;;  %v9785_v39 = vmul.f32 %v19673_v4, %v19673_v4  ;;  %v9710_v31 = vsel %vm9524_vm15, %v19680_v40, 0.0  ;;  %v9783_v50 = vmul.f32 %v19680_v40, %v19680_v40  ;;  %v9998_v8 = vpop.permute.xlu0 %9997  ;;  %v22004_v17 = vld [vmem:[#allocation135_spill] sm:$0xff] }
 0x795   : > { %v9909_v6 = vsel %vm9524_vm15, %v9784_v25, 0.0  ;;  %v9906_v48 = vadd.f32 %v9905_v45, %v9904_v1  ;;  %v9711_v27 = vadd.f32 %v9710_v31, %v9709_v35  ;;  %v10241_v22 = vadd.f32 %v10240_v16, %v10239_v57  ;;  %v10402_v38 = vld [vmem:[#allocation3 + $0x110] ss:$32 sm:$0x80] }
 0x796   : > { %v10401_v23 = vor.u32 %v10400_v43, %v22002_v0  ;;  %v9714_v30 = vsel %vm9524_vm15, %v19673_v4, 0.0  ;;  %v9907_v43 = vsel %vm9524_vm15, %v9783_v50, 0.0  ;;  %v10179_v20 = vmul.f32 %v9992_v19, %v22004_v17  ;;  %10428 = vrot.lane.b32.xlu1 %v19286_v24, %s13159_s10  ;;  %v10004_v45 = vpop.permute.xlu1 %10003  ;;  %v10474_v57 = vld [vmem:[#allocation3 + $0x11f] ss:$32 sm:$0x40]  ;;  %v22007_v1 = vld [vmem:[#allocation142_spill] sm:$0xff] }
 0x797   : > { %v9713_v49 = vadd.f32 %v9712_v14, %v9711_v27  ;;  %v9908_v51 = vadd.f32 %v9907_v43, %v9906_v48  ;;  %v10243_v0 = vadd.f32 %v10242_v33, %v10241_v22  ;;  %v10250_v25 = vsel %vm22006_vm5, %v10181_v47, 0.0  ;;  %10105 = vrot.lane.b32.xlu0 %v19680_v40, %s13159_s10  ;;  %v22008_v48 = vld [vmem:[#allocation245_spill] sm:$0xff]  ;;  %vm22036_vm5 = vmmov %vm21316_vm0 }
 0x798   : > { %v19706_v11 = vor.u32 %v10402_v38, %v10401_v23  ;;  %v9911_v35 = vsel %vm9524_vm15, %v9785_v39, 0.0  ;;  %v10182_v31 = vmul.f32 %v9998_v8, %v22007_v1  ;;  %v9994_v19 = vpop.permute.xlu0 %9993  ;;  %v10473_v23 = vor.u32 %v10472_v52, %v19598_v36  ;;  %v22014_v1 = vld [vmem:[#allocation31_spill] sm:$0xff] }
 0x799   : > { %v9715_v14 = vadd.f32 %v9714_v30, %v9713_v49  ;;  %v9910_v16 = vadd.f32 %v9909_v6, %v9908_v51  ;;  %v10245_v33 = vadd.f32 %v10244_v7, %v10243_v0  ;;  %v10180_v47 = vmul.f32 %v9994_v19, %v22008_v48 }
 0x79a   : > { %22005 = vst [vmem:[#allocation163_spill] sm:$0xff] %v19706_v11  ;;  %v10405_v50 = vsel %vm9524_vm15, %v19706_v11, 0.0  ;;  %v10246_v27 = vsel %vm22009_vm1, %v10179_v20, 0.0  ;;  %v10415_v39 = vmul.f32 %v19706_v11, %v19706_v11  ;;  %10502 = vrot.lane.b32.xlu1 %v19364_v54, %s13159_s10  ;;  %v10475_v8 = vor.u32 %v10474_v57, %v10473_v23  ;;  %v10476_v38 = vld [vmem:[#allocation3 + $0x11f] ss:$32 sm:$0x80]  ;;  %v10000_v7 = vpop.permute.xlu1 %9999  ;;  %vm22039_vm1 = vmmov %vm21316_vm0 }
 0x79b   : > { %v10406_v22 = vadd.f32 %v10405_v50, %v19371_v28  ;;  %v9716_v43 = vrot.slane %v9715_v14, 4  ;;  %v9912_v17 = vadd.f32 %v9911_v35, %v9910_v16  ;;  %v10247_v36 = vadd.f32 %v10246_v27, %v10245_v33  ;;  %10430 = vrot.lane.b32.xlu0 %v19706_v11, %s13159_s10  ;;  %v22011_v20 = vld [vmem:[#allocation137_spill] sm:$0xff]  ;;  %v22015_v27 = vld [vmem:[#allocation144_spill] sm:$0xff] }
 0x79c   : > { %v10248_v52 = vsel %vm22010_vm7, %v10180_v47, 0.0  ;;  %v10417_v28 = vsel %vm9524_vm15, %v10415_v39, 0.0  ;;  %v10006_v30 = vpop.permute.xlu0 %10005  ;;  %v10183_v49 = vmul.f32 %v10000_v7, %v22011_v20  ;;  %v19728_v51 = vor.u32 %v10476_v38, %v10475_v8  ;;  %vm22040_vm7 = vmmov %vm21316_vm0 }
 0x79d   : > { %v10407_v6 = vrot.slane %v10406_v22, 4  ;;  %v10252_v0 = vsel %vm22013_vm3, %v10182_v31, 0.0  ;;  %v10249_v57 = vadd.f32 %v10248_v52, %v10247_v36  ;;  %v10185_v35 = vmul.f32 %v10004_v45, %v22014_v1  ;;  %vm22042_vm3 = vmmov %vm21316_vm0 }
 0x79e   : > { %22012 = vst [vmem:[#allocation41_spill] sm:$0xff] %v19728_v51  ;;  %v10418_v19 = vadd.f32 %v10417_v28, %v19385_v42  ;;  %v9913_v50 = vrot.slane %v9912_v17, 4  ;;  %v10479_v16 = vsel %vm9524_vm15, %v19728_v51, 0.0  ;;  %v10489_v33 = vmul.f32 %v19728_v51, %v19728_v51  ;;  %v22017_v28 = vld [vmem:[#allocation247_spill] sm:$0xff] }
 0x79f   : > { %v10408_v23 = vadd.f32 %v10407_v6, %v10406_v22  ;;  %v10251_v48 = vadd.f32 %v10250_v25, %v10249_v57  ;;  %v10186_v39 = vmul.f32 %v10006_v30, %v22015_v27  ;;  %v10480_v8 = vadd.f32 %v10479_v16, %v19422_v41  ;;  %10504 = vrot.lane.b32.xlu0 %v19728_v51, %s13159_s10  ;;  %v10012_v22 = vpop.permute.xlu1 %10011 }
 0x7a0   : > { %v10419_v47 = vrot.slane %v10418_v19, 4  ;;  %v10254_v45 = vsel %vm22016_vm14, %v10183_v49, 0.0  ;;  %v10491_v42 = vsel %vm9524_vm15, %v10489_v33, 0.0  ;;  %v10002_v31 = vpop.permute.xlu0 %10001  ;;  %v9717_v38 = vadd.f32 %v9716_v43, %v9715_v14  ;;  %vm22044_vm14 = vmmov %vm21316_vm0 }
 0x7a1   : > { %v10409_v36 = vrot.slane %v10408_v23, 2  ;;  %v10253_v7 = vadd.f32 %v10252_v0, %v10251_v48  ;;  %v10481_v6 = vrot.slane %v10480_v8, 4  ;;  %v10492_v25 = vadd.f32 %v10491_v42, %v19437_v3  ;;  %v22020_v3 = vld [vmem:[#allocation146_spill] sm:$0xff] }
 0x7a2   : > { %v10420_v52 = vadd.f32 %v10419_v47, %v10418_v19  ;;  %v10184_v30 = vmul.f32 %v10002_v31, %v22017_v28  ;;  %v9718_v20 = vrot.slane %v9717_v38, 2  ;;  %v9914_v57 = vadd.f32 %v9913_v50, %v9912_v17 }
 0x7a3   : > { %v10410_v41 = vadd.f32 %v10409_v36, %v10408_v23  ;;  %v10255_v16 = vadd.f32 %v10254_v45, %v10253_v7  ;;  %v10493_v27 = vrot.slane %v10492_v25, 4  ;;  %v10482_v49 = vadd.f32 %v10481_v6, %v10480_v8  ;;  %v10008_v54 = vpop.permute.xlu1 %10007 }
 0x7a4   : > { %v10421_v1 = vrot.slane %v10420_v52, 2  ;;  %v10256_v33 = vsel %vm22018_vm8, %v10184_v30, 0.0  ;;  %v10014_v51 = vpop.permute.xlu0 %10013  ;;  %v9719_v14 = vadd.f32 %v9718_v20, %v9717_v38  ;;  %v10258_v0 = vsel %vm22019_vm11, %v10185_v35, 0.0  ;;  %v22022_v20 = vld [vmem:[#allocation139_spill] sm:$0xff]  ;;  %vm22047_vm8 = vmmov %vm21316_vm0 }
 0x7a5   : > { %v10411_v43 = vrot.slane %v10410_v41, 1  ;;  %v10494_v19 = vadd.f32 %v10493_v27, %v10492_v25  ;;  %v10257_v48 = vadd.f32 %v10256_v33, %v10255_v16  ;;  %v10187_v47 = vmul.f32 %v10008_v54, %v22020_v3  ;;  %v22023_v16 = vld [vmem:[#allocation148_spill] sm:$0xff]  ;;  %vm22048_vm11 = vmmov %vm21316_vm0 }
 0x7a6   : > { %v9720_v42 = vrot.slane %v9719_v14, 1  ;;  %v10483_v31 = vrot.slane %v10482_v49, 2  ;;  %v9915_v23 = vrot.slane %v9914_v57, 2  ;;  %v10260_v17 = vsel %vm22021_vm13, %v10186_v39, 0.0  ;;  %vm22049_vm13 = vmmov %vm21316_vm0 }
 0x7a7   : > { %v10259_v50 = vadd.f32 %v10258_v0, %v10257_v48  ;;  %v10412_v45 = vadd.f32 %v10411_v43, %v10410_v41  ;;  %v10422_v8 = vadd.f32 %v10421_v1, %v10420_v52  ;;  %v10020_v7 = vpop.permute.xlu1 %10019  ;;  %v10495_v30 = vrot.slane %v10494_v19, 2  ;;  %v22025_v0 = vld [vmem:[#allocation141_spill] sm:$0xff] }
 0x7a8   : > { %v10010_v36 = vpop.permute.xlu0 %10009  ;;  %v9721_v6 = vadd.f32 %v9720_v42, %v9719_v14  ;;  %v10484_v28 = vadd.f32 %v10483_v31, %v10482_v49  ;;  %v9916_v38 = vadd.f32 %v9915_v23, %v9914_v57  ;;  %v10189_v35 = vmul.f32 %v10012_v22, %v22022_v20 }
 0x7a9   : > { %v10261_v25 = vadd.f32 %v10260_v17, %v10259_v50  ;;  %v10188_v27 = vmul.f32 %v10010_v36, %v22023_v16  ;;  %v10423_v54 = vrot.slane %v10422_v8, 1  ;;  %v10262_v33 = vsel %vm22024_vm12, %v10187_v47, 0.0  ;;  %v22028_v17 = vld [vmem:[#allocation32_spill] sm:$0xff]  ;;  %vm22050_vm12 = vmmov %vm21316_vm0 }
 0x7aa   : > { %v10485_v3 = vrot.slane %v10484_v28, 1  ;;  %v9917_v11 = vrot.slane %v9916_v38, 1  ;;  %v10496_v39 = vadd.f32 %v10495_v30, %v10494_v19  ;;  %v10190_v41 = vmul.f32 %v10014_v51, %v22025_v0 }
 0x7ab   : > { %v10263_v52 = vadd.f32 %v10262_v33, %v10261_v25  ;;  %v10264_v1 = vsel %vm22026_vm2, %v10188_v27, 0.0  ;;  %v10424_v14 = vadd.f32 %v10423_v54, %v10422_v8  ;;  %v10016_v57 = vpop.permute.xlu1 %10015  ;;  %v10413_v43 = vsub.f32 %v9721_v6, %v10412_v45  ;;  %v22030_v6 = vld [vmem:[#allocation251_spill] sm:$0xff]  ;;  %vm22051_vm2 = vmmov %vm21316_vm0 }
 0x7ac   : > { %v10022_v49 = vpop.permute.xlu0 %10021  ;;  %v10486_v48 = vadd.f32 %v10485_v3, %v10484_v28  ;;  %v9918_v22 = vadd.f32 %v9917_v11, %v9916_v38  ;;  %v10497_v42 = vrot.slane %v10496_v39, 1  ;;  %v10266_v31 = vsel %vm22027_vm10, %v10189_v35, 0.0  ;;  %v22031_v28 = vld [vmem:[#allocation143_spill] sm:$0xff]  ;;  %vm22052_vm10 = vmmov %vm21316_vm0 }
 0x7ad   : > { %v10265_v23 = vadd.f32 %v10264_v1, %v10263_v52  ;;  %v10191_v47 = vmul.f32 %v10016_v57, %v22028_v17  ;;  %v10268_v51 = vsel %vm22029_vm4, %v10190_v41, 0.0  ;;  %v10193_v38 = vmul.f32 %v10020_v7, %v22031_v28  ;;  %v22035_v57 = vld [vmem:[#allocation145_spill] sm:$0xff]  ;;  %vm22053_vm4 = vmmov %vm21316_vm0 }
 0x7ae   : > { %v10487_v50 = vsub.f32 %v10413_v43, %v10486_v48  ;;  %v10425_v36 = vsub.f32 %v9918_v22, %v10424_v14  ;;  %v10498_v19 = vadd.f32 %v10497_v42, %v10496_v39  ;;  %v22033_v39 = vld [vmem:[#allocation150_spill] sm:$0xff] }
 0x7af   : > { %v10267_v30 = vadd.f32 %v10266_v31, %v10265_v23  ;;  %v10028_v25 = vpop.permute.xlu1 %10027  ;;  %v10270_v35 = vsel %vm21316_vm0, %v10191_v47, 0.0  ;;  %v10194_v0 = vmul.f32 %v10022_v49, %v22033_v39  ;;  %v10274_v7 = vsel %vm22034_vm6, %v10193_v38, 0.0  ;;  %v22037_v49 = vld [vmem:[#allocation147_spill] sm:$0xff]  ;;  %vm22056_vm6 = vmmov %vm21316_vm0 }
 0x7b0   : > { %v19757_v20 = vmul.f32 0.00390625, %v10487_v50  ;;  %v10018_v8 = vpop.permute.xlu0 %10017  ;;  %v10499_v16 = vsub.f32 %v10425_v36, %v10498_v19  ;;  %v22038_v50 = vld [vmem:[#allocation33_spill] sm:$0xff]  ;;  %v22043_v38 = vld [vmem:[#allocation151_spill] sm:$0xff] }
 0x7b1   : > { %v10269_v45 = vadd.f32 %v10268_v51, %v10267_v30  ;;  %v10192_v11 = vmul.f32 %v10018_v8, %v22030_v6  ;;  %v10276_v42 = vsel %vm22036_vm5, %v10194_v0, 0.0  ;;  %v10197_v36 = vmul.f32 %v10028_v25, %v22038_v50  ;;  %v22041_v8 = vld [vmem:[#allocation253_spill] sm:$0xff]  ;;  %v22045_v39 = vld [vmem:[#allocation35_spill] sm:$0xff]  ;;  %vm22057_vm5 = vmmov %vm21316_vm0 }
 0x7b2   : > { %10529 = vrot.lane.b32.xlu1 %v19757_v20, %s13159_s10  ;;  %v10523_v27 = vmul.f32 0.00390625, %v10499_v16  ;;  %v10524_v54 = vmul.f32 %v19757_v20, %v19757_v20 }
 0x7b3   : > { %v10271_v33 = vadd.f32 %v10270_v35, %v10269_v45  ;;  %v10272_v3 = vsel %vm22032_vm9, %v10192_v11, 0.0  ;;  %v10024_v52 = vpop.permute.xlu1 %10023  ;;  %v10282_v28 = vsel %vm22042_vm3, %v10197_v36, 0.0  ;;  %vm22055_vm9 = vmmov %vm21316_vm0 }
 0x7b4   : > { %v10030_v41 = vpop.permute.xlu0 %10029  ;;  %v10525_v1 = vsub.f32 %v10523_v27, %v10524_v54  ;;  %v10195_v43 = vmul.f32 %v10024_v52, %v22035_v57  ;;  %v22046_v52 = vld [vmem:[#allocation156_spill] sm:$0xff]  ;;  %vm22061_vm3 = vmmov %vm21316_vm0 }
 0x7b5   : > { %v10273_v14 = vadd.f32 %v10272_v3, %v10271_v33  ;;  %v10198_v16 = vmul.f32 %v10030_v41, %v22041_v8 }
 0x7b6   : > { %v19770_v48 = vadd.f32 0.0001, %v10525_v1  ;;  %v10278_v19 = vsel %vm22039_vm1, %v10195_v43, 0.0  ;;  %vm22059_vm1 = vmmov %vm21316_vm0 }
 0x7b7   : > { %v10275_v22 = vadd.f32 %v10274_v7, %v10273_v14  ;;  %v10036_v23 = vpop.permute.xlu1 %10035  ;;  %v10284_v54 = vsel %vm22044_vm14, %v10198_v16, 0.0  ;;  %vm22062_vm14 = vmmov %vm21316_vm0 }
 0x7b8   : > { %10535 = vrot.lane.b32.xlu0 %v19770_v48, %s13159_s10  ;;  %v10026_v31 = vpop.permute.xlu0 %10025  ;;  %v10201_v1 = vmul.f32 %v10036_v23, %v22046_v52 }
 0x7b9   : > { %v10277_v17 = vadd.f32 %v10276_v42, %v10275_v22  ;;  %v10196_v47 = vmul.f32 %v10026_v31, %v22037_v49 }
 0x7ba   : > { %v10290_v31 = vsel %vm22049_vm13, %v10201_v1, 0.0  ;;  %vm22067_vm13 = vmmov %vm21316_vm0 }
 0x7bb   : > { %v10279_v30 = vadd.f32 %v10278_v19, %v10277_v17  ;;  %v10280_v51 = vsel %vm22040_vm7, %v10196_v47, 0.0  ;;  %v10032_v6 = vpop.permute.xlu1 %10031  ;;  %vm22060_vm7 = vmmov %vm21316_vm0 }
 0x7bc   : > { %v10038_v45 = vpop.permute.xlu0 %10037  ;;  %v10199_v35 = vmul.f32 %v10032_v6, %v22043_v38 }
 0x7bd   : > { %v10281_v11 = vadd.f32 %v10280_v51, %v10279_v30  ;;  %v10202_v57 = vmul.f32 %v10038_v45, %v19134_v2 }
 0x7be   : > { %v10286_v14 = vsel %vm22047_vm8, %v10199_v35, 0.0  ;;  %vm22063_vm8 = vmmov %vm21316_vm0 }
 0x7bf   : > { %v10283_v27 = vadd.f32 %v10282_v28, %v10281_v11  ;;  %v10292_v47 = vsel %vm22050_vm12, %v10202_v57, 0.0  ;;  %v22054_v28 = vld [vmem:[#allocation158_spill] sm:$0xff]  ;;  %vm22069_vm12 = vmmov %vm21316_vm0 }
 0x7c0   : > { %v10034_v33 = vpop.permute.xlu0 %10033  ;;  %v10044_v3 = vpop.permute.xlu1 %10043 }
 0x7c1   : > { %v10285_v25 = vadd.f32 %v10284_v54, %v10283_v27  ;;  %v10200_v0 = vmul.f32 %v10034_v33, %v22045_v39  ;;  %v10205_v30 = vmul.f32 %v10044_v3, %v19174_v37 }
 0x7c3   : > { %v10287_v41 = vadd.f32 %v10286_v14, %v10285_v25  ;;  %v10288_v7 = vsel %vm22048_vm11, %v10200_v0, 0.0  ;;  %v10298_v11 = vsel %vm22053_vm4, %v10205_v30, 0.0  ;;  %vm22066_vm11 = vmmov %vm21316_vm0 }
 0x7c4   : > { %v10046_v43 = vpop.permute.xlu0 %10045  ;;  %v10040_v22 = vpop.permute.xlu1 %10039  ;;  %vm22073_vm4 = vmmov %vm21316_vm0 }
 0x7c5   : > { %v10289_v42 = vadd.f32 %v10288_v7, %v10287_v41  ;;  %v10203_v17 = vmul.f32 %v10040_v22, %v19179_v62  ;;  %v10206_v16 = vmul.f32 %v10046_v43, %v19199_v59  ;;  %v22058_v7 = vld [vmem:[#allocation36_spill] sm:$0xff] }
 0x7c7   : > { %v10291_v49 = vadd.f32 %v10290_v31, %v10289_v42  ;;  %v10294_v51 = vsel %vm22051_vm2, %v10203_v17, 0.0  ;;  %v10300_v27 = vsel %vm21316_vm0, %v10206_v16, 0.0  ;;  %vm22071_vm2 = vmmov %vm21316_vm0 }
 0x7c8   : > { %v10042_v50 = vpop.permute.xlu0 %10041  ;;  %v10052_v36 = vpop.permute.xlu1 %10051 }
 0x7c9   : > { %v10293_v23 = vadd.f32 %v10292_v47, %v10291_v49  ;;  %v10204_v19 = vmul.f32 %v10042_v50, %v19211_v61  ;;  %v10209_v3 = vmul.f32 %v10052_v36, %v19218_v5 }
 0x7cb   : > { %v10295_v2 = vadd.f32 %v10294_v51, %v10293_v23  ;;  %v10296_v8 = vsel %vm22052_vm10, %v10204_v19, 0.0  ;;  %v10306_v41 = vsel %vm22057_vm5, %v10209_v3, 0.0  ;;  %vm22072_vm10 = vmmov %vm21316_vm0 }
 0x7cc   : > { %v10054_v45 = vpop.permute.xlu0 %10053  ;;  %v10048_v6 = vpop.permute.xlu1 %10047  ;;  %vm22076_vm5 = vmmov %vm21316_vm0 }
 0x7cd   : > { %v10297_v62 = vadd.f32 %v10296_v8, %v10295_v2  ;;  %v10207_v38 = vmul.f32 %v10048_v6, %v22054_v28  ;;  %v10210_v0 = vmul.f32 %v10054_v45, %v19256_v13  ;;  %v22064_v45 = vld [vmem:[#allocation159_spill] sm:$0xff] }
 0x7cf   : > { %v10299_v35 = vadd.f32 %v10298_v11, %v10297_v62  ;;  %v10302_v25 = vsel %vm22055_vm9, %v10207_v38, 0.0  ;;  %v10308_v22 = vsel %vm22059_vm1, %v10210_v0, 0.0  ;;  %v22065_v62 = vld [vmem:[#allocation153_spill] sm:$0xff]  ;;  %vm22074_vm9 = vmmov %vm21316_vm0 }
 0x7d0   : > { %v10050_v61 = vpop.permute.xlu0 %10049  ;;  %v10060_v54 = vpop.permute.xlu1 %10059  ;;  %vm22077_vm1 = vmmov %vm21316_vm0 }
 0x7d1   : > { %v10301_v37 = vadd.f32 %v10300_v27, %v10299_v35  ;;  %v10208_v33 = vmul.f32 %v10050_v61, %v19261_v46  ;;  %v10213_v17 = vmul.f32 %v10060_v54, %v19283_v29  ;;  %v22068_v35 = vld [vmem:[#allocation157_spill] sm:$0xff] }
 0x7d3   : > { %v10303_v59 = vadd.f32 %v10302_v25, %v10301_v37  ;;  %v10304_v39 = vsel %vm22056_vm6, %v10208_v33, 0.0  ;;  %v10314_v30 = vsel %vm22062_vm14, %v10213_v17, 0.0  ;;  %v22070_v33 = vld [vmem:[#allocation37_spill] sm:$0xff]  ;;  %vm22075_vm6 = vmmov %vm21316_vm0 }
 0x7d4   : > { %v10062_v52 = vpop.permute.xlu0 %10061  ;;  %v10056_v1 = vpop.permute.xlu1 %10055  ;;  %vm22080_vm14 = vmmov %vm21316_vm0 }
 0x7d5   : > { %v10305_v14 = vadd.f32 %v10304_v39, %v10303_v59  ;;  %v10211_v57 = vmul.f32 %v10056_v1, %v22058_v7  ;;  %v10214_v50 = vmul.f32 %v10062_v52, %v19307_v18 }
 0x7d7   : > { %v10307_v43 = vadd.f32 %v10306_v41, %v10305_v14  ;;  %v10310_v49 = vsel %vm22060_vm7, %v10211_v57, 0.0  ;;  %v10316_v8 = vsel %vm22063_vm8, %v10214_v50, 0.0  ;;  %vm22078_vm7 = vmmov %vm21316_vm0 }
 0x7d8   : > { %v10058_v46 = vpop.permute.xlu0 %10057  ;;  %v10068_v42 = vpop.permute.xlu1 %10067  ;;  %vm22082_vm8 = vmmov %vm21316_vm0 }
 0x7d9   : > { %v10309_v5 = vadd.f32 %v10308_v22, %v10307_v43  ;;  %v10212_v31 = vmul.f32 %v10058_v46, %v19329_v56  ;;  %v10217_v11 = vmul.f32 %v10068_v42, %v22065_v62 }
 0x7db   : > { %v10311_v13 = vadd.f32 %v10310_v49, %v10309_v5  ;;  %v10312_v47 = vsel %vm22061_vm3, %v10212_v31, 0.0  ;;  %v10322_v37 = vsel %vm22069_vm12, %v10217_v11, 0.0  ;;  %vm22079_vm3 = vmmov %vm21316_vm0 }
 0x7dc   : > { %v10070_v36 = vpop.permute.xlu0 %10069  ;;  %v10064_v23 = vpop.permute.xlu1 %10063  ;;  %vm22087_vm12 = vmmov %vm21316_vm0 }
 0x7dd   : > { %v10313_v19 = vadd.f32 %v10312_v47, %v10311_v13  ;;  %v10215_v51 = vmul.f32 %v10064_v23, %v19350_v58  ;;  %v10218_v27 = vmul.f32 %v10070_v36, %v22068_v35 }
 0x7df   : > { %v10315_v2 = vadd.f32 %v10314_v30, %v10313_v19  ;;  %v10318_v28 = vsel %vm22066_vm11, %v10215_v51, 0.0  ;;  %v10324_v59 = vsel %vm22071_vm2, %v10218_v27, 0.0  ;;  %vm22084_vm11 = vmmov %vm21316_vm0 }
 0x7e0   : > { %v10066_v56 = vpop.permute.xlu0 %10065  ;;  %v10076_v16 = vpop.permute.xlu1 %10075  ;;  %vm22088_vm2 = vmmov %vm21316_vm0 }
 0x7e1   : > { %v10317_v29 = vadd.f32 %v10316_v8, %v10315_v2  ;;  %v10216_v6 = vmul.f32 %v10066_v56, %v22064_v45  ;;  %v10221_v14 = vmul.f32 %v10076_v16, %v19402_v55 }
 0x7e3   : > { %v10319_v18 = vadd.f32 %v10318_v28, %v10317_v29  ;;  %v10320_v38 = vsel %vm22067_vm13, %v10216_v6, 0.0  ;;  %v10330_v5 = vsel %vm21316_vm0, %v10221_v14, 0.0  ;;  %v22081_v28 = vld [vmem:[#allocation39_spill] sm:$0xff]  ;;  %vm22086_vm13 = vmmov %vm21316_vm0 }
 0x7e4   : > { %v10078_v61 = vpop.permute.xlu0 %10077  ;;  %v10072_v54 = vpop.permute.xlu1 %10071 }
 0x7e5   : > { %v10321_v58 = vadd.f32 %v10320_v38, %v10319_v18  ;;  %v10219_v3 = vmul.f32 %v10072_v54, %v22070_v33  ;;  %v10222_v43 = vmul.f32 %v10078_v61, %v19445_v15  ;;  %v22083_v61 = vld [vmem:[#allocation161_spill] sm:$0xff] }
 0x7e7   : > { %v10323_v25 = vadd.f32 %v10322_v37, %v10321_v58  ;;  %v10326_v41 = vsel %vm22072_vm10, %v10219_v3, 0.0  ;;  %v10332_v49 = vsel %vm22074_vm9, %v10222_v43, 0.0  ;;  %vm22089_vm10 = vmmov %vm21316_vm0 }
 0x7e8   : > { %v10074_v39 = vpop.permute.xlu0 %10073  ;;  %v10084_v0 = vpop.permute.xlu1 %10083  ;;  %vm22092_vm9 = vmmov %vm21316_vm0 }
 0x7e9   : > { %v10325_v52 = vadd.f32 %v10324_v59, %v10323_v25  ;;  %v10220_v1 = vmul.f32 %v10074_v39, %v19450_v21  ;;  %v10225_v50 = vmul.f32 %v10084_v0, %v19472_v60  ;;  %v22085_v25 = vld [vmem:[#allocation160_spill] sm:$0xff] }
 0x7eb   : > { %v10327_v7 = vadd.f32 %v10326_v41, %v10325_v52  ;;  %v10328_v57 = vsel %vm22073_vm4, %v10220_v1, 0.0  ;;  %v10338_v2 = vsel %vm22077_vm1, %v10225_v50, 0.0  ;;  %vm22091_vm4 = vmmov %vm21316_vm0 }
 0x7ec   : > { %v10086_v22 = vpop.permute.xlu0 %10085  ;;  %v10080_v46 = vpop.permute.xlu1 %10079  ;;  %vm22096_vm1 = vmmov %vm21316_vm0 }
 0x7ed   : > { %v10329_v42 = vadd.f32 %v10328_v57, %v10327_v7  ;;  %v10223_v31 = vmul.f32 %v10080_v46, %v19484_v53  ;;  %v10226_v19 = vmul.f32 %v10086_v22, %v19493_v10 }
 0x7ef   : > { %v10331_v17 = vadd.f32 %v10330_v5, %v10329_v42  ;;  %v10334_v36 = vsel %vm22075_vm6, %v10223_v31, 0.0  ;;  %v10340_v16 = vsel %vm22078_vm7, %v10226_v19, 0.0  ;;  %v22090_v31 = vld [vmem:[#allocation162_spill] sm:$0xff]  ;;  %vm22094_vm6 = vmmov %vm21316_vm0 }
 0x7f0   : > { %v10082_v21 = vpop.permute.xlu0 %10081  ;;  %v10092_v13 = vpop.permute.xlu1 %10091  ;;  %vm22099_vm7 = vmmov %vm21316_vm0 }
 0x7f1   : > { %v10333_v55 = vadd.f32 %v10332_v49, %v10331_v17  ;;  %v10224_v47 = vmul.f32 %v10082_v21, %v19517_v26  ;;  %v10229_v6 = vmul.f32 %v10092_v13, %v19535_v63 }
 0x7f3   : > { %v10335_v15 = vadd.f32 %v10334_v36, %v10333_v55  ;;  %v10336_v23 = vsel %vm22076_vm5, %v10224_v47, 0.0  ;;  %v10346_v27 = vsel %vm22082_vm8, %v10229_v6, 0.0  ;;  %vm22095_vm5 = vmmov %vm21316_vm0 }
 0x7f4   : > { %v10094_v30 = vpop.permute.xlu0 %10093  ;;  %v10088_v51 = vpop.permute.xlu1 %10087 }
 0x7f5   : > { %v10337_v53 = vadd.f32 %v10336_v23, %v10335_v15  ;;  %v10227_v8 = vmul.f32 %v10088_v51, %v19540_v32  ;;  %v10230_v18 = vmul.f32 %v10094_v30, %v22081_v28  ;;  %v22093_v23 = vld [vmem:[#allocation163_spill] sm:$0xff] }
 0x7f7   : > { %v10339_v56 = vadd.f32 %v10338_v2, %v10337_v53  ;;  %v10342_v62 = vsel %vm22079_vm3, %v10227_v8, 0.0  ;;  %v10348_v37 = vsel %vm22084_vm11, %v10230_v18, 0.0  ;;  %v22097_v2 = vld [vmem:[#allocation155_spill] sm:$0xff]  ;;  %vm22100_vm3 = vmmov %vm21316_vm0 }
 0x7f8   : > { %v10090_v26 = vpop.permute.xlu0 %10089  ;;  %v10100_v29 = vpop.permute.xlu1 %10099 }
 0x7f9   : > { %v10341_v60 = vadd.f32 %v10340_v16, %v10339_v56  ;;  %v10228_v45 = vmul.f32 %v10090_v26, %v19574_v44  ;;  %v10233_v59 = vmul.f32 %v10100_v29, %v22085_v25 }
 0x7fb   : > { %v10343_v10 = vadd.f32 %v10342_v62, %v10341_v60  ;;  %v10344_v11 = vsel %vm22080_vm14, %v10228_v45, 0.0  ;;  %v10354_v57 = vsel %vm22088_vm2, %v10233_v59, 0.0 }
 0x7fc   : > { %v10102_v38 = vpop.permute.xlu0 %10101  ;;  %v10096_v35 = vpop.permute.xlu1 %10095 }
 0x7fd   : > { %v10345_v32 = vadd.f32 %v10344_v11, %v10343_v10  ;;  %v10231_v54 = vmul.f32 %v10096_v35, %v22083_v61  ;;  %v10234_v1 = vmul.f32 %v10102_v38, %v19620_v34 }
 0x7ff   : > { %v10347_v58 = vadd.f32 %v10346_v27, %v10345_v32  ;;  %v10350_v39 = vsel %vm22086_vm13, %v10231_v54, 0.0  ;;  %v10356_v46 = vsel %vm22089_vm10, %v10234_v1, 0.0  ;;  %vm22104_vm10 = vmmov %vm21316_vm0 }
 0x800   : > { %v10098_v44 = vpop.permute.xlu0 %10097  ;;  %v10108_v33 = vpop.permute.xlu1 %10107 }
 0x801   : > { %v10349_v63 = vadd.f32 %v10348_v37, %v10347_v58  ;;  %v10232_v3 = vmul.f32 %v10098_v44, %v19624_v9  ;;  %v10237_v17 = vmul.f32 %v10108_v33, %v22090_v31 }
 0x803   : > { %v10351_v0 = vadd.f32 %v10350_v39, %v10349_v63  ;;  %v10352_v52 = vsel %vm22087_vm12, %v10232_v3, 0.0  ;;  %v10362_v15 = vsel %vm22092_vm9, %v10237_v17, 0.0  ;;  %vm22101_vm12 = vmmov %vm21316_vm0 }
 0x804   : > { %v10104_v14 = vpop.permute.xlu1 %10103 }
 0x805   : > { %v10353_v41 = vadd.f32 %v10352_v52, %v10351_v0  ;;  %v10110_v7 = vpop.permute.xlu0 %10109  ;;  %v10235_v43 = vmul.f32 %v10104_v14, %v19657_v12 }
 0x806   : > { %v10238_v13 = vmul.f32 %v10110_v7, %v19673_v4 }
 0x807   : > { %v10355_v22 = vadd.f32 %v10354_v57, %v10353_v41  ;;  %v10358_v49 = vsel %vm22091_vm4, %v10235_v43, 0.0 }
 0x808   : > { %v10429_v9 = vpop.permute.xlu1 %10428  ;;  %v10364_v51 = vsel %vm22094_vm6, %v10238_v13, 0.0  ;;  %vm22110_vm6 = vmmov %vm22096_vm1 }
 0x809   : > { %v10357_v42 = vadd.f32 %v10356_v46, %v10355_v22  ;;  %v10106_v5 = vpop.permute.xlu0 %10105  ;;  %v10434_v47 = vmul.f32 %v10429_v9, %v19286_v24  ;;  %v22098_v24 = vld [vmem:[#allocation41_spill] sm:$0xff] }
 0x80a   : > { %v10236_v21 = vmul.f32 %v10106_v5, %v19680_v40 }
 0x80b   : > { %v10359_v34 = vadd.f32 %v10358_v49, %v10357_v42  ;;  %v10436_v53 = vsel %vm22095_vm5, %v10434_v47, 0.0 }
 0x80c   : > { %v10360_v55 = vsel %vm21316_vm0, %v10236_v21, 0.0  ;;  %v10503_v36 = vpop.permute.xlu1 %10502  ;;  %vm22108_vm0 = vcmask 1043456  }
 0x80d   : > { %v10361_v12 = vadd.f32 %v10360_v55, %v10359_v34  ;;  %v10431_v50 = vpop.permute.xlu0 %10430  ;;  %v10508_v4 = vmul.f32 %v10503_v36, %v22097_v2  ;;  %vm22109_vm9 = vmmov %vm22108_vm0 }
 0x80e   : > { %v10435_v19 = vmul.f32 %v10431_v50, %v22093_v23 }
 0x80f   : > { %v10363_v30 = vadd.f32 %v10362_v15, %v10361_v12  ;;  %v10510_v45 = vsel %vm22099_vm7, %v10508_v4, 0.0 }
 0x810   : > { %v10437_v40 = vsel %vm22096_vm1, %v10435_v19, 0.0 }
 0x811   : > { %v10365_v8 = vadd.f32 %v10364_v51, %v10363_v30  ;;  %v10438_v56 = vadd.f32 %v10437_v40, %v10436_v53  ;;  %v10505_v16 = vpop.permute.xlu0 %10504  ;;  %v10520_v53 = vld [vmem:[%s19939_s4] sm:$0x7] }
 0x812   : > { %v10509_v26 = vmul.f32 %v10505_v16, %v22098_v24 }
 0x813   : > { %v10366_v29 = vrot.slane %v10365_v8, 4  ;;  %v10439_v60 = vrot.slane %v10438_v56, 4 }
 0x814   : > { %v10511_v6 = vsel %vm22100_vm3, %v10509_v26, 0.0 }
 0x815   : > { %v10367_v62 = vadd.f32 %v10366_v29, %v10365_v8  ;;  %v10440_v10 = vadd.f32 %v10439_v60, %v10438_v56  ;;  %v10512_v11 = vadd.f32 %v10511_v6, %v10510_v45 }
 0x817   : > { %v10368_v28 = vrot.slane %v10367_v62, 2  ;;  %v10441_v18 = vrot.slane %v10440_v10, 2  ;;  %v10513_v38 = vrot.slane %v10512_v11, 4 }
 0x819   : > { %v10369_v35 = vadd.f32 %v10368_v28, %v10367_v62  ;;  %v10442_v32 = vadd.f32 %v10441_v18, %v10440_v10  ;;  %v10514_v27 = vadd.f32 %v10513_v38, %v10512_v11 }
 0x81b   : > { %v10370_v61 = vrot.slane %v10369_v35, 1  ;;  %v10443_v54 = vrot.slane %v10442_v32, 1  ;;  %v10515_v58 = vrot.slane %v10514_v27, 2 }
 0x81d   : > { %v10444_v37 = vadd.f32 %v10443_v54, %v10442_v32  ;;  %v10516_v44 = vadd.f32 %v10515_v58, %v10514_v27  ;;  %v10371_v33 = vadd.f32 %v10370_v61, %v10369_v35 }
 0x81f   : > { %v10517_v63 = vrot.slane %v10516_v44, 1  ;;  %v10445_v25 = vsub.f32 %v10371_v33, %v10444_v37  ;;  %v10521_v33 = vld [vmem:[%s19940_s5] sm:$0x3] }
 0x821   : > { %v10518_v3 = vadd.f32 %v10517_v63, %v10516_v44 }
 0x823   : > { %v10519_v59 = vsub.f32 %v10445_v25, %v10518_v3 }
 0x824   : > { %v19870_v39 = vpop.permute.xlu1 %10529 }
 0x825   : > { %v10527_v0 = vmul.f32 0.00390625, %v10519_v59  ;;  %v10532_v52 = vmul.f32 %v19870_v39, %v19757_v20 }
 0x827   : > { %v10533_v1 = vsub.f32 %v10527_v0, %v10532_v52 }
 0x829   : > { %v10540_v14 = vmul.f32 %v10533_v1, %v10533_v1  ;;  %v10573_v50 = vsub.f32 0.0, %v10533_v1 }
 0x82a   : > { %v10536_v41 = vpop.permute.xlu0 %10535 }
 0x82b   : > { %v10539_v7 = vmul.f32 %v10536_v41, %v19770_v48  ;;  %v10538_v31 = vadd.f32 %v10536_v41, %v19770_v48 }
 0x82d   : > { %v10541_v57 = vsub.f32 %v10539_v7, %v10540_v14 }
 0x82f   : > { %v10542_v43 = vmax.f32 %v10541_v57, 1e-12  ;;  %v22102_v57 = vld [vmem:[#allocation6_spill] sm:$0xff] }
 0x831   : > { %12993 = vrsqrt.f32 %v10542_v43  ;;  %vm10545_vm14 = vcmp.eq.f32.partialorder %v10542_v43, inf  ;;  %v10548_v9 = vand.u32 2147483648, %v10542_v43  ;;  %vm10547_vm8 = vcmp.eq.f32.partialorder %v10542_v43, 0.0 }
 0x83e   : > { %v12994_v22 = vpop.eup %12993 }
 0x83f   : > { %v10544_v46 = vmul.f32 %v12994_v22, %v10542_v43 }
 0x841   : > { %v10546_v42 = vsel %vm10545_vm14, %v10542_v43, %v10544_v46  ;;  %v22103_v46 = vld [vmem:[#allocation7_spill] sm:$0xff] }
 0x842   : > { %v10549_v5 = vsel %vm10547_vm8, %v10548_v9, %v10546_v42  ;;  %vm10647_vm2 = vcmp.eq.s32.totalorder %v22103_v46, 4  ;;  %v22105_v9 = vld [vmem:[#allocation4_spill] sm:$0xff]  ;;  %v22106_v42 = vld [vmem:[#allocation5_spill] sm:$0xff] }
 0x843   : > { %10562 = vrot.lane.b32.xlu1 %v10549_v5, %s13160_s11  ;;  %v10550_v17 = vmul.f32 2.0, %v10549_v5  ;;  %v10571_v36 = vadd.f32 %v10549_v5, %v19770_v48  ;;  %vm22107_vm4 = vcmp.eq.s32.totalorder %v22105_v9, %v22106_v42 }
 0x845   : > { %v10551_v49 = vadd.f32 %v10550_v17, %v10538_v31 }
 0x847   : > { %12995 = vrsqrt.f32 %v10551_v49  ;;  %vm10554_vm11 = vcmp.eq.f32.partialorder %v10551_v49, inf  ;;  %v10557_v13 = vand.u32 2147483648, %v10551_v49  ;;  %vm10556_vm13 = vcmp.eq.f32.partialorder %v10551_v49, 0.0 }
 0x854   : > { %v12996_v21 = vpop.eup %12995 }
 0x855   : > { %v10553_v34 = vmul.f32 %v12996_v21, %v10551_v49  ;;  %v10660_v21 = vld [vmem:[#allocation3 + $0xc0] ss:$2 sm:$0xff] }
 0x857   : > { %v10555_v55 = vsel %vm10554_vm11, %v10551_v49, %v10553_v34  ;;  %v10656_v49 = vld [vmem:[#allocation3 + $0x40] ss:$2 sm:$0xff] }
 0x858   : > { %v10558_v47 = vsel %vm10556_vm13, %v10557_v13, %v10555_v55  ;;  %v10662_v34 = vld [vmem:[#allocation3 + $0x100] ss:$2 sm:$0xff] }
 0x859   : > { %v10559_v12 = vmul.f32 %v10558_v47, %v10549_v5  ;;  %v10664_v13 = vld [vmem:[#allocation3 + $0x140] ss:$2 sm:$0xff] }
 0x85a   : > { %v10666_v55 = vld [vmem:[#allocation3 + $0x180] ss:$2 sm:$0xff] }
 0x85b   : > { %12997 = vrcp.f32 %v10559_v12  ;;  %v10668_v47 = vld [vmem:[#allocation3 + $0x1c0] ss:$2 sm:$0xff]  ;;  %v10814_v12 = vld [vmem:[%s19941_s6] sm:$0xf] }
 0x868   : > { %v12998_v15 = vpop.eup %12997 }
 0x869   : > { %v10572_v23 = vmul.f32 %v12998_v15, %v10571_v36  ;;  %10567 = vrot.lane.b32.xlu0 %v12998_v15, %s13160_s11  ;;  %v10574_v19 = vmul.f32 %v12998_v15, %v10573_v50  ;;  %v10828_v50 = vsel %vm22109_vm9, %v10814_v12, 0 }
 0x86b   : > { %v10609_v30 = vrot.slane %v10572_v23, 6  ;;  %v10581_v51 = vrot.slane %v10574_v19, 7  ;;  %v10590_v56 = vrot.slane %v10572_v23, 7  ;;  %v10588_v24 = vmul.f32 %v10574_v19, %v10520_v53 }
 0x86c   : > { %v10602_v28 = vrot.slane %v10574_v19, 6 }
 0x86d   : > { %v10611_v40 = vmul.f32 %v10609_v30, %v10520_v53  ;;  %v10583_v2 = vmul.f32 %v10581_v51, %v10520_v53  ;;  %v10592_v16 = vmul.f32 %v10590_v56, %v10520_v53 }
 0x86e   : > { %v10604_v18 = vmul.f32 %v10602_v28, %v10520_v53 }
 0x86f   : > { %v10613_v4 = vrot.slane %v10611_v40, 1  ;;  %v10594_v26 = vrot.slane %v10592_v16, 1  ;;  %v10585_v32 = vrot.slane %v10583_v2, 1 }
 0x870   : > { %v10606_v58 = vrot.slane %v10604_v18, 1 }
 0x871   : > { %v10615_v8 = vadd.f32 %v10613_v4, %v10583_v2  ;;  %v10596_v29 = vadd.f32 %v10594_v26, %v10588_v24 }
 0x873   : > { %v10625_v11 = vrot.slane %v10615_v8, 1  ;;  %v10617_v44 = vmul.f32 %v10596_v29, %v19870_v39  ;;  %v10621_v3 = vmul.f32 %v10615_v8, %v19870_v39 }
 0x8b5   : > { %v10563_v60 = vpop.permute.xlu1 %10562 }
 0x8b6   : > { %v10565_v45 = vadd.f32 %v10563_v60, %v19770_v48 }
 0x8db   : > { %v10568_v6 = vpop.permute.xlu0 %10567 }
 0x8dc   : > { %v10570_v62 = vmul.f32 %v10568_v6, %v10565_v45 }
 0x8de   : > { %v10597_v10 = vrot.slane %v10570_v62, 7  ;;  %10576 = vrot.lane.b32.xlu0 %v10570_v62, %s13159_s10 }
 0x8e0   : > { %10598 = vrot.lane.b32.xlu1 %v10597_v10, %s13159_s10 }
 0x8e4   : > { %10626 = vrot.lane.b32.xlu1 %v10625_v11, %s13160_s11 }
 0x950   : > { %v10577_v38 = vpop.permute.xlu0 %10576 }
 0x951   : > { %v10579_v35 = vmul.f32 %v10577_v38, %v10520_v53 }
 0x952   : > { %v10599_v27 = vpop.permute.xlu1 %10598 }
 0x953   : > { %v10587_v61 = vadd.f32 %v10585_v32, %v10579_v35  ;;  %v10601_v54 = vmul.f32 %v10599_v27, %v10520_v53 }
 0x955   : > { %v10616_v48 = vmul.f32 %v10587_v61, %v19757_v20  ;;  %v10608_v37 = vadd.f32 %v10606_v58, %v10601_v54 }
 0x956   : > { %v10627_v41 = vpop.permute.xlu1 %10626 }
 0x957   : > { %v10620_v63 = vmul.f32 %v10608_v37, %v19757_v20  ;;  %v10631_v25 = vrot.slane %v10608_v37, 1  ;;  %v10618_v59 = vadd.f32 %v10617_v44, %v10616_v48  ;;  %v10629_v7 = vsel %vm22101_vm12, %v10587_v61, %v10627_v41 }
 0x958   : > { %v10645_v43 = vrot.slane %v10629_v7, %v22102_v57 }
 0x959   : > { %v10622_v0 = vadd.f32 %v10621_v3, %v10620_v63  ;;  %10632 = vrot.lane.b32.xlu0 %v10631_v25, %s13160_s11  ;;  %v10619_v52 = vsub.f32 %v10521_v33, %v10618_v59 }
 0x95a   : > { %v10646_v5 = vsel %vm22107_vm4, %v10645_v43, 0.0 }
 0x95b   : > { %v10623_v1 = vsub.f32 %v10521_v33, %v10622_v0 }
 0x95d   : > { %v10637_v14 = vrot.slane %v10623_v1, 1 }
 0x95f   : > { %10638 = vrot.lane.b32.xlu1 %v10637_v14, %s13160_s11 }
 0x9cb   : > { %v10633_v22 = vpop.permute.xlu0 %10632 }
 0x9cc   : > { %v10635_v20 = vsel %vm22104_vm10, %v10596_v29, %v10633_v22 }
 0x9cd   : > { %v10651_v39 = vrot.slane %v10635_v20, %v22102_v57 }
 0x9cf   : > { %v10652_v31 = vsel %vm10647_vm2, %v10651_v39, 0.0 }
 0x9d0   : > { %v10653_v17 = vadd.f32 %v10652_v31, %v10646_v5 }
 0x9d1   : > { %v10639_v36 = vpop.permute.xlu1 %10638 }
 0x9d2   : > { %12771 = vmatprep.subr.mxu0 %v10653_v17  ;;  %12795 = vmatprep.subr.mxu1 %v10653_v17  ;;  %v10641_v15 = vsel %vm22110_vm6, %v10619_v52, %v10639_v36 }
 0x9d3   : > { %12772 = vmatpush3.msra.mxu0 %v10653_v17  ;;  %12796 = vmatpush3.msra.mxu1 %v10653_v17  ;;  %v10672_v23 = vrot.slane %v10641_v15, %v22102_v57 }
 0x9d4   : > { %12774 = vmatmul.mubr.msk.f32.vlgmr.msra.gmra.mxu0 %vm9524_vm15, %v10656_v49  ;;  %12777 = vmatmul.mubr.msk.f32.vlgmr.msra.gmra.mxu1 %vm9524_vm15, %v10660_v21 }
 0x9d5   : > { %12779 = vmatprep.mubr.msk.f32.mxu1 %vm9524_vm15, %v10662_v34  ;;  %12806 = vmatprep.subr.msk.bf16.mxu1 %vm22108_vm0, %v10814_v12 }
 0x9d6   : > { %12786 = vmatpush3.bf16.msra.mxu1 %v10828_v50 }
 0x9d8   : > { %12780 = vmatmul.mubr.msk.f32.gmra.mxu1 %vm9524_vm15, %v10664_v13 }
 0x9d9   : > { %12782 = vmatprep.mubr.msk.f32.mxu1 %vm9524_vm15, %v10666_v55 }
 0x9dc   : > { %12783 = vmatmul.mubr.msk.f32.gmra.mxu1 %vm9524_vm15, %v10668_v47 }
 0xa94   : > { %v12775_v19 = vpop.f32.mrf.mxu0  ;;  %v12778_v30 = vpop.f32.mrf.mxu1 }
 0xa95   : > { %v10769_v51 = vadd.f32 %v12775_v19, %v10672_v23  ;;  %v10779_v53 = vadd.f32 %v12778_v30, %v10672_v23 }
 0xa96   : > { %v10763_v40 = vpop.f32.mrf.mxu0  ;;  %v10773_v2 = vpop.f32.mrf.mxu1 }
 0xa97   : > { %v10764_v4 = vadd.f32 %v10763_v40, %v10672_v23  ;;  %v10774_v8 = vadd.f32 %v10773_v2, %v10672_v23  ;;  %v10803_v56 = vmax.f32 %v10769_v51, 0.0  ;;  %v10805_v24 = vmax.f32 %v10779_v53, 0.0 }
 0xa98   : > { %v12781_v16 = vpop.f32.mrf.mxu1 }
 0xa99   : > { %v10802_v26 = vmax.f32 %v10764_v4, 0.0  ;;  %v10804_v29 = vmax.f32 %v10774_v8, 0.0  ;;  %v10789_v60 = vadd.f32 %v12781_v16, %v10672_v23 }
 0xa9a   : > { %v10783_v45 = vpop.f32.mrf.mxu1 }
 0xa9b   : > { %v10810_v6 = vpack.c.bf16 %v10803_v56, %v10802_v26  ;;  %v10811_v62 = vpack.c.bf16 %v10805_v24, %v10804_v29  ;;  %v10784_v10 = vadd.f32 %v10783_v45, %v10672_v23  ;;  %v10807_v28 = vmax.f32 %v10789_v60, 0.0 }
 0xa9c   : > { %v12784_v11 = vpop.f32.mrf.mxu1 }
 0xa9d   : > { %v10806_v18 = vmax.f32 %v10784_v10, 0.0  ;;  %v10799_v38 = vadd.f32 %v12784_v11, %v10672_v23  ;;  %12787 = vmatprep.mubr.msk.bf16.mxu1 %vm9524_vm15, %v10810_v6 }
 0xa9e   : > { %v10793_v35 = vpop.f32.mrf.mxu1  ;;  %12788 = vmatmul.mubr.msk.bf16.vlgmr.msra.gmra.mxu1 %vm9524_vm15, %v10811_v62 }
 0xa9f   : > { %v10812_v32 = vpack.c.bf16 %v10807_v28, %v10806_v18  ;;  %v10794_v27 = vadd.f32 %v10793_v35, %v10672_v23  ;;  %v10809_v61 = vmax.f32 %v10799_v38, 0.0 }
 0xaa1   : > { %v10808_v54 = vmax.f32 %v10794_v27, 0.0  ;;  %12791 = vmatprep.mubr.msk.bf16.mxu1 %vm9524_vm15, %v10812_v32 }
 0xaa3   : > { %v10813_v58 = vpack.c.bf16 %v10809_v61, %v10808_v54 }
 0xaa6   : > { %12792 = vmatmul.mubr.msk.bf16.gmra.mxu1 %vm9524_vm15, %v10813_v58 }
 0xb5e   : > { %v12789_v48 = vpop.f32.mrf.mxu1 }
 0xb5f   : > { %10897 = vst.msk [vmem:[%s278_s21 + $0x10] sm:$0xff] %vm9524_vm15, %v12789_v48 }
 0xb60   : > { %v10864_v37 = vpop.f32.mrf.mxu1 }
 0xb61   : > { %10895 = vst.msk [vmem:[%s278_s21] sm:$0xff] %vm9524_vm15, %v10864_v37 }
 0xb62   : > { %v12790_v44 = vpop.f32.mrf.mxu1 }
 0xb63   : > { %10898 = vst.msk [vmem:[%s278_s21 + $0x18] sm:$0xff] %vm9524_vm15, %v12790_v44 }
 0xb64   : > { %v10867_v33 = vpop.f32.mrf.mxu1 }
 0xb65   : > { %10896 = vst.msk [vmem:[%s278_s21 + $0x8] sm:$0xff] %vm9524_vm15, %v10867_v33 }
 0xb66   : > { %v12793_v63 = vpop.f32.mrf.mxu1 }
 0xb67   : > { %10901 = vst.msk [vmem:[%s278_s21 + $0x30] sm:$0xff] %vm9524_vm15, %v12793_v63 }
 0xb68   : > { %v10880_v3 = vpop.f32.mrf.mxu1 }
 0xb69   : > { %10899 = vst.msk [vmem:[%s278_s21 + $0x20] sm:$0xff] %vm9524_vm15, %v10880_v3 }
 0xb6a   : > { %v12794_v25 = vpop.f32.mrf.mxu1 }
 0xb6b   : > { %10902 = vst.msk [vmem:[%s278_s21 + $0x38] sm:$0xff] %vm9524_vm15, %v12794_v25 }
 0xb6c   : > { %v10883_v59 = vpop.f32.mrf.mxu1 }
 0xb6d   : > { %10900 = vst.msk [vmem:[%s278_s21 + $0x28] sm:$0xff] %vm9524_vm15, %v10883_v59 }
 0xb6e PF: > { %s17_s24 = sadd.s32 1, %s13154_s24  }
 0xb6f   : > { %p14_p4 = scmp.ge.s32.totalorder %s17_s24, 4  }
 0xb71   :  { %16 = sbr.rel (!%p14_p4) target bundleno = 1 (0x1), region = 97 }

</bundles_post_ra>
